<compile_context>
chip_gen: v5e
topology: v5e:2x2
jax: 0.10.0
libtpu: 0.0.40
codegen_flags: <defaults>
</compile_context>

<pallas_src>
import math

import jax
import jax.numpy as jnp
from jax.experimental import pallas as pl
from jax.experimental.pallas import tpu as pltpu

LN_EPS = 1e-5  # PyTorch nn.LayerNorm default


# ----------------------------------------------------------------------------
# Shared math helpers (used by BOTH the Pallas kernel and the pure-JAX ref).
# ----------------------------------------------------------------------------
def _stable_softmax(x):
    x = x - jnp.max(x, axis=-1, keepdims=True)
    e = jnp.exp(x)
    return e / jnp.sum(e, axis=-1, keepdims=True)


def _layer_norm(x, g, b):
    mu = jnp.mean(x, axis=-1, keepdims=True)
    xc = x - mu
    var = jnp.mean(xc * xc, axis=-1, keepdims=True)
    return xc * jax.lax.rsqrt(var + LN_EPS) * g + b


# ----------------------------------------------------------------------------
# Pallas kernel: the entire TwoWayTransformer forward for one batch element.
# ----------------------------------------------------------------------------
def _make_kernel(*, depth, num_heads):
    f32 = jnp.float32
    bf16 = jnp.bfloat16
    # Contract the last axis of both operands: s = q @ k^T without forming k^T.
    qk_dims = (((1,), (1,)), ((), ()))

    def _attention(q, k, v, wq, bq, wk, bk, wv, bv, wo, bo):
        # q: (Nq, C) f32; k, v: (Nk, C) f32; w*: bf16; b*: (1, D)/(1, C) f32.
        # NOTE: 1/sqrt(head_dim) is pre-folded into wq/bq (prepare_weights).
        qp = (jnp.dot(q.astype(bf16), wq, preferred_element_type=f32) + bq).astype(bf16)
        kp = (jnp.dot(k.astype(bf16), wk, preferred_element_type=f32) + bk).astype(bf16)
        vp = (jnp.dot(v.astype(bf16), wv, preferred_element_type=f32) + bv).astype(bf16)
        D = wq.shape[-1]
        hd = D // num_heads
        out = jnp.zeros((q.shape[0], wo.shape[-1]), f32)
        # Static per-head loop (few heads).  A head-batched dot_general would
        # reintroduce the (H, N, hd) relayout removed above, so per-head 2-D
        # dots with per-head output-projection accumulation are kept.
        for h in range(num_heads):
            sl = slice(h * hd, (h + 1) * hd)
            s = jax.lax.dot_general(qp[:, sl], kp[:, sl], qk_dims,
                                    preferred_element_type=f32)        # (Nq, Nk)
            s = s - jnp.max(s, axis=-1, keepdims=True)
            e = jnp.exp(s)
            p = e * pl.reciprocal(jnp.sum(e, axis=-1, keepdims=True), approx=True)
            oh = jnp.dot(p.astype(bf16), vp[:, sl], preferred_element_type=f32)
            out = out + jnp.dot(oh.astype(bf16), wo[sl, :],
                                preferred_element_type=f32)
        return out + bo

    def kernel(pt_ref, img_ref, ipe_ref, ff_ref,
               w_sa_ref, b_sa_ref, w_ci_ref, b_ci_ref, wo_ci_ref, bo_ci_ref,
               w_m1_ref, b_m1_ref, w_m2_ref, b_m2_ref, ln_gb_ref,
               w_fin_ref, b_fin_ref, wo_fin_ref, bo_fin_ref, ln_fin_ref,
               q_out_ref, k_out_ref, inner_out_ref):
        query_pe = pt_ref[0]          # (N, C) point_embedding (initial queries)
        key_pe = ipe_ref[0]           # (L, C)
        fused = ff_ref[0]             # (L, C)
        queries = query_pe
        keys = img_ref[0]             # (L, C)

        for i in range(depth):        # static unroll: depth is small (=2)
            keys = keys + fused       # reference adds fused_feat every layer
            lnp = ln_gb_ref[i]        # (8, C) aligned slab: rows 0..3 = gammas,
                                      # rows 4..7 = betas of norm1..norm4

            # (1) self-attention of sparse queries (skip_first_layer_pe on i==0)
            r = 4 * i
            q_in = queries if i == 0 else queries + query_pe
            sa = _attention(q_in, q_in, queries,
                            w_sa_ref[r + 0], b_sa_ref[r + 0:r + 1, :],
                            w_sa_ref[r + 1], b_sa_ref[r + 1:r + 2, :],
                            w_sa_ref[r + 2], b_sa_ref[r + 2:r + 3, :],
                            w_sa_ref[r + 3], b_sa_ref[r + 3:r + 4, :])
            queries = sa if i == 0 else queries + sa
            queries = _layer_norm(queries, lnp[0:1, :], lnp[4:5, :])

            # (2) cross-attention: tokens -> image
            c = 3 * i
            q = queries + query_pe
            k = keys + key_pe
            queries = queries + _attention(
                q, k, keys,
                w_ci_ref[c + 0], b_ci_ref[c + 0:c + 1, :],
                w_ci_ref[c + 1], b_ci_ref[c + 1:c + 2, :],
                w_ci_ref[c + 2], b_ci_ref[c + 2:c + 3, :],
                wo_ci_ref[i], bo_ci_ref[i:i + 1, :])
            queries = _layer_norm(queries, lnp[1:2, :], lnp[5:6, :])

            # (3) MLP on sparse tokens (bf16 matmuls, f32 bias / ReLU / residual)
            hmid = jnp.maximum(
                jnp.dot(queries.astype(bf16), w_m1_ref[i],
                        preferred_element_type=f32) + b_m1_ref[i:i + 1, :], 0.0)
            mlp_out = (jnp.dot(hmid.astype(bf16), w_m2_ref[i],
                               preferred_element_type=f32) + b_m2_ref[i:i + 1, :])
            queries = _layer_norm(queries + mlp_out, lnp[2:3, :], lnp[6:7, :])

            # (4) cross_attn_image_to_token: its output is never added back to
            #     `keys` in this densesam variant's forward -> elided
            #     (output-equivalent w.r.t. the module spec).
            keys = _layer_norm(keys, lnp[3:4, :], lnp[7:8, :])
            inner_out_ref[0, i, :, :] = keys.astype(inner_out_ref.dtype)

        # final token -> image attention + final LayerNorm
        q = queries + query_pe
        k = keys + key_pe
        queries = queries + _attention(
            q, k, keys,
            w_fin_ref[0], b_fin_ref[0:1, :],
            w_fin_ref[1], b_fin_ref[1:2, :],
            w_fin_ref[2], b_fin_ref[2:3, :],
            wo_fin_ref[...], bo_fin_ref[...])
        queries = _layer_norm(queries, ln_fin_ref[0:1, :], ln_fin_ref[1:2, :])

        q_out_ref[0] = queries.astype(q_out_ref.dtype)
        k_out_ref[0] = keys.astype(k_out_ref.dtype)

    return kernel


def two_way_transformer_forward(prep, image_embedding, image_pe, point_embedding,
                                fused_feat, *, depth, num_heads):
    """Fused forward.  image_embedding/image_pe: (B, C, h, w); point_embedding:
    (B, N, C); fused_feat: (B, h*w, C) or None.  Returns (queries f32, keys bf16,
    [per-layer inner embeds (B, h, w, C) bf16])."""
    B, C, h, w = image_embedding.shape
    L = h * w
    N = point_embedding.shape[1]

    # NCHW -> (B, L, C) token layout (== flatten(2).permute(0, 2, 1)).
    img = jnp.transpose(image_embedding.reshape(B, C, L), (0, 2, 1))
    ipe = jnp.transpose(image_pe.reshape(B, C, L), (0, 2, 1))
    if fused_feat is None:
        fused_feat = jnp.zeros((B, L, C), jnp.float32)

    kernel = _make_kernel(depth=depth, num_heads=num_heads)

    weight_names = ("w_sa", "b_sa", "w_ci", "b_ci", "wo_ci", "bo_ci",
                    "w_m1", "b_m1", "w_m2", "b_m2", "ln_gb",
                    "w_fin", "b_fin", "wo_fin", "bo_fin", "ln_fin")
    weights = [prep[name] for name in weight_names]

    def tok_spec(n):
        return pl.BlockSpec((1, n, C), lambda b: (b, 0, 0))

    def weight_spec(a, single_buffer):
        zeros = (0,) * a.ndim
        if single_buffer:
            # Grid-invariant weights: fetched once, never re-indexed ->
            # single-buffer them to halve their VMEM footprint.
            return pl.BlockSpec(a.shape, lambda b: zeros,
                                pipeline_mode=pl.Buffered(1))
        return pl.BlockSpec(a.shape, lambda b: zeros)

    # keys / inner embeds written back in bf16 (dominant output bytes); at real
    # SAM C=256 these blocks are lane-dense (C % 128 == 0).
    out_shapes = (
        jax.ShapeDtypeStruct((B, N, C), jnp.float32),          # queries
        jax.ShapeDtypeStruct((B, L, C), jnp.bfloat16),         # keys
        jax.ShapeDtypeStruct((B, depth, L, C), jnp.bfloat16),  # inner embeds
    )
    out_specs = [
        pl.BlockSpec((1, N, C), lambda b: (b, 0, 0)),
        pl.BlockSpec((1, L, C), lambda b: (b, 0, 0)),
        pl.BlockSpec((1, depth, L, C), lambda b: (b, 0, 0, 0)),
    ]

    def build(single_buffer):
        return pl.pallas_call(
            kernel,
            out_shape=out_shapes,
            grid_spec=pltpu.PrefetchScalarGridSpec(
                num_scalar_prefetch=0,
                grid=(B,),    # keep B even so both v7x TensorCores are fed
                in_specs=[tok_spec(N), tok_spec(L), tok_spec(L), tok_spec(L)]
                         + [weight_spec(a, single_buffer) for a in weights],
                out_specs=out_specs,
            ),
            compiler_params=pltpu.CompilerParams(
                dimension_semantics=("parallel",),
                vmem_limit_bytes=48 * 1024 * 1024),
        )

    args = (point_embedding, img, ipe, fused_feat, *weights)
    try:
        q_out, k_out, inner = build(True)(*args)
    except Exception:
        # TODO(synk): some jax builds reject pipeline_mode=pl.Buffered(1);
        # fall back to default double-buffered weight blocks.
        q_out, k_out, inner = build(False)(*args)

    inners = [inner[:, i].reshape(B, h, w, C) for i in range(depth)]
    return q_out, k_out, inners


# ----------------------------------------------------------------------------
# Parameter construction / preparation.
# ----------------------------------------------------------------------------
def init_params(key, *, depth, C, mlp_dim, downsample_rate):
    Cd = C // downsample_rate
    M = mlp_dim
    ks = iter(jax.random.split(key, 32))

    def mat(shape):
        fan_in = shape[-2]
        return (0.5 / math.sqrt(fan_in)) * jax.random.normal(next(ks), shape, jnp.float32)

    def vec(shape, scale=0.05):
        return scale * jax.random.normal(next(ks), shape, jnp.float32)

    return dict(
        w_sa=mat((4 * depth, C, C)),        # per layer: q/k/v/out proj (C, C)
        b_sa=vec((4 * depth, C)),
        w_ci=mat((3 * depth, C, Cd)),       # token->image q/k/v proj
        b_ci=vec((3 * depth, Cd)),
        wo_ci=mat((depth, Cd, C)),
        bo_ci=vec((depth, C)),
        w_m1=mat((depth, C, M)),
        b_m1=vec((depth, M)),
        w_m2=mat((depth, M, C)),
        b_m2=vec((depth, C)),
        ln_g=1.0 + vec((4 * depth, C)),     # norm1..norm4 per layer
        ln_b=vec((4 * depth, C)),
        w_fin=mat((3, C, Cd)),              # final token->image q/k/v proj
        b_fin=vec((3, Cd)),
        wo_fin=mat((Cd, C)),
        bo_fin=vec((1, C)),
        ln_fin=jnp.stack([1.0 + vec((C,)), vec((C,))], axis=0),
    )


def prepare_weights(params, *, num_heads):
    """Fold 1/sqrt(head_dim) into the q-projection weights/biases, pack the
    LayerNorm params into an 8-row aligned per-layer slab, and pre-cast matmul
    weights to bf16 (MXU operands).  Biases / LN params stay f32."""
    prep = dict(params)
    depth = params["w_m1"].shape[0]
    C = params["w_sa"].shape[-1]
    Cd = params["w_ci"].shape[-1]
    s_sa = 1.0 / math.sqrt(C // num_heads)
    s_x = 1.0 / math.sqrt(Cd // num_heads)

    scale_sa = jnp.where(jnp.arange(4 * depth) % 4 == 0, s_sa, 1.0).astype(jnp.float32)
    prep["w_sa"] = params["w_sa"] * scale_sa[:, None, None]
    prep["b_sa"] = params["b_sa"] * scale_sa[:, None]

    scale_ci = jnp.where(jnp.arange(3 * depth) % 3 == 0, s_x, 1.0).astype(jnp.float32)
    prep["w_ci"] = params["w_ci"] * scale_ci[:, None, None]
    prep["b_ci"] = params["b_ci"] * scale_ci[:, None]

    scale_fin = jnp.array([s_x, 1.0, 1.0], jnp.float32)
    prep["w_fin"] = params["w_fin"] * scale_fin[:, None, None]
    prep["b_fin"] = params["b_fin"] * scale_fin[:, None]

    # (depth, 8, C): rows 0..3 = gamma(norm1..4), rows 4..7 = beta(norm1..4).
    prep["ln_gb"] = jnp.concatenate(
        [params["ln_g"].reshape(depth, 4, C), params["ln_b"].reshape(depth, 4, C)],
        axis=1)
    prep.pop("ln_g")
    prep.pop("ln_b")

    for name in ("w_sa", "w_ci", "wo_ci", "w_m1", "w_m2", "w_fin", "wo_fin"):
        prep[name] = prep[name].astype(jnp.bfloat16)
    return prep


# ----------------------------------------------------------------------------
# Pure-JAX reference mirroring the PyTorch forward (same bf16-operand /
# f32-accumulate numerics and the same folded-scale weights as the kernel).
# ----------------------------------------------------------------------------
def reference_forward(prep, image_embedding, image_pe, point_embedding, fused_feat,
                      *, depth, num_heads):
    B, C, h, w = image_embedding.shape
    L = h * w
    bf16, f32 = jnp.bfloat16, jnp.float32

    def attention(q, k, v, wq, bq, wk, bk, wv, bv, wo, bo):
        qp = jnp.einsum("bnc,cd->bnd", q.astype(bf16), wq, preferred_element_type=f32) + bq
        kp = jnp.einsum("bnc,cd->bnd", k.astype(bf16), wk, preferred_element_type=f32) + bk
        vp = jnp.einsum("bnc,cd->bnd", v.astype(bf16), wv, preferred_element_type=f32) + bv
        D = wq.shape[-1]
        hd = D // num_heads
        qh = qp.reshape(B, -1, num_heads, hd).transpose(0, 2, 1, 3)
        kh = kp.reshape(B, -1, num_heads, hd).transpose(0, 2, 1, 3)
        vh = vp.reshape(B, -1, num_heads, hd).transpose(0, 2, 1, 3)
        # NOTE: 1/sqrt(hd) is already folded into wq/bq by prepare_weights().
        s = jnp.einsum("bhqd,bhkd->bhqk", qh.astype(bf16), kh.astype(bf16),
                       preferred_element_type=f32)
        p = _stable_softmax(s)
        o = jnp.einsum("bhqk,bhkd->bhqd", p.astype(bf16), vh.astype(bf16),
                       preferred_element_type=f32)
        o = o.transpose(0, 2, 1, 3).reshape(B, -1, D)
        return jnp.einsum("bnd,dc->bnc", o.astype(bf16), wo,
                          preferred_element_type=f32) + bo

    keys = jnp.transpose(image_embedding.reshape(B, C, L), (0, 2, 1))
    key_pe = jnp.transpose(image_pe.reshape(B, C, L), (0, 2, 1))
    queries = point_embedding
    query_pe = point_embedding
    if fused_feat is None:
        fused_feat = jnp.zeros_like(keys)
    ln_gb = prep["ln_gb"]

    inners = []
    for i in range(depth):
        keys = keys + fused_feat
        r, c = 4 * i, 3 * i

        q_in = queries if i == 0 else queries + query_pe
        sa = attention(q_in, q_in, queries,
                       prep["w_sa"][r + 0], prep["b_sa"][r + 0],
                       prep["w_sa"][r + 1], prep["b_sa"][r + 1],
                       prep["w_sa"][r + 2], prep["b_sa"][r + 2],
                       prep["w_sa"][r + 3], prep["b_sa"][r + 3])
        queries = sa if i == 0 else queries + sa
        queries = _layer_norm(queries, ln_gb[i, 0], ln_gb[i, 4])

        q = queries + query_pe
        k = keys + key_pe
        queries = queries + attention(q, k, keys,
                                      prep["w_ci"][c + 0], prep["b_ci"][c + 0],
                                      prep["w_ci"][c + 1], prep["b_ci"][c + 1],
                                      prep["w_ci"][c + 2], prep["b_ci"][c + 2],
                                      prep["wo_ci"][i], prep["bo_ci"][i])
        queries = _layer_norm(queries, ln_gb[i, 1], ln_gb[i, 5])

        hmid = jnp.maximum(
            jnp.einsum("bnc,cm->bnm", queries.astype(bf16), prep["w_m1"][i],
                       preferred_element_type=f32) + prep["b_m1"][i], 0.0)
        mlp_out = jnp.einsum("bnm,mc->bnc", hmid.astype(bf16), prep["w_m2"][i],
                             preferred_element_type=f32) + prep["b_m2"][i]
        queries = _layer_norm(queries + mlp_out, ln_gb[i, 2], ln_gb[i, 6])

        # cross_attn_image_to_token's output is unused by this variant's forward.
        keys = _layer_norm(keys, ln_gb[i, 3], ln_gb[i, 7])
        inners.append(keys.reshape(B, h, w, C))

    q = queries + query_pe
    k = keys + key_pe
    queries = queries + attention(q, k, keys,
                                  prep["w_fin"][0], prep["b_fin"][0],
                                  prep["w_fin"][1], prep["b_fin"][1],
                                  prep["w_fin"][2], prep["b_fin"][2],
                                  prep["wo_fin"], prep["bo_fin"])
    queries = _layer_norm(queries, prep["ln_fin"][0], prep["ln_fin"][1])
    return queries, keys, inners


# ----------------------------------------------------------------------------
if __name__ == "__main__":
    B = 2            # batch (even: feeds both v7x TensorCores)
    C = 32           # embedding_dim
    NUM_HEADS = 2
    MLP_DIM = 64
    DEPTH = 2
    DOWNSAMPLE = 2   # attention_downsample_rate
    H = W = 8        # image feature map -> L = 64 image tokens
    N_POINTS = 8

    key = jax.random.PRNGKey(0)
    k_img, k_pe, k_pt, k_ff, k_par = jax.random.split(key, 5)
    image_embedding = jax.random.normal(k_img, (B, C, H, W), jnp.float32)
    image_pe = jax.random.normal(k_pe, (B, C, H, W), jnp.float32)
    point_embedding = jax.random.normal(k_pt, (B, N_POINTS, C), jnp.float32)
    fused_feat = jax.random.normal(k_ff, (B, H * W, C), jnp.float32)

    params = init_params(k_par, depth=DEPTH, C=C, mlp_dim=MLP_DIM,
                         downsample_rate=DOWNSAMPLE)
    prep = prepare_weights(params, num_heads=NUM_HEADS)

    q_out, k_out, inners = two_way_transformer_forward(
        prep, image_embedding, image_pe, point_embedding, fused_feat,
        depth=DEPTH, num_heads=NUM_HEADS)
    jax.block_until_ready((q_out, k_out, inners))

    assert q_out.shape == (B, N_POINTS, C)
    assert k_out.shape == (B, H * W, C)
    assert len(inners) == DEPTH and inners[0].shape == (B, H, W, C)

    q_ref, k_ref, inners_ref = reference_forward(
        prep, image_embedding, image_pe, point_embedding, fused_feat,
        depth=DEPTH, num_heads=NUM_HEADS)

    def check(name, a, b, atol=2e-2, rtol=2e-2):
        a = a.astype(jnp.float32)
        b = b.astype(jnp.float32)
        err = float(jnp.max(jnp.abs(a - b)))
        if not jnp.allclose(a, b, atol=atol, rtol=rtol):
            raise AssertionError(f"{name} mismatch vs reference, max_err={err}")

    check("queries", q_out, q_ref)
    check("keys", k_out, k_ref)
    for i in range(DEPTH):
        check(f"inner_embeds[{i}]", inners[i], inners_ref[i])

    print("KERNEL_OK")
</pallas_src>

<mosaic_0001>
module attributes {stable_mosaic.version = 11 : i64} {
  func.func @kernel(%arg0: i32, %arg1: memref<1x8x32xf32, #tpu.memory_space<vmem>>, %arg2: memref<1x64x32xf32, #tpu.memory_space<vmem>>, %arg3: memref<1x64x32xf32, #tpu.memory_space<vmem>>, %arg4: memref<1x64x32xf32, #tpu.memory_space<vmem>>, %arg5: memref<8x32x32xbf16, #tpu.memory_space<vmem>>, %arg6: memref<8x32xf32, #tpu.memory_space<vmem>>, %arg7: memref<6x32x16xbf16, #tpu.memory_space<vmem>>, %arg8: memref<6x16xf32, #tpu.memory_space<vmem>>, %arg9: memref<2x16x32xbf16, #tpu.memory_space<vmem>>, %arg10: memref<2x32xf32, #tpu.memory_space<vmem>>, %arg11: memref<2x32x64xbf16, #tpu.memory_space<vmem>>, %arg12: memref<2x64xf32, #tpu.memory_space<vmem>>, %arg13: memref<2x64x32xbf16, #tpu.memory_space<vmem>>, %arg14: memref<2x32xf32, #tpu.memory_space<vmem>>, %arg15: memref<2x8x32xf32, #tpu.memory_space<vmem>>, %arg16: memref<3x32x16xbf16, #tpu.memory_space<vmem>>, %arg17: memref<3x16xf32, #tpu.memory_space<vmem>>, %arg18: memref<16x32xbf16, #tpu.memory_space<vmem>>, %arg19: memref<1x32xf32, #tpu.memory_space<vmem>>, %arg20: memref<2x32xf32, #tpu.memory_space<vmem>>, %arg21: memref<1x8x32xf32, #tpu.memory_space<vmem>>, %arg22: memref<1x64x32xbf16, #tpu.memory_space<vmem>>, %arg23: memref<1x2x64x32xbf16, #tpu.memory_space<vmem>>) attributes {dimension_semantics = [#tpu.dimension_semantics<parallel>], iteration_bounds = array<i64: 2>, scalar_prefetch = 0 : i64, scratch_operands = 0 : i64, tpu.core_type = #tpu.core_type<tc>, window_params = [{transform_indices = @transform_0, window_bounds = array<i64: 1, 8, 32>}, {transform_indices = @transform_1, window_bounds = array<i64: 1, 64, 32>}, {transform_indices = @transform_2, window_bounds = array<i64: 1, 64, 32>}, {transform_indices = @transform_3, window_bounds = array<i64: 1, 64, 32>}, {pipeline_mode = #tpu.pipeline_mode<synchronous>, transform_indices = @transform_4, window_bounds = array<i64: 8, 32, 32>}, {pipeline_mode = #tpu.pipeline_mode<synchronous>, transform_indices = @transform_5, window_bounds = array<i64: 8, 32>}, {pipeline_mode = #tpu.pipeline_mode<synchronous>, transform_indices = @transform_6, window_bounds = array<i64: 6, 32, 16>}, {pipeline_mode = #tpu.pipeline_mode<synchronous>, transform_indices = @transform_7, window_bounds = array<i64: 6, 16>}, {pipeline_mode = #tpu.pipeline_mode<synchronous>, transform_indices = @transform_8, window_bounds = array<i64: 2, 16, 32>}, {pipeline_mode = #tpu.pipeline_mode<synchronous>, transform_indices = @transform_9, window_bounds = array<i64: 2, 32>}, {pipeline_mode = #tpu.pipeline_mode<synchronous>, transform_indices = @transform_10, window_bounds = array<i64: 2, 32, 64>}, {pipeline_mode = #tpu.pipeline_mode<synchronous>, transform_indices = @transform_11, window_bounds = array<i64: 2, 64>}, {pipeline_mode = #tpu.pipeline_mode<synchronous>, transform_indices = @transform_12, window_bounds = array<i64: 2, 64, 32>}, {pipeline_mode = #tpu.pipeline_mode<synchronous>, transform_indices = @transform_13, window_bounds = array<i64: 2, 32>}, {pipeline_mode = #tpu.pipeline_mode<synchronous>, transform_indices = @transform_14, window_bounds = array<i64: 2, 8, 32>}, {pipeline_mode = #tpu.pipeline_mode<synchronous>, transform_indices = @transform_15, window_bounds = array<i64: 3, 32, 16>}, {pipeline_mode = #tpu.pipeline_mode<synchronous>, transform_indices = @transform_16, window_bounds = array<i64: 3, 16>}, {pipeline_mode = #tpu.pipeline_mode<synchronous>, transform_indices = @transform_17, window_bounds = array<i64: 16, 32>}, {pipeline_mode = #tpu.pipeline_mode<synchronous>, transform_indices = @transform_18, window_bounds = array<i64: 1, 32>}, {pipeline_mode = #tpu.pipeline_mode<synchronous>, transform_indices = @transform_19, window_bounds = array<i64: 2, 32>}, {transform_indices = @transform_20, window_bounds = array<i64: 1, 8, 32>}, {transform_indices = @transform_21, window_bounds = array<i64: 1, 64, 32>}, {transform_indices = @transform_22, window_bounds = array<i64: 1, 2, 64, 32>}]} {
    %c0 = arith.constant 0 : index
    %c0_0 = arith.constant 0 : index
    %c0_1 = arith.constant 0 : index
    %0 = vector.load %arg1[%c0, %c0_0, %c0_1] : memref<1x8x32xf32, #tpu.memory_space<vmem>>, vector<1x8x32xf32>
    %1 = vector.shape_cast %0 : vector<1x8x32xf32> to vector<8x32xf32>
    %c0_2 = arith.constant 0 : index
    %c0_3 = arith.constant 0 : index
    %c0_4 = arith.constant 0 : index
    %2 = vector.load %arg3[%c0_2, %c0_3, %c0_4] : memref<1x64x32xf32, #tpu.memory_space<vmem>>, vector<1x64x32xf32>
    %3 = vector.shape_cast %2 : vector<1x64x32xf32> to vector<64x32xf32>
    %c0_5 = arith.constant 0 : index
    %c0_6 = arith.constant 0 : index
    %c0_7 = arith.constant 0 : index
    %4 = vector.load %arg4[%c0_5, %c0_6, %c0_7] : memref<1x64x32xf32, #tpu.memory_space<vmem>>, vector<1x64x32xf32>
    %5 = vector.shape_cast %4 : vector<1x64x32xf32> to vector<64x32xf32>
    %c0_8 = arith.constant 0 : index
    %c0_9 = arith.constant 0 : index
    %c0_10 = arith.constant 0 : index
    %6 = vector.load %arg2[%c0_8, %c0_9, %c0_10] : memref<1x64x32xf32, #tpu.memory_space<vmem>>, vector<1x64x32xf32>
    %7 = vector.shape_cast %6 : vector<1x64x32xf32> to vector<64x32xf32>
    %8 = arith.addf %7, %5 : vector<64x32xf32>
    %c0_11 = arith.constant 0 : index
    %c0_12 = arith.constant 0 : index
    %c0_13 = arith.constant 0 : index
    %9 = vector.load %arg15[%c0_11, %c0_12, %c0_13] : memref<2x8x32xf32, #tpu.memory_space<vmem>>, vector<1x8x32xf32>
    %10 = vector.shape_cast %9 : vector<1x8x32xf32> to vector<8x32xf32>
    %c0_14 = arith.constant 0 : index
    %c0_15 = arith.constant 0 : index
    %c0_16 = arith.constant 0 : index
    %11 = vector.load %arg5[%c0_14, %c0_15, %c0_16] : memref<8x32x32xbf16, #tpu.memory_space<vmem>>, vector<1x32x32xbf16>
    %12 = vector.shape_cast %11 : vector<1x32x32xbf16> to vector<32x32xbf16>
    %c0_17 = arith.constant 0 : index
    %c0_18 = arith.constant 0 : index
    %13 = vector.load %arg6[%c0_17, %c0_18] : memref<8x32xf32, #tpu.memory_space<vmem>>, vector<1x32xf32>
    %c1 = arith.constant 1 : index
    %c0_19 = arith.constant 0 : index
    %c0_20 = arith.constant 0 : index
    %14 = vector.load %arg5[%c1, %c0_19, %c0_20] : memref<8x32x32xbf16, #tpu.memory_space<vmem>>, vector<1x32x32xbf16>
    %15 = vector.shape_cast %14 : vector<1x32x32xbf16> to vector<32x32xbf16>
    %c1_21 = arith.constant 1 : index
    %c0_22 = arith.constant 0 : index
    %16 = vector.load %arg6[%c1_21, %c0_22] : memref<8x32xf32, #tpu.memory_space<vmem>>, vector<1x32xf32>
    %c2 = arith.constant 2 : index
    %c0_23 = arith.constant 0 : index
    %c0_24 = arith.constant 0 : index
    %17 = vector.load %arg5[%c2, %c0_23, %c0_24] : memref<8x32x32xbf16, #tpu.memory_space<vmem>>, vector<1x32x32xbf16>
    %18 = vector.shape_cast %17 : vector<1x32x32xbf16> to vector<32x32xbf16>
    %c2_25 = arith.constant 2 : index
    %c0_26 = arith.constant 0 : index
    %19 = vector.load %arg6[%c2_25, %c0_26] : memref<8x32xf32, #tpu.memory_space<vmem>>, vector<1x32xf32>
    %c3 = arith.constant 3 : index
    %c0_27 = arith.constant 0 : index
    %c0_28 = arith.constant 0 : index
    %20 = vector.load %arg5[%c3, %c0_27, %c0_28] : memref<8x32x32xbf16, #tpu.memory_space<vmem>>, vector<1x32x32xbf16>
    %21 = vector.shape_cast %20 : vector<1x32x32xbf16> to vector<32x32xbf16>
    %c3_29 = arith.constant 3 : index
    %c0_30 = arith.constant 0 : index
    %22 = vector.load %arg6[%c3_29, %c0_30] : memref<8x32xf32, #tpu.memory_space<vmem>>, vector<1x32xf32>
    %23 = arith.truncf %1 : vector<8x32xf32> to vector<8x32xbf16>
    %cst = arith.constant dense<0.000000e+00> : vector<8x32xf32>
    %24 = tpu.matmul %23, %12, %cst {dimension_numbers = #tpu.dot_dimension_numbers<[1], [0], [0], [1], [0, 0, 1, 1], [], []>} : vector<8x32xbf16>, vector<32x32xbf16>, vector<8x32xf32> -> vector<8x32xf32>
    %25 = vector.broadcast %13 : vector<1x32xf32> to vector<8x32xf32>
    %26 = arith.addf %24, %25 : vector<8x32xf32>
    %27 = arith.truncf %26 : vector<8x32xf32> to vector<8x32xbf16>
    %28 = arith.truncf %1 : vector<8x32xf32> to vector<8x32xbf16>
    %cst_31 = arith.constant dense<0.000000e+00> : vector<8x32xf32>
    %29 = tpu.matmul %28, %15, %cst_31 {dimension_numbers = #tpu.dot_dimension_numbers<[1], [0], [0], [1], [0, 0, 1, 1], [], []>} : vector<8x32xbf16>, vector<32x32xbf16>, vector<8x32xf32> -> vector<8x32xf32>
    %30 = vector.broadcast %16 : vector<1x32xf32> to vector<8x32xf32>
    %31 = arith.addf %29, %30 : vector<8x32xf32>
    %32 = arith.truncf %31 : vector<8x32xf32> to vector<8x32xbf16>
    %33 = arith.truncf %1 : vector<8x32xf32> to vector<8x32xbf16>
    %cst_32 = arith.constant dense<0.000000e+00> : vector<8x32xf32>
    %34 = tpu.matmul %33, %18, %cst_32 {dimension_numbers = #tpu.dot_dimension_numbers<[1], [0], [0], [1], [0, 0, 1, 1], [], []>} : vector<8x32xbf16>, vector<32x32xbf16>, vector<8x32xf32> -> vector<8x32xf32>
    %35 = vector.broadcast %19 : vector<1x32xf32> to vector<8x32xf32>
    %36 = arith.addf %34, %35 : vector<8x32xf32>
    %37 = arith.truncf %36 : vector<8x32xf32> to vector<8x32xbf16>
    %cst_33 = arith.constant 0.000000e+00 : f32
    %38 = vector.broadcast %cst_33 : f32 to vector<8x32xf32>
    %39 = vector.extract_strided_slice %27 {offsets = [0, 0], sizes = [8, 16], strides = [1, 1]} : vector<8x32xbf16> to vector<8x16xbf16>
    %40 = vector.extract_strided_slice %32 {offsets = [0, 0], sizes = [8, 16], strides = [1, 1]} : vector<8x32xbf16> to vector<8x16xbf16>
    %cst_34 = arith.constant dense<0.000000e+00> : vector<8x8xf32>
    %41 = tpu.matmul %39, %40, %cst_34 {dimension_numbers = #tpu.dot_dimension_numbers<[1], [1], [0], [0], [0, 0, 1, 0], [], []>} : vector<8x16xbf16>, vector<8x16xbf16>, vector<8x8xf32> -> vector<8x8xf32>
    %cst_35 = arith.constant dense<0xFF800000> : vector<8xf32>
    %42 = vector.multi_reduction <maximumf>, %41, %cst_35 [1] : vector<8x8xf32> to vector<8xf32>
    %43 = vector.shape_cast %42 : vector<8xf32> to vector<8x1xf32>
    %44 = vector.broadcast %43 : vector<8x1xf32> to vector<8x8xf32>
    %45 = arith.subf %41, %44 : vector<8x8xf32>
    %46 = math.exp %45 : vector<8x8xf32>
    %cst_36 = arith.constant dense<0.000000e+00> : vector<8xf32>
    %47 = vector.multi_reduction <add>, %46, %cst_36 [1] : vector<8x8xf32> to vector<8xf32>
    %48 = vector.shape_cast %47 : vector<8xf32> to vector<8x1xf32>
    %49 = tpu.reciprocal %48 {approx = true} : vector<8x1xf32> -> vector<8x1xf32>
    %50 = vector.broadcast %49 : vector<8x1xf32> to vector<8x8xf32>
    %51 = arith.mulf %46, %50 : vector<8x8xf32>
    %52 = arith.truncf %51 : vector<8x8xf32> to vector<8x8xbf16>
    %53 = vector.extract_strided_slice %37 {offsets = [0, 0], sizes = [8, 16], strides = [1, 1]} : vector<8x32xbf16> to vector<8x16xbf16>
    %cst_37 = arith.constant dense<0.000000e+00> : vector<8x16xf32>
    %54 = tpu.matmul %52, %53, %cst_37 {dimension_numbers = #tpu.dot_dimension_numbers<[1], [0], [0], [1], [0, 0, 1, 1], [], []>} : vector<8x8xbf16>, vector<8x16xbf16>, vector<8x16xf32> -> vector<8x16xf32>
    %55 = arith.truncf %54 : vector<8x16xf32> to vector<8x16xbf16>
    %56 = vector.extract_strided_slice %21 {offsets = [0, 0], sizes = [16, 32], strides = [1, 1]} : vector<32x32xbf16> to vector<16x32xbf16>
    %cst_38 = arith.constant dense<0.000000e+00> : vector<8x32xf32>
    %57 = tpu.matmul %55, %56, %cst_38 {dimension_numbers = #tpu.dot_dimension_numbers<[1], [0], [0], [1], [0, 0, 1, 1], [], []>} : vector<8x16xbf16>, vector<16x32xbf16>, vector<8x32xf32> -> vector<8x32xf32>
    %58 = arith.addf %38, %57 : vector<8x32xf32>
    %59 = vector.extract_strided_slice %27 {offsets = [0, 16], sizes = [8, 16], strides = [1, 1]} : vector<8x32xbf16> to vector<8x16xbf16>
    %60 = vector.extract_strided_slice %32 {offsets = [0, 16], sizes = [8, 16], strides = [1, 1]} : vector<8x32xbf16> to vector<8x16xbf16>
    %cst_39 = arith.constant dense<0.000000e+00> : vector<8x8xf32>
    %61 = tpu.matmul %59, %60, %cst_39 {dimension_numbers = #tpu.dot_dimension_numbers<[1], [1], [0], [0], [0, 0, 1, 0], [], []>} : vector<8x16xbf16>, vector<8x16xbf16>, vector<8x8xf32> -> vector<8x8xf32>
    %cst_40 = arith.constant dense<0xFF800000> : vector<8xf32>
    %62 = vector.multi_reduction <maximumf>, %61, %cst_40 [1] : vector<8x8xf32> to vector<8xf32>
    %63 = vector.shape_cast %62 : vector<8xf32> to vector<8x1xf32>
    %64 = vector.broadcast %63 : vector<8x1xf32> to vector<8x8xf32>
    %65 = arith.subf %61, %64 : vector<8x8xf32>
    %66 = math.exp %65 : vector<8x8xf32>
    %cst_41 = arith.constant dense<0.000000e+00> : vector<8xf32>
    %67 = vector.multi_reduction <add>, %66, %cst_41 [1] : vector<8x8xf32> to vector<8xf32>
    %68 = vector.shape_cast %67 : vector<8xf32> to vector<8x1xf32>
    %69 = tpu.reciprocal %68 {approx = true} : vector<8x1xf32> -> vector<8x1xf32>
    %70 = vector.broadcast %69 : vector<8x1xf32> to vector<8x8xf32>
    %71 = arith.mulf %66, %70 : vector<8x8xf32>
    %72 = arith.truncf %71 : vector<8x8xf32> to vector<8x8xbf16>
    %73 = vector.extract_strided_slice %37 {offsets = [0, 16], sizes = [8, 16], strides = [1, 1]} : vector<8x32xbf16> to vector<8x16xbf16>
    %cst_42 = arith.constant dense<0.000000e+00> : vector<8x16xf32>
    %74 = tpu.matmul %72, %73, %cst_42 {dimension_numbers = #tpu.dot_dimension_numbers<[1], [0], [0], [1], [0, 0, 1, 1], [], []>} : vector<8x8xbf16>, vector<8x16xbf16>, vector<8x16xf32> -> vector<8x16xf32>
    %75 = arith.truncf %74 : vector<8x16xf32> to vector<8x16xbf16>
    %76 = vector.extract_strided_slice %21 {offsets = [16, 0], sizes = [16, 32], strides = [1, 1]} : vector<32x32xbf16> to vector<16x32xbf16>
    %cst_43 = arith.constant dense<0.000000e+00> : vector<8x32xf32>
    %77 = tpu.matmul %75, %76, %cst_43 {dimension_numbers = #tpu.dot_dimension_numbers<[1], [0], [0], [1], [0, 0, 1, 1], [], []>} : vector<8x16xbf16>, vector<16x32xbf16>, vector<8x32xf32> -> vector<8x32xf32>
    %78 = arith.addf %58, %77 : vector<8x32xf32>
    %79 = vector.broadcast %22 : vector<1x32xf32> to vector<8x32xf32>
    %80 = arith.addf %78, %79 : vector<8x32xf32>
    %81 = vector.extract_strided_slice %10 {offsets = [0, 0], sizes = [1, 32], strides = [1, 1]} : vector<8x32xf32> to vector<1x32xf32>
    %82 = vector.extract_strided_slice %10 {offsets = [4, 0], sizes = [1, 32], strides = [1, 1]} : vector<8x32xf32> to vector<1x32xf32>
    %cst_44 = arith.constant dense<0.000000e+00> : vector<8xf32>
    %83 = vector.multi_reduction <add>, %80, %cst_44 [1] : vector<8x32xf32> to vector<8xf32>
    %84 = vector.shape_cast %83 : vector<8xf32> to vector<8x1xf32>
    %cst_45 = arith.constant 3.200000e+01 : f32
    %85 = vector.broadcast %cst_45 : f32 to vector<8x1xf32>
    %86 = arith.divf %84, %85 : vector<8x1xf32>
    %87 = vector.broadcast %86 : vector<8x1xf32> to vector<8x32xf32>
    %88 = arith.subf %80, %87 : vector<8x32xf32>
    %89 = arith.mulf %88, %88 : vector<8x32xf32>
    %cst_46 = arith.constant dense<0.000000e+00> : vector<8xf32>
    %90 = vector.multi_reduction <add>, %89, %cst_46 [1] : vector<8x32xf32> to vector<8xf32>
    %91 = vector.shape_cast %90 : vector<8xf32> to vector<8x1xf32>
    %cst_47 = arith.constant 3.200000e+01 : f32
    %92 = vector.broadcast %cst_47 : f32 to vector<8x1xf32>
    %93 = arith.divf %91, %92 : vector<8x1xf32>
    %cst_48 = arith.constant 9.99999974E-6 : f32
    %94 = vector.broadcast %cst_48 : f32 to vector<8x1xf32>
    %95 = arith.addf %93, %94 : vector<8x1xf32>
    %96 = math.rsqrt %95 : vector<8x1xf32>
    %97 = vector.broadcast %96 : vector<8x1xf32> to vector<8x32xf32>
    %98 = arith.mulf %88, %97 : vector<8x32xf32>
    %99 = vector.broadcast %81 : vector<1x32xf32> to vector<8x32xf32>
    %100 = arith.mulf %98, %99 : vector<8x32xf32>
    %101 = vector.broadcast %82 : vector<1x32xf32> to vector<8x32xf32>
    %102 = arith.addf %100, %101 : vector<8x32xf32>
    %103 = arith.addf %102, %1 : vector<8x32xf32>
    %104 = arith.addf %8, %3 : vector<64x32xf32>
    %c0_49 = arith.constant 0 : index
    %c0_50 = arith.constant 0 : index
    %c0_51 = arith.constant 0 : index
    %105 = vector.load %arg7[%c0_49, %c0_50, %c0_51] : memref<6x32x16xbf16, #tpu.memory_space<vmem>>, vector<1x32x16xbf16>
    %106 = vector.shape_cast %105 : vector<1x32x16xbf16> to vector<32x16xbf16>
    %c0_52 = arith.constant 0 : index
    %c0_53 = arith.constant 0 : index
    %107 = vector.load %arg8[%c0_52, %c0_53] : memref<6x16xf32, #tpu.memory_space<vmem>>, vector<1x16xf32>
    %c1_54 = arith.constant 1 : index
    %c0_55 = arith.constant 0 : index
    %c0_56 = arith.constant 0 : index
    %108 = vector.load %arg7[%c1_54, %c0_55, %c0_56] : memref<6x32x16xbf16, #tpu.memory_space<vmem>>, vector<1x32x16xbf16>
    %109 = vector.shape_cast %108 : vector<1x32x16xbf16> to vector<32x16xbf16>
    %c1_57 = arith.constant 1 : index
    %c0_58 = arith.constant 0 : index
    %110 = vector.load %arg8[%c1_57, %c0_58] : memref<6x16xf32, #tpu.memory_space<vmem>>, vector<1x16xf32>
    %c2_59 = arith.constant 2 : index
    %c0_60 = arith.constant 0 : index
    %c0_61 = arith.constant 0 : index
    %111 = vector.load %arg7[%c2_59, %c0_60, %c0_61] : memref<6x32x16xbf16, #tpu.memory_space<vmem>>, vector<1x32x16xbf16>
    %112 = vector.shape_cast %111 : vector<1x32x16xbf16> to vector<32x16xbf16>
    %c2_62 = arith.constant 2 : index
    %c0_63 = arith.constant 0 : index
    %113 = vector.load %arg8[%c2_62, %c0_63] : memref<6x16xf32, #tpu.memory_space<vmem>>, vector<1x16xf32>
    %c0_64 = arith.constant 0 : index
    %c0_65 = arith.constant 0 : index
    %c0_66 = arith.constant 0 : index
    %114 = vector.load %arg9[%c0_64, %c0_65, %c0_66] : memref<2x16x32xbf16, #tpu.memory_space<vmem>>, vector<1x16x32xbf16>
    %115 = vector.shape_cast %114 : vector<1x16x32xbf16> to vector<16x32xbf16>
    %c0_67 = arith.constant 0 : index
    %c0_68 = arith.constant 0 : index
    %116 = vector.load %arg10[%c0_67, %c0_68] : memref<2x32xf32, #tpu.memory_space<vmem>>, vector<1x32xf32>
    %117 = arith.truncf %103 : vector<8x32xf32> to vector<8x32xbf16>
    %cst_69 = arith.constant dense<0.000000e+00> : vector<8x16xf32>
    %118 = tpu.matmul %117, %106, %cst_69 {dimension_numbers = #tpu.dot_dimension_numbers<[1], [0], [0], [1], [0, 0, 1, 1], [], []>} : vector<8x32xbf16>, vector<32x16xbf16>, vector<8x16xf32> -> vector<8x16xf32>
    %119 = vector.broadcast %107 : vector<1x16xf32> to vector<8x16xf32>
    %120 = arith.addf %118, %119 : vector<8x16xf32>
    %121 = arith.truncf %120 : vector<8x16xf32> to vector<8x16xbf16>
    %122 = arith.truncf %104 : vector<64x32xf32> to vector<64x32xbf16>
    %cst_70 = arith.constant dense<0.000000e+00> : vector<64x16xf32>
    %123 = tpu.matmul %122, %109, %cst_70 {dimension_numbers = #tpu.dot_dimension_numbers<[1], [0], [0], [1], [0, 0, 1, 1], [], []>} : vector<64x32xbf16>, vector<32x16xbf16>, vector<64x16xf32> -> vector<64x16xf32>
    %124 = vector.broadcast %110 : vector<1x16xf32> to vector<64x16xf32>
    %125 = arith.addf %123, %124 : vector<64x16xf32>
    %126 = arith.truncf %125 : vector<64x16xf32> to vector<64x16xbf16>
    %127 = arith.truncf %8 : vector<64x32xf32> to vector<64x32xbf16>
    %cst_71 = arith.constant dense<0.000000e+00> : vector<64x16xf32>
    %128 = tpu.matmul %127, %112, %cst_71 {dimension_numbers = #tpu.dot_dimension_numbers<[1], [0], [0], [1], [0, 0, 1, 1], [], []>} : vector<64x32xbf16>, vector<32x16xbf16>, vector<64x16xf32> -> vector<64x16xf32>
    %129 = vector.broadcast %113 : vector<1x16xf32> to vector<64x16xf32>
    %130 = arith.addf %128, %129 : vector<64x16xf32>
    %131 = arith.truncf %130 : vector<64x16xf32> to vector<64x16xbf16>
    %cst_72 = arith.constant 0.000000e+00 : f32
    %132 = vector.broadcast %cst_72 : f32 to vector<8x32xf32>
    %133 = vector.extract_strided_slice %121 {offsets = [0, 0], sizes = [8, 8], strides = [1, 1]} : vector<8x16xbf16> to vector<8x8xbf16>
    %134 = vector.extract_strided_slice %126 {offsets = [0, 0], sizes = [64, 8], strides = [1, 1]} : vector<64x16xbf16> to vector<64x8xbf16>
    %cst_73 = arith.constant dense<0.000000e+00> : vector<8x64xf32>
    %135 = tpu.matmul %133, %134, %cst_73 {dimension_numbers = #tpu.dot_dimension_numbers<[1], [1], [0], [0], [0, 0, 1, 0], [], []>} : vector<8x8xbf16>, vector<64x8xbf16>, vector<8x64xf32> -> vector<8x64xf32>
    %cst_74 = arith.constant dense<0xFF800000> : vector<8xf32>
    %136 = vector.multi_reduction <maximumf>, %135, %cst_74 [1] : vector<8x64xf32> to vector<8xf32>
    %137 = vector.shape_cast %136 : vector<8xf32> to vector<8x1xf32>
    %138 = vector.broadcast %137 : vector<8x1xf32> to vector<8x64xf32>
    %139 = arith.subf %135, %138 : vector<8x64xf32>
    %140 = math.exp %139 : vector<8x64xf32>
    %cst_75 = arith.constant dense<0.000000e+00> : vector<8xf32>
    %141 = vector.multi_reduction <add>, %140, %cst_75 [1] : vector<8x64xf32> to vector<8xf32>
    %142 = vector.shape_cast %141 : vector<8xf32> to vector<8x1xf32>
    %143 = tpu.reciprocal %142 {approx = true} : vector<8x1xf32> -> vector<8x1xf32>
    %144 = vector.broadcast %143 : vector<8x1xf32> to vector<8x64xf32>
    %145 = arith.mulf %140, %144 : vector<8x64xf32>
    %146 = arith.truncf %145 : vector<8x64xf32> to vector<8x64xbf16>
    %147 = vector.extract_strided_slice %131 {offsets = [0, 0], sizes = [64, 8], strides = [1, 1]} : vector<64x16xbf16> to vector<64x8xbf16>
    %cst_76 = arith.constant dense<0.000000e+00> : vector<8x8xf32>
    %148 = tpu.matmul %146, %147, %cst_76 {dimension_numbers = #tpu.dot_dimension_numbers<[1], [0], [0], [1], [0, 0, 1, 1], [], []>} : vector<8x64xbf16>, vector<64x8xbf16>, vector<8x8xf32> -> vector<8x8xf32>
    %149 = arith.truncf %148 : vector<8x8xf32> to vector<8x8xbf16>
    %150 = vector.extract_strided_slice %115 {offsets = [0, 0], sizes = [8, 32], strides = [1, 1]} : vector<16x32xbf16> to vector<8x32xbf16>
    %cst_77 = arith.constant dense<0.000000e+00> : vector<8x32xf32>
    %151 = tpu.matmul %149, %150, %cst_77 {dimension_numbers = #tpu.dot_dimension_numbers<[1], [0], [0], [1], [0, 0, 1, 1], [], []>} : vector<8x8xbf16>, vector<8x32xbf16>, vector<8x32xf32> -> vector<8x32xf32>
    %152 = arith.addf %132, %151 : vector<8x32xf32>
    %153 = vector.extract_strided_slice %121 {offsets = [0, 8], sizes = [8, 8], strides = [1, 1]} : vector<8x16xbf16> to vector<8x8xbf16>
    %154 = vector.extract_strided_slice %126 {offsets = [0, 8], sizes = [64, 8], strides = [1, 1]} : vector<64x16xbf16> to vector<64x8xbf16>
    %cst_78 = arith.constant dense<0.000000e+00> : vector<8x64xf32>
    %155 = tpu.matmul %153, %154, %cst_78 {dimension_numbers = #tpu.dot_dimension_numbers<[1], [1], [0], [0], [0, 0, 1, 0], [], []>} : vector<8x8xbf16>, vector<64x8xbf16>, vector<8x64xf32> -> vector<8x64xf32>
    %cst_79 = arith.constant dense<0xFF800000> : vector<8xf32>
    %156 = vector.multi_reduction <maximumf>, %155, %cst_79 [1] : vector<8x64xf32> to vector<8xf32>
    %157 = vector.shape_cast %156 : vector<8xf32> to vector<8x1xf32>
    %158 = vector.broadcast %157 : vector<8x1xf32> to vector<8x64xf32>
    %159 = arith.subf %155, %158 : vector<8x64xf32>
    %160 = math.exp %159 : vector<8x64xf32>
    %cst_80 = arith.constant dense<0.000000e+00> : vector<8xf32>
    %161 = vector.multi_reduction <add>, %160, %cst_80 [1] : vector<8x64xf32> to vector<8xf32>
    %162 = vector.shape_cast %161 : vector<8xf32> to vector<8x1xf32>
    %163 = tpu.reciprocal %162 {approx = true} : vector<8x1xf32> -> vector<8x1xf32>
    %164 = vector.broadcast %163 : vector<8x1xf32> to vector<8x64xf32>
    %165 = arith.mulf %160, %164 : vector<8x64xf32>
    %166 = arith.truncf %165 : vector<8x64xf32> to vector<8x64xbf16>
    %167 = vector.extract_strided_slice %131 {offsets = [0, 8], sizes = [64, 8], strides = [1, 1]} : vector<64x16xbf16> to vector<64x8xbf16>
    %cst_81 = arith.constant dense<0.000000e+00> : vector<8x8xf32>
    %168 = tpu.matmul %166, %167, %cst_81 {dimension_numbers = #tpu.dot_dimension_numbers<[1], [0], [0], [1], [0, 0, 1, 1], [], []>} : vector<8x64xbf16>, vector<64x8xbf16>, vector<8x8xf32> -> vector<8x8xf32>
    %169 = arith.truncf %168 : vector<8x8xf32> to vector<8x8xbf16>
    %170 = vector.extract_strided_slice %115 {offsets = [8, 0], sizes = [8, 32], strides = [1, 1]} : vector<16x32xbf16> to vector<8x32xbf16>
    %cst_82 = arith.constant dense<0.000000e+00> : vector<8x32xf32>
    %171 = tpu.matmul %169, %170, %cst_82 {dimension_numbers = #tpu.dot_dimension_numbers<[1], [0], [0], [1], [0, 0, 1, 1], [], []>} : vector<8x8xbf16>, vector<8x32xbf16>, vector<8x32xf32> -> vector<8x32xf32>
    %172 = arith.addf %152, %171 : vector<8x32xf32>
    %173 = vector.broadcast %116 : vector<1x32xf32> to vector<8x32xf32>
    %174 = arith.addf %172, %173 : vector<8x32xf32>
    %175 = arith.addf %102, %174 : vector<8x32xf32>
    %176 = vector.extract_strided_slice %10 {offsets = [1, 0], sizes = [1, 32], strides = [1, 1]} : vector<8x32xf32> to vector<1x32xf32>
    %177 = vector.extract_strided_slice %10 {offsets = [5, 0], sizes = [1, 32], strides = [1, 1]} : vector<8x32xf32> to vector<1x32xf32>
    %cst_83 = arith.constant dense<0.000000e+00> : vector<8xf32>
    %178 = vector.multi_reduction <add>, %175, %cst_83 [1] : vector<8x32xf32> to vector<8xf32>
    %179 = vector.shape_cast %178 : vector<8xf32> to vector<8x1xf32>
    %cst_84 = arith.constant 3.200000e+01 : f32
    %180 = vector.broadcast %cst_84 : f32 to vector<8x1xf32>
    %181 = arith.divf %179, %180 : vector<8x1xf32>
    %182 = vector.broadcast %181 : vector<8x1xf32> to vector<8x32xf32>
    %183 = arith.subf %175, %182 : vector<8x32xf32>
    %184 = arith.mulf %183, %183 : vector<8x32xf32>
    %cst_85 = arith.constant dense<0.000000e+00> : vector<8xf32>
    %185 = vector.multi_reduction <add>, %184, %cst_85 [1] : vector<8x32xf32> to vector<8xf32>
    %186 = vector.shape_cast %185 : vector<8xf32> to vector<8x1xf32>
    %cst_86 = arith.constant 3.200000e+01 : f32
    %187 = vector.broadcast %cst_86 : f32 to vector<8x1xf32>
    %188 = arith.divf %186, %187 : vector<8x1xf32>
    %cst_87 = arith.constant 9.99999974E-6 : f32
    %189 = vector.broadcast %cst_87 : f32 to vector<8x1xf32>
    %190 = arith.addf %188, %189 : vector<8x1xf32>
    %191 = math.rsqrt %190 : vector<8x1xf32>
    %192 = vector.broadcast %191 : vector<8x1xf32> to vector<8x32xf32>
    %193 = arith.mulf %183, %192 : vector<8x32xf32>
    %194 = vector.broadcast %176 : vector<1x32xf32> to vector<8x32xf32>
    %195 = arith.mulf %193, %194 : vector<8x32xf32>
    %196 = vector.broadcast %177 : vector<1x32xf32> to vector<8x32xf32>
    %197 = arith.addf %195, %196 : vector<8x32xf32>
    %198 = arith.truncf %197 : vector<8x32xf32> to vector<8x32xbf16>
    %c0_88 = arith.constant 0 : index
    %c0_89 = arith.constant 0 : index
    %c0_90 = arith.constant 0 : index
    %199 = vector.load %arg11[%c0_88, %c0_89, %c0_90] : memref<2x32x64xbf16, #tpu.memory_space<vmem>>, vector<1x32x64xbf16>
    %200 = vector.shape_cast %199 : vector<1x32x64xbf16> to vector<32x64xbf16>
    %cst_91 = arith.constant dense<0.000000e+00> : vector<8x64xf32>
    %201 = tpu.matmul %198, %200, %cst_91 {dimension_numbers = #tpu.dot_dimension_numbers<[1], [0], [0], [1], [0, 0, 1, 1], [], []>} : vector<8x32xbf16>, vector<32x64xbf16>, vector<8x64xf32> -> vector<8x64xf32>
    %c0_92 = arith.constant 0 : index
    %c0_93 = arith.constant 0 : index
    %202 = vector.load %arg12[%c0_92, %c0_93] : memref<2x64xf32, #tpu.memory_space<vmem>>, vector<1x64xf32>
    %203 = vector.broadcast %202 : vector<1x64xf32> to vector<8x64xf32>
    %204 = arith.addf %201, %203 : vector<8x64xf32>
    %cst_94 = arith.constant 0.000000e+00 : f32
    %205 = vector.broadcast %cst_94 : f32 to vector<8x64xf32>
    %206 = arith.maximumf %204, %205 : vector<8x64xf32>
    %207 = arith.truncf %206 : vector<8x64xf32> to vector<8x64xbf16>
    %c0_95 = arith.constant 0 : index
    %c0_96 = arith.constant 0 : index
    %c0_97 = arith.constant 0 : index
    %208 = vector.load %arg13[%c0_95, %c0_96, %c0_97] : memref<2x64x32xbf16, #tpu.memory_space<vmem>>, vector<1x64x32xbf16>
    %209 = vector.shape_cast %208 : vector<1x64x32xbf16> to vector<64x32xbf16>
    %cst_98 = arith.constant dense<0.000000e+00> : vector<8x32xf32>
    %210 = tpu.matmul %207, %209, %cst_98 {dimension_numbers = #tpu.dot_dimension_numbers<[1], [0], [0], [1], [0, 0, 1, 1], [], []>} : vector<8x64xbf16>, vector<64x32xbf16>, vector<8x32xf32> -> vector<8x32xf32>
    %c0_99 = arith.constant 0 : index
    %c0_100 = arith.constant 0 : index
    %211 = vector.load %arg14[%c0_99, %c0_100] : memref<2x32xf32, #tpu.memory_space<vmem>>, vector<1x32xf32>
    %212 = vector.broadcast %211 : vector<1x32xf32> to vector<8x32xf32>
    %213 = arith.addf %210, %212 : vector<8x32xf32>
    %214 = arith.addf %197, %213 : vector<8x32xf32>
    %215 = vector.extract_strided_slice %10 {offsets = [2, 0], sizes = [1, 32], strides = [1, 1]} : vector<8x32xf32> to vector<1x32xf32>
    %216 = vector.extract_strided_slice %10 {offsets = [6, 0], sizes = [1, 32], strides = [1, 1]} : vector<8x32xf32> to vector<1x32xf32>
    %cst_101 = arith.constant dense<0.000000e+00> : vector<8xf32>
    %217 = vector.multi_reduction <add>, %214, %cst_101 [1] : vector<8x32xf32> to vector<8xf32>
    %218 = vector.shape_cast %217 : vector<8xf32> to vector<8x1xf32>
    %cst_102 = arith.constant 3.200000e+01 : f32
    %219 = vector.broadcast %cst_102 : f32 to vector<8x1xf32>
    %220 = arith.divf %218, %219 : vector<8x1xf32>
    %221 = vector.broadcast %220 : vector<8x1xf32> to vector<8x32xf32>
    %222 = arith.subf %214, %221 : vector<8x32xf32>
    %223 = arith.mulf %222, %222 : vector<8x32xf32>
    %cst_103 = arith.constant dense<0.000000e+00> : vector<8xf32>
    %224 = vector.multi_reduction <add>, %223, %cst_103 [1] : vector<8x32xf32> to vector<8xf32>
    %225 = vector.shape_cast %224 : vector<8xf32> to vector<8x1xf32>
    %cst_104 = arith.constant 3.200000e+01 : f32
    %226 = vector.broadcast %cst_104 : f32 to vector<8x1xf32>
    %227 = arith.divf %225, %226 : vector<8x1xf32>
    %cst_105 = arith.constant 9.99999974E-6 : f32
    %228 = vector.broadcast %cst_105 : f32 to vector<8x1xf32>
    %229 = arith.addf %227, %228 : vector<8x1xf32>
    %230 = math.rsqrt %229 : vector<8x1xf32>
    %231 = vector.broadcast %230 : vector<8x1xf32> to vector<8x32xf32>
    %232 = arith.mulf %222, %231 : vector<8x32xf32>
    %233 = vector.broadcast %215 : vector<1x32xf32> to vector<8x32xf32>
    %234 = arith.mulf %232, %233 : vector<8x32xf32>
    %235 = vector.broadcast %216 : vector<1x32xf32> to vector<8x32xf32>
    %236 = arith.addf %234, %235 : vector<8x32xf32>
    %237 = vector.extract_strided_slice %10 {offsets = [3, 0], sizes = [1, 32], strides = [1, 1]} : vector<8x32xf32> to vector<1x32xf32>
    %238 = vector.extract_strided_slice %10 {offsets = [7, 0], sizes = [1, 32], strides = [1, 1]} : vector<8x32xf32> to vector<1x32xf32>
    %cst_106 = arith.constant dense<0.000000e+00> : vector<64xf32>
    %239 = vector.multi_reduction <add>, %8, %cst_106 [1] : vector<64x32xf32> to vector<64xf32>
    %240 = vector.shape_cast %239 : vector<64xf32> to vector<64x1xf32>
    %cst_107 = arith.constant 3.200000e+01 : f32
    %241 = vector.broadcast %cst_107 : f32 to vector<64x1xf32>
    %242 = arith.divf %240, %241 : vector<64x1xf32>
    %243 = vector.broadcast %242 : vector<64x1xf32> to vector<64x32xf32>
    %244 = arith.subf %8, %243 : vector<64x32xf32>
    %245 = arith.mulf %244, %244 : vector<64x32xf32>
    %cst_108 = arith.constant dense<0.000000e+00> : vector<64xf32>
    %246 = vector.multi_reduction <add>, %245, %cst_108 [1] : vector<64x32xf32> to vector<64xf32>
    %247 = vector.shape_cast %246 : vector<64xf32> to vector<64x1xf32>
    %cst_109 = arith.constant 3.200000e+01 : f32
    %248 = vector.broadcast %cst_109 : f32 to vector<64x1xf32>
    %249 = arith.divf %247, %248 : vector<64x1xf32>
    %cst_110 = arith.constant 9.99999974E-6 : f32
    %250 = vector.broadcast %cst_110 : f32 to vector<64x1xf32>
    %251 = arith.addf %249, %250 : vector<64x1xf32>
    %252 = math.rsqrt %251 : vector<64x1xf32>
    %253 = vector.broadcast %252 : vector<64x1xf32> to vector<64x32xf32>
    %254 = arith.mulf %244, %253 : vector<64x32xf32>
    %255 = vector.broadcast %237 : vector<1x32xf32> to vector<64x32xf32>
    %256 = arith.mulf %254, %255 : vector<64x32xf32>
    %257 = vector.broadcast %238 : vector<1x32xf32> to vector<64x32xf32>
    %258 = arith.addf %256, %257 : vector<64x32xf32>
    %259 = arith.truncf %258 : vector<64x32xf32> to vector<64x32xbf16>
    %c0_111 = arith.constant 0 : index
    %c0_112 = arith.constant 0 : index
    %c0_113 = arith.constant 0 : index
    %c0_114 = arith.constant 0 : index
    %260 = vector.load %arg23[%c0_111, %c0_112, %c0_113, %c0_114] : memref<1x2x64x32xbf16, #tpu.memory_space<vmem>>, vector<1x1x64x32xbf16>
    %261 = vector.shape_cast %260 : vector<1x1x64x32xbf16> to vector<64x32xbf16>
    %262 = vector.shape_cast %259 : vector<64x32xbf16> to vector<1x1x64x32xbf16>
    tpu.vector_store %arg23[%c0_111, %c0_112, %c0_113, %c0_114], %262 {strides = array<i32>} : memref<1x2x64x32xbf16, #tpu.memory_space<vmem>>, vector<1x1x64x32xbf16>,
    %263 = arith.addf %258, %5 : vector<64x32xf32>
    %c1_115 = arith.constant 1 : index
    %c0_116 = arith.constant 0 : index
    %c0_117 = arith.constant 0 : index
    %264 = vector.load %arg15[%c1_115, %c0_116, %c0_117] : memref<2x8x32xf32, #tpu.memory_space<vmem>>, vector<1x8x32xf32>
    %265 = vector.shape_cast %264 : vector<1x8x32xf32> to vector<8x32xf32>
    %266 = arith.addf %236, %1 : vector<8x32xf32>
    %c4 = arith.constant 4 : index
    %c0_118 = arith.constant 0 : index
    %c0_119 = arith.constant 0 : index
    %267 = vector.load %arg5[%c4, %c0_118, %c0_119] : memref<8x32x32xbf16, #tpu.memory_space<vmem>>, vector<1x32x32xbf16>
    %268 = vector.shape_cast %267 : vector<1x32x32xbf16> to vector<32x32xbf16>
    %c4_120 = arith.constant 4 : index
    %c0_121 = arith.constant 0 : index
    %269 = vector.load %arg6[%c4_120, %c0_121] : memref<8x32xf32, #tpu.memory_space<vmem>>, vector<1x32xf32>
    %c5 = arith.constant 5 : index
    %c0_122 = arith.constant 0 : index
    %c0_123 = arith.constant 0 : index
    %270 = vector.load %arg5[%c5, %c0_122, %c0_123] : memref<8x32x32xbf16, #tpu.memory_space<vmem>>, vector<1x32x32xbf16>
    %271 = vector.shape_cast %270 : vector<1x32x32xbf16> to vector<32x32xbf16>
    %c5_124 = arith.constant 5 : index
    %c0_125 = arith.constant 0 : index
    %272 = vector.load %arg6[%c5_124, %c0_125] : memref<8x32xf32, #tpu.memory_space<vmem>>, vector<1x32xf32>
    %c6 = arith.constant 6 : index
    %c0_126 = arith.constant 0 : index
    %c0_127 = arith.constant 0 : index
    %273 = vector.load %arg5[%c6, %c0_126, %c0_127] : memref<8x32x32xbf16, #tpu.memory_space<vmem>>, vector<1x32x32xbf16>
    %274 = vector.shape_cast %273 : vector<1x32x32xbf16> to vector<32x32xbf16>
    %c6_128 = arith.constant 6 : index
    %c0_129 = arith.constant 0 : index
    %275 = vector.load %arg6[%c6_128, %c0_129] : memref<8x32xf32, #tpu.memory_space<vmem>>, vector<1x32xf32>
    %c7 = arith.constant 7 : index
    %c0_130 = arith.constant 0 : index
    %c0_131 = arith.constant 0 : index
    %276 = vector.load %arg5[%c7, %c0_130, %c0_131] : memref<8x32x32xbf16, #tpu.memory_space<vmem>>, vector<1x32x32xbf16>
    %277 = vector.shape_cast %276 : vector<1x32x32xbf16> to vector<32x32xbf16>
    %c7_132 = arith.constant 7 : index
    %c0_133 = arith.constant 0 : index
    %278 = vector.load %arg6[%c7_132, %c0_133] : memref<8x32xf32, #tpu.memory_space<vmem>>, vector<1x32xf32>
    %279 = arith.truncf %266 : vector<8x32xf32> to vector<8x32xbf16>
    %cst_134 = arith.constant dense<0.000000e+00> : vector<8x32xf32>
    %280 = tpu.matmul %279, %268, %cst_134 {dimension_numbers = #tpu.dot_dimension_numbers<[1], [0], [0], [1], [0, 0, 1, 1], [], []>} : vector<8x32xbf16>, vector<32x32xbf16>, vector<8x32xf32> -> vector<8x32xf32>
    %281 = vector.broadcast %269 : vector<1x32xf32> to vector<8x32xf32>
    %282 = arith.addf %280, %281 : vector<8x32xf32>
    %283 = arith.truncf %282 : vector<8x32xf32> to vector<8x32xbf16>
    %284 = arith.truncf %266 : vector<8x32xf32> to vector<8x32xbf16>
    %cst_135 = arith.constant dense<0.000000e+00> : vector<8x32xf32>
    %285 = tpu.matmul %284, %271, %cst_135 {dimension_numbers = #tpu.dot_dimension_numbers<[1], [0], [0], [1], [0, 0, 1, 1], [], []>} : vector<8x32xbf16>, vector<32x32xbf16>, vector<8x32xf32> -> vector<8x32xf32>
    %286 = vector.broadcast %272 : vector<1x32xf32> to vector<8x32xf32>
    %287 = arith.addf %285, %286 : vector<8x32xf32>
    %288 = arith.truncf %287 : vector<8x32xf32> to vector<8x32xbf16>
    %289 = arith.truncf %236 : vector<8x32xf32> to vector<8x32xbf16>
    %cst_136 = arith.constant dense<0.000000e+00> : vector<8x32xf32>
    %290 = tpu.matmul %289, %274, %cst_136 {dimension_numbers = #tpu.dot_dimension_numbers<[1], [0], [0], [1], [0, 0, 1, 1], [], []>} : vector<8x32xbf16>, vector<32x32xbf16>, vector<8x32xf32> -> vector<8x32xf32>
    %291 = vector.broadcast %275 : vector<1x32xf32> to vector<8x32xf32>
    %292 = arith.addf %290, %291 : vector<8x32xf32>
    %293 = arith.truncf %292 : vector<8x32xf32> to vector<8x32xbf16>
    %cst_137 = arith.constant 0.000000e+00 : f32
    %294 = vector.broadcast %cst_137 : f32 to vector<8x32xf32>
    %295 = vector.extract_strided_slice %283 {offsets = [0, 0], sizes = [8, 16], strides = [1, 1]} : vector<8x32xbf16> to vector<8x16xbf16>
    %296 = vector.extract_strided_slice %288 {offsets = [0, 0], sizes = [8, 16], strides = [1, 1]} : vector<8x32xbf16> to vector<8x16xbf16>
    %cst_138 = arith.constant dense<0.000000e+00> : vector<8x8xf32>
    %297 = tpu.matmul %295, %296, %cst_138 {dimension_numbers = #tpu.dot_dimension_numbers<[1], [1], [0], [0], [0, 0, 1, 0], [], []>} : vector<8x16xbf16>, vector<8x16xbf16>, vector<8x8xf32> -> vector<8x8xf32>
    %cst_139 = arith.constant dense<0xFF800000> : vector<8xf32>
    %298 = vector.multi_reduction <maximumf>, %297, %cst_139 [1] : vector<8x8xf32> to vector<8xf32>
    %299 = vector.shape_cast %298 : vector<8xf32> to vector<8x1xf32>
    %300 = vector.broadcast %299 : vector<8x1xf32> to vector<8x8xf32>
    %301 = arith.subf %297, %300 : vector<8x8xf32>
    %302 = math.exp %301 : vector<8x8xf32>
    %cst_140 = arith.constant dense<0.000000e+00> : vector<8xf32>
    %303 = vector.multi_reduction <add>, %302, %cst_140 [1] : vector<8x8xf32> to vector<8xf32>
    %304 = vector.shape_cast %303 : vector<8xf32> to vector<8x1xf32>
    %305 = tpu.reciprocal %304 {approx = true} : vector<8x1xf32> -> vector<8x1xf32>
    %306 = vector.broadcast %305 : vector<8x1xf32> to vector<8x8xf32>
    %307 = arith.mulf %302, %306 : vector<8x8xf32>
    %308 = arith.truncf %307 : vector<8x8xf32> to vector<8x8xbf16>
    %309 = vector.extract_strided_slice %293 {offsets = [0, 0], sizes = [8, 16], strides = [1, 1]} : vector<8x32xbf16> to vector<8x16xbf16>
    %cst_141 = arith.constant dense<0.000000e+00> : vector<8x16xf32>
    %310 = tpu.matmul %308, %309, %cst_141 {dimension_numbers = #tpu.dot_dimension_numbers<[1], [0], [0], [1], [0, 0, 1, 1], [], []>} : vector<8x8xbf16>, vector<8x16xbf16>, vector<8x16xf32> -> vector<8x16xf32>
    %311 = arith.truncf %310 : vector<8x16xf32> to vector<8x16xbf16>
    %312 = vector.extract_strided_slice %277 {offsets = [0, 0], sizes = [16, 32], strides = [1, 1]} : vector<32x32xbf16> to vector<16x32xbf16>
    %cst_142 = arith.constant dense<0.000000e+00> : vector<8x32xf32>
    %313 = tpu.matmul %311, %312, %cst_142 {dimension_numbers = #tpu.dot_dimension_numbers<[1], [0], [0], [1], [0, 0, 1, 1], [], []>} : vector<8x16xbf16>, vector<16x32xbf16>, vector<8x32xf32> -> vector<8x32xf32>
    %314 = arith.addf %294, %313 : vector<8x32xf32>
    %315 = vector.extract_strided_slice %283 {offsets = [0, 16], sizes = [8, 16], strides = [1, 1]} : vector<8x32xbf16> to vector<8x16xbf16>
    %316 = vector.extract_strided_slice %288 {offsets = [0, 16], sizes = [8, 16], strides = [1, 1]} : vector<8x32xbf16> to vector<8x16xbf16>
    %cst_143 = arith.constant dense<0.000000e+00> : vector<8x8xf32>
    %317 = tpu.matmul %315, %316, %cst_143 {dimension_numbers = #tpu.dot_dimension_numbers<[1], [1], [0], [0], [0, 0, 1, 0], [], []>} : vector<8x16xbf16>, vector<8x16xbf16>, vector<8x8xf32> -> vector<8x8xf32>
    %cst_144 = arith.constant dense<0xFF800000> : vector<8xf32>
    %318 = vector.multi_reduction <maximumf>, %317, %cst_144 [1] : vector<8x8xf32> to vector<8xf32>
    %319 = vector.shape_cast %318 : vector<8xf32> to vector<8x1xf32>
    %320 = vector.broadcast %319 : vector<8x1xf32> to vector<8x8xf32>
    %321 = arith.subf %317, %320 : vector<8x8xf32>
    %322 = math.exp %321 : vector<8x8xf32>
    %cst_145 = arith.constant dense<0.000000e+00> : vector<8xf32>
    %323 = vector.multi_reduction <add>, %322, %cst_145 [1] : vector<8x8xf32> to vector<8xf32>
    %324 = vector.shape_cast %323 : vector<8xf32> to vector<8x1xf32>
    %325 = tpu.reciprocal %324 {approx = true} : vector<8x1xf32> -> vector<8x1xf32>
    %326 = vector.broadcast %325 : vector<8x1xf32> to vector<8x8xf32>
    %327 = arith.mulf %322, %326 : vector<8x8xf32>
    %328 = arith.truncf %327 : vector<8x8xf32> to vector<8x8xbf16>
    %329 = vector.extract_strided_slice %293 {offsets = [0, 16], sizes = [8, 16], strides = [1, 1]} : vector<8x32xbf16> to vector<8x16xbf16>
    %cst_146 = arith.constant dense<0.000000e+00> : vector<8x16xf32>
    %330 = tpu.matmul %328, %329, %cst_146 {dimension_numbers = #tpu.dot_dimension_numbers<[1], [0], [0], [1], [0, 0, 1, 1], [], []>} : vector<8x8xbf16>, vector<8x16xbf16>, vector<8x16xf32> -> vector<8x16xf32>
    %331 = arith.truncf %330 : vector<8x16xf32> to vector<8x16xbf16>
    %332 = vector.extract_strided_slice %277 {offsets = [16, 0], sizes = [16, 32], strides = [1, 1]} : vector<32x32xbf16> to vector<16x32xbf16>
    %cst_147 = arith.constant dense<0.000000e+00> : vector<8x32xf32>
    %333 = tpu.matmul %331, %332, %cst_147 {dimension_numbers = #tpu.dot_dimension_numbers<[1], [0], [0], [1], [0, 0, 1, 1], [], []>} : vector<8x16xbf16>, vector<16x32xbf16>, vector<8x32xf32> -> vector<8x32xf32>
    %334 = arith.addf %314, %333 : vector<8x32xf32>
    %335 = vector.broadcast %278 : vector<1x32xf32> to vector<8x32xf32>
    %336 = arith.addf %334, %335 : vector<8x32xf32>
    %337 = arith.addf %236, %336 : vector<8x32xf32>
    %338 = vector.extract_strided_slice %265 {offsets = [0, 0], sizes = [1, 32], strides = [1, 1]} : vector<8x32xf32> to vector<1x32xf32>
    %339 = vector.extract_strided_slice %265 {offsets = [4, 0], sizes = [1, 32], strides = [1, 1]} : vector<8x32xf32> to vector<1x32xf32>
    %cst_148 = arith.constant dense<0.000000e+00> : vector<8xf32>
    %340 = vector.multi_reduction <add>, %337, %cst_148 [1] : vector<8x32xf32> to vector<8xf32>
    %341 = vector.shape_cast %340 : vector<8xf32> to vector<8x1xf32>
    %cst_149 = arith.constant 3.200000e+01 : f32
    %342 = vector.broadcast %cst_149 : f32 to vector<8x1xf32>
    %343 = arith.divf %341, %342 : vector<8x1xf32>
    %344 = vector.broadcast %343 : vector<8x1xf32> to vector<8x32xf32>
    %345 = arith.subf %337, %344 : vector<8x32xf32>
    %346 = arith.mulf %345, %345 : vector<8x32xf32>
    %cst_150 = arith.constant dense<0.000000e+00> : vector<8xf32>
    %347 = vector.multi_reduction <add>, %346, %cst_150 [1] : vector<8x32xf32> to vector<8xf32>
    %348 = vector.shape_cast %347 : vector<8xf32> to vector<8x1xf32>
    %cst_151 = arith.constant 3.200000e+01 : f32
    %349 = vector.broadcast %cst_151 : f32 to vector<8x1xf32>
    %350 = arith.divf %348, %349 : vector<8x1xf32>
    %cst_152 = arith.constant 9.99999974E-6 : f32
    %351 = vector.broadcast %cst_152 : f32 to vector<8x1xf32>
    %352 = arith.addf %350, %351 : vector<8x1xf32>
    %353 = math.rsqrt %352 : vector<8x1xf32>
    %354 = vector.broadcast %353 : vector<8x1xf32> to vector<8x32xf32>
    %355 = arith.mulf %345, %354 : vector<8x32xf32>
    %356 = vector.broadcast %338 : vector<1x32xf32> to vector<8x32xf32>
    %357 = arith.mulf %355, %356 : vector<8x32xf32>
    %358 = vector.broadcast %339 : vector<1x32xf32> to vector<8x32xf32>
    %359 = arith.addf %357, %358 : vector<8x32xf32>
    %360 = arith.addf %359, %1 : vector<8x32xf32>
    %361 = arith.addf %263, %3 : vector<64x32xf32>
    %c3_153 = arith.constant 3 : index
    %c0_154 = arith.constant 0 : index
    %c0_155 = arith.constant 0 : index
    %362 = vector.load %arg7[%c3_153, %c0_154, %c0_155] : memref<6x32x16xbf16, #tpu.memory_space<vmem>>, vector<1x32x16xbf16>
    %363 = vector.shape_cast %362 : vector<1x32x16xbf16> to vector<32x16xbf16>
    %c3_156 = arith.constant 3 : index
    %c0_157 = arith.constant 0 : index
    %364 = vector.load %arg8[%c3_156, %c0_157] : memref<6x16xf32, #tpu.memory_space<vmem>>, vector<1x16xf32>
    %c4_158 = arith.constant 4 : index
    %c0_159 = arith.constant 0 : index
    %c0_160 = arith.constant 0 : index
    %365 = vector.load %arg7[%c4_158, %c0_159, %c0_160] : memref<6x32x16xbf16, #tpu.memory_space<vmem>>, vector<1x32x16xbf16>
    %366 = vector.shape_cast %365 : vector<1x32x16xbf16> to vector<32x16xbf16>
    %c4_161 = arith.constant 4 : index
    %c0_162 = arith.constant 0 : index
    %367 = vector.load %arg8[%c4_161, %c0_162] : memref<6x16xf32, #tpu.memory_space<vmem>>, vector<1x16xf32>
    %c5_163 = arith.constant 5 : index
    %c0_164 = arith.constant 0 : index
    %c0_165 = arith.constant 0 : index
    %368 = vector.load %arg7[%c5_163, %c0_164, %c0_165] : memref<6x32x16xbf16, #tpu.memory_space<vmem>>, vector<1x32x16xbf16>
    %369 = vector.shape_cast %368 : vector<1x32x16xbf16> to vector<32x16xbf16>
    %c5_166 = arith.constant 5 : index
    %c0_167 = arith.constant 0 : index
    %370 = vector.load %arg8[%c5_166, %c0_167] : memref<6x16xf32, #tpu.memory_space<vmem>>, vector<1x16xf32>
    %c1_168 = arith.constant 1 : index
    %c0_169 = arith.constant 0 : index
    %c0_170 = arith.constant 0 : index
    %371 = vector.load %arg9[%c1_168, %c0_169, %c0_170] : memref<2x16x32xbf16, #tpu.memory_space<vmem>>, vector<1x16x32xbf16>
    %372 = vector.shape_cast %371 : vector<1x16x32xbf16> to vector<16x32xbf16>
    %c1_171 = arith.constant 1 : index
    %c0_172 = arith.constant 0 : index
    %373 = vector.load %arg10[%c1_171, %c0_172] : memref<2x32xf32, #tpu.memory_space<vmem>>, vector<1x32xf32>
    %374 = arith.truncf %360 : vector<8x32xf32> to vector<8x32xbf16>
    %cst_173 = arith.constant dense<0.000000e+00> : vector<8x16xf32>
    %375 = tpu.matmul %374, %363, %cst_173 {dimension_numbers = #tpu.dot_dimension_numbers<[1], [0], [0], [1], [0, 0, 1, 1], [], []>} : vector<8x32xbf16>, vector<32x16xbf16>, vector<8x16xf32> -> vector<8x16xf32>
    %376 = vector.broadcast %364 : vector<1x16xf32> to vector<8x16xf32>
    %377 = arith.addf %375, %376 : vector<8x16xf32>
    %378 = arith.truncf %377 : vector<8x16xf32> to vector<8x16xbf16>
    %379 = arith.truncf %361 : vector<64x32xf32> to vector<64x32xbf16>
    %cst_174 = arith.constant dense<0.000000e+00> : vector<64x16xf32>
    %380 = tpu.matmul %379, %366, %cst_174 {dimension_numbers = #tpu.dot_dimension_numbers<[1], [0], [0], [1], [0, 0, 1, 1], [], []>} : vector<64x32xbf16>, vector<32x16xbf16>, vector<64x16xf32> -> vector<64x16xf32>
    %381 = vector.broadcast %367 : vector<1x16xf32> to vector<64x16xf32>
    %382 = arith.addf %380, %381 : vector<64x16xf32>
    %383 = arith.truncf %382 : vector<64x16xf32> to vector<64x16xbf16>
    %384 = arith.truncf %263 : vector<64x32xf32> to vector<64x32xbf16>
    %cst_175 = arith.constant dense<0.000000e+00> : vector<64x16xf32>
    %385 = tpu.matmul %384, %369, %cst_175 {dimension_numbers = #tpu.dot_dimension_numbers<[1], [0], [0], [1], [0, 0, 1, 1], [], []>} : vector<64x32xbf16>, vector<32x16xbf16>, vector<64x16xf32> -> vector<64x16xf32>
    %386 = vector.broadcast %370 : vector<1x16xf32> to vector<64x16xf32>
    %387 = arith.addf %385, %386 : vector<64x16xf32>
    %388 = arith.truncf %387 : vector<64x16xf32> to vector<64x16xbf16>
    %cst_176 = arith.constant 0.000000e+00 : f32
    %389 = vector.broadcast %cst_176 : f32 to vector<8x32xf32>
    %390 = vector.extract_strided_slice %378 {offsets = [0, 0], sizes = [8, 8], strides = [1, 1]} : vector<8x16xbf16> to vector<8x8xbf16>
    %391 = vector.extract_strided_slice %383 {offsets = [0, 0], sizes = [64, 8], strides = [1, 1]} : vector<64x16xbf16> to vector<64x8xbf16>
    %cst_177 = arith.constant dense<0.000000e+00> : vector<8x64xf32>
    %392 = tpu.matmul %390, %391, %cst_177 {dimension_numbers = #tpu.dot_dimension_numbers<[1], [1], [0], [0], [0, 0, 1, 0], [], []>} : vector<8x8xbf16>, vector<64x8xbf16>, vector<8x64xf32> -> vector<8x64xf32>
    %cst_178 = arith.constant dense<0xFF800000> : vector<8xf32>
    %393 = vector.multi_reduction <maximumf>, %392, %cst_178 [1] : vector<8x64xf32> to vector<8xf32>
    %394 = vector.shape_cast %393 : vector<8xf32> to vector<8x1xf32>
    %395 = vector.broadcast %394 : vector<8x1xf32> to vector<8x64xf32>
    %396 = arith.subf %392, %395 : vector<8x64xf32>
    %397 = math.exp %396 : vector<8x64xf32>
    %cst_179 = arith.constant dense<0.000000e+00> : vector<8xf32>
    %398 = vector.multi_reduction <add>, %397, %cst_179 [1] : vector<8x64xf32> to vector<8xf32>
    %399 = vector.shape_cast %398 : vector<8xf32> to vector<8x1xf32>
    %400 = tpu.reciprocal %399 {approx = true} : vector<8x1xf32> -> vector<8x1xf32>
    %401 = vector.broadcast %400 : vector<8x1xf32> to vector<8x64xf32>
    %402 = arith.mulf %397, %401 : vector<8x64xf32>
    %403 = arith.truncf %402 : vector<8x64xf32> to vector<8x64xbf16>
    %404 = vector.extract_strided_slice %388 {offsets = [0, 0], sizes = [64, 8], strides = [1, 1]} : vector<64x16xbf16> to vector<64x8xbf16>
    %cst_180 = arith.constant dense<0.000000e+00> : vector<8x8xf32>
    %405 = tpu.matmul %403, %404, %cst_180 {dimension_numbers = #tpu.dot_dimension_numbers<[1], [0], [0], [1], [0, 0, 1, 1], [], []>} : vector<8x64xbf16>, vector<64x8xbf16>, vector<8x8xf32> -> vector<8x8xf32>
    %406 = arith.truncf %405 : vector<8x8xf32> to vector<8x8xbf16>
    %407 = vector.extract_strided_slice %372 {offsets = [0, 0], sizes = [8, 32], strides = [1, 1]} : vector<16x32xbf16> to vector<8x32xbf16>
    %cst_181 = arith.constant dense<0.000000e+00> : vector<8x32xf32>
    %408 = tpu.matmul %406, %407, %cst_181 {dimension_numbers = #tpu.dot_dimension_numbers<[1], [0], [0], [1], [0, 0, 1, 1], [], []>} : vector<8x8xbf16>, vector<8x32xbf16>, vector<8x32xf32> -> vector<8x32xf32>
    %409 = arith.addf %389, %408 : vector<8x32xf32>
    %410 = vector.extract_strided_slice %378 {offsets = [0, 8], sizes = [8, 8], strides = [1, 1]} : vector<8x16xbf16> to vector<8x8xbf16>
    %411 = vector.extract_strided_slice %383 {offsets = [0, 8], sizes = [64, 8], strides = [1, 1]} : vector<64x16xbf16> to vector<64x8xbf16>
    %cst_182 = arith.constant dense<0.000000e+00> : vector<8x64xf32>
    %412 = tpu.matmul %410, %411, %cst_182 {dimension_numbers = #tpu.dot_dimension_numbers<[1], [1], [0], [0], [0, 0, 1, 0], [], []>} : vector<8x8xbf16>, vector<64x8xbf16>, vector<8x64xf32> -> vector<8x64xf32>
    %cst_183 = arith.constant dense<0xFF800000> : vector<8xf32>
    %413 = vector.multi_reduction <maximumf>, %412, %cst_183 [1] : vector<8x64xf32> to vector<8xf32>
    %414 = vector.shape_cast %413 : vector<8xf32> to vector<8x1xf32>
    %415 = vector.broadcast %414 : vector<8x1xf32> to vector<8x64xf32>
    %416 = arith.subf %412, %415 : vector<8x64xf32>
    %417 = math.exp %416 : vector<8x64xf32>
    %cst_184 = arith.constant dense<0.000000e+00> : vector<8xf32>
    %418 = vector.multi_reduction <add>, %417, %cst_184 [1] : vector<8x64xf32> to vector<8xf32>
    %419 = vector.shape_cast %418 : vector<8xf32> to vector<8x1xf32>
    %420 = tpu.reciprocal %419 {approx = true} : vector<8x1xf32> -> vector<8x1xf32>
    %421 = vector.broadcast %420 : vector<8x1xf32> to vector<8x64xf32>
    %422 = arith.mulf %417, %421 : vector<8x64xf32>
    %423 = arith.truncf %422 : vector<8x64xf32> to vector<8x64xbf16>
    %424 = vector.extract_strided_slice %388 {offsets = [0, 8], sizes = [64, 8], strides = [1, 1]} : vector<64x16xbf16> to vector<64x8xbf16>
    %cst_185 = arith.constant dense<0.000000e+00> : vector<8x8xf32>
    %425 = tpu.matmul %423, %424, %cst_185 {dimension_numbers = #tpu.dot_dimension_numbers<[1], [0], [0], [1], [0, 0, 1, 1], [], []>} : vector<8x64xbf16>, vector<64x8xbf16>, vector<8x8xf32> -> vector<8x8xf32>
    %426 = arith.truncf %425 : vector<8x8xf32> to vector<8x8xbf16>
    %427 = vector.extract_strided_slice %372 {offsets = [8, 0], sizes = [8, 32], strides = [1, 1]} : vector<16x32xbf16> to vector<8x32xbf16>
    %cst_186 = arith.constant dense<0.000000e+00> : vector<8x32xf32>
    %428 = tpu.matmul %426, %427, %cst_186 {dimension_numbers = #tpu.dot_dimension_numbers<[1], [0], [0], [1], [0, 0, 1, 1], [], []>} : vector<8x8xbf16>, vector<8x32xbf16>, vector<8x32xf32> -> vector<8x32xf32>
    %429 = arith.addf %409, %428 : vector<8x32xf32>
    %430 = vector.broadcast %373 : vector<1x32xf32> to vector<8x32xf32>
    %431 = arith.addf %429, %430 : vector<8x32xf32>
    %432 = arith.addf %359, %431 : vector<8x32xf32>
    %433 = vector.extract_strided_slice %265 {offsets = [1, 0], sizes = [1, 32], strides = [1, 1]} : vector<8x32xf32> to vector<1x32xf32>
    %434 = vector.extract_strided_slice %265 {offsets = [5, 0], sizes = [1, 32], strides = [1, 1]} : vector<8x32xf32> to vector<1x32xf32>
    %cst_187 = arith.constant dense<0.000000e+00> : vector<8xf32>
    %435 = vector.multi_reduction <add>, %432, %cst_187 [1] : vector<8x32xf32> to vector<8xf32>
    %436 = vector.shape_cast %435 : vector<8xf32> to vector<8x1xf32>
    %cst_188 = arith.constant 3.200000e+01 : f32
    %437 = vector.broadcast %cst_188 : f32 to vector<8x1xf32>
    %438 = arith.divf %436, %437 : vector<8x1xf32>
    %439 = vector.broadcast %438 : vector<8x1xf32> to vector<8x32xf32>
    %440 = arith.subf %432, %439 : vector<8x32xf32>
    %441 = arith.mulf %440, %440 : vector<8x32xf32>
    %cst_189 = arith.constant dense<0.000000e+00> : vector<8xf32>
    %442 = vector.multi_reduction <add>, %441, %cst_189 [1] : vector<8x32xf32> to vector<8xf32>
    %443 = vector.shape_cast %442 : vector<8xf32> to vector<8x1xf32>
    %cst_190 = arith.constant 3.200000e+01 : f32
    %444 = vector.broadcast %cst_190 : f32 to vector<8x1xf32>
    %445 = arith.divf %443, %444 : vector<8x1xf32>
    %cst_191 = arith.constant 9.99999974E-6 : f32
    %446 = vector.broadcast %cst_191 : f32 to vector<8x1xf32>
    %447 = arith.addf %445, %446 : vector<8x1xf32>
    %448 = math.rsqrt %447 : vector<8x1xf32>
    %449 = vector.broadcast %448 : vector<8x1xf32> to vector<8x32xf32>
    %450 = arith.mulf %440, %449 : vector<8x32xf32>
    %451 = vector.broadcast %433 : vector<1x32xf32> to vector<8x32xf32>
    %452 = arith.mulf %450, %451 : vector<8x32xf32>
    %453 = vector.broadcast %434 : vector<1x32xf32> to vector<8x32xf32>
    %454 = arith.addf %452, %453 : vector<8x32xf32>
    %455 = arith.truncf %454 : vector<8x32xf32> to vector<8x32xbf16>
    %c1_192 = arith.constant 1 : index
    %c0_193 = arith.constant 0 : index
    %c0_194 = arith.constant 0 : index
    %456 = vector.load %arg11[%c1_192, %c0_193, %c0_194] : memref<2x32x64xbf16, #tpu.memory_space<vmem>>, vector<1x32x64xbf16>
    %457 = vector.shape_cast %456 : vector<1x32x64xbf16> to vector<32x64xbf16>
    %cst_195 = arith.constant dense<0.000000e+00> : vector<8x64xf32>
    %458 = tpu.matmul %455, %457, %cst_195 {dimension_numbers = #tpu.dot_dimension_numbers<[1], [0], [0], [1], [0, 0, 1, 1], [], []>} : vector<8x32xbf16>, vector<32x64xbf16>, vector<8x64xf32> -> vector<8x64xf32>
    %c1_196 = arith.constant 1 : index
    %c0_197 = arith.constant 0 : index
    %459 = vector.load %arg12[%c1_196, %c0_197] : memref<2x64xf32, #tpu.memory_space<vmem>>, vector<1x64xf32>
    %460 = vector.broadcast %459 : vector<1x64xf32> to vector<8x64xf32>
    %461 = arith.addf %458, %460 : vector<8x64xf32>
    %cst_198 = arith.constant 0.000000e+00 : f32
    %462 = vector.broadcast %cst_198 : f32 to vector<8x64xf32>
    %463 = arith.maximumf %461, %462 : vector<8x64xf32>
    %464 = arith.truncf %463 : vector<8x64xf32> to vector<8x64xbf16>
    %c1_199 = arith.constant 1 : index
    %c0_200 = arith.constant 0 : index
    %c0_201 = arith.constant 0 : index
    %465 = vector.load %arg13[%c1_199, %c0_200, %c0_201] : memref<2x64x32xbf16, #tpu.memory_space<vmem>>, vector<1x64x32xbf16>
    %466 = vector.shape_cast %465 : vector<1x64x32xbf16> to vector<64x32xbf16>
    %cst_202 = arith.constant dense<0.000000e+00> : vector<8x32xf32>
    %467 = tpu.matmul %464, %466, %cst_202 {dimension_numbers = #tpu.dot_dimension_numbers<[1], [0], [0], [1], [0, 0, 1, 1], [], []>} : vector<8x64xbf16>, vector<64x32xbf16>, vector<8x32xf32> -> vector<8x32xf32>
    %c1_203 = arith.constant 1 : index
    %c0_204 = arith.constant 0 : index
    %468 = vector.load %arg14[%c1_203, %c0_204] : memref<2x32xf32, #tpu.memory_space<vmem>>, vector<1x32xf32>
    %469 = vector.broadcast %468 : vector<1x32xf32> to vector<8x32xf32>
    %470 = arith.addf %467, %469 : vector<8x32xf32>
    %471 = arith.addf %454, %470 : vector<8x32xf32>
    %472 = vector.extract_strided_slice %265 {offsets = [2, 0], sizes = [1, 32], strides = [1, 1]} : vector<8x32xf32> to vector<1x32xf32>
    %473 = vector.extract_strided_slice %265 {offsets = [6, 0], sizes = [1, 32], strides = [1, 1]} : vector<8x32xf32> to vector<1x32xf32>
    %cst_205 = arith.constant dense<0.000000e+00> : vector<8xf32>
    %474 = vector.multi_reduction <add>, %471, %cst_205 [1] : vector<8x32xf32> to vector<8xf32>
    %475 = vector.shape_cast %474 : vector<8xf32> to vector<8x1xf32>
    %cst_206 = arith.constant 3.200000e+01 : f32
    %476 = vector.broadcast %cst_206 : f32 to vector<8x1xf32>
    %477 = arith.divf %475, %476 : vector<8x1xf32>
    %478 = vector.broadcast %477 : vector<8x1xf32> to vector<8x32xf32>
    %479 = arith.subf %471, %478 : vector<8x32xf32>
    %480 = arith.mulf %479, %479 : vector<8x32xf32>
    %cst_207 = arith.constant dense<0.000000e+00> : vector<8xf32>
    %481 = vector.multi_reduction <add>, %480, %cst_207 [1] : vector<8x32xf32> to vector<8xf32>
    %482 = vector.shape_cast %481 : vector<8xf32> to vector<8x1xf32>
    %cst_208 = arith.constant 3.200000e+01 : f32
    %483 = vector.broadcast %cst_208 : f32 to vector<8x1xf32>
    %484 = arith.divf %482, %483 : vector<8x1xf32>
    %cst_209 = arith.constant 9.99999974E-6 : f32
    %485 = vector.broadcast %cst_209 : f32 to vector<8x1xf32>
    %486 = arith.addf %484, %485 : vector<8x1xf32>
    %487 = math.rsqrt %486 : vector<8x1xf32>
    %488 = vector.broadcast %487 : vector<8x1xf32> to vector<8x32xf32>
    %489 = arith.mulf %479, %488 : vector<8x32xf32>
    %490 = vector.broadcast %472 : vector<1x32xf32> to vector<8x32xf32>
    %491 = arith.mulf %489, %490 : vector<8x32xf32>
    %492 = vector.broadcast %473 : vector<1x32xf32> to vector<8x32xf32>
    %493 = arith.addf %491, %492 : vector<8x32xf32>
    %494 = vector.extract_strided_slice %265 {offsets = [3, 0], sizes = [1, 32], strides = [1, 1]} : vector<8x32xf32> to vector<1x32xf32>
    %495 = vector.extract_strided_slice %265 {offsets = [7, 0], sizes = [1, 32], strides = [1, 1]} : vector<8x32xf32> to vector<1x32xf32>
    %cst_210 = arith.constant dense<0.000000e+00> : vector<64xf32>
    %496 = vector.multi_reduction <add>, %263, %cst_210 [1] : vector<64x32xf32> to vector<64xf32>
    %497 = vector.shape_cast %496 : vector<64xf32> to vector<64x1xf32>
    %cst_211 = arith.constant 3.200000e+01 : f32
    %498 = vector.broadcast %cst_211 : f32 to vector<64x1xf32>
    %499 = arith.divf %497, %498 : vector<64x1xf32>
    %500 = vector.broadcast %499 : vector<64x1xf32> to vector<64x32xf32>
    %501 = arith.subf %263, %500 : vector<64x32xf32>
    %502 = arith.mulf %501, %501 : vector<64x32xf32>
    %cst_212 = arith.constant dense<0.000000e+00> : vector<64xf32>
    %503 = vector.multi_reduction <add>, %502, %cst_212 [1] : vector<64x32xf32> to vector<64xf32>
    %504 = vector.shape_cast %503 : vector<64xf32> to vector<64x1xf32>
    %cst_213 = arith.constant 3.200000e+01 : f32
    %505 = vector.broadcast %cst_213 : f32 to vector<64x1xf32>
    %506 = arith.divf %504, %505 : vector<64x1xf32>
    %cst_214 = arith.constant 9.99999974E-6 : f32
    %507 = vector.broadcast %cst_214 : f32 to vector<64x1xf32>
    %508 = arith.addf %506, %507 : vector<64x1xf32>
    %509 = math.rsqrt %508 : vector<64x1xf32>
    %510 = vector.broadcast %509 : vector<64x1xf32> to vector<64x32xf32>
    %511 = arith.mulf %501, %510 : vector<64x32xf32>
    %512 = vector.broadcast %494 : vector<1x32xf32> to vector<64x32xf32>
    %513 = arith.mulf %511, %512 : vector<64x32xf32>
    %514 = vector.broadcast %495 : vector<1x32xf32> to vector<64x32xf32>
    %515 = arith.addf %513, %514 : vector<64x32xf32>
    %516 = arith.truncf %515 : vector<64x32xf32> to vector<64x32xbf16>
    %c0_215 = arith.constant 0 : index
    %c1_216 = arith.constant 1 : index
    %c0_217 = arith.constant 0 : index
    %c0_218 = arith.constant 0 : index
    %517 = vector.load %arg23[%c0_215, %c1_216, %c0_217, %c0_218] : memref<1x2x64x32xbf16, #tpu.memory_space<vmem>>, vector<1x1x64x32xbf16>
    %518 = vector.shape_cast %517 : vector<1x1x64x32xbf16> to vector<64x32xbf16>
    %519 = vector.shape_cast %516 : vector<64x32xbf16> to vector<1x1x64x32xbf16>
    tpu.vector_store %arg23[%c0_215, %c1_216, %c0_217, %c0_218], %519 {strides = array<i32>} : memref<1x2x64x32xbf16, #tpu.memory_space<vmem>>, vector<1x1x64x32xbf16>,
    %520 = arith.addf %493, %1 : vector<8x32xf32>
    %521 = arith.addf %515, %3 : vector<64x32xf32>
    %c0_219 = arith.constant 0 : index
    %c0_220 = arith.constant 0 : index
    %c0_221 = arith.constant 0 : index
    %522 = vector.load %arg16[%c0_219, %c0_220, %c0_221] : memref<3x32x16xbf16, #tpu.memory_space<vmem>>, vector<1x32x16xbf16>
    %523 = vector.shape_cast %522 : vector<1x32x16xbf16> to vector<32x16xbf16>
    %c0_222 = arith.constant 0 : index
    %c0_223 = arith.constant 0 : index
    %524 = vector.load %arg17[%c0_222, %c0_223] : memref<3x16xf32, #tpu.memory_space<vmem>>, vector<1x16xf32>
    %c1_224 = arith.constant 1 : index
    %c0_225 = arith.constant 0 : index
    %c0_226 = arith.constant 0 : index
    %525 = vector.load %arg16[%c1_224, %c0_225, %c0_226] : memref<3x32x16xbf16, #tpu.memory_space<vmem>>, vector<1x32x16xbf16>
    %526 = vector.shape_cast %525 : vector<1x32x16xbf16> to vector<32x16xbf16>
    %c1_227 = arith.constant 1 : index
    %c0_228 = arith.constant 0 : index
    %527 = vector.load %arg17[%c1_227, %c0_228] : memref<3x16xf32, #tpu.memory_space<vmem>>, vector<1x16xf32>
    %c2_229 = arith.constant 2 : index
    %c0_230 = arith.constant 0 : index
    %c0_231 = arith.constant 0 : index
    %528 = vector.load %arg16[%c2_229, %c0_230, %c0_231] : memref<3x32x16xbf16, #tpu.memory_space<vmem>>, vector<1x32x16xbf16>
    %529 = vector.shape_cast %528 : vector<1x32x16xbf16> to vector<32x16xbf16>
    %c2_232 = arith.constant 2 : index
    %c0_233 = arith.constant 0 : index
    %530 = vector.load %arg17[%c2_232, %c0_233] : memref<3x16xf32, #tpu.memory_space<vmem>>, vector<1x16xf32>
    %c0_234 = arith.constant 0 : index
    %c0_235 = arith.constant 0 : index
    %531 = vector.load %arg18[%c0_234, %c0_235] : memref<16x32xbf16, #tpu.memory_space<vmem>>, vector<16x32xbf16>
    %c0_236 = arith.constant 0 : index
    %c0_237 = arith.constant 0 : index
    %532 = vector.load %arg19[%c0_236, %c0_237] : memref<1x32xf32, #tpu.memory_space<vmem>>, vector<1x32xf32>
    %533 = arith.truncf %520 : vector<8x32xf32> to vector<8x32xbf16>
    %cst_238 = arith.constant dense<0.000000e+00> : vector<8x16xf32>
    %534 = tpu.matmul %533, %523, %cst_238 {dimension_numbers = #tpu.dot_dimension_numbers<[1], [0], [0], [1], [0, 0, 1, 1], [], []>} : vector<8x32xbf16>, vector<32x16xbf16>, vector<8x16xf32> -> vector<8x16xf32>
    %535 = vector.broadcast %524 : vector<1x16xf32> to vector<8x16xf32>
    %536 = arith.addf %534, %535 : vector<8x16xf32>
    %537 = arith.truncf %536 : vector<8x16xf32> to vector<8x16xbf16>
    %538 = arith.truncf %521 : vector<64x32xf32> to vector<64x32xbf16>
    %cst_239 = arith.constant dense<0.000000e+00> : vector<64x16xf32>
    %539 = tpu.matmul %538, %526, %cst_239 {dimension_numbers = #tpu.dot_dimension_numbers<[1], [0], [0], [1], [0, 0, 1, 1], [], []>} : vector<64x32xbf16>, vector<32x16xbf16>, vector<64x16xf32> -> vector<64x16xf32>
    %540 = vector.broadcast %527 : vector<1x16xf32> to vector<64x16xf32>
    %541 = arith.addf %539, %540 : vector<64x16xf32>
    %542 = arith.truncf %541 : vector<64x16xf32> to vector<64x16xbf16>
    %543 = arith.truncf %515 : vector<64x32xf32> to vector<64x32xbf16>
    %cst_240 = arith.constant dense<0.000000e+00> : vector<64x16xf32>
    %544 = tpu.matmul %543, %529, %cst_240 {dimension_numbers = #tpu.dot_dimension_numbers<[1], [0], [0], [1], [0, 0, 1, 1], [], []>} : vector<64x32xbf16>, vector<32x16xbf16>, vector<64x16xf32> -> vector<64x16xf32>
    %545 = vector.broadcast %530 : vector<1x16xf32> to vector<64x16xf32>
    %546 = arith.addf %544, %545 : vector<64x16xf32>
    %547 = arith.truncf %546 : vector<64x16xf32> to vector<64x16xbf16>
    %cst_241 = arith.constant 0.000000e+00 : f32
    %548 = vector.broadcast %cst_241 : f32 to vector<8x32xf32>
    %549 = vector.extract_strided_slice %537 {offsets = [0, 0], sizes = [8, 8], strides = [1, 1]} : vector<8x16xbf16> to vector<8x8xbf16>
    %550 = vector.extract_strided_slice %542 {offsets = [0, 0], sizes = [64, 8], strides = [1, 1]} : vector<64x16xbf16> to vector<64x8xbf16>
    %cst_242 = arith.constant dense<0.000000e+00> : vector<8x64xf32>
    %551 = tpu.matmul %549, %550, %cst_242 {dimension_numbers = #tpu.dot_dimension_numbers<[1], [1], [0], [0], [0, 0, 1, 0], [], []>} : vector<8x8xbf16>, vector<64x8xbf16>, vector<8x64xf32> -> vector<8x64xf32>
    %cst_243 = arith.constant dense<0xFF800000> : vector<8xf32>
    %552 = vector.multi_reduction <maximumf>, %551, %cst_243 [1] : vector<8x64xf32> to vector<8xf32>
    %553 = vector.shape_cast %552 : vector<8xf32> to vector<8x1xf32>
    %554 = vector.broadcast %553 : vector<8x1xf32> to vector<8x64xf32>
    %555 = arith.subf %551, %554 : vector<8x64xf32>
    %556 = math.exp %555 : vector<8x64xf32>
    %cst_244 = arith.constant dense<0.000000e+00> : vector<8xf32>
    %557 = vector.multi_reduction <add>, %556, %cst_244 [1] : vector<8x64xf32> to vector<8xf32>
    %558 = vector.shape_cast %557 : vector<8xf32> to vector<8x1xf32>
    %559 = tpu.reciprocal %558 {approx = true} : vector<8x1xf32> -> vector<8x1xf32>
    %560 = vector.broadcast %559 : vector<8x1xf32> to vector<8x64xf32>
    %561 = arith.mulf %556, %560 : vector<8x64xf32>
    %562 = arith.truncf %561 : vector<8x64xf32> to vector<8x64xbf16>
    %563 = vector.extract_strided_slice %547 {offsets = [0, 0], sizes = [64, 8], strides = [1, 1]} : vector<64x16xbf16> to vector<64x8xbf16>
    %cst_245 = arith.constant dense<0.000000e+00> : vector<8x8xf32>
    %564 = tpu.matmul %562, %563, %cst_245 {dimension_numbers = #tpu.dot_dimension_numbers<[1], [0], [0], [1], [0, 0, 1, 1], [], []>} : vector<8x64xbf16>, vector<64x8xbf16>, vector<8x8xf32> -> vector<8x8xf32>
    %565 = arith.truncf %564 : vector<8x8xf32> to vector<8x8xbf16>
    %566 = vector.extract_strided_slice %531 {offsets = [0, 0], sizes = [8, 32], strides = [1, 1]} : vector<16x32xbf16> to vector<8x32xbf16>
    %cst_246 = arith.constant dense<0.000000e+00> : vector<8x32xf32>
    %567 = tpu.matmul %565, %566, %cst_246 {dimension_numbers = #tpu.dot_dimension_numbers<[1], [0], [0], [1], [0, 0, 1, 1], [], []>} : vector<8x8xbf16>, vector<8x32xbf16>, vector<8x32xf32> -> vector<8x32xf32>
    %568 = arith.addf %548, %567 : vector<8x32xf32>
    %569 = vector.extract_strided_slice %537 {offsets = [0, 8], sizes = [8, 8], strides = [1, 1]} : vector<8x16xbf16> to vector<8x8xbf16>
    %570 = vector.extract_strided_slice %542 {offsets = [0, 8], sizes = [64, 8], strides = [1, 1]} : vector<64x16xbf16> to vector<64x8xbf16>
    %cst_247 = arith.constant dense<0.000000e+00> : vector<8x64xf32>
    %571 = tpu.matmul %569, %570, %cst_247 {dimension_numbers = #tpu.dot_dimension_numbers<[1], [1], [0], [0], [0, 0, 1, 0], [], []>} : vector<8x8xbf16>, vector<64x8xbf16>, vector<8x64xf32> -> vector<8x64xf32>
    %cst_248 = arith.constant dense<0xFF800000> : vector<8xf32>
    %572 = vector.multi_reduction <maximumf>, %571, %cst_248 [1] : vector<8x64xf32> to vector<8xf32>
    %573 = vector.shape_cast %572 : vector<8xf32> to vector<8x1xf32>
    %574 = vector.broadcast %573 : vector<8x1xf32> to vector<8x64xf32>
    %575 = arith.subf %571, %574 : vector<8x64xf32>
    %576 = math.exp %575 : vector<8x64xf32>
    %cst_249 = arith.constant dense<0.000000e+00> : vector<8xf32>
    %577 = vector.multi_reduction <add>, %576, %cst_249 [1] : vector<8x64xf32> to vector<8xf32>
    %578 = vector.shape_cast %577 : vector<8xf32> to vector<8x1xf32>
    %579 = tpu.reciprocal %578 {approx = true} : vector<8x1xf32> -> vector<8x1xf32>
    %580 = vector.broadcast %579 : vector<8x1xf32> to vector<8x64xf32>
    %581 = arith.mulf %576, %580 : vector<8x64xf32>
    %582 = arith.truncf %581 : vector<8x64xf32> to vector<8x64xbf16>
    %583 = vector.extract_strided_slice %547 {offsets = [0, 8], sizes = [64, 8], strides = [1, 1]} : vector<64x16xbf16> to vector<64x8xbf16>
    %cst_250 = arith.constant dense<0.000000e+00> : vector<8x8xf32>
    %584 = tpu.matmul %582, %583, %cst_250 {dimension_numbers = #tpu.dot_dimension_numbers<[1], [0], [0], [1], [0, 0, 1, 1], [], []>} : vector<8x64xbf16>, vector<64x8xbf16>, vector<8x8xf32> -> vector<8x8xf32>
    %585 = arith.truncf %584 : vector<8x8xf32> to vector<8x8xbf16>
    %586 = vector.extract_strided_slice %531 {offsets = [8, 0], sizes = [8, 32], strides = [1, 1]} : vector<16x32xbf16> to vector<8x32xbf16>
    %cst_251 = arith.constant dense<0.000000e+00> : vector<8x32xf32>
    %587 = tpu.matmul %585, %586, %cst_251 {dimension_numbers = #tpu.dot_dimension_numbers<[1], [0], [0], [1], [0, 0, 1, 1], [], []>} : vector<8x8xbf16>, vector<8x32xbf16>, vector<8x32xf32> -> vector<8x32xf32>
    %588 = arith.addf %568, %587 : vector<8x32xf32>
    %589 = vector.broadcast %532 : vector<1x32xf32> to vector<8x32xf32>
    %590 = arith.addf %588, %589 : vector<8x32xf32>
    %591 = arith.addf %493, %590 : vector<8x32xf32>
    %c0_252 = arith.constant 0 : index
    %c0_253 = arith.constant 0 : index
    %592 = vector.load %arg20[%c0_252, %c0_253] : memref<2x32xf32, #tpu.memory_space<vmem>>, vector<1x32xf32>
    %c1_254 = arith.constant 1 : index
    %c0_255 = arith.constant 0 : index
    %593 = vector.load %arg20[%c1_254, %c0_255] : memref<2x32xf32, #tpu.memory_space<vmem>>, vector<1x32xf32>
    %cst_256 = arith.constant dense<0.000000e+00> : vector<8xf32>
    %594 = vector.multi_reduction <add>, %591, %cst_256 [1] : vector<8x32xf32> to vector<8xf32>
    %595 = vector.shape_cast %594 : vector<8xf32> to vector<8x1xf32>
    %cst_257 = arith.constant 3.200000e+01 : f32
    %596 = vector.broadcast %cst_257 : f32 to vector<8x1xf32>
    %597 = arith.divf %595, %596 : vector<8x1xf32>
    %598 = vector.broadcast %597 : vector<8x1xf32> to vector<8x32xf32>
    %599 = arith.subf %591, %598 : vector<8x32xf32>
    %600 = arith.mulf %599, %599 : vector<8x32xf32>
    %cst_258 = arith.constant dense<0.000000e+00> : vector<8xf32>
    %601 = vector.multi_reduction <add>, %600, %cst_258 [1] : vector<8x32xf32> to vector<8xf32>
    %602 = vector.shape_cast %601 : vector<8xf32> to vector<8x1xf32>
    %cst_259 = arith.constant 3.200000e+01 : f32
    %603 = vector.broadcast %cst_259 : f32 to vector<8x1xf32>
    %604 = arith.divf %602, %603 : vector<8x1xf32>
    %cst_260 = arith.constant 9.99999974E-6 : f32
    %605 = vector.broadcast %cst_260 : f32 to vector<8x1xf32>
    %606 = arith.addf %604, %605 : vector<8x1xf32>
    %607 = math.rsqrt %606 : vector<8x1xf32>
    %608 = vector.broadcast %607 : vector<8x1xf32> to vector<8x32xf32>
    %609 = arith.mulf %599, %608 : vector<8x32xf32>
    %610 = vector.broadcast %592 : vector<1x32xf32> to vector<8x32xf32>
    %611 = arith.mulf %609, %610 : vector<8x32xf32>
    %612 = vector.broadcast %593 : vector<1x32xf32> to vector<8x32xf32>
    %613 = arith.addf %611, %612 : vector<8x32xf32>
    %c0_261 = arith.constant 0 : index
    %c0_262 = arith.constant 0 : index
    %c0_263 = arith.constant 0 : index
    %614 = vector.load %arg21[%c0_261, %c0_262, %c0_263] : memref<1x8x32xf32, #tpu.memory_space<vmem>>, vector<1x8x32xf32>
    %615 = vector.shape_cast %614 : vector<1x8x32xf32> to vector<8x32xf32>
    %616 = vector.shape_cast %613 : vector<8x32xf32> to vector<1x8x32xf32>
    tpu.vector_store %arg21[%c0_261, %c0_262, %c0_263], %616 {strides = array<i32>} : memref<1x8x32xf32, #tpu.memory_space<vmem>>, vector<1x8x32xf32>,
    %617 = arith.truncf %515 : vector<64x32xf32> to vector<64x32xbf16>
    %c0_264 = arith.constant 0 : index
    %c0_265 = arith.constant 0 : index
    %c0_266 = arith.constant 0 : index
    %618 = vector.load %arg22[%c0_264, %c0_265, %c0_266] : memref<1x64x32xbf16, #tpu.memory_space<vmem>>, vector<1x64x32xbf16>
    %619 = vector.shape_cast %618 : vector<1x64x32xbf16> to vector<64x32xbf16>
    %620 = vector.shape_cast %617 : vector<64x32xbf16> to vector<1x64x32xbf16>
    tpu.vector_store %arg22[%c0_264, %c0_265, %c0_266], %620 {strides = array<i32>} : memref<1x64x32xbf16, #tpu.memory_space<vmem>>, vector<1x64x32xbf16>,
    return
  }
  func.func @transform_0(%arg0: i32) -> (i32, i32, i32) {
    %c0_i32 = arith.constant 0 : i32
    %c0_i32_0 = arith.constant 0 : i32
    %c0_i32_1 = arith.constant 0 : i32
    return %arg0, %c0_i32, %c0_i32_0 : i32, i32, i32
  }
  func.func @transform_1(%arg0: i32) -> (i32, i32, i32) {
    %c0_i32 = arith.constant 0 : i32
    %c0_i32_0 = arith.constant 0 : i32
    %c0_i32_1 = arith.constant 0 : i32
    return %arg0, %c0_i32, %c0_i32_0 : i32, i32, i32
  }
  func.func @transform_2(%arg0: i32) -> (i32, i32, i32) {
    %c0_i32 = arith.constant 0 : i32
    %c0_i32_0 = arith.constant 0 : i32
    %c0_i32_1 = arith.constant 0 : i32
    return %arg0, %c0_i32, %c0_i32_0 : i32, i32, i32
  }
  func.func @transform_3(%arg0: i32) -> (i32, i32, i32) {
    %c0_i32 = arith.constant 0 : i32
    %c0_i32_0 = arith.constant 0 : i32
    %c0_i32_1 = arith.constant 0 : i32
    return %arg0, %c0_i32, %c0_i32_0 : i32, i32, i32
  }
  func.func @transform_4(%arg0: i32) -> (i32, i32, i32) {
    %c0_i32 = arith.constant 0 : i32
    %c0_i32_0 = arith.constant 0 : i32
    %c0_i32_1 = arith.constant 0 : i32
    %c0_i32_2 = arith.constant 0 : i32
    return %c0_i32, %c0_i32_0, %c0_i32_1 : i32, i32, i32
  }
  func.func @transform_5(%arg0: i32) -> (i32, i32) {
    %c0_i32 = arith.constant 0 : i32
    %c0_i32_0 = arith.constant 0 : i32
    %c0_i32_1 = arith.constant 0 : i32
    return %c0_i32, %c0_i32_0 : i32, i32
  }
  func.func @transform_6(%arg0: i32) -> (i32, i32, i32) {
    %c0_i32 = arith.constant 0 : i32
    %c0_i32_0 = arith.constant 0 : i32
    %c0_i32_1 = arith.constant 0 : i32
    %c0_i32_2 = arith.constant 0 : i32
    return %c0_i32, %c0_i32_0, %c0_i32_1 : i32, i32, i32
  }
  func.func @transform_7(%arg0: i32) -> (i32, i32) {
    %c0_i32 = arith.constant 0 : i32
    %c0_i32_0 = arith.constant 0 : i32
    %c0_i32_1 = arith.constant 0 : i32
    return %c0_i32, %c0_i32_0 : i32, i32
  }
  func.func @transform_8(%arg0: i32) -> (i32, i32, i32) {
    %c0_i32 = arith.constant 0 : i32
    %c0_i32_0 = arith.constant 0 : i32
    %c0_i32_1 = arith.constant 0 : i32
    %c0_i32_2 = arith.constant 0 : i32
    return %c0_i32, %c0_i32_0, %c0_i32_1 : i32, i32, i32
  }
  func.func @transform_9(%arg0: i32) -> (i32, i32) {
    %c0_i32 = arith.constant 0 : i32
    %c0_i32_0 = arith.constant 0 : i32
    %c0_i32_1 = arith.constant 0 : i32
    return %c0_i32, %c0_i32_0 : i32, i32
  }
  func.func @transform_10(%arg0: i32) -> (i32, i32, i32) {
    %c0_i32 = arith.constant 0 : i32
    %c0_i32_0 = arith.constant 0 : i32
    %c0_i32_1 = arith.constant 0 : i32
    %c0_i32_2 = arith.constant 0 : i32
    return %c0_i32, %c0_i32_0, %c0_i32_1 : i32, i32, i32
  }
  func.func @transform_11(%arg0: i32) -> (i32, i32) {
    %c0_i32 = arith.constant 0 : i32
    %c0_i32_0 = arith.constant 0 : i32
    %c0_i32_1 = arith.constant 0 : i32
    return %c0_i32, %c0_i32_0 : i32, i32
  }
  func.func @transform_12(%arg0: i32) -> (i32, i32, i32) {
    %c0_i32 = arith.constant 0 : i32
    %c0_i32_0 = arith.constant 0 : i32
    %c0_i32_1 = arith.constant 0 : i32
    %c0_i32_2 = arith.constant 0 : i32
    return %c0_i32, %c0_i32_0, %c0_i32_1 : i32, i32, i32
  }
  func.func @transform_13(%arg0: i32) -> (i32, i32) {
    %c0_i32 = arith.constant 0 : i32
    %c0_i32_0 = arith.constant 0 : i32
    %c0_i32_1 = arith.constant 0 : i32
    return %c0_i32, %c0_i32_0 : i32, i32
  }
  func.func @transform_14(%arg0: i32) -> (i32, i32, i32) {
    %c0_i32 = arith.constant 0 : i32
    %c0_i32_0 = arith.constant 0 : i32
    %c0_i32_1 = arith.constant 0 : i32
    %c0_i32_2 = arith.constant 0 : i32
    return %c0_i32, %c0_i32_0, %c0_i32_1 : i32, i32, i32
  }
  func.func @transform_15(%arg0: i32) -> (i32, i32, i32) {
    %c0_i32 = arith.constant 0 : i32
    %c0_i32_0 = arith.constant 0 : i32
    %c0_i32_1 = arith.constant 0 : i32
    %c0_i32_2 = arith.constant 0 : i32
    return %c0_i32, %c0_i32_0, %c0_i32_1 : i32, i32, i32
  }
  func.func @transform_16(%arg0: i32) -> (i32, i32) {
    %c0_i32 = arith.constant 0 : i32
    %c0_i32_0 = arith.constant 0 : i32
    %c0_i32_1 = arith.constant 0 : i32
    return %c0_i32, %c0_i32_0 : i32, i32
  }
  func.func @transform_17(%arg0: i32) -> (i32, i32) {
    %c0_i32 = arith.constant 0 : i32
    %c0_i32_0 = arith.constant 0 : i32
    %c0_i32_1 = arith.constant 0 : i32
    return %c0_i32, %c0_i32_0 : i32, i32
  }
  func.func @transform_18(%arg0: i32) -> (i32, i32) {
    %c0_i32 = arith.constant 0 : i32
    %c0_i32_0 = arith.constant 0 : i32
    %c0_i32_1 = arith.constant 0 : i32
    return %c0_i32, %c0_i32_0 : i32, i32
  }
  func.func @transform_19(%arg0: i32) -> (i32, i32) {
    %c0_i32 = arith.constant 0 : i32
    %c0_i32_0 = arith.constant 0 : i32
    %c0_i32_1 = arith.constant 0 : i32
    return %c0_i32, %c0_i32_0 : i32, i32
  }
  func.func @transform_20(%arg0: i32) -> (i32, i32, i32) {
    %c0_i32 = arith.constant 0 : i32
    %c0_i32_0 = arith.constant 0 : i32
    %c0_i32_1 = arith.constant 0 : i32
    return %arg0, %c0_i32, %c0_i32_0 : i32, i32, i32
  }
  func.func @transform_21(%arg0: i32) -> (i32, i32, i32) {
    %c0_i32 = arith.constant 0 : i32
    %c0_i32_0 = arith.constant 0 : i32
    %c0_i32_1 = arith.constant 0 : i32
    return %arg0, %c0_i32, %c0_i32_0 : i32, i32, i32
  }
  func.func @transform_22(%arg0: i32) -> (i32, i32, i32, i32) {
    %c0_i32 = arith.constant 0 : i32
    %c0_i32_0 = arith.constant 0 : i32
    %c0_i32_1 = arith.constant 0 : i32
    %c0_i32_2 = arith.constant 0 : i32
    return %arg0, %c0_i32, %c0_i32_0, %c0_i32_1 : i32, i32, i32, i32
  }
}

module attributes {stable_mosaic.version = 11 : i64} {
  func.func @kernel(%arg0: i32, %arg1: memref<1x8x32xf32, #tpu.memory_space<vmem>>, %arg2: memref<1x64x32xf32, #tpu.memory_space<vmem>>, %arg3: memref<1x64x32xf32, #tpu.memory_space<vmem>>, %arg4: memref<1x64x32xf32, #tpu.memory_space<vmem>>, %arg5: memref<8x32x32xbf16, #tpu.memory_space<vmem>>, %arg6: memref<8x32xf32, #tpu.memory_space<vmem>>, %arg7: memref<6x32x16xbf16, #tpu.memory_space<vmem>>, %arg8: memref<6x16xf32, #tpu.memory_space<vmem>>, %arg9: memref<2x16x32xbf16, #tpu.memory_space<vmem>>, %arg10: memref<2x32xf32, #tpu.memory_space<vmem>>, %arg11: memref<2x32x64xbf16, #tpu.memory_space<vmem>>, %arg12: memref<2x64xf32, #tpu.memory_space<vmem>>, %arg13: memref<2x64x32xbf16, #tpu.memory_space<vmem>>, %arg14: memref<2x32xf32, #tpu.memory_space<vmem>>, %arg15: memref<2x8x32xf32, #tpu.memory_space<vmem>>, %arg16: memref<3x32x16xbf16, #tpu.memory_space<vmem>>, %arg17: memref<3x16xf32, #tpu.memory_space<vmem>>, %arg18: memref<16x32xbf16, #tpu.memory_space<vmem>>, %arg19: memref<1x32xf32, #tpu.memory_space<vmem>>, %arg20: memref<2x32xf32, #tpu.memory_space<vmem>>, %arg21: memref<1x8x32xf32, #tpu.memory_space<vmem>>, %arg22: memref<1x64x32xbf16, #tpu.memory_space<vmem>>, %arg23: memref<1x2x64x32xbf16, #tpu.memory_space<vmem>>) attributes {dimension_semantics = [#tpu.dimension_semantics<parallel>], iteration_bounds = array<i64: 2>, scalar_prefetch = 0 : i64, scratch_operands = 0 : i64, tpu.core_type = #tpu.core_type<tc>, window_params = [{transform_indices = @transform_0, window_bounds = array<i64: 1, 8, 32>}, {transform_indices = @transform_1, window_bounds = array<i64: 1, 64, 32>}, {transform_indices = @transform_2, window_bounds = array<i64: 1, 64, 32>}, {transform_indices = @transform_3, window_bounds = array<i64: 1, 64, 32>}, {pipeline_mode = #tpu.pipeline_mode<synchronous>, transform_indices = @transform_4, window_bounds = array<i64: 8, 32, 32>}, {pipeline_mode = #tpu.pipeline_mode<synchronous>, transform_indices = @transform_5, window_bounds = array<i64: 8, 32>}, {pipeline_mode = #tpu.pipeline_mode<synchronous>, transform_indices = @transform_6, window_bounds = array<i64: 6, 32, 16>}, {pipeline_mode = #tpu.pipeline_mode<synchronous>, transform_indices = @transform_7, window_bounds = array<i64: 6, 16>}, {pipeline_mode = #tpu.pipeline_mode<synchronous>, transform_indices = @transform_8, window_bounds = array<i64: 2, 16, 32>}, {pipeline_mode = #tpu.pipeline_mode<synchronous>, transform_indices = @transform_9, window_bounds = array<i64: 2, 32>}, {pipeline_mode = #tpu.pipeline_mode<synchronous>, transform_indices = @transform_10, window_bounds = array<i64: 2, 32, 64>}, {pipeline_mode = #tpu.pipeline_mode<synchronous>, transform_indices = @transform_11, window_bounds = array<i64: 2, 64>}, {pipeline_mode = #tpu.pipeline_mode<synchronous>, transform_indices = @transform_12, window_bounds = array<i64: 2, 64, 32>}, {pipeline_mode = #tpu.pipeline_mode<synchronous>, transform_indices = @transform_13, window_bounds = array<i64: 2, 32>}, {pipeline_mode = #tpu.pipeline_mode<synchronous>, transform_indices = @transform_14, window_bounds = array<i64: 2, 8, 32>}, {pipeline_mode = #tpu.pipeline_mode<synchronous>, transform_indices = @transform_15, window_bounds = array<i64: 3, 32, 16>}, {pipeline_mode = #tpu.pipeline_mode<synchronous>, transform_indices = @transform_16, window_bounds = array<i64: 3, 16>}, {pipeline_mode = #tpu.pipeline_mode<synchronous>, transform_indices = @transform_17, window_bounds = array<i64: 16, 32>}, {pipeline_mode = #tpu.pipeline_mode<synchronous>, transform_indices = @transform_18, window_bounds = array<i64: 1, 32>}, {pipeline_mode = #tpu.pipeline_mode<synchronous>, transform_indices = @transform_19, window_bounds = array<i64: 2, 32>}, {transform_indices = @transform_20, window_bounds = array<i64: 1, 8, 32>}, {transform_indices = @transform_21, window_bounds = array<i64: 1, 64, 32>}, {transform_indices = @transform_22, window_bounds = array<i64: 1, 2, 64, 32>}]} {
    %c0 = arith.constant 0 : index
    %c0_0 = arith.constant 0 : index
    %c0_1 = arith.constant 0 : index
    %0 = vector.load %arg1[%c0, %c0_0, %c0_1] : memref<1x8x32xf32, #tpu.memory_space<vmem>>, vector<1x8x32xf32>
    %1 = vector.shape_cast %0 : vector<1x8x32xf32> to vector<8x32xf32>
    %c0_2 = arith.constant 0 : index
    %c0_3 = arith.constant 0 : index
    %c0_4 = arith.constant 0 : index
    %2 = vector.load %arg3[%c0_2, %c0_3, %c0_4] : memref<1x64x32xf32, #tpu.memory_space<vmem>>, vector<1x64x32xf32>
    %3 = vector.shape_cast %2 : vector<1x64x32xf32> to vector<64x32xf32>
    %c0_5 = arith.constant 0 : index
    %c0_6 = arith.constant 0 : index
    %c0_7 = arith.constant 0 : index
    %4 = vector.load %arg4[%c0_5, %c0_6, %c0_7] : memref<1x64x32xf32, #tpu.memory_space<vmem>>, vector<1x64x32xf32>
    %5 = vector.shape_cast %4 : vector<1x64x32xf32> to vector<64x32xf32>
    %c0_8 = arith.constant 0 : index
    %c0_9 = arith.constant 0 : index
    %c0_10 = arith.constant 0 : index
    %6 = vector.load %arg2[%c0_8, %c0_9, %c0_10] : memref<1x64x32xf32, #tpu.memory_space<vmem>>, vector<1x64x32xf32>
    %7 = vector.shape_cast %6 : vector<1x64x32xf32> to vector<64x32xf32>
    %8 = arith.addf %7, %5 : vector<64x32xf32>
    %c0_11 = arith.constant 0 : index
    %c0_12 = arith.constant 0 : index
    %c0_13 = arith.constant 0 : index
    %9 = vector.load %arg15[%c0_11, %c0_12, %c0_13] : memref<2x8x32xf32, #tpu.memory_space<vmem>>, vector<1x8x32xf32>
    %10 = vector.shape_cast %9 : vector<1x8x32xf32> to vector<8x32xf32>
    %c0_14 = arith.constant 0 : index
    %c0_15 = arith.constant 0 : index
    %c0_16 = arith.constant 0 : index
    %11 = vector.load %arg5[%c0_14, %c0_15, %c0_16] : memref<8x32x32xbf16, #tpu.memory_space<vmem>>, vector<1x32x32xbf16>
    %12 = vector.shape_cast %11 : vector<1x32x32xbf16> to vector<32x32xbf16>
    %c0_17 = arith.constant 0 : index
    %c0_18 = arith.constant 0 : index
    %13 = vector.load %arg6[%c0_17, %c0_18] : memref<8x32xf32, #tpu.memory_space<vmem>>, vector<1x32xf32>
    %c1 = arith.constant 1 : index
    %c0_19 = arith.constant 0 : index
    %c0_20 = arith.constant 0 : index
    %14 = vector.load %arg5[%c1, %c0_19, %c0_20] : memref<8x32x32xbf16, #tpu.memory_space<vmem>>, vector<1x32x32xbf16>
    %15 = vector.shape_cast %14 : vector<1x32x32xbf16> to vector<32x32xbf16>
    %c1_21 = arith.constant 1 : index
    %c0_22 = arith.constant 0 : index
    %16 = vector.load %arg6[%c1_21, %c0_22] : memref<8x32xf32, #tpu.memory_space<vmem>>, vector<1x32xf32>
    %c2 = arith.constant 2 : index
    %c0_23 = arith.constant 0 : index
    %c0_24 = arith.constant 0 : index
    %17 = vector.load %arg5[%c2, %c0_23, %c0_24] : memref<8x32x32xbf16, #tpu.memory_space<vmem>>, vector<1x32x32xbf16>
    %18 = vector.shape_cast %17 : vector<1x32x32xbf16> to vector<32x32xbf16>
    %c2_25 = arith.constant 2 : index
    %c0_26 = arith.constant 0 : index
    %19 = vector.load %arg6[%c2_25, %c0_26] : memref<8x32xf32, #tpu.memory_space<vmem>>, vector<1x32xf32>
    %c3 = arith.constant 3 : index
    %c0_27 = arith.constant 0 : index
    %c0_28 = arith.constant 0 : index
    %20 = vector.load %arg5[%c3, %c0_27, %c0_28] : memref<8x32x32xbf16, #tpu.memory_space<vmem>>, vector<1x32x32xbf16>
    %21 = vector.shape_cast %20 : vector<1x32x32xbf16> to vector<32x32xbf16>
    %c3_29 = arith.constant 3 : index
    %c0_30 = arith.constant 0 : index
    %22 = vector.load %arg6[%c3_29, %c0_30] : memref<8x32xf32, #tpu.memory_space<vmem>>, vector<1x32xf32>
    %23 = arith.truncf %1 : vector<8x32xf32> to vector<8x32xbf16>
    %cst = arith.constant dense<0.000000e+00> : vector<8x32xf32>
    %24 = tpu.matmul %23, %12, %cst {dimension_numbers = #tpu.dot_dimension_numbers<[1], [0], [0], [1], [0, 0, 1, 1], [], []>} : vector<8x32xbf16>, vector<32x32xbf16>, vector<8x32xf32> -> vector<8x32xf32>
    %25 = vector.broadcast %13 : vector<1x32xf32> to vector<8x32xf32>
    %26 = arith.addf %24, %25 : vector<8x32xf32>
    %27 = arith.truncf %26 : vector<8x32xf32> to vector<8x32xbf16>
    %28 = arith.truncf %1 : vector<8x32xf32> to vector<8x32xbf16>
    %cst_31 = arith.constant dense<0.000000e+00> : vector<8x32xf32>
    %29 = tpu.matmul %28, %15, %cst_31 {dimension_numbers = #tpu.dot_dimension_numbers<[1], [0], [0], [1], [0, 0, 1, 1], [], []>} : vector<8x32xbf16>, vector<32x32xbf16>, vector<8x32xf32> -> vector<8x32xf32>
    %30 = vector.broadcast %16 : vector<1x32xf32> to vector<8x32xf32>
    %31 = arith.addf %29, %30 : vector<8x32xf32>
    %32 = arith.truncf %31 : vector<8x32xf32> to vector<8x32xbf16>
    %33 = arith.truncf %1 : vector<8x32xf32> to vector<8x32xbf16>
    %cst_32 = arith.constant dense<0.000000e+00> : vector<8x32xf32>
    %34 = tpu.matmul %33, %18, %cst_32 {dimension_numbers = #tpu.dot_dimension_numbers<[1], [0], [0], [1], [0, 0, 1, 1], [], []>} : vector<8x32xbf16>, vector<32x32xbf16>, vector<8x32xf32> -> vector<8x32xf32>
    %35 = vector.broadcast %19 : vector<1x32xf32> to vector<8x32xf32>
    %36 = arith.addf %34, %35 : vector<8x32xf32>
    %37 = arith.truncf %36 : vector<8x32xf32> to vector<8x32xbf16>
    %cst_33 = arith.constant 0.000000e+00 : f32
    %38 = vector.broadcast %cst_33 : f32 to vector<8x32xf32>
    %39 = vector.extract_strided_slice %27 {offsets = [0, 0], sizes = [8, 16], strides = [1, 1]} : vector<8x32xbf16> to vector<8x16xbf16>
    %40 = vector.extract_strided_slice %32 {offsets = [0, 0], sizes = [8, 16], strides = [1, 1]} : vector<8x32xbf16> to vector<8x16xbf16>
    %cst_34 = arith.constant dense<0.000000e+00> : vector<8x8xf32>
    %41 = tpu.matmul %39, %40, %cst_34 {dimension_numbers = #tpu.dot_dimension_numbers<[1], [1], [0], [0], [0, 0, 1, 0], [], []>} : vector<8x16xbf16>, vector<8x16xbf16>, vector<8x8xf32> -> vector<8x8xf32>
    %cst_35 = arith.constant dense<0xFF800000> : vector<8xf32>
    %42 = vector.multi_reduction <maximumf>, %41, %cst_35 [1] : vector<8x8xf32> to vector<8xf32>
    %43 = vector.shape_cast %42 : vector<8xf32> to vector<8x1xf32>
    %44 = vector.broadcast %43 : vector<8x1xf32> to vector<8x8xf32>
    %45 = arith.subf %41, %44 : vector<8x8xf32>
    %46 = math.exp %45 : vector<8x8xf32>
    %cst_36 = arith.constant dense<0.000000e+00> : vector<8xf32>
    %47 = vector.multi_reduction <add>, %46, %cst_36 [1] : vector<8x8xf32> to vector<8xf32>
    %48 = vector.shape_cast %47 : vector<8xf32> to vector<8x1xf32>
    %49 = tpu.reciprocal %48 {approx = true} : vector<8x1xf32> -> vector<8x1xf32>
    %50 = vector.broadcast %49 : vector<8x1xf32> to vector<8x8xf32>
    %51 = arith.mulf %46, %50 : vector<8x8xf32>
    %52 = arith.truncf %51 : vector<8x8xf32> to vector<8x8xbf16>
    %53 = vector.extract_strided_slice %37 {offsets = [0, 0], sizes = [8, 16], strides = [1, 1]} : vector<8x32xbf16> to vector<8x16xbf16>
    %cst_37 = arith.constant dense<0.000000e+00> : vector<8x16xf32>
    %54 = tpu.matmul %52, %53, %cst_37 {dimension_numbers = #tpu.dot_dimension_numbers<[1], [0], [0], [1], [0, 0, 1, 1], [], []>} : vector<8x8xbf16>, vector<8x16xbf16>, vector<8x16xf32> -> vector<8x16xf32>
    %55 = arith.truncf %54 : vector<8x16xf32> to vector<8x16xbf16>
    %56 = vector.extract_strided_slice %21 {offsets = [0, 0], sizes = [16, 32], strides = [1, 1]} : vector<32x32xbf16> to vector<16x32xbf16>
    %cst_38 = arith.constant dense<0.000000e+00> : vector<8x32xf32>
    %57 = tpu.matmul %55, %56, %cst_38 {dimension_numbers = #tpu.dot_dimension_numbers<[1], [0], [0], [1], [0, 0, 1, 1], [], []>} : vector<8x16xbf16>, vector<16x32xbf16>, vector<8x32xf32> -> vector<8x32xf32>
    %58 = arith.addf %38, %57 : vector<8x32xf32>
    %59 = vector.extract_strided_slice %27 {offsets = [0, 16], sizes = [8, 16], strides = [1, 1]} : vector<8x32xbf16> to vector<8x16xbf16>
    %60 = vector.extract_strided_slice %32 {offsets = [0, 16], sizes = [8, 16], strides = [1, 1]} : vector<8x32xbf16> to vector<8x16xbf16>
    %cst_39 = arith.constant dense<0.000000e+00> : vector<8x8xf32>
    %61 = tpu.matmul %59, %60, %cst_39 {dimension_numbers = #tpu.dot_dimension_numbers<[1], [1], [0], [0], [0, 0, 1, 0], [], []>} : vector<8x16xbf16>, vector<8x16xbf16>, vector<8x8xf32> -> vector<8x8xf32>
    %cst_40 = arith.constant dense<0xFF800000> : vector<8xf32>
    %62 = vector.multi_reduction <maximumf>, %61, %cst_40 [1] : vector<8x8xf32> to vector<8xf32>
    %63 = vector.shape_cast %62 : vector<8xf32> to vector<8x1xf32>
    %64 = vector.broadcast %63 : vector<8x1xf32> to vector<8x8xf32>
    %65 = arith.subf %61, %64 : vector<8x8xf32>
    %66 = math.exp %65 : vector<8x8xf32>
    %cst_41 = arith.constant dense<0.000000e+00> : vector<8xf32>
    %67 = vector.multi_reduction <add>, %66, %cst_41 [1] : vector<8x8xf32> to vector<8xf32>
    %68 = vector.shape_cast %67 : vector<8xf32> to vector<8x1xf32>
    %69 = tpu.reciprocal %68 {approx = true} : vector<8x1xf32> -> vector<8x1xf32>
    %70 = vector.broadcast %69 : vector<8x1xf32> to vector<8x8xf32>
    %71 = arith.mulf %66, %70 : vector<8x8xf32>
    %72 = arith.truncf %71 : vector<8x8xf32> to vector<8x8xbf16>
    %73 = vector.extract_strided_slice %37 {offsets = [0, 16], sizes = [8, 16], strides = [1, 1]} : vector<8x32xbf16> to vector<8x16xbf16>
    %cst_42 = arith.constant dense<0.000000e+00> : vector<8x16xf32>
    %74 = tpu.matmul %72, %73, %cst_42 {dimension_numbers = #tpu.dot_dimension_numbers<[1], [0], [0], [1], [0, 0, 1, 1], [], []>} : vector<8x8xbf16>, vector<8x16xbf16>, vector<8x16xf32> -> vector<8x16xf32>
    %75 = arith.truncf %74 : vector<8x16xf32> to vector<8x16xbf16>
    %76 = vector.extract_strided_slice %21 {offsets = [16, 0], sizes = [16, 32], strides = [1, 1]} : vector<32x32xbf16> to vector<16x32xbf16>
    %cst_43 = arith.constant dense<0.000000e+00> : vector<8x32xf32>
    %77 = tpu.matmul %75, %76, %cst_43 {dimension_numbers = #tpu.dot_dimension_numbers<[1], [0], [0], [1], [0, 0, 1, 1], [], []>} : vector<8x16xbf16>, vector<16x32xbf16>, vector<8x32xf32> -> vector<8x32xf32>
    %78 = arith.addf %58, %77 : vector<8x32xf32>
    %79 = vector.broadcast %22 : vector<1x32xf32> to vector<8x32xf32>
    %80 = arith.addf %78, %79 : vector<8x32xf32>
    %81 = vector.extract_strided_slice %10 {offsets = [0, 0], sizes = [1, 32], strides = [1, 1]} : vector<8x32xf32> to vector<1x32xf32>
    %82 = vector.extract_strided_slice %10 {offsets = [4, 0], sizes = [1, 32], strides = [1, 1]} : vector<8x32xf32> to vector<1x32xf32>
    %cst_44 = arith.constant dense<0.000000e+00> : vector<8xf32>
    %83 = vector.multi_reduction <add>, %80, %cst_44 [1] : vector<8x32xf32> to vector<8xf32>
    %84 = vector.shape_cast %83 : vector<8xf32> to vector<8x1xf32>
    %cst_45 = arith.constant 3.200000e+01 : f32
    %85 = vector.broadcast %cst_45 : f32 to vector<8x1xf32>
    %86 = arith.divf %84, %85 : vector<8x1xf32>
    %87 = vector.broadcast %86 : vector<8x1xf32> to vector<8x32xf32>
    %88 = arith.subf %80, %87 : vector<8x32xf32>
    %89 = arith.mulf %88, %88 : vector<8x32xf32>
    %cst_46 = arith.constant dense<0.000000e+00> : vector<8xf32>
    %90 = vector.multi_reduction <add>, %89, %cst_46 [1] : vector<8x32xf32> to vector<8xf32>
    %91 = vector.shape_cast %90 : vector<8xf32> to vector<8x1xf32>
    %cst_47 = arith.constant 3.200000e+01 : f32
    %92 = vector.broadcast %cst_47 : f32 to vector<8x1xf32>
    %93 = arith.divf %91, %92 : vector<8x1xf32>
    %cst_48 = arith.constant 9.99999974E-6 : f32
    %94 = vector.broadcast %cst_48 : f32 to vector<8x1xf32>
    %95 = arith.addf %93, %94 : vector<8x1xf32>
    %96 = math.rsqrt %95 : vector<8x1xf32>
    %97 = vector.broadcast %96 : vector<8x1xf32> to vector<8x32xf32>
    %98 = arith.mulf %88, %97 : vector<8x32xf32>
    %99 = vector.broadcast %81 : vector<1x32xf32> to vector<8x32xf32>
    %100 = arith.mulf %98, %99 : vector<8x32xf32>
    %101 = vector.broadcast %82 : vector<1x32xf32> to vector<8x32xf32>
    %102 = arith.addf %100, %101 : vector<8x32xf32>
    %103 = arith.addf %102, %1 : vector<8x32xf32>
    %104 = arith.addf %8, %3 : vector<64x32xf32>
    %c0_49 = arith.constant 0 : index
    %c0_50 = arith.constant 0 : index
    %c0_51 = arith.constant 0 : index
    %105 = vector.load %arg7[%c0_49, %c0_50, %c0_51] : memref<6x32x16xbf16, #tpu.memory_space<vmem>>, vector<1x32x16xbf16>
    %106 = vector.shape_cast %105 : vector<1x32x16xbf16> to vector<32x16xbf16>
    %c0_52 = arith.constant 0 : index
    %c0_53 = arith.constant 0 : index
    %107 = vector.load %arg8[%c0_52, %c0_53] : memref<6x16xf32, #tpu.memory_space<vmem>>, vector<1x16xf32>
    %c1_54 = arith.constant 1 : index
    %c0_55 = arith.constant 0 : index
    %c0_56 = arith.constant 0 : index
    %108 = vector.load %arg7[%c1_54, %c0_55, %c0_56] : memref<6x32x16xbf16, #tpu.memory_space<vmem>>, vector<1x32x16xbf16>
    %109 = vector.shape_cast %108 : vector<1x32x16xbf16> to vector<32x16xbf16>
    %c1_57 = arith.constant 1 : index
    %c0_58 = arith.constant 0 : index
    %110 = vector.load %arg8[%c1_57, %c0_58] : memref<6x16xf32, #tpu.memory_space<vmem>>, vector<1x16xf32>
    %c2_59 = arith.constant 2 : index
    %c0_60 = arith.constant 0 : index
    %c0_61 = arith.constant 0 : index
    %111 = vector.load %arg7[%c2_59, %c0_60, %c0_61] : memref<6x32x16xbf16, #tpu.memory_space<vmem>>, vector<1x32x16xbf16>
    %112 = vector.shape_cast %111 : vector<1x32x16xbf16> to vector<32x16xbf16>
    %c2_62 = arith.constant 2 : index
    %c0_63 = arith.constant 0 : index
    %113 = vector.load %arg8[%c2_62, %c0_63] : memref<6x16xf32, #tpu.memory_space<vmem>>, vector<1x16xf32>
    %c0_64 = arith.constant 0 : index
    %c0_65 = arith.constant 0 : index
    %c0_66 = arith.constant 0 : index
    %114 = vector.load %arg9[%c0_64, %c0_65, %c0_66] : memref<2x16x32xbf16, #tpu.memory_space<vmem>>, vector<1x16x32xbf16>
    %115 = vector.shape_cast %114 : vector<1x16x32xbf16> to vector<16x32xbf16>
    %c0_67 = arith.constant 0 : index
    %c0_68 = arith.constant 0 : index
    %116 = vector.load %arg10[%c0_67, %c0_68] : memref<2x32xf32, #tpu.memory_space<vmem>>, vector<1x32xf32>
    %117 = arith.truncf %103 : vector<8x32xf32> to vector<8x32xbf16>
    %cst_69 = arith.constant dense<0.000000e+00> : vector<8x16xf32>
    %118 = tpu.matmul %117, %106, %cst_69 {dimension_numbers = #tpu.dot_dimension_numbers<[1], [0], [0], [1], [0, 0, 1, 1], [], []>} : vector<8x32xbf16>, vector<32x16xbf16>, vector<8x16xf32> -> vector<8x16xf32>
    %119 = vector.broadcast %107 : vector<1x16xf32> to vector<8x16xf32>
    %120 = arith.addf %118, %119 : vector<8x16xf32>
    %121 = arith.truncf %120 : vector<8x16xf32> to vector<8x16xbf16>
    %122 = arith.truncf %104 : vector<64x32xf32> to vector<64x32xbf16>
    %cst_70 = arith.constant dense<0.000000e+00> : vector<64x16xf32>
    %123 = tpu.matmul %122, %109, %cst_70 {dimension_numbers = #tpu.dot_dimension_numbers<[1], [0], [0], [1], [0, 0, 1, 1], [], []>} : vector<64x32xbf16>, vector<32x16xbf16>, vector<64x16xf32> -> vector<64x16xf32>
    %124 = vector.broadcast %110 : vector<1x16xf32> to vector<64x16xf32>
    %125 = arith.addf %123, %124 : vector<64x16xf32>
    %126 = arith.truncf %125 : vector<64x16xf32> to vector<64x16xbf16>
    %127 = arith.truncf %8 : vector<64x32xf32> to vector<64x32xbf16>
    %cst_71 = arith.constant dense<0.000000e+00> : vector<64x16xf32>
    %128 = tpu.matmul %127, %112, %cst_71 {dimension_numbers = #tpu.dot_dimension_numbers<[1], [0], [0], [1], [0, 0, 1, 1], [], []>} : vector<64x32xbf16>, vector<32x16xbf16>, vector<64x16xf32> -> vector<64x16xf32>
    %129 = vector.broadcast %113 : vector<1x16xf32> to vector<64x16xf32>
    %130 = arith.addf %128, %129 : vector<64x16xf32>
    %131 = arith.truncf %130 : vector<64x16xf32> to vector<64x16xbf16>
    %cst_72 = arith.constant 0.000000e+00 : f32
    %132 = vector.broadcast %cst_72 : f32 to vector<8x32xf32>
    %133 = vector.extract_strided_slice %121 {offsets = [0, 0], sizes = [8, 8], strides = [1, 1]} : vector<8x16xbf16> to vector<8x8xbf16>
    %134 = vector.extract_strided_slice %126 {offsets = [0, 0], sizes = [64, 8], strides = [1, 1]} : vector<64x16xbf16> to vector<64x8xbf16>
    %cst_73 = arith.constant dense<0.000000e+00> : vector<8x64xf32>
    %135 = tpu.matmul %133, %134, %cst_73 {dimension_numbers = #tpu.dot_dimension_numbers<[1], [1], [0], [0], [0, 0, 1, 0], [], []>} : vector<8x8xbf16>, vector<64x8xbf16>, vector<8x64xf32> -> vector<8x64xf32>
    %cst_74 = arith.constant dense<0xFF800000> : vector<8xf32>
    %136 = vector.multi_reduction <maximumf>, %135, %cst_74 [1] : vector<8x64xf32> to vector<8xf32>
    %137 = vector.shape_cast %136 : vector<8xf32> to vector<8x1xf32>
    %138 = vector.broadcast %137 : vector<8x1xf32> to vector<8x64xf32>
    %139 = arith.subf %135, %138 : vector<8x64xf32>
    %140 = math.exp %139 : vector<8x64xf32>
    %cst_75 = arith.constant dense<0.000000e+00> : vector<8xf32>
    %141 = vector.multi_reduction <add>, %140, %cst_75 [1] : vector<8x64xf32> to vector<8xf32>
    %142 = vector.shape_cast %141 : vector<8xf32> to vector<8x1xf32>
    %143 = tpu.reciprocal %142 {approx = true} : vector<8x1xf32> -> vector<8x1xf32>
    %144 = vector.broadcast %143 : vector<8x1xf32> to vector<8x64xf32>
    %145 = arith.mulf %140, %144 : vector<8x64xf32>
    %146 = arith.truncf %145 : vector<8x64xf32> to vector<8x64xbf16>
    %147 = vector.extract_strided_slice %131 {offsets = [0, 0], sizes = [64, 8], strides = [1, 1]} : vector<64x16xbf16> to vector<64x8xbf16>
    %cst_76 = arith.constant dense<0.000000e+00> : vector<8x8xf32>
    %148 = tpu.matmul %146, %147, %cst_76 {dimension_numbers = #tpu.dot_dimension_numbers<[1], [0], [0], [1], [0, 0, 1, 1], [], []>} : vector<8x64xbf16>, vector<64x8xbf16>, vector<8x8xf32> -> vector<8x8xf32>
    %149 = arith.truncf %148 : vector<8x8xf32> to vector<8x8xbf16>
    %150 = vector.extract_strided_slice %115 {offsets = [0, 0], sizes = [8, 32], strides = [1, 1]} : vector<16x32xbf16> to vector<8x32xbf16>
    %cst_77 = arith.constant dense<0.000000e+00> : vector<8x32xf32>
    %151 = tpu.matmul %149, %150, %cst_77 {dimension_numbers = #tpu.dot_dimension_numbers<[1], [0], [0], [1], [0, 0, 1, 1], [], []>} : vector<8x8xbf16>, vector<8x32xbf16>, vector<8x32xf32> -> vector<8x32xf32>
    %152 = arith.addf %132, %151 : vector<8x32xf32>
    %153 = vector.extract_strided_slice %121 {offsets = [0, 8], sizes = [8, 8], strides = [1, 1]} : vector<8x16xbf16> to vector<8x8xbf16>
    %154 = vector.extract_strided_slice %126 {offsets = [0, 8], sizes = [64, 8], strides = [1, 1]} : vector<64x16xbf16> to vector<64x8xbf16>
    %cst_78 = arith.constant dense<0.000000e+00> : vector<8x64xf32>
    %155 = tpu.matmul %153, %154, %cst_78 {dimension_numbers = #tpu.dot_dimension_numbers<[1], [1], [0], [0], [0, 0, 1, 0], [], []>} : vector<8x8xbf16>, vector<64x8xbf16>, vector<8x64xf32> -> vector<8x64xf32>
    %cst_79 = arith.constant dense<0xFF800000> : vector<8xf32>
    %156 = vector.multi_reduction <maximumf>, %155, %cst_79 [1] : vector<8x64xf32> to vector<8xf32>
    %157 = vector.shape_cast %156 : vector<8xf32> to vector<8x1xf32>
    %158 = vector.broadcast %157 : vector<8x1xf32> to vector<8x64xf32>
    %159 = arith.subf %155, %158 : vector<8x64xf32>
    %160 = math.exp %159 : vector<8x64xf32>
    %cst_80 = arith.constant dense<0.000000e+00> : vector<8xf32>
    %161 = vector.multi_reduction <add>, %160, %cst_80 [1] : vector<8x64xf32> to vector<8xf32>
    %162 = vector.shape_cast %161 : vector<8xf32> to vector<8x1xf32>
    %163 = tpu.reciprocal %162 {approx = true} : vector<8x1xf32> -> vector<8x1xf32>
    %164 = vector.broadcast %163 : vector<8x1xf32> to vector<8x64xf32>
    %165 = arith.mulf %160, %164 : vector<8x64xf32>
    %166 = arith.truncf %165 : vector<8x64xf32> to vector<8x64xbf16>
    %167 = vector.extract_strided_slice %131 {offsets = [0, 8], sizes = [64, 8], strides = [1, 1]} : vector<64x16xbf16> to vector<64x8xbf16>
    %cst_81 = arith.constant dense<0.000000e+00> : vector<8x8xf32>
    %168 = tpu.matmul %166, %167, %cst_81 {dimension_numbers = #tpu.dot_dimension_numbers<[1], [0], [0], [1], [0, 0, 1, 1], [], []>} : vector<8x64xbf16>, vector<64x8xbf16>, vector<8x8xf32> -> vector<8x8xf32>
    %169 = arith.truncf %168 : vector<8x8xf32> to vector<8x8xbf16>
    %170 = vector.extract_strided_slice %115 {offsets = [8, 0], sizes = [8, 32], strides = [1, 1]} : vector<16x32xbf16> to vector<8x32xbf16>
    %cst_82 = arith.constant dense<0.000000e+00> : vector<8x32xf32>
    %171 = tpu.matmul %169, %170, %cst_82 {dimension_numbers = #tpu.dot_dimension_numbers<[1], [0], [0], [1], [0, 0, 1, 1], [], []>} : vector<8x8xbf16>, vector<8x32xbf16>, vector<8x32xf32> -> vector<8x32xf32>
    %172 = arith.addf %152, %171 : vector<8x32xf32>
    %173 = vector.broadcast %116 : vector<1x32xf32> to vector<8x32xf32>
    %174 = arith.addf %172, %173 : vector<8x32xf32>
    %175 = arith.addf %102, %174 : vector<8x32xf32>
    %176 = vector.extract_strided_slice %10 {offsets = [1, 0], sizes = [1, 32], strides = [1, 1]} : vector<8x32xf32> to vector<1x32xf32>
    %177 = vector.extract_strided_slice %10 {offsets = [5, 0], sizes = [1, 32], strides = [1, 1]} : vector<8x32xf32> to vector<1x32xf32>
    %cst_83 = arith.constant dense<0.000000e+00> : vector<8xf32>
    %178 = vector.multi_reduction <add>, %175, %cst_83 [1] : vector<8x32xf32> to vector<8xf32>
    %179 = vector.shape_cast %178 : vector<8xf32> to vector<8x1xf32>
    %cst_84 = arith.constant 3.200000e+01 : f32
    %180 = vector.broadcast %cst_84 : f32 to vector<8x1xf32>
    %181 = arith.divf %179, %180 : vector<8x1xf32>
    %182 = vector.broadcast %181 : vector<8x1xf32> to vector<8x32xf32>
    %183 = arith.subf %175, %182 : vector<8x32xf32>
    %184 = arith.mulf %183, %183 : vector<8x32xf32>
    %cst_85 = arith.constant dense<0.000000e+00> : vector<8xf32>
    %185 = vector.multi_reduction <add>, %184, %cst_85 [1] : vector<8x32xf32> to vector<8xf32>
    %186 = vector.shape_cast %185 : vector<8xf32> to vector<8x1xf32>
    %cst_86 = arith.constant 3.200000e+01 : f32
    %187 = vector.broadcast %cst_86 : f32 to vector<8x1xf32>
    %188 = arith.divf %186, %187 : vector<8x1xf32>
    %cst_87 = arith.constant 9.99999974E-6 : f32
    %189 = vector.broadcast %cst_87 : f32 to vector<8x1xf32>
    %190 = arith.addf %188, %189 : vector<8x1xf32>
    %191 = math.rsqrt %190 : vector<8x1xf32>
    %192 = vector.broadcast %191 : vector<8x1xf32> to vector<8x32xf32>
    %193 = arith.mulf %183, %192 : vector<8x32xf32>
    %194 = vector.broadcast %176 : vector<1x32xf32> to vector<8x32xf32>
    %195 = arith.mulf %193, %194 : vector<8x32xf32>
    %196 = vector.broadcast %177 : vector<1x32xf32> to vector<8x32xf32>
    %197 = arith.addf %195, %196 : vector<8x32xf32>
    %198 = arith.truncf %197 : vector<8x32xf32> to vector<8x32xbf16>
    %c0_88 = arith.constant 0 : index
    %c0_89 = arith.constant 0 : index
    %c0_90 = arith.constant 0 : index
    %199 = vector.load %arg11[%c0_88, %c0_89, %c0_90] : memref<2x32x64xbf16, #tpu.memory_space<vmem>>, vector<1x32x64xbf16>
    %200 = vector.shape_cast %199 : vector<1x32x64xbf16> to vector<32x64xbf16>
    %cst_91 = arith.constant dense<0.000000e+00> : vector<8x64xf32>
    %201 = tpu.matmul %198, %200, %cst_91 {dimension_numbers = #tpu.dot_dimension_numbers<[1], [0], [0], [1], [0, 0, 1, 1], [], []>} : vector<8x32xbf16>, vector<32x64xbf16>, vector<8x64xf32> -> vector<8x64xf32>
    %c0_92 = arith.constant 0 : index
    %c0_93 = arith.constant 0 : index
    %202 = vector.load %arg12[%c0_92, %c0_93] : memref<2x64xf32, #tpu.memory_space<vmem>>, vector<1x64xf32>
    %203 = vector.broadcast %202 : vector<1x64xf32> to vector<8x64xf32>
    %204 = arith.addf %201, %203 : vector<8x64xf32>
    %cst_94 = arith.constant 0.000000e+00 : f32
    %205 = vector.broadcast %cst_94 : f32 to vector<8x64xf32>
    %206 = arith.maximumf %204, %205 : vector<8x64xf32>
    %207 = arith.truncf %206 : vector<8x64xf32> to vector<8x64xbf16>
    %c0_95 = arith.constant 0 : index
    %c0_96 = arith.constant 0 : index
    %c0_97 = arith.constant 0 : index
    %208 = vector.load %arg13[%c0_95, %c0_96, %c0_97] : memref<2x64x32xbf16, #tpu.memory_space<vmem>>, vector<1x64x32xbf16>
    %209 = vector.shape_cast %208 : vector<1x64x32xbf16> to vector<64x32xbf16>
    %cst_98 = arith.constant dense<0.000000e+00> : vector<8x32xf32>
    %210 = tpu.matmul %207, %209, %cst_98 {dimension_numbers = #tpu.dot_dimension_numbers<[1], [0], [0], [1], [0, 0, 1, 1], [], []>} : vector<8x64xbf16>, vector<64x32xbf16>, vector<8x32xf32> -> vector<8x32xf32>
    %c0_99 = arith.constant 0 : index
    %c0_100 = arith.constant 0 : index
    %211 = vector.load %arg14[%c0_99, %c0_100] : memref<2x32xf32, #tpu.memory_space<vmem>>, vector<1x32xf32>
    %212 = vector.broadcast %211 : vector<1x32xf32> to vector<8x32xf32>
    %213 = arith.addf %210, %212 : vector<8x32xf32>
    %214 = arith.addf %197, %213 : vector<8x32xf32>
    %215 = vector.extract_strided_slice %10 {offsets = [2, 0], sizes = [1, 32], strides = [1, 1]} : vector<8x32xf32> to vector<1x32xf32>
    %216 = vector.extract_strided_slice %10 {offsets = [6, 0], sizes = [1, 32], strides = [1, 1]} : vector<8x32xf32> to vector<1x32xf32>
    %cst_101 = arith.constant dense<0.000000e+00> : vector<8xf32>
    %217 = vector.multi_reduction <add>, %214, %cst_101 [1] : vector<8x32xf32> to vector<8xf32>
    %218 = vector.shape_cast %217 : vector<8xf32> to vector<8x1xf32>
    %cst_102 = arith.constant 3.200000e+01 : f32
    %219 = vector.broadcast %cst_102 : f32 to vector<8x1xf32>
    %220 = arith.divf %218, %219 : vector<8x1xf32>
    %221 = vector.broadcast %220 : vector<8x1xf32> to vector<8x32xf32>
    %222 = arith.subf %214, %221 : vector<8x32xf32>
    %223 = arith.mulf %222, %222 : vector<8x32xf32>
    %cst_103 = arith.constant dense<0.000000e+00> : vector<8xf32>
    %224 = vector.multi_reduction <add>, %223, %cst_103 [1] : vector<8x32xf32> to vector<8xf32>
    %225 = vector.shape_cast %224 : vector<8xf32> to vector<8x1xf32>
    %cst_104 = arith.constant 3.200000e+01 : f32
    %226 = vector.broadcast %cst_104 : f32 to vector<8x1xf32>
    %227 = arith.divf %225, %226 : vector<8x1xf32>
    %cst_105 = arith.constant 9.99999974E-6 : f32
    %228 = vector.broadcast %cst_105 : f32 to vector<8x1xf32>
    %229 = arith.addf %227, %228 : vector<8x1xf32>
    %230 = math.rsqrt %229 : vector<8x1xf32>
    %231 = vector.broadcast %230 : vector<8x1xf32> to vector<8x32xf32>
    %232 = arith.mulf %222, %231 : vector<8x32xf32>
    %233 = vector.broadcast %215 : vector<1x32xf32> to vector<8x32xf32>
    %234 = arith.mulf %232, %233 : vector<8x32xf32>
    %235 = vector.broadcast %216 : vector<1x32xf32> to vector<8x32xf32>
    %236 = arith.addf %234, %235 : vector<8x32xf32>
    %237 = vector.extract_strided_slice %10 {offsets = [3, 0], sizes = [1, 32], strides = [1, 1]} : vector<8x32xf32> to vector<1x32xf32>
    %238 = vector.extract_strided_slice %10 {offsets = [7, 0], sizes = [1, 32], strides = [1, 1]} : vector<8x32xf32> to vector<1x32xf32>
    %cst_106 = arith.constant dense<0.000000e+00> : vector<64xf32>
    %239 = vector.multi_reduction <add>, %8, %cst_106 [1] : vector<64x32xf32> to vector<64xf32>
    %240 = vector.shape_cast %239 : vector<64xf32> to vector<64x1xf32>
    %cst_107 = arith.constant 3.200000e+01 : f32
    %241 = vector.broadcast %cst_107 : f32 to vector<64x1xf32>
    %242 = arith.divf %240, %241 : vector<64x1xf32>
    %243 = vector.broadcast %242 : vector<64x1xf32> to vector<64x32xf32>
    %244 = arith.subf %8, %243 : vector<64x32xf32>
    %245 = arith.mulf %244, %244 : vector<64x32xf32>
    %cst_108 = arith.constant dense<0.000000e+00> : vector<64xf32>
    %246 = vector.multi_reduction <add>, %245, %cst_108 [1] : vector<64x32xf32> to vector<64xf32>
    %247 = vector.shape_cast %246 : vector<64xf32> to vector<64x1xf32>
    %cst_109 = arith.constant 3.200000e+01 : f32
    %248 = vector.broadcast %cst_109 : f32 to vector<64x1xf32>
    %249 = arith.divf %247, %248 : vector<64x1xf32>
    %cst_110 = arith.constant 9.99999974E-6 : f32
    %250 = vector.broadcast %cst_110 : f32 to vector<64x1xf32>
    %251 = arith.addf %249, %250 : vector<64x1xf32>
    %252 = math.rsqrt %251 : vector<64x1xf32>
    %253 = vector.broadcast %252 : vector<64x1xf32> to vector<64x32xf32>
    %254 = arith.mulf %244, %253 : vector<64x32xf32>
    %255 = vector.broadcast %237 : vector<1x32xf32> to vector<64x32xf32>
    %256 = arith.mulf %254, %255 : vector<64x32xf32>
    %257 = vector.broadcast %238 : vector<1x32xf32> to vector<64x32xf32>
    %258 = arith.addf %256, %257 : vector<64x32xf32>
    %259 = arith.truncf %258 : vector<64x32xf32> to vector<64x32xbf16>
    %c0_111 = arith.constant 0 : index
    %c0_112 = arith.constant 0 : index
    %c0_113 = arith.constant 0 : index
    %c0_114 = arith.constant 0 : index
    %260 = vector.load %arg23[%c0_111, %c0_112, %c0_113, %c0_114] : memref<1x2x64x32xbf16, #tpu.memory_space<vmem>>, vector<1x1x64x32xbf16>
    %261 = vector.shape_cast %260 : vector<1x1x64x32xbf16> to vector<64x32xbf16>
    %262 = vector.shape_cast %259 : vector<64x32xbf16> to vector<1x1x64x32xbf16>
    tpu.vector_store %arg23[%c0_111, %c0_112, %c0_113, %c0_114], %262 {strides = array<i32>} : memref<1x2x64x32xbf16, #tpu.memory_space<vmem>>, vector<1x1x64x32xbf16>,
    %263 = arith.addf %258, %5 : vector<64x32xf32>
    %c1_115 = arith.constant 1 : index
    %c0_116 = arith.constant 0 : index
    %c0_117 = arith.constant 0 : index
    %264 = vector.load %arg15[%c1_115, %c0_116, %c0_117] : memref<2x8x32xf32, #tpu.memory_space<vmem>>, vector<1x8x32xf32>
    %265 = vector.shape_cast %264 : vector<1x8x32xf32> to vector<8x32xf32>
    %266 = arith.addf %236, %1 : vector<8x32xf32>
    %c4 = arith.constant 4 : index
    %c0_118 = arith.constant 0 : index
    %c0_119 = arith.constant 0 : index
    %267 = vector.load %arg5[%c4, %c0_118, %c0_119] : memref<8x32x32xbf16, #tpu.memory_space<vmem>>, vector<1x32x32xbf16>
    %268 = vector.shape_cast %267 : vector<1x32x32xbf16> to vector<32x32xbf16>
    %c4_120 = arith.constant 4 : index
    %c0_121 = arith.constant 0 : index
    %269 = vector.load %arg6[%c4_120, %c0_121] : memref<8x32xf32, #tpu.memory_space<vmem>>, vector<1x32xf32>
    %c5 = arith.constant 5 : index
    %c0_122 = arith.constant 0 : index
    %c0_123 = arith.constant 0 : index
    %270 = vector.load %arg5[%c5, %c0_122, %c0_123] : memref<8x32x32xbf16, #tpu.memory_space<vmem>>, vector<1x32x32xbf16>
    %271 = vector.shape_cast %270 : vector<1x32x32xbf16> to vector<32x32xbf16>
    %c5_124 = arith.constant 5 : index
    %c0_125 = arith.constant 0 : index
    %272 = vector.load %arg6[%c5_124, %c0_125] : memref<8x32xf32, #tpu.memory_space<vmem>>, vector<1x32xf32>
    %c6 = arith.constant 6 : index
    %c0_126 = arith.constant 0 : index
    %c0_127 = arith.constant 0 : index
    %273 = vector.load %arg5[%c6, %c0_126, %c0_127] : memref<8x32x32xbf16, #tpu.memory_space<vmem>>, vector<1x32x32xbf16>
    %274 = vector.shape_cast %273 : vector<1x32x32xbf16> to vector<32x32xbf16>
    %c6_128 = arith.constant 6 : index
    %c0_129 = arith.constant 0 : index
    %275 = vector.load %arg6[%c6_128, %c0_129] : memref<8x32xf32, #tpu.memory_space<vmem>>, vector<1x32xf32>
    %c7 = arith.constant 7 : index
    %c0_130 = arith.constant 0 : index
    %c0_131 = arith.constant 0 : index
    %276 = vector.load %arg5[%c7, %c0_130, %c0_131] : memref<8x32x32xbf16, #tpu.memory_space<vmem>>, vector<1x32x32xbf16>
    %277 = vector.shape_cast %276 : vector<1x32x32xbf16> to vector<32x32xbf16>
    %c7_132 = arith.constant 7 : index
    %c0_133 = arith.constant 0 : index
    %278 = vector.load %arg6[%c7_132, %c0_133] : memref<8x32xf32, #tpu.memory_space<vmem>>, vector<1x32xf32>
    %279 = arith.truncf %266 : vector<8x32xf32> to vector<8x32xbf16>
    %cst_134 = arith.constant dense<0.000000e+00> : vector<8x32xf32>
    %280 = tpu.matmul %279, %268, %cst_134 {dimension_numbers = #tpu.dot_dimension_numbers<[1], [0], [0], [1], [0, 0, 1, 1], [], []>} : vector<8x32xbf16>, vector<32x32xbf16>, vector<8x32xf32> -> vector<8x32xf32>
    %281 = vector.broadcast %269 : vector<1x32xf32> to vector<8x32xf32>
    %282 = arith.addf %280, %281 : vector<8x32xf32>
    %283 = arith.truncf %282 : vector<8x32xf32> to vector<8x32xbf16>
    %284 = arith.truncf %266 : vector<8x32xf32> to vector<8x32xbf16>
    %cst_135 = arith.constant dense<0.000000e+00> : vector<8x32xf32>
    %285 = tpu.matmul %284, %271, %cst_135 {dimension_numbers = #tpu.dot_dimension_numbers<[1], [0], [0], [1], [0, 0, 1, 1], [], []>} : vector<8x32xbf16>, vector<32x32xbf16>, vector<8x32xf32> -> vector<8x32xf32>
    %286 = vector.broadcast %272 : vector<1x32xf32> to vector<8x32xf32>
    %287 = arith.addf %285, %286 : vector<8x32xf32>
    %288 = arith.truncf %287 : vector<8x32xf32> to vector<8x32xbf16>
    %289 = arith.truncf %236 : vector<8x32xf32> to vector<8x32xbf16>
    %cst_136 = arith.constant dense<0.000000e+00> : vector<8x32xf32>
    %290 = tpu.matmul %289, %274, %cst_136 {dimension_numbers = #tpu.dot_dimension_numbers<[1], [0], [0], [1], [0, 0, 1, 1], [], []>} : vector<8x32xbf16>, vector<32x32xbf16>, vector<8x32xf32> -> vector<8x32xf32>
    %291 = vector.broadcast %275 : vector<1x32xf32> to vector<8x32xf32>
    %292 = arith.addf %290, %291 : vector<8x32xf32>
    %293 = arith.truncf %292 : vector<8x32xf32> to vector<8x32xbf16>
    %cst_137 = arith.constant 0.000000e+00 : f32
    %294 = vector.broadcast %cst_137 : f32 to vector<8x32xf32>
    %295 = vector.extract_strided_slice %283 {offsets = [0, 0], sizes = [8, 16], strides = [1, 1]} : vector<8x32xbf16> to vector<8x16xbf16>
    %296 = vector.extract_strided_slice %288 {offsets = [0, 0], sizes = [8, 16], strides = [1, 1]} : vector<8x32xbf16> to vector<8x16xbf16>
    %cst_138 = arith.constant dense<0.000000e+00> : vector<8x8xf32>
    %297 = tpu.matmul %295, %296, %cst_138 {dimension_numbers = #tpu.dot_dimension_numbers<[1], [1], [0], [0], [0, 0, 1, 0], [], []>} : vector<8x16xbf16>, vector<8x16xbf16>, vector<8x8xf32> -> vector<8x8xf32>
    %cst_139 = arith.constant dense<0xFF800000> : vector<8xf32>
    %298 = vector.multi_reduction <maximumf>, %297, %cst_139 [1] : vector<8x8xf32> to vector<8xf32>
    %299 = vector.shape_cast %298 : vector<8xf32> to vector<8x1xf32>
    %300 = vector.broadcast %299 : vector<8x1xf32> to vector<8x8xf32>
    %301 = arith.subf %297, %300 : vector<8x8xf32>
    %302 = math.exp %301 : vector<8x8xf32>
    %cst_140 = arith.constant dense<0.000000e+00> : vector<8xf32>
    %303 = vector.multi_reduction <add>, %302, %cst_140 [1] : vector<8x8xf32> to vector<8xf32>
    %304 = vector.shape_cast %303 : vector<8xf32> to vector<8x1xf32>
    %305 = tpu.reciprocal %304 {approx = true} : vector<8x1xf32> -> vector<8x1xf32>
    %306 = vector.broadcast %305 : vector<8x1xf32> to vector<8x8xf32>
    %307 = arith.mulf %302, %306 : vector<8x8xf32>
    %308 = arith.truncf %307 : vector<8x8xf32> to vector<8x8xbf16>
    %309 = vector.extract_strided_slice %293 {offsets = [0, 0], sizes = [8, 16], strides = [1, 1]} : vector<8x32xbf16> to vector<8x16xbf16>
    %cst_141 = arith.constant dense<0.000000e+00> : vector<8x16xf32>
    %310 = tpu.matmul %308, %309, %cst_141 {dimension_numbers = #tpu.dot_dimension_numbers<[1], [0], [0], [1], [0, 0, 1, 1], [], []>} : vector<8x8xbf16>, vector<8x16xbf16>, vector<8x16xf32> -> vector<8x16xf32>
    %311 = arith.truncf %310 : vector<8x16xf32> to vector<8x16xbf16>
    %312 = vector.extract_strided_slice %277 {offsets = [0, 0], sizes = [16, 32], strides = [1, 1]} : vector<32x32xbf16> to vector<16x32xbf16>
    %cst_142 = arith.constant dense<0.000000e+00> : vector<8x32xf32>
    %313 = tpu.matmul %311, %312, %cst_142 {dimension_numbers = #tpu.dot_dimension_numbers<[1], [0], [0], [1], [0, 0, 1, 1], [], []>} : vector<8x16xbf16>, vector<16x32xbf16>, vector<8x32xf32> -> vector<8x32xf32>
    %314 = arith.addf %294, %313 : vector<8x32xf32>
    %315 = vector.extract_strided_slice %283 {offsets = [0, 16], sizes = [8, 16], strides = [1, 1]} : vector<8x32xbf16> to vector<8x16xbf16>
    %316 = vector.extract_strided_slice %288 {offsets = [0, 16], sizes = [8, 16], strides = [1, 1]} : vector<8x32xbf16> to vector<8x16xbf16>
    %cst_143 = arith.constant dense<0.000000e+00> : vector<8x8xf32>
    %317 = tpu.matmul %315, %316, %cst_143 {dimension_numbers = #tpu.dot_dimension_numbers<[1], [1], [0], [0], [0, 0, 1, 0], [], []>} : vector<8x16xbf16>, vector<8x16xbf16>, vector<8x8xf32> -> vector<8x8xf32>
    %cst_144 = arith.constant dense<0xFF800000> : vector<8xf32>
    %318 = vector.multi_reduction <maximumf>, %317, %cst_144 [1] : vector<8x8xf32> to vector<8xf32>
    %319 = vector.shape_cast %318 : vector<8xf32> to vector<8x1xf32>
    %320 = vector.broadcast %319 : vector<8x1xf32> to vector<8x8xf32>
    %321 = arith.subf %317, %320 : vector<8x8xf32>
    %322 = math.exp %321 : vector<8x8xf32>
    %cst_145 = arith.constant dense<0.000000e+00> : vector<8xf32>
    %323 = vector.multi_reduction <add>, %322, %cst_145 [1] : vector<8x8xf32> to vector<8xf32>
    %324 = vector.shape_cast %323 : vector<8xf32> to vector<8x1xf32>
    %325 = tpu.reciprocal %324 {approx = true} : vector<8x1xf32> -> vector<8x1xf32>
    %326 = vector.broadcast %325 : vector<8x1xf32> to vector<8x8xf32>
    %327 = arith.mulf %322, %326 : vector<8x8xf32>
    %328 = arith.truncf %327 : vector<8x8xf32> to vector<8x8xbf16>
    %329 = vector.extract_strided_slice %293 {offsets = [0, 16], sizes = [8, 16], strides = [1, 1]} : vector<8x32xbf16> to vector<8x16xbf16>
    %cst_146 = arith.constant dense<0.000000e+00> : vector<8x16xf32>
    %330 = tpu.matmul %328, %329, %cst_146 {dimension_numbers = #tpu.dot_dimension_numbers<[1], [0], [0], [1], [0, 0, 1, 1], [], []>} : vector<8x8xbf16>, vector<8x16xbf16>, vector<8x16xf32> -> vector<8x16xf32>
    %331 = arith.truncf %330 : vector<8x16xf32> to vector<8x16xbf16>
    %332 = vector.extract_strided_slice %277 {offsets = [16, 0], sizes = [16, 32], strides = [1, 1]} : vector<32x32xbf16> to vector<16x32xbf16>
    %cst_147 = arith.constant dense<0.000000e+00> : vector<8x32xf32>
    %333 = tpu.matmul %331, %332, %cst_147 {dimension_numbers = #tpu.dot_dimension_numbers<[1], [0], [0], [1], [0, 0, 1, 1], [], []>} : vector<8x16xbf16>, vector<16x32xbf16>, vector<8x32xf32> -> vector<8x32xf32>
    %334 = arith.addf %314, %333 : vector<8x32xf32>
    %335 = vector.broadcast %278 : vector<1x32xf32> to vector<8x32xf32>
    %336 = arith.addf %334, %335 : vector<8x32xf32>
    %337 = arith.addf %236, %336 : vector<8x32xf32>
    %338 = vector.extract_strided_slice %265 {offsets = [0, 0], sizes = [1, 32], strides = [1, 1]} : vector<8x32xf32> to vector<1x32xf32>
    %339 = vector.extract_strided_slice %265 {offsets = [4, 0], sizes = [1, 32], strides = [1, 1]} : vector<8x32xf32> to vector<1x32xf32>
    %cst_148 = arith.constant dense<0.000000e+00> : vector<8xf32>
    %340 = vector.multi_reduction <add>, %337, %cst_148 [1] : vector<8x32xf32> to vector<8xf32>
    %341 = vector.shape_cast %340 : vector<8xf32> to vector<8x1xf32>
    %cst_149 = arith.constant 3.200000e+01 : f32
    %342 = vector.broadcast %cst_149 : f32 to vector<8x1xf32>
    %343 = arith.divf %341, %342 : vector<8x1xf32>
    %344 = vector.broadcast %343 : vector<8x1xf32> to vector<8x32xf32>
    %345 = arith.subf %337, %344 : vector<8x32xf32>
    %346 = arith.mulf %345, %345 : vector<8x32xf32>
    %cst_150 = arith.constant dense<0.000000e+00> : vector<8xf32>
    %347 = vector.multi_reduction <add>, %346, %cst_150 [1] : vector<8x32xf32> to vector<8xf32>
    %348 = vector.shape_cast %347 : vector<8xf32> to vector<8x1xf32>
    %cst_151 = arith.constant 3.200000e+01 : f32
    %349 = vector.broadcast %cst_151 : f32 to vector<8x1xf32>
    %350 = arith.divf %348, %349 : vector<8x1xf32>
    %cst_152 = arith.constant 9.99999974E-6 : f32
    %351 = vector.broadcast %cst_152 : f32 to vector<8x1xf32>
    %352 = arith.addf %350, %351 : vector<8x1xf32>
    %353 = math.rsqrt %352 : vector<8x1xf32>
    %354 = vector.broadcast %353 : vector<8x1xf32> to vector<8x32xf32>
    %355 = arith.mulf %345, %354 : vector<8x32xf32>
    %356 = vector.broadcast %338 : vector<1x32xf32> to vector<8x32xf32>
    %357 = arith.mulf %355, %356 : vector<8x32xf32>
    %358 = vector.broadcast %339 : vector<1x32xf32> to vector<8x32xf32>
    %359 = arith.addf %357, %358 : vector<8x32xf32>
    %360 = arith.addf %359, %1 : vector<8x32xf32>
    %361 = arith.addf %263, %3 : vector<64x32xf32>
    %c3_153 = arith.constant 3 : index
    %c0_154 = arith.constant 0 : index
    %c0_155 = arith.constant 0 : index
    %362 = vector.load %arg7[%c3_153, %c0_154, %c0_155] : memref<6x32x16xbf16, #tpu.memory_space<vmem>>, vector<1x32x16xbf16>
    %363 = vector.shape_cast %362 : vector<1x32x16xbf16> to vector<32x16xbf16>
    %c3_156 = arith.constant 3 : index
    %c0_157 = arith.constant 0 : index
    %364 = vector.load %arg8[%c3_156, %c0_157] : memref<6x16xf32, #tpu.memory_space<vmem>>, vector<1x16xf32>
    %c4_158 = arith.constant 4 : index
    %c0_159 = arith.constant 0 : index
    %c0_160 = arith.constant 0 : index
    %365 = vector.load %arg7[%c4_158, %c0_159, %c0_160] : memref<6x32x16xbf16, #tpu.memory_space<vmem>>, vector<1x32x16xbf16>
    %366 = vector.shape_cast %365 : vector<1x32x16xbf16> to vector<32x16xbf16>
    %c4_161 = arith.constant 4 : index
    %c0_162 = arith.constant 0 : index
    %367 = vector.load %arg8[%c4_161, %c0_162] : memref<6x16xf32, #tpu.memory_space<vmem>>, vector<1x16xf32>
    %c5_163 = arith.constant 5 : index
    %c0_164 = arith.constant 0 : index
    %c0_165 = arith.constant 0 : index
    %368 = vector.load %arg7[%c5_163, %c0_164, %c0_165] : memref<6x32x16xbf16, #tpu.memory_space<vmem>>, vector<1x32x16xbf16>
    %369 = vector.shape_cast %368 : vector<1x32x16xbf16> to vector<32x16xbf16>
    %c5_166 = arith.constant 5 : index
    %c0_167 = arith.constant 0 : index
    %370 = vector.load %arg8[%c5_166, %c0_167] : memref<6x16xf32, #tpu.memory_space<vmem>>, vector<1x16xf32>
    %c1_168 = arith.constant 1 : index
    %c0_169 = arith.constant 0 : index
    %c0_170 = arith.constant 0 : index
    %371 = vector.load %arg9[%c1_168, %c0_169, %c0_170] : memref<2x16x32xbf16, #tpu.memory_space<vmem>>, vector<1x16x32xbf16>
    %372 = vector.shape_cast %371 : vector<1x16x32xbf16> to vector<16x32xbf16>
    %c1_171 = arith.constant 1 : index
    %c0_172 = arith.constant 0 : index
    %373 = vector.load %arg10[%c1_171, %c0_172] : memref<2x32xf32, #tpu.memory_space<vmem>>, vector<1x32xf32>
    %374 = arith.truncf %360 : vector<8x32xf32> to vector<8x32xbf16>
    %cst_173 = arith.constant dense<0.000000e+00> : vector<8x16xf32>
    %375 = tpu.matmul %374, %363, %cst_173 {dimension_numbers = #tpu.dot_dimension_numbers<[1], [0], [0], [1], [0, 0, 1, 1], [], []>} : vector<8x32xbf16>, vector<32x16xbf16>, vector<8x16xf32> -> vector<8x16xf32>
    %376 = vector.broadcast %364 : vector<1x16xf32> to vector<8x16xf32>
    %377 = arith.addf %375, %376 : vector<8x16xf32>
    %378 = arith.truncf %377 : vector<8x16xf32> to vector<8x16xbf16>
    %379 = arith.truncf %361 : vector<64x32xf32> to vector<64x32xbf16>
    %cst_174 = arith.constant dense<0.000000e+00> : vector<64x16xf32>
    %380 = tpu.matmul %379, %366, %cst_174 {dimension_numbers = #tpu.dot_dimension_numbers<[1], [0], [0], [1], [0, 0, 1, 1], [], []>} : vector<64x32xbf16>, vector<32x16xbf16>, vector<64x16xf32> -> vector<64x16xf32>
    %381 = vector.broadcast %367 : vector<1x16xf32> to vector<64x16xf32>
    %382 = arith.addf %380, %381 : vector<64x16xf32>
    %383 = arith.truncf %382 : vector<64x16xf32> to vector<64x16xbf16>
    %384 = arith.truncf %263 : vector<64x32xf32> to vector<64x32xbf16>
    %cst_175 = arith.constant dense<0.000000e+00> : vector<64x16xf32>
    %385 = tpu.matmul %384, %369, %cst_175 {dimension_numbers = #tpu.dot_dimension_numbers<[1], [0], [0], [1], [0, 0, 1, 1], [], []>} : vector<64x32xbf16>, vector<32x16xbf16>, vector<64x16xf32> -> vector<64x16xf32>
    %386 = vector.broadcast %370 : vector<1x16xf32> to vector<64x16xf32>
    %387 = arith.addf %385, %386 : vector<64x16xf32>
    %388 = arith.truncf %387 : vector<64x16xf32> to vector<64x16xbf16>
    %cst_176 = arith.constant 0.000000e+00 : f32
    %389 = vector.broadcast %cst_176 : f32 to vector<8x32xf32>
    %390 = vector.extract_strided_slice %378 {offsets = [0, 0], sizes = [8, 8], strides = [1, 1]} : vector<8x16xbf16> to vector<8x8xbf16>
    %391 = vector.extract_strided_slice %383 {offsets = [0, 0], sizes = [64, 8], strides = [1, 1]} : vector<64x16xbf16> to vector<64x8xbf16>
    %cst_177 = arith.constant dense<0.000000e+00> : vector<8x64xf32>
    %392 = tpu.matmul %390, %391, %cst_177 {dimension_numbers = #tpu.dot_dimension_numbers<[1], [1], [0], [0], [0, 0, 1, 0], [], []>} : vector<8x8xbf16>, vector<64x8xbf16>, vector<8x64xf32> -> vector<8x64xf32>
    %cst_178 = arith.constant dense<0xFF800000> : vector<8xf32>
    %393 = vector.multi_reduction <maximumf>, %392, %cst_178 [1] : vector<8x64xf32> to vector<8xf32>
    %394 = vector.shape_cast %393 : vector<8xf32> to vector<8x1xf32>
    %395 = vector.broadcast %394 : vector<8x1xf32> to vector<8x64xf32>
    %396 = arith.subf %392, %395 : vector<8x64xf32>
    %397 = math.exp %396 : vector<8x64xf32>
    %cst_179 = arith.constant dense<0.000000e+00> : vector<8xf32>
    %398 = vector.multi_reduction <add>, %397, %cst_179 [1] : vector<8x64xf32> to vector<8xf32>
    %399 = vector.shape_cast %398 : vector<8xf32> to vector<8x1xf32>
    %400 = tpu.reciprocal %399 {approx = true} : vector<8x1xf32> -> vector<8x1xf32>
    %401 = vector.broadcast %400 : vector<8x1xf32> to vector<8x64xf32>
    %402 = arith.mulf %397, %401 : vector<8x64xf32>
    %403 = arith.truncf %402 : vector<8x64xf32> to vector<8x64xbf16>
    %404 = vector.extract_strided_slice %388 {offsets = [0, 0], sizes = [64, 8], strides = [1, 1]} : vector<64x16xbf16> to vector<64x8xbf16>
    %cst_180 = arith.constant dense<0.000000e+00> : vector<8x8xf32>
    %405 = tpu.matmul %403, %404, %cst_180 {dimension_numbers = #tpu.dot_dimension_numbers<[1], [0], [0], [1], [0, 0, 1, 1], [], []>} : vector<8x64xbf16>, vector<64x8xbf16>, vector<8x8xf32> -> vector<8x8xf32>
    %406 = arith.truncf %405 : vector<8x8xf32> to vector<8x8xbf16>
    %407 = vector.extract_strided_slice %372 {offsets = [0, 0], sizes = [8, 32], strides = [1, 1]} : vector<16x32xbf16> to vector<8x32xbf16>
    %cst_181 = arith.constant dense<0.000000e+00> : vector<8x32xf32>
    %408 = tpu.matmul %406, %407, %cst_181 {dimension_numbers = #tpu.dot_dimension_numbers<[1], [0], [0], [1], [0, 0, 1, 1], [], []>} : vector<8x8xbf16>, vector<8x32xbf16>, vector<8x32xf32> -> vector<8x32xf32>
    %409 = arith.addf %389, %408 : vector<8x32xf32>
    %410 = vector.extract_strided_slice %378 {offsets = [0, 8], sizes = [8, 8], strides = [1, 1]} : vector<8x16xbf16> to vector<8x8xbf16>
    %411 = vector.extract_strided_slice %383 {offsets = [0, 8], sizes = [64, 8], strides = [1, 1]} : vector<64x16xbf16> to vector<64x8xbf16>
    %cst_182 = arith.constant dense<0.000000e+00> : vector<8x64xf32>
    %412 = tpu.matmul %410, %411, %cst_182 {dimension_numbers = #tpu.dot_dimension_numbers<[1], [1], [0], [0], [0, 0, 1, 0], [], []>} : vector<8x8xbf16>, vector<64x8xbf16>, vector<8x64xf32> -> vector<8x64xf32>
    %cst_183 = arith.constant dense<0xFF800000> : vector<8xf32>
    %413 = vector.multi_reduction <maximumf>, %412, %cst_183 [1] : vector<8x64xf32> to vector<8xf32>
    %414 = vector.shape_cast %413 : vector<8xf32> to vector<8x1xf32>
    %415 = vector.broadcast %414 : vector<8x1xf32> to vector<8x64xf32>
    %416 = arith.subf %412, %415 : vector<8x64xf32>
    %417 = math.exp %416 : vector<8x64xf32>
    %cst_184 = arith.constant dense<0.000000e+00> : vector<8xf32>
    %418 = vector.multi_reduction <add>, %417, %cst_184 [1] : vector<8x64xf32> to vector<8xf32>
    %419 = vector.shape_cast %418 : vector<8xf32> to vector<8x1xf32>
    %420 = tpu.reciprocal %419 {approx = true} : vector<8x1xf32> -> vector<8x1xf32>
    %421 = vector.broadcast %420 : vector<8x1xf32> to vector<8x64xf32>
    %422 = arith.mulf %417, %421 : vector<8x64xf32>
    %423 = arith.truncf %422 : vector<8x64xf32> to vector<8x64xbf16>
    %424 = vector.extract_strided_slice %388 {offsets = [0, 8], sizes = [64, 8], strides = [1, 1]} : vector<64x16xbf16> to vector<64x8xbf16>
    %cst_185 = arith.constant dense<0.000000e+00> : vector<8x8xf32>
    %425 = tpu.matmul %423, %424, %cst_185 {dimension_numbers = #tpu.dot_dimension_numbers<[1], [0], [0], [1], [0, 0, 1, 1], [], []>} : vector<8x64xbf16>, vector<64x8xbf16>, vector<8x8xf32> -> vector<8x8xf32>
    %426 = arith.truncf %425 : vector<8x8xf32> to vector<8x8xbf16>
    %427 = vector.extract_strided_slice %372 {offsets = [8, 0], sizes = [8, 32], strides = [1, 1]} : vector<16x32xbf16> to vector<8x32xbf16>
    %cst_186 = arith.constant dense<0.000000e+00> : vector<8x32xf32>
    %428 = tpu.matmul %426, %427, %cst_186 {dimension_numbers = #tpu.dot_dimension_numbers<[1], [0], [0], [1], [0, 0, 1, 1], [], []>} : vector<8x8xbf16>, vector<8x32xbf16>, vector<8x32xf32> -> vector<8x32xf32>
    %429 = arith.addf %409, %428 : vector<8x32xf32>
    %430 = vector.broadcast %373 : vector<1x32xf32> to vector<8x32xf32>
    %431 = arith.addf %429, %430 : vector<8x32xf32>
    %432 = arith.addf %359, %431 : vector<8x32xf32>
    %433 = vector.extract_strided_slice %265 {offsets = [1, 0], sizes = [1, 32], strides = [1, 1]} : vector<8x32xf32> to vector<1x32xf32>
    %434 = vector.extract_strided_slice %265 {offsets = [5, 0], sizes = [1, 32], strides = [1, 1]} : vector<8x32xf32> to vector<1x32xf32>
    %cst_187 = arith.constant dense<0.000000e+00> : vector<8xf32>
    %435 = vector.multi_reduction <add>, %432, %cst_187 [1] : vector<8x32xf32> to vector<8xf32>
    %436 = vector.shape_cast %435 : vector<8xf32> to vector<8x1xf32>
    %cst_188 = arith.constant 3.200000e+01 : f32
    %437 = vector.broadcast %cst_188 : f32 to vector<8x1xf32>
    %438 = arith.divf %436, %437 : vector<8x1xf32>
    %439 = vector.broadcast %438 : vector<8x1xf32> to vector<8x32xf32>
    %440 = arith.subf %432, %439 : vector<8x32xf32>
    %441 = arith.mulf %440, %440 : vector<8x32xf32>
    %cst_189 = arith.constant dense<0.000000e+00> : vector<8xf32>
    %442 = vector.multi_reduction <add>, %441, %cst_189 [1] : vector<8x32xf32> to vector<8xf32>
    %443 = vector.shape_cast %442 : vector<8xf32> to vector<8x1xf32>
    %cst_190 = arith.constant 3.200000e+01 : f32
    %444 = vector.broadcast %cst_190 : f32 to vector<8x1xf32>
    %445 = arith.divf %443, %444 : vector<8x1xf32>
    %cst_191 = arith.constant 9.99999974E-6 : f32
    %446 = vector.broadcast %cst_191 : f32 to vector<8x1xf32>
    %447 = arith.addf %445, %446 : vector<8x1xf32>
    %448 = math.rsqrt %447 : vector<8x1xf32>
    %449 = vector.broadcast %448 : vector<8x1xf32> to vector<8x32xf32>
    %450 = arith.mulf %440, %449 : vector<8x32xf32>
    %451 = vector.broadcast %433 : vector<1x32xf32> to vector<8x32xf32>
    %452 = arith.mulf %450, %451 : vector<8x32xf32>
    %453 = vector.broadcast %434 : vector<1x32xf32> to vector<8x32xf32>
    %454 = arith.addf %452, %453 : vector<8x32xf32>
    %455 = arith.truncf %454 : vector<8x32xf32> to vector<8x32xbf16>
    %c1_192 = arith.constant 1 : index
    %c0_193 = arith.constant 0 : index
    %c0_194 = arith.constant 0 : index
    %456 = vector.load %arg11[%c1_192, %c0_193, %c0_194] : memref<2x32x64xbf16, #tpu.memory_space<vmem>>, vector<1x32x64xbf16>
    %457 = vector.shape_cast %456 : vector<1x32x64xbf16> to vector<32x64xbf16>
    %cst_195 = arith.constant dense<0.000000e+00> : vector<8x64xf32>
    %458 = tpu.matmul %455, %457, %cst_195 {dimension_numbers = #tpu.dot_dimension_numbers<[1], [0], [0], [1], [0, 0, 1, 1], [], []>} : vector<8x32xbf16>, vector<32x64xbf16>, vector<8x64xf32> -> vector<8x64xf32>
    %c1_196 = arith.constant 1 : index
    %c0_197 = arith.constant 0 : index
    %459 = vector.load %arg12[%c1_196, %c0_197] : memref<2x64xf32, #tpu.memory_space<vmem>>, vector<1x64xf32>
    %460 = vector.broadcast %459 : vector<1x64xf32> to vector<8x64xf32>
    %461 = arith.addf %458, %460 : vector<8x64xf32>
    %cst_198 = arith.constant 0.000000e+00 : f32
    %462 = vector.broadcast %cst_198 : f32 to vector<8x64xf32>
    %463 = arith.maximumf %461, %462 : vector<8x64xf32>
    %464 = arith.truncf %463 : vector<8x64xf32> to vector<8x64xbf16>
    %c1_199 = arith.constant 1 : index
    %c0_200 = arith.constant 0 : index
    %c0_201 = arith.constant 0 : index
    %465 = vector.load %arg13[%c1_199, %c0_200, %c0_201] : memref<2x64x32xbf16, #tpu.memory_space<vmem>>, vector<1x64x32xbf16>
    %466 = vector.shape_cast %465 : vector<1x64x32xbf16> to vector<64x32xbf16>
    %cst_202 = arith.constant dense<0.000000e+00> : vector<8x32xf32>
    %467 = tpu.matmul %464, %466, %cst_202 {dimension_numbers = #tpu.dot_dimension_numbers<[1], [0], [0], [1], [0, 0, 1, 1], [], []>} : vector<8x64xbf16>, vector<64x32xbf16>, vector<8x32xf32> -> vector<8x32xf32>
    %c1_203 = arith.constant 1 : index
    %c0_204 = arith.constant 0 : index
    %468 = vector.load %arg14[%c1_203, %c0_204] : memref<2x32xf32, #tpu.memory_space<vmem>>, vector<1x32xf32>
    %469 = vector.broadcast %468 : vector<1x32xf32> to vector<8x32xf32>
    %470 = arith.addf %467, %469 : vector<8x32xf32>
    %471 = arith.addf %454, %470 : vector<8x32xf32>
    %472 = vector.extract_strided_slice %265 {offsets = [2, 0], sizes = [1, 32], strides = [1, 1]} : vector<8x32xf32> to vector<1x32xf32>
    %473 = vector.extract_strided_slice %265 {offsets = [6, 0], sizes = [1, 32], strides = [1, 1]} : vector<8x32xf32> to vector<1x32xf32>
    %cst_205 = arith.constant dense<0.000000e+00> : vector<8xf32>
    %474 = vector.multi_reduction <add>, %471, %cst_205 [1] : vector<8x32xf32> to vector<8xf32>
    %475 = vector.shape_cast %474 : vector<8xf32> to vector<8x1xf32>
    %cst_206 = arith.constant 3.200000e+01 : f32
    %476 = vector.broadcast %cst_206 : f32 to vector<8x1xf32>
    %477 = arith.divf %475, %476 : vector<8x1xf32>
    %478 = vector.broadcast %477 : vector<8x1xf32> to vector<8x32xf32>
    %479 = arith.subf %471, %478 : vector<8x32xf32>
    %480 = arith.mulf %479, %479 : vector<8x32xf32>
    %cst_207 = arith.constant dense<0.000000e+00> : vector<8xf32>
    %481 = vector.multi_reduction <add>, %480, %cst_207 [1] : vector<8x32xf32> to vector<8xf32>
    %482 = vector.shape_cast %481 : vector<8xf32> to vector<8x1xf32>
    %cst_208 = arith.constant 3.200000e+01 : f32
    %483 = vector.broadcast %cst_208 : f32 to vector<8x1xf32>
    %484 = arith.divf %482, %483 : vector<8x1xf32>
    %cst_209 = arith.constant 9.99999974E-6 : f32
    %485 = vector.broadcast %cst_209 : f32 to vector<8x1xf32>
    %486 = arith.addf %484, %485 : vector<8x1xf32>
    %487 = math.rsqrt %486 : vector<8x1xf32>
    %488 = vector.broadcast %487 : vector<8x1xf32> to vector<8x32xf32>
    %489 = arith.mulf %479, %488 : vector<8x32xf32>
    %490 = vector.broadcast %472 : vector<1x32xf32> to vector<8x32xf32>
    %491 = arith.mulf %489, %490 : vector<8x32xf32>
    %492 = vector.broadcast %473 : vector<1x32xf32> to vector<8x32xf32>
    %493 = arith.addf %491, %492 : vector<8x32xf32>
    %494 = vector.extract_strided_slice %265 {offsets = [3, 0], sizes = [1, 32], strides = [1, 1]} : vector<8x32xf32> to vector<1x32xf32>
    %495 = vector.extract_strided_slice %265 {offsets = [7, 0], sizes = [1, 32], strides = [1, 1]} : vector<8x32xf32> to vector<1x32xf32>
    %cst_210 = arith.constant dense<0.000000e+00> : vector<64xf32>
    %496 = vector.multi_reduction <add>, %263, %cst_210 [1] : vector<64x32xf32> to vector<64xf32>
    %497 = vector.shape_cast %496 : vector<64xf32> to vector<64x1xf32>
    %cst_211 = arith.constant 3.200000e+01 : f32
    %498 = vector.broadcast %cst_211 : f32 to vector<64x1xf32>
    %499 = arith.divf %497, %498 : vector<64x1xf32>
    %500 = vector.broadcast %499 : vector<64x1xf32> to vector<64x32xf32>
    %501 = arith.subf %263, %500 : vector<64x32xf32>
    %502 = arith.mulf %501, %501 : vector<64x32xf32>
    %cst_212 = arith.constant dense<0.000000e+00> : vector<64xf32>
    %503 = vector.multi_reduction <add>, %502, %cst_212 [1] : vector<64x32xf32> to vector<64xf32>
    %504 = vector.shape_cast %503 : vector<64xf32> to vector<64x1xf32>
    %cst_213 = arith.constant 3.200000e+01 : f32
    %505 = vector.broadcast %cst_213 : f32 to vector<64x1xf32>
    %506 = arith.divf %504, %505 : vector<64x1xf32>
    %cst_214 = arith.constant 9.99999974E-6 : f32
    %507 = vector.broadcast %cst_214 : f32 to vector<64x1xf32>
    %508 = arith.addf %506, %507 : vector<64x1xf32>
    %509 = math.rsqrt %508 : vector<64x1xf32>
    %510 = vector.broadcast %509 : vector<64x1xf32> to vector<64x32xf32>
    %511 = arith.mulf %501, %510 : vector<64x32xf32>
    %512 = vector.broadcast %494 : vector<1x32xf32> to vector<64x32xf32>
    %513 = arith.mulf %511, %512 : vector<64x32xf32>
    %514 = vector.broadcast %495 : vector<1x32xf32> to vector<64x32xf32>
    %515 = arith.addf %513, %514 : vector<64x32xf32>
    %516 = arith.truncf %515 : vector<64x32xf32> to vector<64x32xbf16>
    %c0_215 = arith.constant 0 : index
    %c1_216 = arith.constant 1 : index
    %c0_217 = arith.constant 0 : index
    %c0_218 = arith.constant 0 : index
    %517 = vector.load %arg23[%c0_215, %c1_216, %c0_217, %c0_218] : memref<1x2x64x32xbf16, #tpu.memory_space<vmem>>, vector<1x1x64x32xbf16>
    %518 = vector.shape_cast %517 : vector<1x1x64x32xbf16> to vector<64x32xbf16>
    %519 = vector.shape_cast %516 : vector<64x32xbf16> to vector<1x1x64x32xbf16>
    tpu.vector_store %arg23[%c0_215, %c1_216, %c0_217, %c0_218], %519 {strides = array<i32>} : memref<1x2x64x32xbf16, #tpu.memory_space<vmem>>, vector<1x1x64x32xbf16>,
    %520 = arith.addf %493, %1 : vector<8x32xf32>
    %521 = arith.addf %515, %3 : vector<64x32xf32>
    %c0_219 = arith.constant 0 : index
    %c0_220 = arith.constant 0 : index
    %c0_221 = arith.constant 0 : index
    %522 = vector.load %arg16[%c0_219, %c0_220, %c0_221] : memref<3x32x16xbf16, #tpu.memory_space<vmem>>, vector<1x32x16xbf16>
    %523 = vector.shape_cast %522 : vector<1x32x16xbf16> to vector<32x16xbf16>
    %c0_222 = arith.constant 0 : index
    %c0_223 = arith.constant 0 : index
    %524 = vector.load %arg17[%c0_222, %c0_223] : memref<3x16xf32, #tpu.memory_space<vmem>>, vector<1x16xf32>
    %c1_224 = arith.constant 1 : index
    %c0_225 = arith.constant 0 : index
    %c0_226 = arith.constant 0 : index
    %525 = vector.load %arg16[%c1_224, %c0_225, %c0_226] : memref<3x32x16xbf16, #tpu.memory_space<vmem>>, vector<1x32x16xbf16>
    %526 = vector.shape_cast %525 : vector<1x32x16xbf16> to vector<32x16xbf16>
    %c1_227 = arith.constant 1 : index
    %c0_228 = arith.constant 0 : index
    %527 = vector.load %arg17[%c1_227, %c0_228] : memref<3x16xf32, #tpu.memory_space<vmem>>, vector<1x16xf32>
    %c2_229 = arith.constant 2 : index
    %c0_230 = arith.constant 0 : index
    %c0_231 = arith.constant 0 : index
    %528 = vector.load %arg16[%c2_229, %c0_230, %c0_231] : memref<3x32x16xbf16, #tpu.memory_space<vmem>>, vector<1x32x16xbf16>
    %529 = vector.shape_cast %528 : vector<1x32x16xbf16> to vector<32x16xbf16>
    %c2_232 = arith.constant 2 : index
    %c0_233 = arith.constant 0 : index
    %530 = vector.load %arg17[%c2_232, %c0_233] : memref<3x16xf32, #tpu.memory_space<vmem>>, vector<1x16xf32>
    %c0_234 = arith.constant 0 : index
    %c0_235 = arith.constant 0 : index
    %531 = vector.load %arg18[%c0_234, %c0_235] : memref<16x32xbf16, #tpu.memory_space<vmem>>, vector<16x32xbf16>
    %c0_236 = arith.constant 0 : index
    %c0_237 = arith.constant 0 : index
    %532 = vector.load %arg19[%c0_236, %c0_237] : memref<1x32xf32, #tpu.memory_space<vmem>>, vector<1x32xf32>
    %533 = arith.truncf %520 : vector<8x32xf32> to vector<8x32xbf16>
    %cst_238 = arith.constant dense<0.000000e+00> : vector<8x16xf32>
    %534 = tpu.matmul %533, %523, %cst_238 {dimension_numbers = #tpu.dot_dimension_numbers<[1], [0], [0], [1], [0, 0, 1, 1], [], []>} : vector<8x32xbf16>, vector<32x16xbf16>, vector<8x16xf32> -> vector<8x16xf32>
    %535 = vector.broadcast %524 : vector<1x16xf32> to vector<8x16xf32>
    %536 = arith.addf %534, %535 : vector<8x16xf32>
    %537 = arith.truncf %536 : vector<8x16xf32> to vector<8x16xbf16>
    %538 = arith.truncf %521 : vector<64x32xf32> to vector<64x32xbf16>
    %cst_239 = arith.constant dense<0.000000e+00> : vector<64x16xf32>
    %539 = tpu.matmul %538, %526, %cst_239 {dimension_numbers = #tpu.dot_dimension_numbers<[1], [0], [0], [1], [0, 0, 1, 1], [], []>} : vector<64x32xbf16>, vector<32x16xbf16>, vector<64x16xf32> -> vector<64x16xf32>
    %540 = vector.broadcast %527 : vector<1x16xf32> to vector<64x16xf32>
    %541 = arith.addf %539, %540 : vector<64x16xf32>
    %542 = arith.truncf %541 : vector<64x16xf32> to vector<64x16xbf16>
    %543 = arith.truncf %515 : vector<64x32xf32> to vector<64x32xbf16>
    %cst_240 = arith.constant dense<0.000000e+00> : vector<64x16xf32>
    %544 = tpu.matmul %543, %529, %cst_240 {dimension_numbers = #tpu.dot_dimension_numbers<[1], [0], [0], [1], [0, 0, 1, 1], [], []>} : vector<64x32xbf16>, vector<32x16xbf16>, vector<64x16xf32> -> vector<64x16xf32>
    %545 = vector.broadcast %530 : vector<1x16xf32> to vector<64x16xf32>
    %546 = arith.addf %544, %545 : vector<64x16xf32>
    %547 = arith.truncf %546 : vector<64x16xf32> to vector<64x16xbf16>
    %cst_241 = arith.constant 0.000000e+00 : f32
    %548 = vector.broadcast %cst_241 : f32 to vector<8x32xf32>
    %549 = vector.extract_strided_slice %537 {offsets = [0, 0], sizes = [8, 8], strides = [1, 1]} : vector<8x16xbf16> to vector<8x8xbf16>
    %550 = vector.extract_strided_slice %542 {offsets = [0, 0], sizes = [64, 8], strides = [1, 1]} : vector<64x16xbf16> to vector<64x8xbf16>
    %cst_242 = arith.constant dense<0.000000e+00> : vector<8x64xf32>
    %551 = tpu.matmul %549, %550, %cst_242 {dimension_numbers = #tpu.dot_dimension_numbers<[1], [1], [0], [0], [0, 0, 1, 0], [], []>} : vector<8x8xbf16>, vector<64x8xbf16>, vector<8x64xf32> -> vector<8x64xf32>
    %cst_243 = arith.constant dense<0xFF800000> : vector<8xf32>
    %552 = vector.multi_reduction <maximumf>, %551, %cst_243 [1] : vector<8x64xf32> to vector<8xf32>
    %553 = vector.shape_cast %552 : vector<8xf32> to vector<8x1xf32>
    %554 = vector.broadcast %553 : vector<8x1xf32> to vector<8x64xf32>
    %555 = arith.subf %551, %554 : vector<8x64xf32>
    %556 = math.exp %555 : vector<8x64xf32>
    %cst_244 = arith.constant dense<0.000000e+00> : vector<8xf32>
    %557 = vector.multi_reduction <add>, %556, %cst_244 [1] : vector<8x64xf32> to vector<8xf32>
    %558 = vector.shape_cast %557 : vector<8xf32> to vector<8x1xf32>
    %559 = tpu.reciprocal %558 {approx = true} : vector<8x1xf32> -> vector<8x1xf32>
    %560 = vector.broadcast %559 : vector<8x1xf32> to vector<8x64xf32>
    %561 = arith.mulf %556, %560 : vector<8x64xf32>
    %562 = arith.truncf %561 : vector<8x64xf32> to vector<8x64xbf16>
    %563 = vector.extract_strided_slice %547 {offsets = [0, 0], sizes = [64, 8], strides = [1, 1]} : vector<64x16xbf16> to vector<64x8xbf16>
    %cst_245 = arith.constant dense<0.000000e+00> : vector<8x8xf32>
    %564 = tpu.matmul %562, %563, %cst_245 {dimension_numbers = #tpu.dot_dimension_numbers<[1], [0], [0], [1], [0, 0, 1, 1], [], []>} : vector<8x64xbf16>, vector<64x8xbf16>, vector<8x8xf32> -> vector<8x8xf32>
    %565 = arith.truncf %564 : vector<8x8xf32> to vector<8x8xbf16>
    %566 = vector.extract_strided_slice %531 {offsets = [0, 0], sizes = [8, 32], strides = [1, 1]} : vector<16x32xbf16> to vector<8x32xbf16>
    %cst_246 = arith.constant dense<0.000000e+00> : vector<8x32xf32>
    %567 = tpu.matmul %565, %566, %cst_246 {dimension_numbers = #tpu.dot_dimension_numbers<[1], [0], [0], [1], [0, 0, 1, 1], [], []>} : vector<8x8xbf16>, vector<8x32xbf16>, vector<8x32xf32> -> vector<8x32xf32>
    %568 = arith.addf %548, %567 : vector<8x32xf32>
    %569 = vector.extract_strided_slice %537 {offsets = [0, 8], sizes = [8, 8], strides = [1, 1]} : vector<8x16xbf16> to vector<8x8xbf16>
    %570 = vector.extract_strided_slice %542 {offsets = [0, 8], sizes = [64, 8], strides = [1, 1]} : vector<64x16xbf16> to vector<64x8xbf16>
    %cst_247 = arith.constant dense<0.000000e+00> : vector<8x64xf32>
    %571 = tpu.matmul %569, %570, %cst_247 {dimension_numbers = #tpu.dot_dimension_numbers<[1], [1], [0], [0], [0, 0, 1, 0], [], []>} : vector<8x8xbf16>, vector<64x8xbf16>, vector<8x64xf32> -> vector<8x64xf32>
    %cst_248 = arith.constant dense<0xFF800000> : vector<8xf32>
    %572 = vector.multi_reduction <maximumf>, %571, %cst_248 [1] : vector<8x64xf32> to vector<8xf32>
    %573 = vector.shape_cast %572 : vector<8xf32> to vector<8x1xf32>
    %574 = vector.broadcast %573 : vector<8x1xf32> to vector<8x64xf32>
    %575 = arith.subf %571, %574 : vector<8x64xf32>
    %576 = math.exp %575 : vector<8x64xf32>
    %cst_249 = arith.constant dense<0.000000e+00> : vector<8xf32>
    %577 = vector.multi_reduction <add>, %576, %cst_249 [1] : vector<8x64xf32> to vector<8xf32>
    %578 = vector.shape_cast %577 : vector<8xf32> to vector<8x1xf32>
    %579 = tpu.reciprocal %578 {approx = true} : vector<8x1xf32> -> vector<8x1xf32>
    %580 = vector.broadcast %579 : vector<8x1xf32> to vector<8x64xf32>
    %581 = arith.mulf %576, %580 : vector<8x64xf32>
    %582 = arith.truncf %581 : vector<8x64xf32> to vector<8x64xbf16>
    %583 = vector.extract_strided_slice %547 {offsets = [0, 8], sizes = [64, 8], strides = [1, 1]} : vector<64x16xbf16> to vector<64x8xbf16>
    %cst_250 = arith.constant dense<0.000000e+00> : vector<8x8xf32>
    %584 = tpu.matmul %582, %583, %cst_250 {dimension_numbers = #tpu.dot_dimension_numbers<[1], [0], [0], [1], [0, 0, 1, 1], [], []>} : vector<8x64xbf16>, vector<64x8xbf16>, vector<8x8xf32> -> vector<8x8xf32>
    %585 = arith.truncf %584 : vector<8x8xf32> to vector<8x8xbf16>
    %586 = vector.extract_strided_slice %531 {offsets = [8, 0], sizes = [8, 32], strides = [1, 1]} : vector<16x32xbf16> to vector<8x32xbf16>
    %cst_251 = arith.constant dense<0.000000e+00> : vector<8x32xf32>
    %587 = tpu.matmul %585, %586, %cst_251 {dimension_numbers = #tpu.dot_dimension_numbers<[1], [0], [0], [1], [0, 0, 1, 1], [], []>} : vector<8x8xbf16>, vector<8x32xbf16>, vector<8x32xf32> -> vector<8x32xf32>
    %588 = arith.addf %568, %587 : vector<8x32xf32>
    %589 = vector.broadcast %532 : vector<1x32xf32> to vector<8x32xf32>
    %590 = arith.addf %588, %589 : vector<8x32xf32>
    %591 = arith.addf %493, %590 : vector<8x32xf32>
    %c0_252 = arith.constant 0 : index
    %c0_253 = arith.constant 0 : index
    %592 = vector.load %arg20[%c0_252, %c0_253] : memref<2x32xf32, #tpu.memory_space<vmem>>, vector<1x32xf32>
    %c1_254 = arith.constant 1 : index
    %c0_255 = arith.constant 0 : index
    %593 = vector.load %arg20[%c1_254, %c0_255] : memref<2x32xf32, #tpu.memory_space<vmem>>, vector<1x32xf32>
    %cst_256 = arith.constant dense<0.000000e+00> : vector<8xf32>
    %594 = vector.multi_reduction <add>, %591, %cst_256 [1] : vector<8x32xf32> to vector<8xf32>
    %595 = vector.shape_cast %594 : vector<8xf32> to vector<8x1xf32>
    %cst_257 = arith.constant 3.200000e+01 : f32
    %596 = vector.broadcast %cst_257 : f32 to vector<8x1xf32>
    %597 = arith.divf %595, %596 : vector<8x1xf32>
    %598 = vector.broadcast %597 : vector<8x1xf32> to vector<8x32xf32>
    %599 = arith.subf %591, %598 : vector<8x32xf32>
    %600 = arith.mulf %599, %599 : vector<8x32xf32>
    %cst_258 = arith.constant dense<0.000000e+00> : vector<8xf32>
    %601 = vector.multi_reduction <add>, %600, %cst_258 [1] : vector<8x32xf32> to vector<8xf32>
    %602 = vector.shape_cast %601 : vector<8xf32> to vector<8x1xf32>
    %cst_259 = arith.constant 3.200000e+01 : f32
    %603 = vector.broadcast %cst_259 : f32 to vector<8x1xf32>
    %604 = arith.divf %602, %603 : vector<8x1xf32>
    %cst_260 = arith.constant 9.99999974E-6 : f32
    %605 = vector.broadcast %cst_260 : f32 to vector<8x1xf32>
    %606 = arith.addf %604, %605 : vector<8x1xf32>
    %607 = math.rsqrt %606 : vector<8x1xf32>
    %608 = vector.broadcast %607 : vector<8x1xf32> to vector<8x32xf32>
    %609 = arith.mulf %599, %608 : vector<8x32xf32>
    %610 = vector.broadcast %592 : vector<1x32xf32> to vector<8x32xf32>
    %611 = arith.mulf %609, %610 : vector<8x32xf32>
    %612 = vector.broadcast %593 : vector<1x32xf32> to vector<8x32xf32>
    %613 = arith.addf %611, %612 : vector<8x32xf32>
    %c0_261 = arith.constant 0 : index
    %c0_262 = arith.constant 0 : index
    %c0_263 = arith.constant 0 : index
    %614 = vector.load %arg21[%c0_261, %c0_262, %c0_263] : memref<1x8x32xf32, #tpu.memory_space<vmem>>, vector<1x8x32xf32>
    %615 = vector.shape_cast %614 : vector<1x8x32xf32> to vector<8x32xf32>
    %616 = vector.shape_cast %613 : vector<8x32xf32> to vector<1x8x32xf32>
    tpu.vector_store %arg21[%c0_261, %c0_262, %c0_263], %616 {strides = array<i32>} : memref<1x8x32xf32, #tpu.memory_space<vmem>>, vector<1x8x32xf32>,
    %617 = arith.truncf %515 : vector<64x32xf32> to vector<64x32xbf16>
    %c0_264 = arith.constant 0 : index
    %c0_265 = arith.constant 0 : index
    %c0_266 = arith.constant 0 : index
    %618 = vector.load %arg22[%c0_264, %c0_265, %c0_266] : memref<1x64x32xbf16, #tpu.memory_space<vmem>>, vector<1x64x32xbf16>
    %619 = vector.shape_cast %618 : vector<1x64x32xbf16> to vector<64x32xbf16>
    %620 = vector.shape_cast %617 : vector<64x32xbf16> to vector<1x64x32xbf16>
    tpu.vector_store %arg22[%c0_264, %c0_265, %c0_266], %620 {strides = array<i32>} : memref<1x64x32xbf16, #tpu.memory_space<vmem>>, vector<1x64x32xbf16>,
    return
  }
  func.func @transform_0(%arg0: i32) -> (i32, i32, i32) {
    %c0_i32 = arith.constant 0 : i32
    %c0_i32_0 = arith.constant 0 : i32
    %c0_i32_1 = arith.constant 0 : i32
    return %arg0, %c0_i32, %c0_i32_0 : i32, i32, i32
  }
  func.func @transform_1(%arg0: i32) -> (i32, i32, i32) {
    %c0_i32 = arith.constant 0 : i32
    %c0_i32_0 = arith.constant 0 : i32
    %c0_i32_1 = arith.constant 0 : i32
    return %arg0, %c0_i32, %c0_i32_0 : i32, i32, i32
  }
  func.func @transform_2(%arg0: i32) -> (i32, i32, i32) {
    %c0_i32 = arith.constant 0 : i32
    %c0_i32_0 = arith.constant 0 : i32
    %c0_i32_1 = arith.constant 0 : i32
    return %arg0, %c0_i32, %c0_i32_0 : i32, i32, i32
  }
  func.func @transform_3(%arg0: i32) -> (i32, i32, i32) {
    %c0_i32 = arith.constant 0 : i32
    %c0_i32_0 = arith.constant 0 : i32
    %c0_i32_1 = arith.constant 0 : i32
    return %arg0, %c0_i32, %c0_i32_0 : i32, i32, i32
  }
  func.func @transform_4(%arg0: i32) -> (i32, i32, i32) {
    %c0_i32 = arith.constant 0 : i32
    %c0_i32_0 = arith.constant 0 : i32
    %c0_i32_1 = arith.constant 0 : i32
    %c0_i32_2 = arith.constant 0 : i32
    return %c0_i32, %c0_i32_0, %c0_i32_1 : i32, i32, i32
  }
  func.func @transform_5(%arg0: i32) -> (i32, i32) {
    %c0_i32 = arith.constant 0 : i32
    %c0_i32_0 = arith.constant 0 : i32
    %c0_i32_1 = arith.constant 0 : i32
    return %c0_i32, %c0_i32_0 : i32, i32
  }
  func.func @transform_6(%arg0: i32) -> (i32, i32, i32) {
    %c0_i32 = arith.constant 0 : i32
    %c0_i32_0 = arith.constant 0 : i32
    %c0_i32_1 = arith.constant 0 : i32
    %c0_i32_2 = arith.constant 0 : i32
    return %c0_i32, %c0_i32_0, %c0_i32_1 : i32, i32, i32
  }
  func.func @transform_7(%arg0: i32) -> (i32, i32) {
    %c0_i32 = arith.constant 0 : i32
    %c0_i32_0 = arith.constant 0 : i32
    %c0_i32_1 = arith.constant 0 : i32
    return %c0_i32, %c0_i32_0 : i32, i32
  }
  func.func @transform_8(%arg0: i32) -> (i32, i32, i32) {
    %c0_i32 = arith.constant 0 : i32
    %c0_i32_0 = arith.constant 0 : i32
    %c0_i32_1 = arith.constant 0 : i32
    %c0_i32_2 = arith.constant 0 : i32
    return %c0_i32, %c0_i32_0, %c0_i32_1 : i32, i32, i32
  }
  func.func @transform_9(%arg0: i32) -> (i32, i32) {
    %c0_i32 = arith.constant 0 : i32
    %c0_i32_0 = arith.constant 0 : i32
    %c0_i32_1 = arith.constant 0 : i32
    return %c0_i32, %c0_i32_0 : i32, i32
  }
  func.func @transform_10(%arg0: i32) -> (i32, i32, i32) {
    %c0_i32 = arith.constant 0 : i32
    %c0_i32_0 = arith.constant 0 : i32
    %c0_i32_1 = arith.constant 0 : i32
    %c0_i32_2 = arith.constant 0 : i32
    return %c0_i32, %c0_i32_0, %c0_i32_1 : i32, i32, i32
  }
  func.func @transform_11(%arg0: i32) -> (i32, i32) {
    %c0_i32 = arith.constant 0 : i32
    %c0_i32_0 = arith.constant 0 : i32
    %c0_i32_1 = arith.constant 0 : i32
    return %c0_i32, %c0_i32_0 : i32, i32
  }
  func.func @transform_12(%arg0: i32) -> (i32, i32, i32) {
    %c0_i32 = arith.constant 0 : i32
    %c0_i32_0 = arith.constant 0 : i32
    %c0_i32_1 = arith.constant 0 : i32
    %c0_i32_2 = arith.constant 0 : i32
    return %c0_i32, %c0_i32_0, %c0_i32_1 : i32, i32, i32
  }
  func.func @transform_13(%arg0: i32) -> (i32, i32) {
    %c0_i32 = arith.constant 0 : i32
    %c0_i32_0 = arith.constant 0 : i32
    %c0_i32_1 = arith.constant 0 : i32
    return %c0_i32, %c0_i32_0 : i32, i32
  }
  func.func @transform_14(%arg0: i32) -> (i32, i32, i32) {
    %c0_i32 = arith.constant 0 : i32
    %c0_i32_0 = arith.constant 0 : i32
    %c0_i32_1 = arith.constant 0 : i32
    %c0_i32_2 = arith.constant 0 : i32
    return %c0_i32, %c0_i32_0, %c0_i32_1 : i32, i32, i32
  }
  func.func @transform_15(%arg0: i32) -> (i32, i32, i32) {
    %c0_i32 = arith.constant 0 : i32
    %c0_i32_0 = arith.constant 0 : i32
    %c0_i32_1 = arith.constant 0 : i32
    %c0_i32_2 = arith.constant 0 : i32
    return %c0_i32, %c0_i32_0, %c0_i32_1 : i32, i32, i32
  }
  func.func @transform_16(%arg0: i32) -> (i32, i32) {
    %c0_i32 = arith.constant 0 : i32
    %c0_i32_0 = arith.constant 0 : i32
    %c0_i32_1 = arith.constant 0 : i32
    return %c0_i32, %c0_i32_0 : i32, i32
  }
  func.func @transform_17(%arg0: i32) -> (i32, i32) {
    %c0_i32 = arith.constant 0 : i32
    %c0_i32_0 = arith.constant 0 : i32
    %c0_i32_1 = arith.constant 0 : i32
    return %c0_i32, %c0_i32_0 : i32, i32
  }
  func.func @transform_18(%arg0: i32) -> (i32, i32) {
    %c0_i32 = arith.constant 0 : i32
    %c0_i32_0 = arith.constant 0 : i32
    %c0_i32_1 = arith.constant 0 : i32
    return %c0_i32, %c0_i32_0 : i32, i32
  }
  func.func @transform_19(%arg0: i32) -> (i32, i32) {
    %c0_i32 = arith.constant 0 : i32
    %c0_i32_0 = arith.constant 0 : i32
    %c0_i32_1 = arith.constant 0 : i32
    return %c0_i32, %c0_i32_0 : i32, i32
  }
  func.func @transform_20(%arg0: i32) -> (i32, i32, i32) {
    %c0_i32 = arith.constant 0 : i32
    %c0_i32_0 = arith.constant 0 : i32
    %c0_i32_1 = arith.constant 0 : i32
    return %arg0, %c0_i32, %c0_i32_0 : i32, i32, i32
  }
  func.func @transform_21(%arg0: i32) -> (i32, i32, i32) {
    %c0_i32 = arith.constant 0 : i32
    %c0_i32_0 = arith.constant 0 : i32
    %c0_i32_1 = arith.constant 0 : i32
    return %arg0, %c0_i32, %c0_i32_0 : i32, i32, i32
  }
  func.func @transform_22(%arg0: i32) -> (i32, i32, i32, i32) {
    %c0_i32 = arith.constant 0 : i32
    %c0_i32_0 = arith.constant 0 : i32
    %c0_i32_1 = arith.constant 0 : i32
    %c0_i32_2 = arith.constant 0 : i32
    return %arg0, %c0_i32, %c0_i32_0, %c0_i32_1 : i32, i32, i32, i32
  }
}

</mosaic_0001>

<bundles_post_ra>
// kernel: tpu_custom_call.1
= control target key start
LH: loop header
LB: loop body
LE: loop exit
PB: predicated region body
PF: predicated region fallthrough
CT: control target
= control target key end

     0   :  { %s5468_s0 = inlined_call_operand.vmem [shape: f32[2,8,32], index: 0, kind: input, shape index: {}]   ;;  %s5469_s1 = inlined_call_operand.vmem [shape: f32[2,64,32], index: 1, kind: input, shape index: {}]   ;;  %s5470_s2 = inlined_call_operand.vmem [shape: f32[2,64,32], index: 2, kind: input, shape index: {}]   ;;  %s5471_s3 = inlined_call_operand.vmem [shape: f32[2,64,32], index: 3, kind: input, shape index: {}]   ;;  %s5472_s4 = inlined_call_operand.vmem [shape: bf16[8,32,32], index: 4, kind: input, shape index: {}]   ;;  %s5473_s5 = inlined_call_operand.vmem [shape: f32[8,32], index: 5, kind: input, shape index: {}]   ;;  %s5474_s6 = inlined_call_operand.vmem [shape: bf16[6,32,16], index: 6, kind: input, shape index: {}]   ;;  %s5475_s7 = inlined_call_operand.vmem [shape: f32[6,16], index: 7, kind: input, shape index: {}]   ;;  %s5476_s8 = inlined_call_operand.vmem [shape: bf16[2,16,32], index: 8, kind: input, shape index: {}]   ;;  %s5477_s9 = inlined_call_operand.vmem [shape: f32[2,32], index: 9, kind: input, shape index: {}]   ;;  %s5478_s10 = inlined_call_operand.vmem [shape: bf16[2,32,64], index: 10, kind: input, shape index: {}]   ;;  %s5479_s11 = inlined_call_operand.vmem [shape: f32[2,64], index: 11, kind: input, shape index: {}]   ;;  %s5480_s12 = inlined_call_operand.vmem [shape: bf16[2,64,32], index: 12, kind: input, shape index: {}]   ;;  %s5481_s13 = inlined_call_operand.vmem [shape: f32[2,32], index: 13, kind: input, shape index: {}]   ;;  %s5482_s14 = inlined_call_operand.vmem [shape: f32[2,8,32], index: 14, kind: input, shape index: {}]   ;;  %s5483_s15 = inlined_call_operand.vmem [shape: bf16[3,32,16], index: 15, kind: input, shape index: {}]   ;;  %s5484_s16 = inlined_call_operand.vmem [shape: f32[3,16], index: 16, kind: input, shape index: {}]   ;;  %s5485_s17 = inlined_call_operand.vmem [shape: bf16[16,32], index: 17, kind: input, shape index: {}]   ;;  %s5486_s18 = inlined_call_operand.vmem [shape: f32[1,32], index: 18, kind: input, shape index: {}]   ;;  %s5487_s19 = inlined_call_operand.vmem [shape: f32[2,32], index: 19, kind: input, shape index: {}]   ;;  %s5488_s20 = inlined_call_operand.hbm [shape: f32[2,8,32], index: 20, kind: output, shape index: {0}]   ;;  %s5489_s21 = inlined_call_operand.vmem [shape: bf16[2,64,32], index: 21, kind: output, shape index: {1}]   ;;  %s5490_s22 = inlined_call_operand.vmem [shape: bf16[2,2,64,32], index: 22, kind: output, shape index: {2}]  }
   0x1   :  { %5511 = sst [smem:[#allocation14_spill]] %s5468_s0 }
   0x2   :  { %5512 = sst [smem:[#allocation15_spill]] %s5469_s1 }
   0x3   :  { %5513 = sst [smem:[#allocation16_spill]] %s5470_s2 }
   0x4   :  { %5514 = sst [smem:[#allocation17_spill]] %s5471_s3 }
   0x5   :  { %5515 = sst [smem:[#allocation18_spill]] %s5472_s4 }
   0x6   :  { %5516 = sst [smem:[#allocation19_spill]] %s5473_s5 }
   0x7   :  { %5517 = sst [smem:[#allocation20_spill]] %s5474_s6 }
   0x8   :  { %5518 = sst [smem:[#allocation21_spill]] %s5475_s7 }
   0x9   :  { %5519 = sst [smem:[#allocation22_spill]] %s5484_s16 }
   0xa   :  { %5520 = sst [smem:[#allocation23_spill]] %s5485_s17 }
   0xb   :  { %5521 = sst [smem:[#allocation24_spill]] %s5486_s18 }
   0xc   :  { %5522 = sst [smem:[#allocation25_spill]] %s5487_s19 }
   0xd   :  { %5523 = sst [smem:[#allocation26_spill]] %s5488_s20 }
   0xe   :  { %28 = vsyncpa [#allocation3], 0 }
   0xf   :  { %30 = vsyncpa [#allocation3 + $0x1], 0  ;;  %s4374_s3 = smov 0   ;;  %s4376_s28 = smov 0  }
  0x10   :  { %s4378_s29 = smov 0   ;;  %s4380_s30 = smov 0  }
  0x11 LB: > { %5524 = sst [smem:[#allocation5_spill]] %s4242_s3  ;;  %s4395_s4 = sadd.s32 4294967295, %s4254_s30   ;;  %s4254_s30 = sphi %s4380_s30, %s5560_s30   ;;  %s4250_s29 = sphi %s4378_s29, %s5563_s29   ;;  %s4246_s28 = sphi %s4376_s28, %s5562_s28   ;;  %s4242_s3 = sphi %s4374_s3, %s5561_s3  }
  0x12   : > { %5525 = sst [smem:[#allocation6_spill]] %s4246_s28  ;;  %s3608_s0 = sadd.s32 4294967294, %s4254_s30  }
  0x13   : > { %5526 = sst [smem:[#allocation7_spill]] %s4250_s29  ;;  %s4399_s23 = sadd.s32 1, %s4254_s30  }
  0x14   : > { %5527 = sst [smem:[#allocation8_spill]] %s4254_s30  ;;  %s483_s1 = sadd.s32 1, %s4250_s29 }
  0x15   : > { %5528 = sst [smem:[#allocation9_spill]] %s4395_s4  ;;  %s480_s5 = ssub.s32 %s4254_s30, %s4399_s23 }
  0x16   : > { %5529 = sst [smem:[#allocation10_spill]] %s4399_s23  ;;  %p493_p0 = scmp.ne.s32.totalorder %s4250_s29, %s4246_s28 }
  0x17   : > { %p481_p1 = scmp.eq.s32.totalorder %s480_s5, 0  ;;  %p494_p2 = scmp.eq.s32.totalorder %s4395_s4, 1 }
  0x18   : > { %p499_p3 = scmp.ne.s32.totalorder %s4246_s28, %s4242_s3  ;;  %p500_p4 = scmp.eq.s32.totalorder %s3608_s0, 1 }
  0x19   : > { %s4410_s24 = scalar_select %p481_p1, %s4250_s29, %s483_s1  }
  0x1a   : > { %p4412_p5 = por %p494_p2, %p493_p0  ;;  %p4416_p6 = por %p500_p4, %p499_p3 }
  0x1b   : > { %5530 = sst [smem:[#allocation11_spill]] %s4410_s24  ;;  %p3611_p7 = scmp.ge.s32.totalorder %s4254_s30, 1 }
  0x1c   : > { %s5531_s6 = scalar_select %p4412_p5, 1, 0 }
  0x1d   : > { %s5533_s25 = scalar_select %p4416_p6, 1, 0 }
  0x1e   : > { %5532 = sst [smem:[#allocation12_spill]] %s5531_s6  ;;  %p649_p8 = scmp.lt.s32.totalorder %s4254_s30, 3 }
  0x1f   : > { %5534 = sst [smem:[#allocation13_spill]] %s5533_s25 }
  0x20   : > { %p650_p9 = pnand %p3611_p7, %p649_p8 }
  0x21   : > { %s5535_s27 = sld [smem:[#allocation18_spill]] (!%p650_p9)  ;;  %p735_p10 = scmp.lt.s32.totalorder (!%p650_p9), %s4395_s4, 1 }
  0x22   : > { %653 = sbr.rel (%p650_p9) target bundleno = 7893 (0x1ed5), region = 100  ;;  %s5536_s30 = sld [smem:[#allocation14_spill]] (!%p650_p9) }
  0x23   : > { %s5537_s24 = sld [smem:[#allocation19_spill]] (!%p650_p9)  ;;  %s5500_s1 = smov (!%p650_p9), 112  }
  0x24   : > { %s5541_s3 = sld [smem:[#allocation20_spill]] (!%p650_p9)  ;;  %s4258_s19 = smov (!%p650_p9), 120  }
  0x25   : > { %s5543_s7 = sld [smem:[#allocation21_spill]] (!%p650_p9)  ;;  %s5544_s20 = smov (!%p650_p9), 112  }
  0x26   : > { %s5549_s23 = sld [smem:[#allocation22_spill]] (!%p650_p9) }
  0x27   : > { %v3964_v0 = vld [vmem:[%s5535_s27 + $0x8] sm:$0xff]  ;;  %v3966_v1 = vld [vmem:[%s5535_s27 + $0x18] sm:$0xff]  ;;  %v3963_v2 = vld [vmem:[%s5535_s27] sm:$0xff]  ;;  %s4436_s25 = scalar_select %p735_p10, %s4395_s4, 1  ;;  %vm836_vm0 = vcmask 261120   ;;  %vm908_vm1 = vcmask 130048  }
  0x28   : > { %846 = vmatpush.bf16.msra.mxu0 %v3964_v0  ;;  %873 = vmatpush.bf16.msra.mxu1 %v3966_v1  ;;  %v3965_v3 = vld [vmem:[%s5535_s27 + $0x10] sm:$0xff]  ;;  %v3968_v26 = vld [vmem:[%s5535_s27 + $0x28] sm:$0xff]  ;;  %v3967_v27 = vld [vmem:[%s5535_s27 + $0x20] sm:$0xff]  ;;  %vm928_vm2 = vcmask 64512   ;;  %vm944_vm3 = vcmask 1043456   ;;  %s5540_s4 = sld [smem:[#allocation15_spill]] }
  0x29   : > { %s3613_s26 = sshll.u32 %s4436_s25, 3  ;;  %v4051_v6 = vld [vmem:[%s5537_s24] ss:$0 sm:$0xff]  ;;  %v4052_v7 = vld [vmem:[%s5537_s24 + $0x1] ss:$0 sm:$0xff]  ;;  %900 = vmatpush.bf16.msra.mxu2 %v3968_v26  ;;  %v3970_v60 = vld [vmem:[%s5535_s27 + $0x38] sm:$0xff] }
  0x2a   : > { %s4442_s0 = scalar_lea.vmem %s5536_s30, %s3613_s26  ;;  %v4053_v32 = vld [vmem:[%s5537_s24 + $0x2] ss:$0 sm:$0xff]  ;;  %v3969_v61 = vld [vmem:[%s5535_s27 + $0x30] sm:$0xff]  ;;  %s4491_s29 = sshll.u32 %s4436_s25, 6  ;;  %vm1347_vm8 = vcmask 523264  }
  0x2b   : > { %v4445_v4 = vld [vmem:[%s4442_s0] sm:$0xff]  ;;  %s5538_s30 = sld [smem:[#allocation16_spill]]  ;;  %s5542_s17 = smov %s5541_s3 }
  0x2c   : > { %847 = vmatpush.bf16.msra.mxu0 %v3963_v2  ;;  %874 = vmatpush.bf16.msra.mxu1 %v3965_v3  ;;  %v822_v5 = vpack.c.bf16 %v4445_v4, %v4445_v4  ;;  %s3961_s16 = sshll.u32 %s4436_s25, 5  ;;  %s5551_s26 = sld [smem:[#allocation24_spill]] }
  0x2d   : > { %901 = vmatpush.bf16.msra.mxu2 %v3967_v27  ;;  %s5553_s2 = sld [smem:[#allocation9_spill]] }
  0x2e   : > { %s4509_s28 = scalar_lea.vmem %s5540_s4, %s4491_s29  ;;  %s5118_s4 = scalar_lea.vmem %s5489_s21, %s3961_s16 }
  0x2f   : > { %3644 = vmatmul.msk.bf16.vlgmr.msra.gmra.mxu0 %vm836_vm0, %v822_v5  ;;  %3653 = vmatmul.msk.bf16.vlgmr.msra.gmra.mxu1 %vm836_vm0, %v822_v5 }
  0x30   : > { %3662 = vmatmul.msk.bf16.vlgmr.msra.gmra.mxu2 %vm836_vm0, %v822_v5  ;;  %v3974_v5 = vld [vmem:[%s5541_s3 + $0x18] sm:$0xff] }
  0x31   : > { %s4497_s5 = scalar_lea.vmem %s5538_s30, %s4491_s29 }
  0x33   : > { %s3955_s30 = sshll.u32 %s5553_s2, 3 }
  0xac   : > { %v849_v8 = vpop.f32.mrf.mxu0  ;;  %v876_v9 = vpop.f32.mrf.mxu1 }
  0xad   : > { %v850_v10 = vadd.f32 %v4051_v6, %v849_v8  ;;  %v877_v11 = vadd.f32 %v4052_v7, %v876_v9  ;;  %v3973_v6 = vld [vmem:[%s5542_s17 + $0x10] sm:$0xff]  ;;  %v766_v7 = vld [vmem:[%s4497_s5] sm:$0xff] }
  0xaf   : > { %v880_v12 = vpack.c.bf16 %v877_v11, %v877_v11  ;;  %v853_v13 = vpack.c.bf16 %v850_v10, %v850_v10  ;;  %v767_v10 = vld [vmem:[%s4497_s5 + $0x8] sm:$0xff]  ;;  %v782_v11 = vld [vmem:[%s4509_s28] sm:$0xff] }
  0xb1   : > { %v913_v14 = vsel %vm908_vm1, %v880_v12, 0  ;;  %v968_v15 = vunpack.c.l.b16 %v880_v12  ;;  %v963_v19 = vunpack.c.l.b16 %v853_v13  ;;  %v783_v12 = vld [vmem:[%s4509_s28 + $0x8] sm:$0xff] }
  0xb2   : > { %922 = vmatpush.bf16.xpose.msra.mxu3 %v913_v14 }
  0xb3   : > { %v969_v16 = vpack.c.b16 %v968_v15, %v968_v15  ;;  %v964_v20 = vpack.c.b16 %v963_v19, %v963_v19  ;;  %v903_v33 = vpop.f32.mrf.mxu2 }
  0xb4   : > { %v851_v17 = vpop.f32.mrf.mxu0  ;;  %v878_v18 = vpop.f32.mrf.mxu1  ;;  %v904_v34 = vadd.f32 %v4053_v32, %v903_v33 }
  0xb5   : > { %970 = vrot.lane.b32.xlu0 %v969_v16, %s5500_s1 }
  0xb6   : > { %v907_v36 = vpack.c.bf16 %v904_v34, %v904_v34 }
  0xb8   : > { %v946_v38 = vsel %vm944_vm3, %v907_v36, 0  ;;  %v1004_v48 = vunpack.c.l.b16 %v907_v36 }
  0xb9   : > { %3663 = vmatmul.msk.bf16.vlgmr.msra.gmra.mxu3 %vm908_vm1, %v853_v13  ;;  %955 = vmatpush.bf16.msrb.mxu0 %v946_v38 }
  0xba   : > { %v1005_v49 = vpack.c.b16 %v1004_v48, %v1004_v48  ;;  %1044 = vmatpush.bf16.msrb.mxu3 %v3970_v60  ;;  %v772_v60 = vld [vmem:[%s4497_s5 + $0x30] sm:$0xff] }
  0xbb   : > { %v905_v40 = vpop.f32.mrf.mxu2 }
  0xbc   : > { %v787_v40 = vld [vmem:[%s4509_s28 + $0x28] sm:$0xff] }
  0xbd   : > { %965 = vrot.lane.b32.xlu0 %v964_v20, %s5500_s1  ;;  %1066 = vmatpush.bf16.msra.mxu0 %v3969_v61  ;;  %v784_v20 = vld [vmem:[%s4509_s28 + $0x10] sm:$0xff]  ;;  %v773_v61 = vld [vmem:[%s4497_s5 + $0x38] sm:$0xff] }
 0x127   : > { %v971_v21 = vpop.permute.xlu0 %970 }
 0x128   : > { %v976_v22 = vsel %vm908_vm1, %v971_v21, 0  ;;  %v785_v21 = vld [vmem:[%s4509_s28 + $0x18] sm:$0xff] }
 0x129   : > { %985 = vmatpush.bf16.xpose.msrb.mxu1 %v976_v22 }
 0x12f   : > { %v966_v23 = vpop.permute.xlu0 %965 }
 0x130   : > { %3665 = vmatmul.msk.bf16.vlgmr.msrb.gmra.mxu1 %vm908_vm1, %v966_v23 }
 0x13c   : > { %v924_v24 = vpop.f32.mrf.mxu3 }
 0x13d   : > { %v929_v31 = vsel %vm928_vm2, %v924_v24, -inf }
 0x144   : > { %v926_v25 = vpop.f32.mrf.mxu3 }
 0x145   : > { %v769_v25 = vld [vmem:[%s4497_s5 + $0x18] sm:$0xff] }
 0x1ad   : > { %v987_v28 = vpop.f32.mrf.mxu1 }
 0x1ae   : > { %v991_v29 = vsel %vm928_vm2, %v987_v28, -inf }
 0x1af   : > { %992 = vmax.xlane.f32.xlu1 %v991_v29 }
 0x1b5   : > { %v989_v30 = vpop.f32.mrf.mxu1 }
 0x1b6   : > { %v4054_v30 = vld [vmem:[%s5537_s24 + $0x3] ss:$0 sm:$0xff] }
 0x1b7   : > { %930 = vmax.xlane.f32.xlu1 %v929_v31 }
 0x222   : > { %v993_v35 = vpop.xlane.xlu1 %992 }
 0x223   : > { %v994_v37 = vsub.f32 %v987_v28, %v993_v35 }
 0x225   : > { %v995_v39 = vmul.f32 1.442695, %v994_v37 }
 0x227   : > { %4077 = vpow2.f32 %v995_v39  ;;  %v786_v39 = vld [vmem:[%s4509_s28 + $0x20] sm:$0xff] }
 0x22a   : > { %v931_v41 = vpop.xlane.xlu1 %930 }
 0x22b   : > { %v932_v42 = vsub.f32 %v924_v24, %v931_v41  ;;  %v768_v24 = vld [vmem:[%s4497_s5 + $0x10] sm:$0xff] }
 0x22d   : > { %v4078_v43 = vpop.eup %4077  ;;  %v933_v44 = vmul.f32 1.442695, %v932_v42  ;;  %v4257_v42 = vmov 32.0  }
 0x22e   : > { %v997_v45 = vsel %vm928_vm2, %v4078_v43, 0.0 }
 0x22f   : > { %4079 = vpow2.f32 %v933_v44  ;;  %998 = vadd.xlane.f32.xlu2 %v997_v45  ;;  %v771_v44 = vld [vmem:[%s4497_s5 + $0x28] sm:$0xff] }
 0x235   : > { %v4080_v46 = vpop.eup %4079 }
 0x236   : > { %v935_v47 = vsel %vm928_vm2, %v4080_v46, 0.0 }
 0x237   : > { %936 = vadd.xlane.f32.xlu0 %v935_v47 }
 0x247   : > { %1006 = vrot.lane.b32.xlu2 %v1005_v49, %s5500_s1  ;;  %s5539_s1 = sld [smem:[#allocation17_spill]]  ;;  %v3976_v49 = vld [vmem:[%s5542_s17 + $0x28] sm:$0xff] }
 0x248   : > { %1268 = vmatpush.bf16.msra.mxu3 %v3976_v49 }
 0x24d   : > { %s4503_s6 = scalar_lea.vmem %s5539_s1, %s4491_s29  ;;  %s5550_s1 = sld [smem:[#allocation23_spill]] }
 0x24e   : > { %v774_v8 = vld [vmem:[%s4503_s6] sm:$0xff]  ;;  %v775_v9 = vld [vmem:[%s4503_s6 + $0x8] sm:$0xff]  ;;  %v776_v18 = vld [vmem:[%s4503_s6 + $0x10] sm:$0xff] }
 0x24f   : > { %v4523_v13 = vadd.f32 %v782_v11, %v774_v8  ;;  %v4525_v14 = vadd.f32 %v783_v12, %v775_v9  ;;  %v777_v19 = vld [vmem:[%s4503_s6 + $0x18] sm:$0xff]  ;;  %v4534_v22 = vadd.f32 %v784_v20, %v776_v18  ;;  %v778_v37 = vld [vmem:[%s4503_s6 + $0x20] sm:$0xff]  ;;  %v779_v38 = vld [vmem:[%s4503_s6 + $0x28] sm:$0xff] }
 0x250   : > { %v4536_v23 = vadd.f32 %v785_v21, %v777_v19  ;;  %v4551_v41 = vadd.f32 %v786_v39, %v778_v37  ;;  %v4555_v45 = vadd.f32 %v787_v40, %v779_v38  ;;  %v3972_v20 = vld [vmem:[%s5542_s17 + $0x8] sm:$0xff]  ;;  %v3971_v21 = vld [vmem:[%s5542_s17] sm:$0xff] }
 0x251   : > { %v1108_v15 = vadd.f32 %v4523_v13, %v766_v7  ;;  %v1109_v16 = vadd.f32 %v4525_v14, %v767_v10  ;;  %v1110_v26 = vadd.f32 %v4534_v22, %v768_v24  ;;  %1159 = vmatpush.bf16.msra.mxu1 %v3972_v20 }
 0x252   : > { %v1111_v27 = vadd.f32 %v4536_v23, %v769_v25  ;;  %v1113_v47 = vadd.f32 %v4555_v45, %v771_v44  ;;  %v1235_v18 = vpack.c.bf16 %v4555_v45, %v4551_v41 }
 0x253   : > { %v1167_v17 = vpack.c.bf16 %v1109_v16, %v1108_v15  ;;  %v1234_v15 = vpack.c.bf16 %v4536_v23, %v4534_v22 }
 0x254   : > { %v1168_v29 = vpack.c.bf16 %v1111_v27, %v1110_v26 }
 0x255   : > { %1160 = vmatpush.bf16.msra.mxu1 %v3971_v21 }
 0x2a2   : > { %v999_v50 = vpop.xlane.xlu2 %998 }
 0x2a3   : > { %4081 = vrcp.f32 %v999_v50 }
 0x2a9   : > { %v4082_v51 = vpop.eup %4081 }
 0x2aa   : > { %v1001_v52 = vmul.f32 %v4082_v51, %v4078_v43  ;;  %v1007_v53 = vpop.permute.xlu2 %1006  ;;  %v937_v54 = vpop.xlane.xlu0 %936  ;;  %v770_v43 = vld [vmem:[%s4497_s5 + $0x20] sm:$0xff]  ;;  %v780_v51 = vld [vmem:[%s4503_s6 + $0x30] sm:$0xff] }
 0x2ab   : > { %4083 = vrcp.f32 %v937_v54  ;;  %v1012_v55 = vsel %vm944_vm3, %v1007_v53, 0  ;;  %v788_v53 = vld [vmem:[%s4509_s28 + $0x30] sm:$0xff]  ;;  %v789_v54 = vld [vmem:[%s4509_s28 + $0x38] sm:$0xff]  ;;  %s4852_s28 = scalar_lea.vmem %s5490_s22, %s4491_s29 }
 0x2ac   : > { %1021 = vmatpush.bf16.msrb.mxu2 %v1012_v55  ;;  %v1002_v56 = vpack.c.bf16 %v1001_v52, %v1001_v52  ;;  %4085 = vrcp.f32 %v4257_v42  ;;  %v781_v52 = vld [vmem:[%s4503_s6 + $0x38] sm:$0xff]  ;;  %v3975_v55 = vld [vmem:[%s5542_s17 + $0x20] sm:$0xff] }
 0x2ad   : > { %1269 = vmatpush.bf16.msra.mxu3 %v3975_v55 }
 0x2af   : > { %3666 = vmatmul.msk.bf16.vlgmr.msrb.gmra.mxu2 %vm928_vm2, %v1002_v56 }
 0x2b0   : > { %1202 = vmatpush.bf16.msra.mxu2 %v3974_v5 }
 0x2b1   : > { %v4084_v57 = vpop.eup %4083 }
 0x2b2   : > { %v939_v58 = vmul.f32 %v4084_v57, %v4080_v46  ;;  %v1112_v46 = vadd.f32 %v4551_v41, %v770_v43  ;;  %v4086_v50 = vpop.eup %4085  ;;  %v4570_v57 = vadd.f32 %v788_v53, %v780_v51  ;;  %v4612_v51 = vld [vmem:[%s5482_s14] sm:$0xff] }
 0x2b3   : > { %v1078_v56 = vmul.f32 32.0, %v4086_v50  ;;  %vm1082_vm4 = vweird.f32 %v4086_v50 }
 0x2b4   : > { %v940_v59 = vpack.c.bf16 %v939_v58, %v939_v58  ;;  %1203 = vmatpush.bf16.msra.mxu2 %v3973_v6  ;;  %v1169_v48 = vpack.c.bf16 %v1113_v47, %v1112_v46  ;;  %v4572_v58 = vadd.f32 %v789_v54, %v781_v52 }
 0x2b6   : > { %3664 = vmatmul.msk.bf16.vlgmr.msrb.gmra.mxu0 %vm928_vm2, %v940_v59  ;;  %v1233_v59 = vpack.c.bf16 %v4525_v14, %v4523_v13  ;;  %v1236_v25 = vpack.c.bf16 %v4572_v58, %v4570_v57 }
 0x2bf   : > { %3702 = vmatmul.msk.bf16.vlgmr.msra.gmra.mxu2 %vm836_vm0, %v1167_v17 }
 0x2cf   : > { %3703 = vmatmul.msk.bf16.gmra.mxu2 %vm836_vm0, %v1168_v29 }
 0x2df   : > { %3704 = vmatmul.msk.bf16.gmra.mxu2 %vm836_vm0, %v1169_v48 }
 0x332   : > { %v1023_v62 = vpop.f32.mrf.mxu2 }
 0x333   : > { %v1027_v63 = vpack.c.bf16 %v1023_v62, %v1023_v62  ;;  %v957_v0 = vpop.f32.mrf.mxu0  ;;  %v1079_v62 = vsub.f32 1.0, %v1078_v56 }
 0x334   : > { %v961_v1 = vpack.c.bf16 %v957_v0, %v957_v0  ;;  %v1115_v0 = vadd.f32 %v4572_v58, %v773_v61  ;;  %v1103_v61 = vperm.slane %v4612_v51, 0 }
 0x335   : > { %3671 = vmatmul.msk.bf16.vlgmr.msrb.gmra.mxu3 %vm908_vm1, %v1027_v63  ;;  %v1114_v63 = vadd.f32 %v4570_v57, %v772_v60 }
 0x336   : > { %3676 = vmatmul.msk.bf16.vlgmr.msra.gmra.mxu0 %vm908_vm1, %v961_v1  ;;  %v1080_v1 = vmul.f32 %v4086_v50, %v1079_v62 }
 0x33a   : > { %v1025_v2 = vpop.f32.mrf.mxu2 }
 0x33b   : > { %v959_v3 = vpop.f32.mrf.mxu0  ;;  %v1170_v2 = vpack.c.bf16 %v1115_v0, %v1114_v63 }
 0x33c   : > { %v1081_v3 = vadd.f32 %v4086_v50, %v1080_v1 }
 0x33d   : > { %3705 = vmatmul.msk.bf16.gmra.mxu2 %vm836_vm0, %v1170_v2  ;;  %v1105_v2 = vperm.slane %v4612_v51, 4 }
 0x33e   : > { %v4582_v5 = vsel %vm1082_vm4, %v4086_v50, %v1081_v3 }
 0x342   : > { %v1205_v11 = vpop.f32.mrf.mxu2 }
 0x345   : > { %3714 = vmatmul.msk.bf16.vlgmr.msra.gmra.mxu3 %vm836_vm0, %v1233_v59 }
 0x34a   : > { %v1207_v12 = vpop.f32.mrf.mxu2 }
 0x352   : > { %v1210_v16 = vpop.f32.mrf.mxu2 }
 0x355   : > { %3715 = vmatmul.msk.bf16.gmra.mxu3 %vm836_vm0, %v1234_v15 }
 0x35a   : > { %v1212_v17 = vpop.f32.mrf.mxu2 }
 0x362   : > { %v1215_v19 = vpop.f32.mrf.mxu2 }
 0x365   : > { %3716 = vmatmul.msk.bf16.gmra.mxu3 %vm836_vm0, %v1235_v18 }
 0x36a   : > { %v1217_v24 = vpop.f32.mrf.mxu2 }
 0x375   : > { %3717 = vmatmul.msk.bf16.gmra.mxu3 %vm836_vm0, %v1236_v25 }
 0x3b3   : > { %v1068_v28 = vpop.f32.mrf.mxu0 }
 0x3b8   : > { %v1046_v31 = vpop.f32.mrf.mxu3 }
 0x3b9   : > { %v1069_v32 = vadd.f32 %v1068_v28, %v1046_v31  ;;  %v4055_v28 = vld [vmem:[%s5543_s7 + $0x1] ss:$0 sm:$0xff] }
 0x3ba   : > { %v1211_v48 = vadd.f32 %v4055_v28, %v1210_v16  ;;  %v1213_v49 = vadd.f32 %v4055_v28, %v1212_v17  ;;  %v1206_v55 = vadd.f32 %v4055_v28, %v1205_v11  ;;  %v1208_v56 = vadd.f32 %v4055_v28, %v1207_v12 }
 0x3bb   : > { %v1070_v33 = vpop.f32.mrf.mxu0  ;;  %v1073_v34 = vadd.f32 %v4054_v30, %v1069_v32  ;;  %v1216_v32 = vadd.f32 %v4055_v28, %v1215_v19 }
 0x3bc   : > { %v1218_v33 = vadd.f32 %v4055_v28, %v1217_v24  ;;  %v1227_v63 = vpack.c.bf16 %v1211_v48, %v1211_v48  ;;  %v1228_v0 = vpack.c.bf16 %v1213_v49, %v1213_v49 }
 0x3bd   : > { %v1074_v35 = vsel %vm836_vm0, %v1073_v34, 0.0  ;;  %v1229_v39 = vpack.c.bf16 %v1216_v32, %v1216_v32 }
 0x3be   : > { %1075 = vadd.xlane.f32.xlu1 %v1074_v35  ;;  %v1230_v42 = vpack.c.bf16 %v1218_v33, %v1218_v33  ;;  %v1310_v11 = vunpack.c.l.b16 %v1228_v0 }
 0x3bf   : > { %v1311_v50 = vunpack.c.l.b16 %v1229_v39 }
 0x3c0   : > { %v1048_v36 = vpop.f32.mrf.mxu3  ;;  %v1220_v30 = vpop.f32.mrf.mxu2  ;;  %v1312_v53 = vunpack.c.l.b16 %v1230_v42 }
 0x3c1   : > { %v1221_v31 = vadd.f32 %v4055_v28, %v1220_v30 }
 0x3c2   : > { %v1317_v1 = vpack.c.b16 %v1312_v53, %v1311_v50 }
 0x3c4   : > { %v1329_v12 = vsel %vm928_vm2, %v1317_v1, 0 }
 0x3c8   : > { %v1222_v36 = vpop.f32.mrf.mxu2  ;;  %v1271_v25 = vpop.f32.mrf.mxu3 }
 0x3c9   : > { %v1223_v38 = vadd.f32 %v4055_v28, %v1222_v36 }
 0x3cb   : > { %v1232_v44 = vpack.c.bf16 %v1223_v38, %v1223_v38 }
 0x3cd   : > { %v1314_v47 = vunpack.c.l.b16 %v1232_v44 }
 0x431   : > { %v1076_v6 = vpop.xlane.xlu1 %1075 }
 0x432   : > { %v1084_v7 = vmul.f32 %v4582_v5, %v1076_v6  ;;  %v1225_v6 = vpack.c.bf16 %v1206_v55, %v1206_v55 }
 0x434   : > { %v4585_v8 = vsub.f32 %v1073_v34, %v1084_v7  ;;  %v1231_v34 = vpack.c.bf16 %v1221_v31, %v1221_v31  ;;  %v1226_v7 = vpack.c.bf16 %v1208_v56, %v1208_v56  ;;  %v1307_v16 = vunpack.c.l.b16 %v1225_v6  ;;  %v4056_v31 = vld [vmem:[%s5543_s7 + $0x2] ss:$0 sm:$0xff]  ;;  %v4057_v6 = vld [vmem:[%s5543_s7] ss:$0 sm:$0xff] }
 0x436   : > { %v1086_v9 = vmul.f32 %v4585_v8, %v4585_v8  ;;  %v1313_v43 = vunpack.c.l.b16 %v1231_v34  ;;  %v1308_v17 = vunpack.c.l.b16 %v1226_v7 }
 0x438   : > { %v1087_v10 = vsel %vm836_vm0, %v1086_v9, 0.0  ;;  %v1318_v54 = vpack.c.b16 %v1314_v47, %v1313_v43  ;;  %v1315_v20 = vpack.c.b16 %v1308_v17, %v1307_v16  ;;  %v1272_v47 = vadd.f32 %v4056_v31, %v1271_v25 }
 0x439   : > { %1088 = vadd.xlane.f32.xlu1 %v1087_v10  ;;  %v1309_v10 = vunpack.c.l.b16 %v1227_v63 }
 0x43a   : > { %v1332_v60 = vsel %vm928_vm2, %v1318_v54, 0  ;;  %1412 = vrot.lane.b32.xlu2 %v1318_v54, %s4258_s19  ;;  %v1323_v24 = vsel %vm928_vm2, %v1315_v20, 0  ;;  %v1291_v56 = vpack.c.bf16 %v1272_v47, %v1272_v47 }
 0x43b   : > { %1338 = vmatpush.bf16.xpose.msrb.mxu0 %v1332_v60  ;;  %v4625_v19 = vpack.c.b16 %v1310_v11, %v1309_v10 }
 0x43c   : > { %v1368_v63 = vunpack.c.l.b16 %v1291_v56 }
 0x43d   : > { %v1326_v21 = vsel %vm928_vm2, %v4625_v19, 0 }
 0x442   : > { %1410 = vrot.lane.b32.xlu2 %v1317_v1, %s4258_s19 }
 0x443   : > { %1339 = vmatpush.bf16.xpose.msrb.mxu0 %v1329_v12 }
 0x44a   : > { %1406 = vrot.lane.b32.xlu2 %v1315_v20, %s4258_s19 }
 0x44b   : > { %1340 = vmatpush.bf16.xpose.msrb.mxu0 %v1326_v21 }
 0x453   : > { %1341 = vmatpush.bf16.xpose.msrb.mxu0 %v1323_v24 }
 0x4ac   : > { %v1089_v26 = vpop.xlane.xlu1 %1088 }
 0x4ad   : > { %v1090_v27 = vmul.f32 %v1089_v26, %v4582_v5  ;;  %v1273_v26 = vpop.f32.mrf.mxu3 }
 0x4ae   : > { %v1274_v48 = vadd.f32 %v4056_v31, %v1273_v26 }
 0x4af   : > { %v1091_v29 = vadd.f32 1e-05, %v1090_v27 }
 0x4b1   : > { %4087 = vrsqrt.f32 %v1091_v29  ;;  %vm1098_vm6 = vweird.f32 %v1091_v29 }
 0x4b5   : > { %v1276_v27 = vpop.f32.mrf.mxu3 }
 0x4b7   : > { %v4088_v35 = vpop.eup %4087 }
 0x4b8   : > { %v1093_v37 = vmul.f32 %v4088_v35, %v1091_v29  ;;  %vm1099_vm5 = vweird.f32 %v4088_v35 }
 0x4b9   : > { %vm1100_vm7 = vmor %vm1098_vm6, %vm1099_vm5  ;;  %vm1866_vm6 = vcmask 257024  }
 0x4ba   : > { %v1094_v40 = vmul.f32 %v4088_v35, %v1093_v37  ;;  %v1277_v37 = vadd.f32 %v4056_v31, %v1276_v27 }
 0x4bc   : > { %v1095_v46 = vmul.f32 0.5, %v1094_v40  ;;  %v1293_v49 = vpack.c.bf16 %v1277_v37, %v1277_v37 }
 0x4bd   : > { %v1278_v28 = vpop.f32.mrf.mxu3 }
 0x4be   : > { %v1096_v52 = vsub.f32 1.5, %v1095_v46  ;;  %v1279_v39 = vadd.f32 %v4056_v31, %v1278_v28  ;;  %v1370_v60 = vunpack.c.l.b16 %v1293_v49 }
 0x4c0   : > { %v1097_v59 = vmul.f32 %v4088_v35, %v1096_v52  ;;  %v1294_v50 = vpack.c.bf16 %v1279_v39, %v1279_v39 }
 0x4c2   : > { %v1101_v62 = vsel %vm1100_vm7, %v4088_v35, %v1097_v59  ;;  %v1292_v59 = vpack.c.bf16 %v1274_v48, %v1274_v48 }
 0x4c3   : > { %v1102_v3 = vmul.f32 %v1101_v62, %v4585_v8 }
 0x4c4   : > { %v1369_v0 = vunpack.c.l.b16 %v1292_v59 }
 0x4c5   : > { %v1104_v9 = vmul.f32 %v1103_v61, %v1102_v3  ;;  %v1281_v29 = vpop.f32.mrf.mxu3  ;;  %v1371_v61 = vunpack.c.l.b16 %v1294_v50 }
 0x4c6   : > { %v1282_v34 = vadd.f32 %v4056_v31, %v1281_v29  ;;  %v4635_v3 = vpack.c.b16 %v1369_v0, %v1368_v63 }
 0x4c7   : > { %v4620_v15 = vadd.f32 %v1105_v2, %v1104_v9  ;;  %v1377_v1 = vpack.c.b16 %v1371_v61, %v1370_v60  ;;  %v1413_v2 = vpop.permute.xlu2 %1412 }
 0x4c8   : > { %v1295_v40 = vpack.c.bf16 %v1282_v34, %v1282_v34  ;;  %v1427_v7 = vsel %vm928_vm2, %v1413_v2, 0  ;;  %v1134_v2 = vld [vmem:[%s5476_s8 + $0x4] sm:$0xf] }
 0x4c9   : > { %v1107_v18 = vadd.f32 %v4620_v15, %v4445_v4 }
 0x4ca   : > { %v1372_v52 = vunpack.c.l.b16 %v1295_v40 }
 0x4cb   : > { %v1136_v8 = vpack.c.bf16 %v1107_v18, %v1107_v18 }
 0x4cd   : > { %3693 = vmatmul.msk.bf16.vlgmr.msra.gmra.mxu1 %vm836_vm0, %v1136_v8  ;;  %v1283_v30 = vpop.f32.mrf.mxu3 }
 0x4ce   : > { %v1284_v35 = vadd.f32 %v4056_v31, %v1283_v30 }
 0x4cf   : > { %v1411_v16 = vpop.permute.xlu2 %1410 }
 0x4d0   : > { %v1296_v42 = vpack.c.bf16 %v1284_v35, %v1284_v35  ;;  %v1424_v17 = vsel %vm928_vm2, %v1411_v16, 0 }
 0x4d2   : > { %v1373_v53 = vunpack.c.l.b16 %v1296_v42  ;;  %v1133_v42 = vld [vmem:[%s5476_s8] sm:$0xf] }
 0x4d4   : > { %v1378_v62 = vpack.c.b16 %v1373_v53, %v1372_v52 }
 0x4d5   : > { %v1286_v32 = vpop.f32.mrf.mxu3 }
 0x4d6   : > { %v1287_v33 = vadd.f32 %v4056_v31, %v1286_v32 }
 0x4d7   : > { %v1407_v30 = vpop.permute.xlu2 %1406 }
 0x4d8   : > { %v1297_v36 = vpack.c.bf16 %v1287_v33, %v1287_v33  ;;  %v1418_v40 = vsel %vm928_vm2, %v1407_v30, 0 }
 0x4da   : > { %v1374_v44 = vunpack.c.l.b16 %v1297_v36 }
 0x4dd   : > { %v1288_v38 = vpop.f32.mrf.mxu3 }
 0x4de   : > { %v1289_v43 = vadd.f32 %v4056_v31, %v1288_v38 }
 0x4e0   : > { %v1298_v46 = vpack.c.bf16 %v1289_v43, %v1289_v43  ;;  %v1506_v43 = vsel %vm944_vm3, %v1133_v42, 0  ;;  %v1548_v42 = vperm.slane %v4612_v51, 5 }
 0x4e2   : > { %v1375_v54 = vunpack.c.l.b16 %v1298_v46 }
 0x4e4   : > { %v1379_v55 = vpack.c.b16 %v1375_v54, %v1374_v44 }
 0x4e6   : > { %1391 = vmatpush.bf16.msrb.mxu1 %v1379_v55 }
 0x4ea   : > { %1392 = vmatpush.bf16.msrb.mxu1 %v1378_v62 }
 0x4ee   : > { %1393 = vmatpush.bf16.msrb.mxu1 %v1377_v1 }
 0x4f2   : > { %1394 = vmatpush.bf16.msrb.mxu1 %v4635_v3 }
 0x4f6   : > { %1433 = vmatpush.bf16.xpose.msra.mxu1 %v1427_v7 }
 0x4fe   : > { %1434 = vmatpush.bf16.xpose.msra.mxu1 %v1424_v17 }
 0x54a   : > { %v1162_v9 = vpop.f32.mrf.mxu1 }
 0x54b   : > { %v1163_v10 = vadd.f32 %v4057_v6, %v1162_v9  ;;  %v1487_v6 = vsel %vm944_vm3, %v1134_v2, 0 }
 0x54d   : > { %v1166_v11 = vpack.c.bf16 %v1163_v10, %v1163_v10  ;;  %v4058_v10 = vld [vmem:[%s5477_s9] ss:$0 sm:$0xff] }
 0x54f   : > { %v1402_v12 = vunpack.c.l.b16 %v1166_v11  ;;  %3718 = vmatmul.msk.bf16.vlgmr.msrb.gmra.mxu0 %vm928_vm2, %v1166_v11 }
 0x551   : > { %v1403_v18 = vpack.c.b16 %v1402_v12, %v1402_v12 }
 0x552   : > { %v1164_v8 = vpop.f32.mrf.mxu1 }
 0x553   : > { %1404 = vrot.lane.b32.xlu2 %v1403_v18, %s4258_s19 }
 0x55b   : > { %1460 = vrot.lane.b32.xlu2 %v1379_v55, %s4258_s19 }
 0x563   : > { %1458 = vrot.lane.b32.xlu2 %v1378_v62, %s4258_s19 }
 0x5ad   : > { %v1405_v32 = vpop.permute.xlu2 %1404 }
 0x5b5   : > { %v1461_v35 = vpop.permute.xlu2 %1460 }
 0x5b6   : > { %1473 = vmatpush.bf16.msra.mxu0 %v1461_v35 }
 0x5bd   : > { %v1459_v37 = vpop.permute.xlu2 %1458 }
 0x5be   : > { %1474 = vmatpush.bf16.msra.mxu0 %v1459_v37 }
 0x5cc   : > { %v1343_v20 = vpop.f32.mrf.mxu0 }
 0x5cd   : > { %v1348_v21 = vsel %vm1347_vm8, %v1343_v20, -inf }
 0x5ce   : > { %1349 = vmax.xlane.f32.xlu1 %v1348_v21 }
 0x5d4   : > { %v1345_v24 = vpop.f32.mrf.mxu0 }
 0x641   : > { %v1350_v25 = vpop.xlane.xlu1 %1349 }
 0x642   : > { %v1351_v26 = vsub.f32 %v1343_v20, %v1350_v25  ;;  %v3978_v20 = vld [vmem:[%s5478_s10 + $0x8] sm:$0xff] }
 0x643   : > { %1578 = vmatpush.bf16.msrb.mxu2 %v3978_v20 }
 0x644   : > { %v1352_v27 = vmul.f32 1.442695, %v1351_v26 }
 0x646   : > { %4089 = vpow2.f32 %v1352_v27 }
 0x64c   : > { %v4090_v28 = vpop.eup %4089 }
 0x64d   : > { %v1354_v29 = vsel %vm1347_vm8, %v4090_v28, 0.0 }
 0x64e   : > { %1355 = vadd.xlane.f32.xlu1 %v1354_v29 }
 0x667   : > { %1408 = vrot.lane.b32.xlu1 %v4625_v19, %s4258_s19 }
 0x66f   : > { %1456 = vrot.lane.b32.xlu1 %v1377_v1, %s4258_s19 }
 0x6c1   : > { %v1356_v31 = vpop.xlane.xlu1 %1355 }
 0x6c2   : > { %4091 = vrcp.f32 %v1356_v31  ;;  %v3981_v31 = vld [vmem:[%s5480_s12 + $0x10] sm:$0xff] }
 0x6c8   : > { %v4092_v33 = vpop.eup %4091 }
 0x6c9   : > { %v1358_v34 = vmul.f32 %v4092_v33, %v4090_v28  ;;  %v3982_v28 = vld [vmem:[%s5480_s12 + $0x18] sm:$0xff]  ;;  %v3980_v33 = vld [vmem:[%s5480_s12 + $0x8] sm:$0xff] }
 0x6ca   : > { %1628 = vmatpush.bf16.msrb.mxu3 %v3982_v28 }
 0x6cb   : > { %v1359_v36 = vpack.c.bf16 %v1358_v34, %v1358_v34 }
 0x6cd   : > { %3719 = vmatmul.msk.bf16.vlgmr.msrb.gmra.mxu1 %vm1347_vm8, %v1359_v36 }
 0x6ce   : > { %1629 = vmatpush.bf16.msrb.mxu3 %v3981_v31 }
 0x6d2   : > { %1630 = vmatpush.bf16.msrb.mxu3 %v3980_v33 }
 0x6d9   : > { %v1409_v38 = vpop.permute.xlu1 %1408 }
 0x6da   : > { %v1421_v39 = vsel %vm928_vm2, %v1409_v38, 0 }
 0x6db   : > { %1435 = vmatpush.bf16.xpose.msra.mxu1 %v1421_v39 }
 0x6e1   : > { %v1457_v19 = vpop.permute.xlu1 %1456 }
 0x6e2   : > { %1475 = vmatpush.bf16.msra.mxu0 %v1457_v19  ;;  %v1546_v19 = vperm.slane %v4612_v51, 1 }
 0x6e3   : > { %1436 = vmatpush.bf16.xpose.msra.mxu1 %v1418_v40 }
 0x6ea   : > { %3720 = vmatmul.msk.bf16.vlgmr.msra.gmra.mxu1 %vm928_vm2, %v1405_v32 }
 0x6eb   : > { %1515 = vmatpush.bf16.msrb.mxu1 %v1506_v43 }
 0x74a   : > { %v1396_v44 = vpop.f32.mrf.mxu1 }
 0x74b   : > { %v1400_v46 = vpack.c.bf16 %v1396_v44, %v1396_v44 }
 0x74d   : > { %3723 = vmatmul.msk.bf16.vlgmr.msrb.gmra.mxu1 %vm928_vm2, %v1400_v46 }
 0x752   : > { %v1398_v47 = vpop.f32.mrf.mxu1 }
 0x767   : > { %v1438_v48 = vpop.f32.mrf.mxu1 }
 0x768   : > { %v1442_v49 = vsel %vm1347_vm8, %v1438_v48, -inf }
 0x769   : > { %1443 = vmax.xlane.f32.xlu0 %v1442_v49  ;;  %v4059_v49 = vld [vmem:[%s5479_s11] ss:$0 sm:$0xff] }
 0x76f   : > { %v1440_v50 = vpop.f32.mrf.mxu1 }
 0x7ca   : > { %v1517_v52 = vpop.f32.mrf.mxu1 }
 0x7d2   : > { %v1519_v53 = vpop.f32.mrf.mxu1 }
 0x7dc   : > { %v1444_v54 = vpop.xlane.xlu0 %1443 }
 0x7dd   : > { %v1445_v55 = vsub.f32 %v1438_v48, %v1444_v54  ;;  %v3979_v48 = vld [vmem:[%s5480_s12] sm:$0xff] }
 0x7de   : > { %1631 = vmatpush.bf16.msrb.mxu3 %v3979_v48 }
 0x7df   : > { %v1446_v56 = vmul.f32 1.442695, %v1445_v55 }
 0x7e1   : > { %4093 = vpow2.f32 %v1446_v56  ;;  %v4060_v56 = vld [vmem:[%s5481_s13] ss:$0 sm:$0xff] }
 0x7e7   : > { %v4094_v59 = vpop.eup %4093 }
 0x7e8   : > { %v1448_v60 = vsel %vm1347_vm8, %v4094_v59, 0.0 }
 0x7e9   : > { %1449 = vadd.xlane.f32.xlu0 %v1448_v60 }
 0x7fd   : > { %1454 = vrot.lane.b32.xlu0 %v4635_v3, %s4258_s19 }
 0x85c   : > { %v1450_v61 = vpop.xlane.xlu0 %1449 }
 0x85d   : > { %4095 = vrcp.f32 %v1450_v61 }
 0x863   : > { %v4096_v62 = vpop.eup %4095 }
 0x864   : > { %v1452_v63 = vmul.f32 %v4096_v62, %v4094_v59 }
 0x866   : > { %v1453_v1 = vpack.c.bf16 %v1452_v63, %v1452_v63 }
 0x86f   : > { %v1455_v0 = vpop.permute.xlu0 %1454 }
 0x870   : > { %1476 = vmatpush.bf16.msra.mxu0 %v1455_v0 }
 0x873   : > { %3721 = vmatmul.msk.bf16.vlgmr.msra.gmra.mxu0 %vm1347_vm8, %v1453_v1 }
 0x874   : > { %1496 = vmatpush.bf16.msrb.mxu0 %v1487_v6 }
 0x8f0   : > { %v1478_v7 = vpop.f32.mrf.mxu0 }
 0x8f1   : > { %v1482_v9 = vpack.c.bf16 %v1478_v7, %v1478_v7 }
 0x8f3   : > { %3722 = vmatmul.msk.bf16.vlgmr.msrb.gmra.mxu0 %vm928_vm2, %v1482_v9  ;;  %v3988_v9 = vld [vmem:[%s5535_s27 + $0x68] sm:$0xff] }
 0x8f8   : > { %v1480_v3 = vpop.f32.mrf.mxu0 }
 0x8f9   : > { %v3984_v3 = vld [vmem:[%s5535_s27 + $0x48] sm:$0xff] }
 0x8fa   : > { %1933 = vmatpush.bf16.msra.mxu0 %v3984_v3 }
 0x970   : > { %v1498_v11 = vpop.f32.mrf.mxu0 }
 0x971   : > { %v1518_v12 = vadd.f32 %v1517_v52, %v1498_v11  ;;  %v3987_v11 = vld [vmem:[%s5535_s27 + $0x60] sm:$0xff] }
 0x973   : > { %v1522_v16 = vadd.f32 %v4058_v10, %v1518_v12  ;;  %v3986_v10 = vld [vmem:[%s5535_s27 + $0x58] sm:$0xff]  ;;  %v3983_v12 = vld [vmem:[%s5535_s27 + $0x40] sm:$0xff] }
 0x974   : > { %1960 = vmatpush.bf16.msra.mxu1 %v3986_v10  ;;  %1934 = vmatpush.bf16.msra.mxu0 %v3983_v12  ;;  %v1664_v10 = vsel %vm836_vm0, %v4523_v13, 0.0 }
 0x975   : > { %v1523_v17 = vadd.f32 %v1522_v16, %v4620_v15  ;;  %v3977_v15 = vld [vmem:[%s5478_s10] sm:$0xff]  ;;  %v3985_v16 = vld [vmem:[%s5535_s27 + $0x50] sm:$0xff] }
 0x976   : > { %1579 = vmatpush.bf16.msrb.mxu2 %v3977_v15  ;;  %v1660_v15 = vperm.slane %v4612_v51, 2 }
 0x977   : > { %v1524_v18 = vsel %vm836_vm0, %v1523_v17, 0.0 }
 0x978   : > { %v1500_v8 = vpop.f32.mrf.mxu0  ;;  %1525 = vadd.xlane.f32.xlu2 %v1524_v18  ;;  %1961 = vmatpush.bf16.msra.mxu1 %v3985_v16 }
 0x97a   : > { %1991 = vmatpush.bf16.msra.mxu2 %v3988_v9 }
 0x97e   : > { %1992 = vmatpush.bf16.msra.mxu2 %v3987_v11 }
 0x9eb   : > { %v1526_v21 = vpop.xlane.xlu2 %1525 }
 0x9ec   : > { %v1527_v24 = vmul.f32 %v1526_v21, %v4582_v5 }
 0x9ee   : > { %v1528_v25 = vsub.f32 %v1523_v17, %v1527_v24 }
 0x9f0   : > { %v1529_v26 = vmul.f32 %v1528_v25, %v1528_v25 }
 0x9f2   : > { %v1530_v27 = vsel %vm836_vm0, %v1529_v26, 0.0 }
 0x9f3   : > { %1531 = vadd.xlane.f32.xlu1 %v1530_v27 }
 0xa66   : > { %v1532_v29 = vpop.xlane.xlu1 %1531 }
 0xa67   : > { %v1533_v30 = vmul.f32 %v1532_v29, %v4582_v5  ;;  %v1662_v29 = vperm.slane %v4612_v51, 6 }
 0xa69   : > { %v1534_v32 = vadd.f32 1e-05, %v1533_v30 }
 0xa6b   : > { %4097 = vrsqrt.f32 %v1534_v32  ;;  %vm1541_vm10 = vweird.f32 %v1534_v32 }
 0xa71   : > { %v4098_v34 = vpop.eup %4097 }
 0xa72   : > { %v1536_v35 = vmul.f32 %v4098_v34, %v1534_v32  ;;  %vm1542_vm9 = vweird.f32 %v4098_v34 }
 0xa73   : > { %vm1543_vm11 = vmor %vm1541_vm10, %vm1542_vm9 }
 0xa74   : > { %v1537_v36 = vmul.f32 %v4098_v34, %v1536_v35 }
 0xa76   : > { %v1538_v37 = vmul.f32 0.5, %v1537_v36  ;;  %v4061_v36 = vld [vmem:[%s5537_s24 + $0x4] ss:$0 sm:$0xff] }
 0xa78   : > { %v1539_v38 = vsub.f32 1.5, %v1538_v37  ;;  %v4062_v37 = vld [vmem:[%s5537_s24 + $0x5] ss:$0 sm:$0xff] }
 0xa7a   : > { %v1540_v39 = vmul.f32 %v4098_v34, %v1539_v38 }
 0xa7c   : > { %v1544_v40 = vsel %vm1543_vm11, %v4098_v34, %v1540_v39 }
 0xa7d   : > { %v1545_v43 = vmul.f32 %v1544_v40, %v1528_v25 }
 0xa7f   : > { %v1547_v44 = vmul.f32 %v1546_v19, %v1545_v43 }
 0xa81   : > { %v1549_v46 = vadd.f32 %v1548_v42, %v1547_v44 }
 0xa83   : > { %v1550_v47 = vpack.c.bf16 %v1549_v46, %v1549_v46 }
 0xa85   : > { %3732 = vmatmul.msk.bf16.vlgmr.msrb.gmra.mxu2 %vm836_vm0, %v1550_v47 }
 0xb08   : > { %v1581_v50 = vpop.f32.mrf.mxu2 }
 0xb09   : > { %v1582_v52 = vadd.f32 %v4059_v49, %v1581_v50 }
 0xb0b   : > { %v1585_v53 = vmax.f32 %v1582_v52, 0.0 }
 0xb0d   : > { %v1586_v54 = vpack.c.bf16 %v1585_v53, %v1585_v53 }
 0xb0f   : > { %3749 = vmatmul.msk.bf16.vlgmr.msrb.gmra.mxu3 %vm1347_vm8, %v1586_v54 }
 0xb10   : > { %v1583_v55 = vpop.f32.mrf.mxu2 }
 0xb92   : > { %v1633_v59 = vpop.f32.mrf.mxu3 }
 0xb93   : > { %v1634_v60 = vadd.f32 %v4060_v56, %v1633_v59 }
 0xb95   : > { %v1637_v61 = vadd.f32 %v1634_v60, %v1549_v46 }
 0xb97   : > { %v1638_v62 = vsel %vm836_vm0, %v1637_v61, 0.0 }
 0xb98   : > { %1639 = vadd.xlane.f32.xlu0 %v1638_v62 }
 0xb9a   : > { %v1635_v63 = vpop.f32.mrf.mxu3 }
 0xc0b   : > { %v1640_v0 = vpop.xlane.xlu0 %1639 }
 0xc0c   : > { %v1641_v1 = vmul.f32 %v1640_v0, %v4582_v5 }
 0xc0e   : > { %v1642_v2 = vsub.f32 %v1637_v61, %v1641_v1 }
 0xc10   : > { %v1643_v6 = vmul.f32 %v1642_v2, %v1642_v2 }
 0xc12   : > { %v1644_v7 = vsel %vm836_vm0, %v1643_v6, 0.0 }
 0xc13   : > { %1645 = vadd.xlane.f32.xlu2 %v1644_v7 }
 0xc86   : > { %v1646_v17 = vpop.xlane.xlu2 %1645 }
 0xc87   : > { %v1647_v18 = vmul.f32 %v1646_v17, %v4582_v5 }
 0xc89   : > { %v1648_v8 = vadd.f32 1e-05, %v1647_v18 }
 0xc8b   : > { %4099 = vrsqrt.f32 %v1648_v8  ;;  %vm1655_vm13 = vweird.f32 %v1648_v8 }
 0xc91   : > { %v4100_v20 = vpop.eup %4099 }
 0xc92   : > { %v1650_v21 = vmul.f32 %v4100_v20, %v1648_v8  ;;  %vm1656_vm12 = vweird.f32 %v4100_v20 }
 0xc93   : > { %vm1657_vm14 = vmor %vm1655_vm13, %vm1656_vm12 }
 0xc94   : > { %v1651_v24 = vmul.f32 %v4100_v20, %v1650_v21 }
 0xc96   : > { %v1652_v25 = vmul.f32 0.5, %v1651_v24  ;;  %v1667_v24 = vsel %vm836_vm0, %v4525_v14, 0.0 }
 0xc98   : > { %v1653_v26 = vsub.f32 1.5, %v1652_v25 }
 0xc9a   : > { %v1654_v27 = vmul.f32 %v4100_v20, %v1653_v26 }
 0xc9c   : > { %v1658_v28 = vsel %vm1657_vm14, %v4100_v20, %v1654_v27  ;;  %v1673_v27 = vsel %vm836_vm0, %v4536_v23, 0.0 }
 0xc9d   : > { %v1659_v30 = vmul.f32 %v1658_v28, %v1642_v2  ;;  %v1670_v28 = vsel %vm836_vm0, %v4534_v22, 0.0 }
 0xc9f   : > { %v1661_v31 = vmul.f32 %v1660_v15, %v1659_v30  ;;  %v1679_v30 = vsel %vm836_vm0, %v4555_v45, 0.0 }
 0xca1   : > { %v4731_v32 = vadd.f32 %v1662_v29, %v1661_v31  ;;  %v1676_v31 = vsel %vm836_vm0, %v4551_v41, 0.0 }
 0xca3   : > { %v1968_v33 = vpack.c.bf16 %v4731_v32, %v4731_v32  ;;  %v1885_v34 = vadd.f32 %v4731_v32, %v4445_v4  ;;  %v4063_v4 = vld [vmem:[%s5537_s24 + $0x6] ss:$0 sm:$0xff] }
 0xca5   : > { %3793 = vmatmul.msk.bf16.vlgmr.msra.gmra.mxu2 %vm836_vm0, %v1968_v33  ;;  %v1910_v35 = vpack.c.bf16 %v1885_v34, %v1885_v34  ;;  %v1682_v33 = vsel %vm836_vm0, %v4570_v57, 0.0 }
 0xca7   : > { %3775 = vmatmul.msk.bf16.vlgmr.msra.gmra.mxu0 %vm836_vm0, %v1910_v35  ;;  %3784 = vmatmul.msk.bf16.vlgmr.msra.gmra.mxu1 %vm836_vm0, %v1910_v35 }
 0xd24   : > { %v1936_v38 = vpop.f32.mrf.mxu0  ;;  %v1963_v39 = vpop.f32.mrf.mxu1 }
 0xd25   : > { %v1937_v19 = vadd.f32 %v4061_v36, %v1936_v38  ;;  %v1964_v40 = vadd.f32 %v4062_v37, %v1963_v39  ;;  %v1685_v39 = vsel %vm836_vm0, %v4572_v58, 0.0 }
 0xd27   : > { %v1940_v42 = vpack.c.bf16 %v1937_v19, %v1937_v19  ;;  %v1967_v43 = vpack.c.bf16 %v1964_v40, %v1964_v40 }
 0xd28   : > { %v1994_v44 = vpop.f32.mrf.mxu2 }
 0xd29   : > { %v2051_v46 = vunpack.c.l.b16 %v1940_v42  ;;  %v2003_v47 = vsel %vm908_vm1, %v1967_v43, 0  ;;  %v2056_v48 = vunpack.c.l.b16 %v1967_v43  ;;  %v1995_v49 = vadd.f32 %v4063_v4, %v1994_v44 }
 0xd2a   : > { %2012 = vmatpush.bf16.xpose.msra.mxu3 %v2003_v47 }
 0xd2b   : > { %v2052_v50 = vpack.c.b16 %v2051_v46, %v2051_v46  ;;  %v2057_v52 = vpack.c.b16 %v2056_v48, %v2056_v48  ;;  %v1998_v53 = vpack.c.bf16 %v1995_v49, %v1995_v49 }
 0xd2c   : > { %v1938_v54 = vpop.f32.mrf.mxu0  ;;  %v1965_v55 = vpop.f32.mrf.mxu1 }
 0xd2d   : > { %v2034_v56 = vsel %vm944_vm3, %v1998_v53, 0  ;;  %2058 = vrot.lane.b32.xlu1 %v2057_v52, %s5544_s20  ;;  %2053 = vrot.lane.b32.xlu2 %v2052_v50, %s5544_s20  ;;  %v2092_v9 = vunpack.c.l.b16 %v1998_v53 }
 0xd2e   : > { %2043 = vmatpush.bf16.msrb.mxu0 %v2034_v56 }
 0xd2f   : > { %v2093_v3 = vpack.c.b16 %v2092_v9, %v2092_v9 }
 0xd30   : > { %v1996_v59 = vpop.f32.mrf.mxu2 }
 0xd31   : > { %3794 = vmatmul.msk.bf16.vlgmr.msra.gmra.mxu3 %vm908_vm1, %v1940_v42 }
 0xd87   : > { %v2054_v62 = vpop.permute.xlu2 %2053 }
 0xd9f   : > { %v2059_v60 = vpop.permute.xlu1 %2058 }
 0xda0   : > { %v2064_v61 = vsel %vm908_vm1, %v2059_v60, 0 }
 0xda1   : > { %2073 = vmatpush.bf16.xpose.msrb.mxu1 %v2064_v61 }
 0xda8   : > { %3796 = vmatmul.msk.bf16.vlgmr.msrb.gmra.mxu1 %vm908_vm1, %v2054_v62 }
 0xdb4   : > { %v2014_v63 = vpop.f32.mrf.mxu3 }
 0xdb5   : > { %v2018_v7 = vsel %vm928_vm2, %v2014_v63, -inf }
 0xdbc   : > { %v2016_v0 = vpop.f32.mrf.mxu3 }
 0xe25   : > { %v2075_v1 = vpop.f32.mrf.mxu1 }
 0xe26   : > { %v2079_v2 = vsel %vm928_vm2, %v2075_v1, -inf }
 0xe27   : > { %2080 = vmax.xlane.f32.xlu0 %v2079_v2 }
 0xe2d   : > { %v2077_v6 = vpop.f32.mrf.mxu1 }
 0xe2f   : > { %2019 = vmax.xlane.f32.xlu0 %v2018_v7 }
 0xe43   : > { %2094 = vrot.lane.b32.xlu0 %v2093_v3, %s5544_s20  ;;  %s5554_s20 = sld [smem:[#allocation25_spill]] }
 0xe6d   : > { %1665 = vadd.xlane.f32.xlu0 %v1664_v10 }
 0xe9a   : > { %v2081_v11 = vpop.xlane.xlu0 %2080 }
 0xe9b   : > { %v2082_v12 = vsub.f32 %v2075_v1, %v2081_v11 }
 0xe9d   : > { %v2083_v16 = vmul.f32 1.442695, %v2082_v12 }
 0xe9f   : > { %4101 = vpow2.f32 %v2083_v16 }
 0xea2   : > { %v2020_v17 = vpop.xlane.xlu0 %2019 }
 0xea3   : > { %v2021_v18 = vsub.f32 %v2014_v63, %v2020_v17 }
 0xea5   : > { %v4102_v8 = vpop.eup %4101  ;;  %v2022_v20 = vmul.f32 1.442695, %v2021_v18 }
 0xea6   : > { %v2085_v21 = vsel %vm928_vm2, %v4102_v8, 0.0 }
 0xea7   : > { %4103 = vpow2.f32 %v2022_v20  ;;  %2086 = vadd.xlane.f32.xlu1 %v2085_v21 }
 0xead   : > { %v4104_v25 = vpop.eup %4103 }
 0xeae   : > { %v2024_v26 = vsel %vm928_vm2, %v4104_v25, 0.0 }
 0xeaf   : > { %2025 = vadd.xlane.f32.xlu2 %v2024_v26  ;;  %1668 = vadd.xlane.f32.xlu1 %v1667_v24 }
 0xeb5   : > { %v2095_v15 = vpop.permute.xlu0 %2094 }
 0xeb6   : > { %v2100_v29 = vsel %vm944_vm3, %v2095_v15, 0 }
 0xeb7   : > { %2109 = vmatpush.bf16.msrb.mxu2 %v2100_v29  ;;  %1674 = vadd.xlane.f32.xlu1 %v1673_v27 }
 0xeb8   : > { %1671 = vadd.xlane.f32.xlu2 %v1670_v28 }
 0xebf   : > { %1680 = vadd.xlane.f32.xlu1 %v1679_v30 }
 0xec0   : > { %1677 = vadd.xlane.f32.xlu2 %v1676_v31  ;;  %v4838_v31 = vperm.slane %v4612_v51, 3 }
 0xec7   : > { %1683 = vadd.xlane.f32.xlu1 %v1682_v33  ;;  %v4841_v33 = vperm.slane %v4612_v51, 7  ;;  %v3990_v51 = vld [vmem:[%s5535_s27 + $0x78] sm:$0xff] }
 0xec8   : > { %2132 = vmatpush.bf16.msrb.mxu3 %v3990_v51 }
 0xee0   : > { %v1666_v34 = vpop.xlane.xlu0 %1665 }
 0xee1   : > { %v1688_v35 = vmul.f32 %v1666_v34, %v4582_v5 }
 0xee3   : > { %v4778_v36 = vsub.f32 %v4523_v13, %v1688_v35 }
 0xee5   : > { %v1704_v37 = vmul.f32 %v4778_v36, %v4778_v36 }
 0xee7   : > { %v1712_v38 = vsel %vm836_vm0, %v1704_v37, 0.0 }
 0xee8   : > { %1713 = vadd.xlane.f32.xlu2 %v1712_v38 }
 0xef0   : > { %1686 = vadd.xlane.f32.xlu2 %v1685_v39 }
 0xf1a   : > { %v2087_v19 = vpop.xlane.xlu1 %2086 }
 0xf1b   : > { %4105 = vrcp.f32 %v2087_v19 }
 0xf21   : > { %v4106_v40 = vpop.eup %4105 }
 0xf22   : > { %v2089_v4 = vmul.f32 %v4106_v40, %v4102_v8  ;;  %v2026_v42 = vpop.xlane.xlu2 %2025  ;;  %v1669_v43 = vpop.xlane.xlu1 %1668 }
 0xf23   : > { %4107 = vrcp.f32 %v2026_v42  ;;  %v1689_v13 = vmul.f32 %v1669_v43, %v4582_v5  ;;  %v3996_v42 = vld [vmem:[%s5542_s17 + $0x58] sm:$0xff]  ;;  %v3994_v43 = vld [vmem:[%s5542_s17 + $0x48] sm:$0xff] }
 0xf24   : > { %v2090_v44 = vpack.c.bf16 %v2089_v4, %v2089_v4  ;;  %2352 = vmatpush.bf16.msra.mxu3 %v3996_v42  ;;  %2286 = vmatpush.bf16.msra.mxu2 %v3994_v43  ;;  %v4167_v43 = vld [vmem:[%s4497_s5] sm:$0xff] }
 0xf25   : > { %v4787_v46 = vsub.f32 %v4525_v14, %v1689_v13 }
 0xf26   : > { %3797 = vmatmul.msk.bf16.vlgmr.msrb.gmra.mxu2 %vm928_vm2, %v2090_v44 }
 0xf27   : > { %v1705_v47 = vmul.f32 %v4787_v46, %v4787_v46 }
 0xf29   : > { %v4108_v48 = vpop.eup %4107  ;;  %v1715_v49 = vsel %vm836_vm0, %v1705_v47, 0.0 }
 0xf2a   : > { %v2028_v50 = vmul.f32 %v4108_v48, %v4104_v25  ;;  %1716 = vadd.xlane.f32.xlu0 %v1715_v49  ;;  %v1675_v52 = vpop.xlane.xlu1 %1674  ;;  %v3995_v48 = vld [vmem:[%s5542_s17 + $0x50] sm:$0xff]  ;;  %v3993_v49 = vld [vmem:[%s5542_s17 + $0x40] sm:$0xff] }
 0xf2b   : > { %v1691_v53 = vmul.f32 %v1675_v52, %v4582_v5  ;;  %v1672_v54 = vpop.xlane.xlu2 %1671  ;;  %2353 = vmatpush.bf16.msra.mxu3 %v3995_v48  ;;  %2287 = vmatpush.bf16.msra.mxu2 %v3993_v49 }
 0xf2c   : > { %v2029_v55 = vpack.c.bf16 %v2028_v50, %v2028_v50  ;;  %v1690_v56 = vmul.f32 %v1672_v54, %v4582_v5 }
 0xf2d   : > { %v4796_v14 = vsub.f32 %v4536_v23, %v1691_v53 }
 0xf2e   : > { %3795 = vmatmul.msk.bf16.vlgmr.msrb.gmra.mxu0 %vm928_vm2, %v2029_v55  ;;  %v4800_v59 = vsub.f32 %v4534_v22, %v1690_v56 }
 0xf2f   : > { %v1707_v60 = vmul.f32 %v4796_v14, %v4796_v14 }
 0xf30   : > { %v1706_v61 = vmul.f32 %v4800_v59, %v4800_v59 }
 0xf31   : > { %v1721_v62 = vsel %vm836_vm0, %v1707_v60, 0.0 }
 0xf32   : > { %1722 = vadd.xlane.f32.xlu1 %v1721_v62  ;;  %v1718_v63 = vsel %vm836_vm0, %v1706_v61, 0.0  ;;  %v1681_v0 = vpop.xlane.xlu1 %1680 }
 0xf33   : > { %1719 = vadd.xlane.f32.xlu0 %v1718_v63  ;;  %v1693_v23 = vmul.f32 %v1681_v0, %v4582_v5  ;;  %v1678_v1 = vpop.xlane.xlu2 %1677 }
 0xf34   : > { %v1692_v2 = vmul.f32 %v1678_v1, %v4582_v5 }
 0xf35   : > { %v4811_v22 = vsub.f32 %v4555_v45, %v1693_v23 }
 0xf36   : > { %v4814_v6 = vsub.f32 %v4551_v41, %v1692_v2 }
 0xf37   : > { %v1709_v7 = vmul.f32 %v4811_v22, %v4811_v22 }
 0xf38   : > { %v1708_v9 = vmul.f32 %v4814_v6, %v4814_v6 }
 0xf39   : > { %v1727_v3 = vsel %vm836_vm0, %v1709_v7, 0.0 }
 0xf3a   : > { %v1724_v10 = vsel %vm836_vm0, %v1708_v9, 0.0  ;;  %v1684_v11 = vpop.xlane.xlu1 %1683 }
 0xf3b   : > { %1728 = vadd.xlane.f32.xlu0 %v1727_v3  ;;  %1725 = vadd.xlane.f32.xlu2 %v1724_v10  ;;  %v1694_v12 = vmul.f32 %v1684_v11, %v4582_v5 }
 0xf3d   : > { %v4824_v45 = vsub.f32 %v4570_v57, %v1694_v12 }
 0xf3f   : > { %v1710_v41 = vmul.f32 %v4824_v45, %v4824_v45 }
 0xf41   : > { %v1730_v16 = vsel %vm836_vm0, %v1710_v41, 0.0 }
 0xf42   : > { %1731 = vadd.xlane.f32.xlu1 %v1730_v16 }
 0xf5b   : > { %v1714_v17 = vpop.xlane.xlu2 %1713 }
 0xf5c   : > { %v1736_v18 = vmul.f32 %v1714_v17, %v4582_v5 }
 0xf5e   : > { %v1744_v8 = vadd.f32 1e-05, %v1736_v18 }
 0xf60   : > { %4109 = vrsqrt.f32 %v1744_v8  ;;  %vm1758_vm15 = vweird.f32 %v1744_v8 }
 0xf63   : > { %v1687_v20 = vpop.xlane.xlu2 %1686 }
 0xf64   : > { %v1695_v21 = vmul.f32 %v1687_v20, %v4582_v5 }
 0xf66   : > { %v4110_v24 = vpop.eup %4109  ;;  %v4832_v25 = vsub.f32 %v4572_v58, %v1695_v21 }
 0xf67   : > { %v1753_v57 = vmul.f32 %v4110_v24, %v1744_v8  ;;  %vm1759_vm4 = vweird.f32 %v4110_v24 }
 0xf68   : > { %v1711_v26 = vmul.f32 %v4832_v25, %v4832_v25  ;;  %vm1760_vm5 = vmor %vm1758_vm15, %vm1759_vm4 }
 0xf69   : > { %v1754_v27 = vmul.f32 %v4110_v24, %v1753_v57 }
 0xf6a   : > { %v1733_v15 = vsel %vm836_vm0, %v1711_v26, 0.0 }
 0xf6b   : > { %v1755_v28 = vmul.f32 0.5, %v1754_v27  ;;  %1734 = vadd.xlane.f32.xlu2 %v1733_v15  ;;  %v4165_v15 = vld [vmem:[%s4503_s6] sm:$0xff] }
 0xf6d   : > { %v1756_v29 = vsub.f32 1.5, %v1755_v28 }
 0xf6f   : > { %v1757_v30 = vmul.f32 %v4110_v24, %v1756_v29 }
 0xf71   : > { %v1761_v58 = vsel %vm1760_vm5, %v4110_v24, %v1757_v30 }
 0xf72   : > { %v1832_v34 = vmul.f32 %v1761_v58, %v4778_v36  ;;  %v3989_v36 = vld [vmem:[%s5535_s27 + $0x70] sm:$0xff] }
 0xf73   : > { %2154 = vmatpush.bf16.msra.mxu0 %v3989_v36 }
 0xf74   : > { %v1841_v35 = vmul.f32 %v4838_v31, %v1832_v34 }
 0xf76   : > { %v4846_v37 = vadd.f32 %v4841_v33, %v1841_v35 }
 0xf78   : > { %v1858_v38 = vpack.c.bf16 %v4846_v37, %v4846_v37  ;;  %v4890_v28 = vadd.f32 %v4165_v15, %v4846_v37  ;;  %v4166_v37 = vld [vmem:[%s4503_s6 + $0x8] sm:$0xff]  ;;  %v4172_v15 = vld [vmem:[%s4497_s5 + $0x18] sm:$0xff] }
 0xf7a   : > { %1867 = vst.msk [vmem:[%s4852_s28] sm:$0xf] %vm1866_vm6, %v1858_v38 }
 0xf9d   : > { %v1717_v39 = vpop.xlane.xlu0 %1716 }
 0xf9e   : > { %v1737_v19 = vmul.f32 %v1717_v39, %v4582_v5 }
 0xfa0   : > { %v1745_v40 = vadd.f32 1e-05, %v1737_v19 }
 0xfa2   : > { %4111 = vrsqrt.f32 %v1745_v40  ;;  %vm1768_vm7 = vweird.f32 %v1745_v40 }
 0xfa5   : > { %v1723_v4 = vpop.xlane.xlu1 %1722 }
 0xfa6   : > { %v1739_v13 = vmul.f32 %v1723_v4, %v4582_v5  ;;  %v1720_v44 = vpop.xlane.xlu0 %1719 }
 0xfa7   : > { %v1738_v47 = vmul.f32 %v1720_v44, %v4582_v5 }
 0xfa8   : > { %v4112_v50 = vpop.eup %4111  ;;  %v1747_v52 = vadd.f32 1e-05, %v1739_v13  ;;  %v2190_v13 = vadd.f32 %v4167_v43, %v4890_v28  ;;  %v4174_v43 = vld [vmem:[%s4503_s6 + $0x28] sm:$0xff] }
 0xfa9   : > { %v2111_v53 = vpop.f32.mrf.mxu2  ;;  %v1763_v54 = vmul.f32 %v4112_v50, %v1745_v40  ;;  %v1746_v55 = vadd.f32 1e-05, %v1738_v47  ;;  %vm1769_vm9 = vweird.f32 %v4112_v50 }
 0xfaa   : > { %v2115_v56 = vpack.c.bf16 %v2111_v53, %v2111_v53  ;;  %4113 = vrsqrt.f32 %v1747_v52  ;;  %vm1770_vm10 = vmor %vm1768_vm7, %vm1769_vm9  ;;  %v4168_v53 = vld [vmem:[%s4497_s5 + $0x8] sm:$0xff] }
 0xfab   : > { %v2045_v60 = vpop.f32.mrf.mxu0  ;;  %v1764_v61 = vmul.f32 %v4112_v50, %v1763_v54  ;;  %4115 = vrsqrt.f32 %v1746_v55  ;;  %vm1778_vm12 = vweird.f32 %v1746_v55 }
 0xfac   : > { %v2049_v62 = vpack.c.bf16 %v2045_v60, %v2045_v60  ;;  %3802 = vmatmul.msk.bf16.vlgmr.msrb.gmra.mxu3 %vm908_vm1, %v2115_v56 }
 0xfad   : > { %v1765_v63 = vmul.f32 0.5, %v1764_v61 }
 0xfae   : > { %3807 = vmatmul.msk.bf16.vlgmr.msra.gmra.mxu0 %vm908_vm1, %v2049_v62  ;;  %v1726_v0 = vpop.xlane.xlu2 %1725  ;;  %v1729_v23 = vpop.xlane.xlu0 %1728  ;;  %vm1788_vm1 = vweird.f32 %v1747_v52 }
 0xfaf   : > { %v1766_v1 = vsub.f32 1.5, %v1765_v63  ;;  %v1740_v2 = vmul.f32 %v1726_v0, %v4582_v5  ;;  %v1741_v7 = vmul.f32 %v1729_v23, %v4582_v5 }
 0xfb0   : > { %v4114_v9 = vpop.eup %4113 }
 0xfb1   : > { %v4116_v3 = vpop.eup %4115  ;;  %v1767_v10 = vmul.f32 %v4112_v50, %v1766_v1  ;;  %v2113_v11 = vpop.f32.mrf.mxu2  ;;  %v1783_v12 = vmul.f32 %v4114_v9, %v1747_v52  ;;  %v1748_v41 = vadd.f32 1e-05, %v1740_v2  ;;  %v4883_v17 = vadd.f32 1e-05, %v1741_v7 }
 0xfb2   : > { %v1773_v16 = vmul.f32 %v4116_v3, %v1746_v55  ;;  %vm1789_vm11 = vweird.f32 %v4114_v9  ;;  %vm1779_vm13 = vweird.f32 %v4116_v3 }
 0xfb3   : > { %v1771_v18 = vsel %vm1770_vm10, %v4112_v50, %v1767_v10  ;;  %v2047_v8 = vpop.f32.mrf.mxu0  ;;  %v1784_v20 = vmul.f32 %v4114_v9, %v1783_v12  ;;  %4117 = vrsqrt.f32 %v1748_v41  ;;  %vm4893_vm14 = vmor %vm1788_vm1, %vm1789_vm11  ;;  %vm1798_vm4 = vweird.f32 %v1748_v41 }
 0xfb4   : > { %v1833_v21 = vmul.f32 %v1771_v18, %v4787_v46  ;;  %v1774_v24 = vmul.f32 %v4116_v3, %v1773_v16  ;;  %4119 = vrsqrt.f32 %v4883_v17  ;;  %vm4897_vm15 = vmor %vm1778_vm12, %vm1779_vm13  ;;  %vm1808_vm5 = vweird.f32 %v4883_v17  ;;  %v4169_v16 = vld [vmem:[%s4503_s6 + $0x10] sm:$0xff]  ;;  %v4170_v8 = vld [vmem:[%s4503_s6 + $0x18] sm:$0xff] }
 0xfb5   : > { %v1785_v57 = vmul.f32 0.5, %v1784_v20 }
 0xfb6   : > { %v1842_v26 = vmul.f32 %v4838_v31, %v1833_v21  ;;  %v1775_v27 = vmul.f32 0.5, %v1774_v24 }
 0xfb7   : > { %v1786_v29 = vsub.f32 1.5, %v1785_v57 }
 0xfb8   : > { %v1851_v46 = vadd.f32 %v4841_v33, %v1842_v26  ;;  %v1776_v58 = vsub.f32 1.5, %v1775_v27  ;;  %v4171_v27 = vld [vmem:[%s4497_s5 + $0x10] sm:$0xff] }
 0xfb9   : > { %v4118_v34 = vpop.eup %4117  ;;  %v1787_v35 = vmul.f32 %v4114_v9, %v1786_v29 }
 0xfba   : > { %v4120_v51 = vpop.eup %4119  ;;  %v1859_v36 = vpack.c.bf16 %v1851_v46, %v1851_v46  ;;  %v4902_v39 = vadd.f32 %v4166_v37, %v1851_v46  ;;  %v1777_v19 = vmul.f32 %v4116_v3, %v1776_v58  ;;  %v1793_v40 = vmul.f32 %v4118_v34, %v1748_v41 }
 0xfbb   : > { %v1791_v4 = vsel %vm4893_vm14, %v4114_v9, %v1787_v35  ;;  %v1803_v42 = vmul.f32 %v4120_v51, %v4883_v17  ;;  %vm1799_vm7 = vweird.f32 %v4118_v34  ;;  %vm1809_vm9 = vweird.f32 %v4120_v51 }
 0xfbc   : > { %1868 = vst.msk [vmem:[%s4852_s28 + $0x4] sm:$0xf] %vm1866_vm6, %v1859_v36  ;;  %v1835_v44 = vmul.f32 %v1791_v4, %v4796_v14  ;;  %v1781_v47 = vsel %vm4897_vm15, %v4116_v3, %v1777_v19  ;;  %v1794_v48 = vmul.f32 %v4118_v34, %v1793_v40  ;;  %v2317_v49 = vpack.c.bf16 %v4902_v39, %v4890_v28  ;;  %v1732_v14 = vpop.xlane.xlu1 %1731  ;;  %vm1800_vm10 = vmor %vm1798_vm4, %vm1799_vm7  ;;  %v4173_v4 = vld [vmem:[%s4503_s6 + $0x20] sm:$0xff] }
 0xfbd   : > { %v1834_v50 = vmul.f32 %v1781_v47, %v4800_v59  ;;  %v1804_v52 = vmul.f32 %v4120_v51, %v1803_v42  ;;  %v2191_v54 = vadd.f32 %v4168_v53, %v4902_v39  ;;  %v1742_v59 = vmul.f32 %v1732_v14, %v4582_v5  ;;  %vm1810_vm1 = vmor %vm1808_vm5, %vm1809_vm9 }
 0xfbe   : > { %v1844_v55 = vmul.f32 %v4838_v31, %v1835_v44  ;;  %v1795_v56 = vmul.f32 0.5, %v1794_v48  ;;  %3851 = vmatmul.msk.bf16.vlgmr.msra.gmra.mxu3 %vm836_vm0, %v2317_v49  ;;  %v4175_v48 = vld [vmem:[%s4497_s5 + $0x20] sm:$0xff] }
 0xfbf   : > { %v1843_v60 = vmul.f32 %v4838_v31, %v1834_v50  ;;  %v1805_v61 = vmul.f32 0.5, %v1804_v52  ;;  %v2251_v62 = vpack.c.bf16 %v2191_v54, %v2190_v13  ;;  %v1750_v2 = vadd.f32 1e-05, %v1742_v59  ;;  %v4176_v50 = vld [vmem:[%s4497_s5 + $0x28] sm:$0xff] }
 0xfc0   : > { %v1853_v63 = vadd.f32 %v4841_v33, %v1844_v55  ;;  %v1796_v0 = vsub.f32 1.5, %v1795_v56 }
 0xfc1   : > { %v1852_v23 = vadd.f32 %v4841_v33, %v1843_v60  ;;  %v1806_v1 = vsub.f32 1.5, %v1805_v61  ;;  %3839 = vmatmul.msk.bf16.vlgmr.msra.gmra.mxu2 %vm836_vm0, %v2251_v62  ;;  %4121 = vrsqrt.f32 %v1750_v2  ;;  %vm1818_vm11 = vweird.f32 %v1750_v2 }
 0xfc2   : > { %v1861_v7 = vpack.c.bf16 %v1853_v63, %v1853_v63  ;;  %v1797_v9 = vmul.f32 %v4118_v34, %v1796_v0  ;;  %v4940_v20 = vadd.f32 %v4170_v8, %v1853_v63 }
 0xfc3   : > { %v1860_v3 = vpack.c.bf16 %v1852_v23, %v1852_v23  ;;  %v1807_v10 = vmul.f32 %v4120_v51, %v1806_v1  ;;  %v4937_v18 = vadd.f32 %v4169_v16, %v1852_v23 }
 0xfc4   : > { %1870 = vst.msk [vmem:[%s4852_s28 + $0xc] sm:$0xf] %vm1866_vm6, %v1861_v7  ;;  %v1801_v11 = vsel %vm1800_vm10, %v4118_v34, %v1797_v9  ;;  %v2193_v29 = vadd.f32 %v4172_v15, %v4940_v20  ;;  %v4177_v7 = vld [vmem:[%s4503_s6 + $0x30] sm:$0xff] }
 0xfc5   : > { %1869 = vst.msk [vmem:[%s4852_s28 + $0x8] sm:$0xf] %vm1866_vm6, %v1860_v3  ;;  %v1836_v12 = vmul.f32 %v1801_v11, %v4814_v6  ;;  %v1811_v41 = vsel %vm1810_vm1, %v4120_v51, %v1807_v10  ;;  %v2192_v6 = vadd.f32 %v4171_v27, %v4937_v18  ;;  %v4178_v11 = vld [vmem:[%s4503_s6 + $0x38] sm:$0xff]  ;;  %s5552_s6 = sld [smem:[#allocation6_spill]] }
 0xfc6   : > { %v1837_v17 = vmul.f32 %v1811_v41, %v4811_v22  ;;  %v2318_v22 = vpack.c.bf16 %v4940_v20, %v4937_v18  ;;  %v4179_v41 = vld [vmem:[%s4497_s5 + $0x30] sm:$0xff] }
 0xfc7   : > { %v1845_v21 = vmul.f32 %v4838_v31, %v1836_v12  ;;  %v4122_v57 = vpop.eup %4121  ;;  %v2252_v38 = vpack.c.bf16 %v2193_v29, %v2192_v6 }
 0xfc8   : > { %v1846_v24 = vmul.f32 %v4838_v31, %v1837_v17  ;;  %v1813_v30 = vmul.f32 %v4122_v57, %v1750_v2  ;;  %vm1819_vm12 = vweird.f32 %v4122_v57 }
 0xfc9   : > { %v1854_v26 = vadd.f32 %v4841_v33, %v1845_v21  ;;  %vm1820_vm13 = vmor %vm1818_vm11, %vm1819_vm12  ;;  %v4064_v21 = vld [vmem:[%s5537_s24 + $0x7] ss:$0 sm:$0xff] }
 0xfca   : > { %v1855_v46 = vadd.f32 %v4841_v33, %v1846_v24  ;;  %v1814_v35 = vmul.f32 %v4122_v57, %v1813_v30 }
 0xfcb   : > { %v1862_v58 = vpack.c.bf16 %v1854_v26, %v1854_v26  ;;  %v4961_v42 = vadd.f32 %v4173_v4, %v1854_v26  ;;  %s718_s3 = sand.u32 1, %s5552_s6  }
 0xfcc   : > { %v1863_v34 = vpack.c.bf16 %v1855_v46, %v1855_v46  ;;  %v1815_v51 = vmul.f32 0.5, %v1814_v35  ;;  %v4964_v13 = vadd.f32 %v4174_v43, %v1855_v46  ;;  %s3612_s29 = sshll.u32 %s718_s3, 3  ;;  %s3432_s16 = scalar_lea.sflag [#allocation3], %s718_s3 }
 0xfcd   : > { %1871 = vst.msk [vmem:[%s4852_s28 + $0x10] sm:$0xf] %vm1866_vm6, %v1862_v58  ;;  %v2194_v49 = vadd.f32 %v4175_v48, %v4961_v42  ;;  %v4066_v48 = vld [vmem:[%s5543_s7 + $0x4] ss:$0 sm:$0xff]  ;;  %s720_s6 = scalar_lea.vmem [#allocation2], %s3612_s29 }
 0xfce   : > { %1872 = vst.msk [vmem:[%s4852_s28 + $0x14] sm:$0xf] %vm1866_vm6, %v1863_v34  ;;  %3852 = vmatmul.msk.bf16.gmra.mxu3 %vm836_vm0, %v2318_v22  ;;  %v1816_v36 = vsub.f32 1.5, %v1815_v51  ;;  %v2195_v52 = vadd.f32 %v4176_v50, %v4964_v13  ;;  %v2319_v53 = vpack.c.bf16 %v4964_v13, %v4961_v42  ;;  %s3454_s2 = sshll.u32 %s720_s6, 4  ;;  %s3455_s2 = int_to_ptr.vmem [resolvable:$true] %s3454_s2 }
 0xfd0   : > { %v1817_v37 = vmul.f32 %v4122_v57, %v1816_v36  ;;  %v2253_v54 = vpack.c.bf16 %v2195_v52, %v2194_v49  ;;  %v3992_v36 = vld [vmem:[%s5542_s17 + $0x38] sm:$0xff] }
 0xfd1   : > { %3840 = vmatmul.msk.bf16.gmra.mxu2 %vm836_vm0, %v2252_v38  ;;  %2243 = vmatpush.bf16.msra.mxu1 %v3992_v36 }
 0xfd2   : > { %v1821_v19 = vsel %vm1820_vm13, %v4122_v57, %v1817_v37 }
 0xfd3   : > { %v1838_v40 = vmul.f32 %v1821_v19, %v4824_v45  ;;  %v3991_v19 = vld [vmem:[%s5542_s17 + $0x30] sm:$0xff] }
 0xfd5   : > { %v1847_v44 = vmul.f32 %v4838_v31, %v1838_v40  ;;  %2244 = vmatpush.bf16.msra.mxu1 %v3991_v19 }
 0xfd7   : > { %v1856_v47 = vadd.f32 %v4841_v33, %v1847_v44  ;;  %v4065_v44 = vld [vmem:[%s5543_s7 + $0x5] ss:$0 sm:$0xff] }
 0xfd9   : > { %v1864_v45 = vpack.c.bf16 %v1856_v47, %v1856_v47  ;;  %v4982_v9 = vadd.f32 %v4177_v7, %v1856_v47 }
 0xfdb   : > { %1873 = vst.msk [vmem:[%s4852_s28 + $0x18] sm:$0xf] %vm1866_vm6, %v1864_v45  ;;  %v2196_v16 = vadd.f32 %v4179_v41, %v4982_v9 }
 0xfde   : > { %v1735_v55 = vpop.xlane.xlu2 %1734  ;;  %3853 = vmatmul.msk.bf16.gmra.mxu3 %vm836_vm0, %v2319_v53 }
 0xfdf   : > { %v1743_v56 = vmul.f32 %v1735_v55, %v4582_v5 }
 0xfe1   : > { %v1751_v14 = vadd.f32 1e-05, %v1743_v56  ;;  %3841 = vmatmul.msk.bf16.gmra.mxu2 %vm836_vm0, %v2253_v54 }
 0xfe3   : > { %4123 = vrsqrt.f32 %v1751_v14  ;;  %vm1828_vm14 = vweird.f32 %v1751_v14 }
 0xfe9   : > { %v4124_v60 = vpop.eup %4123 }
 0xfea   : > { %v1823_v61 = vmul.f32 %v4124_v60, %v1751_v14  ;;  %vm1829_vm15 = vweird.f32 %v4124_v60 }
 0xfeb   : > { %vm1830_vm4 = vmor %vm1828_vm14, %vm1829_vm15 }
 0xfec   : > { %v1824_v62 = vmul.f32 %v4124_v60, %v1823_v61 }
 0xfee   : > { %v1825_v59 = vmul.f32 0.5, %v1824_v62 }
 0xff0   : > { %v1826_v63 = vsub.f32 1.5, %v1825_v59 }
 0xff2   : > { %v1827_v0 = vmul.f32 %v4124_v60, %v1826_v63 }
 0xff4   : > { %v1831_v23 = vsel %vm1830_vm4, %v4124_v60, %v1827_v0 }
 0xff5   : > { %v1839_v1 = vmul.f32 %v1831_v23, %v4832_v25  ;;  %v4180_v25 = vld [vmem:[%s4497_s5 + $0x38] sm:$0xff] }
 0xff7   : > { %v1848_v2 = vmul.f32 %v4838_v31, %v1839_v1 }
 0xff9   : > { %v1857_v3 = vadd.f32 %v4841_v33, %v1848_v2 }
 0xffb   : > { %v1865_v10 = vpack.c.bf16 %v1857_v3, %v1857_v3  ;;  %v4986_v12 = vadd.f32 %v4178_v11, %v1857_v3 }
 0xffd   : > { %1874 = vst.msk [vmem:[%s4852_s28 + $0x1c] sm:$0xf] %vm1866_vm6, %v1865_v10  ;;  %v2320_v8 = vpack.c.bf16 %v4986_v12, %v4982_v9  ;;  %v2197_v31 = vadd.f32 %v4180_v25, %v4986_v12 }
 0xfff   : > { %3854 = vmatmul.msk.bf16.gmra.mxu3 %vm836_vm0, %v2320_v8  ;;  %v2254_v17 = vpack.c.bf16 %v2197_v31, %v2196_v16 }
0x1001   : > { %3842 = vmatmul.msk.bf16.gmra.mxu2 %vm836_vm0, %v2254_v17 }
0x102b   : > { %v2156_v33 = vpop.f32.mrf.mxu0 }
0x102f   : > { %v2134_v24 = vpop.f32.mrf.mxu3 }
0x1030   : > { %v2157_v57 = vadd.f32 %v2156_v33, %v2134_v24 }
0x1032   : > { %v2161_v26 = vadd.f32 %v4064_v21, %v2157_v57 }
0x1033   : > { %v2158_v27 = vpop.f32.mrf.mxu0 }
0x1034   : > { %v5002_v6 = vadd.f32 %v2161_v26, %v4731_v32 }
0x1036   : > { %v2163_v15 = vsel %vm836_vm0, %v5002_v6, 0.0 }
0x1037   : > { %2164 = vadd.xlane.f32.xlu0 %v2163_v15  ;;  %v2136_v29 = vpop.f32.mrf.mxu3 }
0x1041   : > { %v2355_v46 = vpop.f32.mrf.mxu3 }
0x1042   : > { %v2356_v21 = vadd.f32 %v4065_v44, %v2355_v46 }
0x1044   : > { %v2289_v30 = vpop.f32.mrf.mxu2  ;;  %v2375_v19 = vpack.c.bf16 %v2356_v21, %v2356_v21 }
0x1045   : > { %v2290_v0 = vadd.f32 %v4066_v48, %v2289_v30 }
0x1047   : > { %v2309_v24 = vpack.c.bf16 %v2290_v0, %v2290_v0 }
0x1049   : > { %v2357_v22 = vpop.f32.mrf.mxu3 }
0x104a   : > { %v2358_v57 = vadd.f32 %v4065_v44, %v2357_v22  ;;  %v2391_v22 = vunpack.c.l.b16 %v2309_v24 }
0x104c   : > { %v2291_v58 = vpop.f32.mrf.mxu2 }
0x104d   : > { %v2292_v23 = vadd.f32 %v4066_v48, %v2291_v58 }
0x104f   : > { %v2310_v26 = vpack.c.bf16 %v2292_v23, %v2292_v23 }
0x1051   : > { %v2360_v34 = vpop.f32.mrf.mxu3 }
0x1052   : > { %v2361_v45 = vadd.f32 %v4065_v44, %v2360_v34 }
0x1054   : > { %v2294_v35 = vpop.f32.mrf.mxu2  ;;  %v2377_v2 = vpack.c.bf16 %v2361_v45, %v2361_v45 }
0x1055   : > { %v2295_v30 = vadd.f32 %v4066_v48, %v2294_v35 }
0x1056   : > { %v2453_v29 = vunpack.c.l.b16 %v2377_v2 }
0x1059   : > { %v2362_v38 = vpop.f32.mrf.mxu3 }
0x105a   : > { %v2363_v55 = vadd.f32 %v4065_v44, %v2362_v38 }
0x105c   : > { %v2296_v51 = vpop.f32.mrf.mxu2  ;;  %v2378_v11 = vpack.c.bf16 %v2363_v55, %v2363_v55 }
0x105d   : > { %v2297_v34 = vadd.f32 %v4066_v48, %v2296_v51 }
0x105e   : > { %v2454_v58 = vunpack.c.l.b16 %v2378_v11 }
0x105f   : > { %v2312_v51 = vpack.c.bf16 %v2297_v34, %v2297_v34 }
0x1060   : > { %v5025_v35 = vpack.c.b16 %v2454_v58, %v2453_v29 }
0x1061   : > { %v2365_v37 = vpop.f32.mrf.mxu3 }
0x1062   : > { %v2366_v50 = vadd.f32 %v4065_v44, %v2365_v37 }
0x1064   : > { %v2299_v32 = vpop.f32.mrf.mxu2  ;;  %v2379_v56 = vpack.c.bf16 %v2366_v50, %v2366_v50 }
0x1065   : > { %v2300_v14 = vadd.f32 %v4066_v48, %v2299_v32 }
0x1066   : > { %v2455_v41 = vunpack.c.l.b16 %v2379_v56 }
0x1067   : > { %v2313_v16 = vpack.c.bf16 %v2300_v14, %v2300_v14 }
0x1069   : > { %v2367_v40 = vpop.f32.mrf.mxu3  ;;  %v2395_v38 = vunpack.c.l.b16 %v2313_v16 }
0x106a   : > { %v2368_v52 = vadd.f32 %v4065_v44, %v2367_v40  ;;  %v2376_v40 = vpack.c.bf16 %v2358_v57, %v2358_v57 }
0x106c   : > { %v2301_v4 = vpop.f32.mrf.mxu2  ;;  %v2380_v60 = vpack.c.bf16 %v2368_v52, %v2368_v52  ;;  %v2394_v52 = vunpack.c.l.b16 %v2312_v51 }
0x106d   : > { %v2302_v62 = vadd.f32 %v4066_v48, %v2301_v4  ;;  %v2392_v4 = vunpack.c.l.b16 %v2310_v26 }
0x106e   : > { %v2456_v8 = vunpack.c.l.b16 %v2380_v60 }
0x106f   : > { %v2314_v25 = vpack.c.bf16 %v2302_v62, %v2302_v62 }
0x1070   : > { %v5020_v36 = vpack.c.b16 %v2456_v8, %v2455_v41 }
0x1071   : > { %v2396_v37 = vunpack.c.l.b16 %v2314_v25 }
0x1082   : > { %v2370_v43 = vpop.f32.mrf.mxu3 }
0x1083   : > { %v2371_v49 = vadd.f32 %v4065_v44, %v2370_v43  ;;  %v2311_v43 = vpack.c.bf16 %v2295_v30, %v2295_v30 }
0x1084   : > { %v2304_v47 = vpop.f32.mrf.mxu2 }
0x1085   : > { %v2305_v53 = vadd.f32 %v4066_v48, %v2304_v47  ;;  %v2381_v54 = vpack.c.bf16 %v2371_v49, %v2371_v49  ;;  %v2451_v47 = vunpack.c.l.b16 %v2375_v19  ;;  %v2399_v49 = vpack.c.b16 %v2392_v4, %v2391_v22 }
0x1086   : > { %v2393_v50 = vunpack.c.l.b16 %v2311_v43 }
0x1087   : > { %v2315_v59 = vpack.c.bf16 %v2305_v53, %v2305_v53  ;;  %v2457_v7 = vunpack.c.l.b16 %v2381_v54 }
0x1088   : > { %v2400_v54 = vpack.c.b16 %v2394_v52, %v2393_v50 }
0x1089   : > { %v2397_v31 = vunpack.c.l.b16 %v2315_v59 }
0x108a   : > { %v2372_v61 = vpop.f32.mrf.mxu3  ;;  %v2410_v55 = vsel %vm928_vm2, %v2400_v54, 0 }
0x108b   : > { %v2373_v63 = vadd.f32 %v4065_v44, %v2372_v61  ;;  %v5027_v44 = vpack.c.b16 %v2396_v37, %v2395_v38  ;;  %v2407_v61 = vsel %vm928_vm2, %v2399_v49, 0 }
0x108c   : > { %v2306_v1 = vpop.f32.mrf.mxu2 }
0x108d   : > { %v2382_v3 = vpack.c.bf16 %v2373_v63, %v2373_v63  ;;  %v2307_v10 = vadd.f32 %v4066_v48, %v2306_v1  ;;  %v2452_v48 = vunpack.c.l.b16 %v2376_v40  ;;  %v2413_v53 = vsel %vm928_vm2, %v5027_v44, 0 }
0x108f   : > { %v2458_v17 = vunpack.c.l.b16 %v2382_v3  ;;  %v2316_v33 = vpack.c.bf16 %v2307_v10, %v2307_v10  ;;  %v5033_v45 = vpack.c.b16 %v2452_v48, %v2451_v47 }
0x1091   : > { %v5018_v27 = vpack.c.b16 %v2458_v17, %v2457_v7  ;;  %v2398_v15 = vunpack.c.l.b16 %v2316_v33  ;;  %v4181_v33 = vld [vmem:[%s4442_s0] sm:$0xff] }
0x1093   : > { %v2402_v32 = vpack.c.b16 %v2398_v15, %v2397_v31  ;;  %2474 = vmatpush.bf16.msrb.mxu1 %v5018_v27  ;;  %v4067_v15 = vld [vmem:[%s5543_s7 + $0x3] ss:$0 sm:$0xff] }
0x1095   : > { %2495 = vrot.lane.b32.xlu0 %v2402_v32, %s4258_s19  ;;  %v2416_v46 = vsel %vm928_vm2, %v2402_v32, 0 }
0x1096   : > { %2422 = vmatpush.bf16.xpose.msrb.mxu0 %v2416_v46 }
0x1097   : > { %2475 = vmatpush.bf16.msrb.mxu1 %v5020_v36 }
0x109b   : > { %2476 = vmatpush.bf16.msrb.mxu1 %v5025_v35 }
0x109d   : > { %2489 = vrot.lane.b32.xlu0 %v2399_v49, %s4258_s19 }
0x109e   : > { %2423 = vmatpush.bf16.xpose.msrb.mxu0 %v2413_v53 }
0x109f   : > { %2477 = vmatpush.bf16.msrb.mxu1 %v5033_v45 }
0x10a6   : > { %2424 = vmatpush.bf16.xpose.msrb.mxu0 %v2410_v55 }
0x10aa   : > { %v2165_v56 = vpop.xlane.xlu0 %2164 }
0x10ab   : > { %v2166_v14 = vmul.f32 %v2165_v56, %v4582_v5 }
0x10ad   : > { %v2167_v60 = vsub.f32 %v5002_v6, %v2166_v14  ;;  %v5046_v6 = vld [vmem:[%s5482_s14 + $0x8] sm:$0xff] }
0x10ae   : > { %2425 = vmatpush.bf16.xpose.msrb.mxu0 %v2407_v61  ;;  %v2185_v41 = vperm.slane %v5046_v6, 0  ;;  %v2187_v8 = vperm.slane %v5046_v6, 4 }
0x10af   : > { %v2168_v62 = vmul.f32 %v2167_v60, %v2167_v60 }
0x10b1   : > { %v2169_v59 = vsel %vm836_vm0, %v2168_v62, 0.0 }
0x10b2   : > { %2170 = vadd.xlane.f32.xlu1 %v2169_v59 }
0x1107   : > { %v2496_v24 = vpop.permute.xlu0 %2495 }
0x1108   : > { %v2510_v57 = vsel %vm928_vm2, %v2496_v24, 0 }
0x1125   : > { %v2171_v63 = vpop.xlane.xlu1 %2170 }
0x1126   : > { %v2172_v0 = vmul.f32 %v2171_v63, %v4582_v5 }
0x1128   : > { %v2173_v23 = vadd.f32 1e-05, %v2172_v0 }
0x112a   : > { %4125 = vrsqrt.f32 %v2173_v23  ;;  %vm2180_vm7 = vweird.f32 %v2173_v23 }
0x1130   : > { %v4126_v1 = vpop.eup %4125 }
0x1131   : > { %v2175_v2 = vmul.f32 %v4126_v1, %v2173_v23  ;;  %vm2181_vm5 = vweird.f32 %v4126_v1 }
0x1132   : > { %vm2182_vm9 = vmor %vm2180_vm7, %vm2181_vm5 }
0x1133   : > { %v2176_v7 = vmul.f32 %v4126_v1, %v2175_v2 }
0x1135   : > { %v2177_v3 = vmul.f32 0.5, %v2176_v7 }
0x1137   : > { %v2178_v10 = vsub.f32 1.5, %v2177_v3 }
0x1139   : > { %v2179_v11 = vmul.f32 %v4126_v1, %v2178_v10 }
0x113b   : > { %v2183_v16 = vsel %vm2182_vm9, %v4126_v1, %v2179_v11 }
0x113c   : > { %v2184_v25 = vmul.f32 %v2183_v16, %v2167_v60  ;;  %v3820_v60 = vld [vmem:[%s5476_s8 + $0x8] sm:$0xf] }
0x113d   : > { %v2589_v61 = vsel %vm944_vm3, %v3820_v60, 0 }
0x113e   : > { %v2186_v31 = vmul.f32 %v2185_v41, %v2184_v25  ;;  %v2758_v25 = vsel %vm836_vm0, %v4940_v20, 0.0 }
0x1140   : > { %v5050_v17 = vadd.f32 %v2187_v8, %v2186_v31  ;;  %v2752_v8 = vsel %vm836_vm0, %v4902_v39, 0.0  ;;  %v2764_v31 = vsel %vm836_vm0, %v4964_v13, 0.0 }
0x1142   : > { %v2189_v21 = vadd.f32 %v4181_v33, %v5050_v17 }
0x1144   : > { %v2220_v26 = vpack.c.bf16 %v2189_v21, %v2189_v21 }
0x1146   : > { %3830 = vmatmul.msk.bf16.vlgmr.msra.gmra.mxu1 %vm836_vm0, %v2220_v26 }
0x1147   : > { %2516 = vmatpush.bf16.xpose.msra.mxu1 %v2510_v57 }
0x11c3   : > { %v2246_v29 = vpop.f32.mrf.mxu1 }
0x11c4   : > { %v2247_v30 = vadd.f32 %v4067_v15, %v2246_v29 }
0x11c6   : > { %v2250_v58 = vpack.c.bf16 %v2247_v30, %v2247_v30 }
0x11c8   : > { %v2485_v34 = vunpack.c.l.b16 %v2250_v58  ;;  %3855 = vmatmul.msk.bf16.vlgmr.msrb.gmra.mxu0 %vm928_vm2, %v2250_v58 }
0x11ca   : > { %v2486_v38 = vpack.c.b16 %v2485_v34, %v2485_v34  ;;  %v3821_v34 = vld [vmem:[%s5476_s8 + $0xc] sm:$0xf] }
0x11cb   : > { %v2248_v37 = vpop.f32.mrf.mxu1 }
0x11cc   : > { %2487 = vrot.lane.b32.xlu0 %v2486_v38, %s4258_s19  ;;  %v2570_v38 = vsel %vm944_vm3, %v3821_v34, 0 }
0x1245   : > { %v2427_v32 = vpop.f32.mrf.mxu0 }
0x1246   : > { %v2431_v19 = vsel %vm1347_vm8, %v2427_v32, -inf }
0x1247   : > { %2432 = vmax.xlane.f32.xlu2 %v2431_v19 }
0x124d   : > { %v2429_v40 = vpop.f32.mrf.mxu0 }
0x125f   : > { %2493 = vrot.lane.b32.xlu2 %v5027_v44, %s4258_s19 }
0x12ba   : > { %v2433_v46 = vpop.xlane.xlu2 %2432 }
0x12bb   : > { %v2434_v22 = vsub.f32 %v2427_v32, %v2433_v46 }
0x12bd   : > { %v2435_v4 = vmul.f32 1.442695, %v2434_v22 }
0x12bf   : > { %4127 = vpow2.f32 %v2435_v4 }
0x12c2   : > { %v2494_v43 = vpop.permute.xlu2 %2493 }
0x12c3   : > { %v2507_v51 = vsel %vm928_vm2, %v2494_v43, 0 }
0x12c4   : > { %2517 = vmatpush.bf16.xpose.msra.mxu1 %v2507_v51 }
0x12c5   : > { %v4128_v47 = vpop.eup %4127 }
0x12c6   : > { %v2437_v48 = vsel %vm1347_vm8, %v4128_v47, 0.0 }
0x12c7   : > { %2438 = vadd.xlane.f32.xlu1 %v2437_v48 }
0x12e0   : > { %2491 = vrot.lane.b32.xlu1 %v2400_v54, %s4258_s19 }
0x12e8   : > { %2543 = vrot.lane.b32.xlu1 %v5018_v27, %s4258_s19  ;;  %v2490_v27 = vpop.permute.xlu0 %2489 }
0x12f0   : > { %2541 = vrot.lane.b32.xlu1 %v5020_v36, %s4258_s19  ;;  %v2501_v36 = vsel %vm928_vm2, %v2490_v27, 0 }
0x12f8   : > { %2539 = vrot.lane.b32.xlu1 %v5025_v35, %s4258_s19  ;;  %v2488_v35 = vpop.permute.xlu0 %2487 }
0x1300   : > { %2537 = vrot.lane.b32.xlu1 %v5033_v45, %s4258_s19 }
0x133a   : > { %v2439_v44 = vpop.xlane.xlu1 %2438 }
0x133b   : > { %4129 = vrcp.f32 %v2439_v44 }
0x1341   : > { %v4130_v49 = vpop.eup %4129 }
0x1342   : > { %v2441_v50 = vmul.f32 %v4130_v49, %v4128_v47 }
0x1344   : > { %v2442_v52 = vpack.c.bf16 %v2441_v50, %v2441_v50  ;;  %v5105_v50 = vperm.slane %v5046_v6, 3 }
0x1346   : > { %3856 = vmatmul.msk.bf16.vlgmr.msrb.gmra.mxu1 %vm1347_vm8, %v2442_v52 }
0x1352   : > { %v2492_v53 = vpop.permute.xlu1 %2491 }
0x1353   : > { %v2504_v54 = vsel %vm928_vm2, %v2492_v53, 0  ;;  %v5108_v53 = vperm.slane %v5046_v6, 7 }
0x1354   : > { %2518 = vmatpush.bf16.xpose.msra.mxu1 %v2504_v54 }
0x135a   : > { %v2544_v55 = vpop.permute.xlu1 %2543 }
0x135b   : > { %2556 = vmatpush.bf16.msra.mxu0 %v2544_v55 }
0x135c   : > { %2519 = vmatpush.bf16.xpose.msra.mxu1 %v2501_v36 }
0x1362   : > { %v2542_v56 = vpop.permute.xlu1 %2541 }
0x1363   : > { %3857 = vmatmul.msk.bf16.vlgmr.msra.gmra.mxu1 %vm928_vm2, %v2488_v35  ;;  %2557 = vmatpush.bf16.msra.mxu0 %v2542_v56  ;;  %v4068_v35 = vld [vmem:[%s5477_s9 + $0x1] ss:$0 sm:$0xff] }
0x1364   : > { %2598 = vmatpush.bf16.msrb.mxu1 %v2589_v61 }
0x136a   : > { %v2540_v45 = vpop.permute.xlu1 %2539 }
0x136b   : > { %2558 = vmatpush.bf16.msra.mxu0 %v2540_v45 }
0x1372   : > { %v2538_v14 = vpop.permute.xlu1 %2537 }
0x1373   : > { %2559 = vmatpush.bf16.msra.mxu0 %v2538_v14 }
0x1377   : > { %2579 = vmatpush.bf16.msrb.mxu0 %v2570_v38 }
0x13c3   : > { %v2479_v62 = vpop.f32.mrf.mxu1 }
0x13c4   : > { %v2483_v59 = vpack.c.bf16 %v2479_v62, %v2479_v62 }
0x13c6   : > { %3860 = vmatmul.msk.bf16.vlgmr.msrb.gmra.mxu1 %vm928_vm2, %v2483_v59 }
0x13cb   : > { %v2481_v63 = vpop.f32.mrf.mxu1 }
0x13e0   : > { %v2521_v0 = vpop.f32.mrf.mxu1 }
0x13e1   : > { %v2525_v23 = vsel %vm1347_vm8, %v2521_v0, -inf }
0x13e2   : > { %2526 = vmax.xlane.f32.xlu2 %v2525_v23 }
0x13e8   : > { %v2523_v1 = vpop.f32.mrf.mxu1 }
0x1443   : > { %v2600_v2 = vpop.f32.mrf.mxu1 }
0x144b   : > { %v2602_v7 = vpop.f32.mrf.mxu1 }
0x1455   : > { %v2527_v3 = vpop.xlane.xlu2 %2526 }
0x1456   : > { %v2528_v10 = vsub.f32 %v2521_v0, %v2527_v3  ;;  %v2767_v0 = vsel %vm836_vm0, %v4982_v9, 0.0 }
0x1458   : > { %v2529_v11 = vmul.f32 1.442695, %v2528_v10 }
0x145a   : > { %4131 = vpow2.f32 %v2529_v11  ;;  %v3998_v11 = vld [vmem:[%s5478_s10 + $0x18] sm:$0xff] }
0x145b   : > { %2662 = vmatpush.bf16.msrb.mxu2 %v3998_v11 }
0x1460   : > { %v4132_v41 = vpop.eup %4131 }
0x1461   : > { %v2531_v16 = vsel %vm1347_vm8, %v4132_v41, 0.0 }
0x1462   : > { %2532 = vadd.xlane.f32.xlu0 %v2531_v16 }
0x146a   : > { %2753 = vadd.xlane.f32.xlu0 %v2752_v8 }
0x1472   : > { %2759 = vadd.xlane.f32.xlu0 %v2758_v25 }
0x147a   : > { %2765 = vadd.xlane.f32.xlu0 %v2764_v31  ;;  %v2755_v31 = vsel %vm836_vm0, %v4937_v18, 0.0 }
0x14d5   : > { %v2533_v33 = vpop.xlane.xlu0 %2532 }
0x14d6   : > { %4133 = vrcp.f32 %v2533_v33 }
0x14dc   : > { %v4134_v21 = vpop.eup %4133 }
0x14dd   : > { %v2535_v24 = vmul.f32 %v4134_v21, %v4132_v41  ;;  %v2754_v57 = vpop.xlane.xlu0 %2753  ;;  %v2749_v41 = vsel %vm836_vm0, %v4890_v28, 0.0 }
0x14de   : > { %v2774_v26 = vmul.f32 %v2754_v57, %v4582_v5  ;;  %v2761_v57 = vsel %vm836_vm0, %v4961_v42, 0.0 }
0x14df   : > { %v2536_v15 = vpack.c.bf16 %v2535_v24, %v2535_v24 }
0x14e0   : > { %v2782_v29 = vsub.f32 %v4902_v39, %v2774_v26 }
0x14e1   : > { %3858 = vmatmul.msk.bf16.vlgmr.msra.gmra.mxu0 %vm1347_vm8, %v2536_v15 }
0x14e2   : > { %v2790_v30 = vmul.f32 %v2782_v29, %v2782_v29 }
0x14e4   : > { %v2800_v58 = vsel %vm836_vm0, %v2790_v30, 0.0 }
0x14e5   : > { %2801 = vadd.xlane.f32.xlu0 %v2800_v58  ;;  %v2760_v37 = vpop.xlane.xlu0 %2759 }
0x14e6   : > { %v2776_v59 = vmul.f32 %v2760_v37, %v4582_v5 }
0x14e8   : > { %v2784_v63 = vsub.f32 %v4940_v20, %v2776_v59  ;;  %v2770_v59 = vsel %vm836_vm0, %v4986_v12, 0.0 }
0x14ea   : > { %v2792_v23 = vmul.f32 %v2784_v63, %v2784_v63 }
0x14ec   : > { %v2806_v1 = vsel %vm836_vm0, %v2792_v23, 0.0 }
0x14ed   : > { %v5100_v32 = vpop.xlane.xlu0 %2765 }
0x1558   : > { %v2802_v19 = vpop.xlane.xlu0 %2801 }
0x1559   : > { %v2822_v40 = vmul.f32 %v2802_v19, %v4582_v5  ;;  %v3997_v19 = vld [vmem:[%s5478_s10 + $0x10] sm:$0xff] }
0x155a   : > { %2663 = vmatpush.bf16.msrb.mxu2 %v3997_v19 }
0x155b   : > { %v2830_v39 = vadd.f32 1e-05, %v2822_v40 }
0x155d   : > { %4135 = vrsqrt.f32 %v2830_v39  ;;  %vm2853_vm1 = vweird.f32 %v2830_v39 }
0x155e   : > { %v2561_v46 = vpop.f32.mrf.mxu0 }
0x155f   : > { %v2565_v22 = vpack.c.bf16 %v2561_v46, %v2561_v46 }
0x1561   : > { %3859 = vmatmul.msk.bf16.vlgmr.msrb.gmra.mxu0 %vm928_vm2, %v2565_v22 }
0x1563   : > { %v4136_v4 = vpop.eup %4135 }
0x1564   : > { %v2848_v43 = vmul.f32 %v4136_v4, %v2830_v39  ;;  %vm2854_vm10 = vweird.f32 %v4136_v4 }
0x1565   : > { %vm2855_vm11 = vmor %vm2853_vm1, %vm2854_vm10 }
0x1566   : > { %v2849_v51 = vmul.f32 %v4136_v4, %v2848_v43  ;;  %v2563_v47 = vpop.f32.mrf.mxu0 }
0x1568   : > { %v2850_v48 = vmul.f32 0.5, %v2849_v51 }
0x156a   : > { %v2851_v44 = vsub.f32 1.5, %v2850_v48 }
0x156c   : > { %v2852_v49 = vmul.f32 %v4136_v4, %v2851_v44 }
0x156e   : > { %v2856_v52 = vsel %vm2855_vm11, %v4136_v4, %v2852_v49  ;;  %v4002_v4 = vld [vmem:[%s5480_s12 + $0x38] sm:$0xff] }
0x156f   : > { %v2918_v54 = vmul.f32 %v2856_v52, %v2782_v29  ;;  %2713 = vmatpush.bf16.msrb.mxu3 %v4002_v4 }
0x1571   : > { %v2927_v27 = vmul.f32 %v5105_v50, %v2918_v54 }
0x1573   : > { %v5113_v55 = vadd.f32 %v5108_v53, %v2927_v27 }
0x1575   : > { %v5122_v36 = vpack.c.bf16 %v5113_v55, %v5113_v55 }
0x1577   : > { %3900 = vst.msk [vmem:[%s4852_s28 + $0x24] sm:$0xf] %vm1866_vm6, %v5122_v36 }
0x1578   : > { %3424 = vst.msk [vmem:[%s5118_s4 + $0x4] sm:$0xf] %vm1866_vm6, %v5122_v36 }
0x15de   : > { %v2581_v56 = vpop.f32.mrf.mxu0 }
0x15df   : > { %v2601_v45 = vadd.f32 %v2600_v2, %v2581_v56 }
0x15e1   : > { %v2605_v14 = vadd.f32 %v4068_v35, %v2601_v45  ;;  %v2778_v45 = vmul.f32 %v5100_v32, %v4582_v5  ;;  %v2631_v32 = vperm.slane %v5046_v6, 5 }
0x15e3   : > { %v2606_v60 = vadd.f32 %v2605_v14, %v5050_v17 }
0x15e5   : > { %v2607_v61 = vsel %vm836_vm0, %v2606_v60, 0.0 }
0x15e6   : > { %v2583_v62 = vpop.f32.mrf.mxu0  ;;  %2608 = vadd.xlane.f32.xlu1 %v2607_v61 }
0x15ee   : > { %2768 = vadd.xlane.f32.xlu1 %v2767_v0 }
0x15f6   : > { %2807 = vadd.xlane.f32.xlu1 %v2806_v1 }
0x1659   : > { %v2609_v2 = vpop.xlane.xlu1 %2608 }
0x165a   : > { %v2610_v7 = vmul.f32 %v2609_v2, %v4582_v5 }
0x165c   : > { %v5141_v17 = vsub.f32 %v2606_v60, %v2610_v7  ;;  %v2629_v60 = vperm.slane %v5046_v6, 1 }
0x165e   : > { %v2612_v3 = vmul.f32 %v5141_v17, %v5141_v17 }
0x1660   : > { %v2613_v10 = vsel %vm836_vm0, %v2612_v3, 0.0 }
0x1661   : > { %2614 = vadd.xlane.f32.xlu2 %v2613_v10  ;;  %v5146_v20 = vpop.xlane.xlu1 %2768 }
0x1662   : > { %v2779_v7 = vmul.f32 %v5146_v20, %v4582_v5 }
0x1664   : > { %v5218_v11 = vsub.f32 %v4982_v9, %v2779_v7  ;;  %v4001_v9 = vld [vmem:[%s5480_s12 + $0x30] sm:$0xff] }
0x1665   : > { %2714 = vmatpush.bf16.msrb.mxu3 %v4001_v9 }
0x1669   : > { %2750 = vadd.xlane.f32.xlu2 %v2749_v41  ;;  %v2808_v16 = vpop.xlane.xlu1 %2807 }
0x166a   : > { %v2824_v8 = vmul.f32 %v2808_v16, %v4582_v5 }
0x166c   : > { %v2832_v25 = vadd.f32 1e-05, %v2824_v8  ;;  %v4006_v8 = vld [vmem:[%s5483_s15 + $0x18] sm:$0xff] }
0x166d   : > { %3055 = vmatpush.bf16.msra.mxu1 %v4006_v8 }
0x166e   : > { %4137 = vrsqrt.f32 %v2832_v25  ;;  %vm2873_vm13 = vweird.f32 %v2832_v25 }
0x1671   : > { %2756 = vadd.xlane.f32.xlu2 %v2755_v31  ;;  %v4005_v31 = vld [vmem:[%s5483_s15 + $0x10] sm:$0xff] }
0x1672   : > { %3056 = vmatpush.bf16.msra.mxu1 %v4005_v31  ;;  %v3096_v31 = vunpack.c.l.b16 %v5122_v36 }
0x1674   : > { %v4138_v33 = vpop.eup %4137 }
0x1675   : > { %v2868_v21 = vmul.f32 %v4138_v33, %v2832_v25  ;;  %vm2874_vm12 = vweird.f32 %v4138_v33  ;;  %v4008_v25 = vld [vmem:[%s5483_s15 + $0x28] sm:$0xff] }
0x1676   : > { %vm2875_vm14 = vmor %vm2873_vm13, %vm2874_vm12  ;;  %3137 = vmatpush.bf16.msra.mxu2 %v4008_v25 }
0x1677   : > { %v2869_v24 = vmul.f32 %v4138_v33, %v2868_v21  ;;  %v4007_v21 = vld [vmem:[%s5483_s15 + $0x20] sm:$0xff] }
0x1679   : > { %v2870_v26 = vmul.f32 0.5, %v2869_v24  ;;  %2762 = vadd.xlane.f32.xlu2 %v2761_v57 }
0x167a   : > { %3138 = vmatpush.bf16.msra.mxu2 %v4007_v21 }
0x167b   : > { %v2871_v15 = vsub.f32 1.5, %v2870_v26  ;;  %v3999_v26 = vld [vmem:[%s5480_s12 + $0x20] sm:$0xff] }
0x167d   : > { %v2872_v29 = vmul.f32 %v4138_v33, %v2871_v15 }
0x167f   : > { %v2876_v30 = vsel %vm2875_vm14, %v4138_v33, %v2872_v29  ;;  %v4000_v33 = vld [vmem:[%s5480_s12 + $0x28] sm:$0xff] }
0x1680   : > { %v2920_v58 = vmul.f32 %v2876_v30, %v2784_v63  ;;  %v5198_v63 = vsub.f32 %v4964_v13, %v2778_v45  ;;  %2715 = vmatpush.bf16.msrb.mxu3 %v4000_v33 }
0x1682   : > { %v2929_v34 = vmul.f32 %v5105_v50, %v2920_v58  ;;  %v2794_v6 = vmul.f32 %v5198_v63, %v5198_v63 }
0x1684   : > { %v5160_v38 = vadd.f32 %v5108_v53, %v2929_v34  ;;  %v2812_v20 = vsel %vm836_vm0, %v2794_v6, 0.0  ;;  %2716 = vmatpush.bf16.msrb.mxu3 %v3999_v26 }
0x1686   : > { %v5164_v37 = vpack.c.bf16 %v5160_v38, %v5160_v38 }
0x1688   : > { %3902 = vst.msk [vmem:[%s4852_s28 + $0x2c] sm:$0xf] %vm1866_vm6, %v5164_v37 }
0x1689   : > { %3426 = vst.msk [vmem:[%s5118_s4 + $0xc] sm:$0xf] %vm1866_vm6, %v5164_v37 }
0x16d4   : > { %v2615_v40 = vpop.xlane.xlu2 %2614 }
0x16d5   : > { %v2616_v39 = vmul.f32 %v2615_v40, %v4582_v5 }
0x16d7   : > { %v2617_v46 = vadd.f32 1e-05, %v2616_v39 }
0x16d9   : > { %4139 = vrsqrt.f32 %v2617_v46  ;;  %vm2624_vm4 = vweird.f32 %v2617_v46 }
0x16dc   : > { %v2751_v22 = vpop.xlane.xlu2 %2750 }
0x16dd   : > { %v2773_v43 = vmul.f32 %v2751_v22, %v4582_v5 }
0x16df   : > { %v4140_v51 = vpop.eup %4139  ;;  %v5181_v47 = vsub.f32 %v4890_v28, %v2773_v43 }
0x16e0   : > { %v2619_v48 = vmul.f32 %v4140_v51, %v2617_v46  ;;  %vm2625_vm15 = vweird.f32 %v4140_v51 }
0x16e1   : > { %v2789_v44 = vmul.f32 %v5181_v47, %v5181_v47  ;;  %vm2626_vm5 = vmor %vm2624_vm4, %vm2625_vm15 }
0x16e2   : > { %v2620_v49 = vmul.f32 %v4140_v51, %v2619_v48 }
0x16e3   : > { %v2797_v52 = vsel %vm836_vm0, %v2789_v44, 0.0 }
0x16e4   : > { %v2621_v54 = vmul.f32 0.5, %v2620_v49  ;;  %2798 = vadd.xlane.f32.xlu2 %v2797_v52  ;;  %v2757_v27 = vpop.xlane.xlu2 %2756 }
0x16e5   : > { %v2775_v35 = vmul.f32 %v2757_v27, %v4582_v5 }
0x16e6   : > { %v2622_v56 = vsub.f32 1.5, %v2621_v54 }
0x16e7   : > { %v5190_v28 = vsub.f32 %v4937_v18, %v2775_v35 }
0x16e8   : > { %v2623_v14 = vmul.f32 %v4140_v51, %v2622_v56 }
0x16e9   : > { %v2791_v61 = vmul.f32 %v5190_v28, %v5190_v28 }
0x16ea   : > { %v2627_v62 = vsel %vm2626_vm5, %v4140_v51, %v2623_v14 }
0x16eb   : > { %v2628_v18 = vmul.f32 %v2627_v62, %v5141_v17  ;;  %v2803_v0 = vsel %vm836_vm0, %v2791_v61, 0.0 }
0x16ec   : > { %2771 = vadd.xlane.f32.xlu2 %v2770_v59  ;;  %2804 = vadd.xlane.f32.xlu0 %v2803_v0  ;;  %v2763_v23 = vpop.xlane.xlu2 %2762 }
0x16ed   : > { %v2630_v1 = vmul.f32 %v2629_v60, %v2628_v18  ;;  %v2777_v2 = vmul.f32 %v2763_v23, %v4582_v5 }
0x16ef   : > { %v5206_v3 = vadd.f32 %v2631_v32, %v2630_v1  ;;  %v5209_v13 = vsub.f32 %v4961_v42, %v2777_v2  ;;  %v2795_v42 = vmul.f32 %v5218_v11, %v5218_v11 }
0x16f1   : > { %v2633_v17 = vpack.c.bf16 %v5206_v3, %v5206_v3  ;;  %v2793_v10 = vmul.f32 %v5209_v13, %v5209_v13  ;;  %v2815_v16 = vsel %vm836_vm0, %v2795_v42, 0.0  ;;  %v4183_v42 = vld [vmem:[%s4497_s5] sm:$0xff] }
0x16f3   : > { %3873 = vmatmul.msk.bf16.vlgmr.msrb.gmra.mxu2 %vm836_vm0, %v2633_v17  ;;  %v2809_v41 = vsel %vm836_vm0, %v2793_v10, 0.0  ;;  %v4182_v10 = vld [vmem:[%s4497_s5 + $0x8] sm:$0xff] }
0x16f4   : > { %2813 = vadd.xlane.f32.xlu0 %v2812_v20  ;;  %2810 = vadd.xlane.f32.xlu2 %v2809_v41  ;;  %v2962_v20 = vadd.f32 %v4182_v10, %v5113_v55  ;;  %v4187_v10 = vld [vmem:[%s4497_s5 + $0x28] sm:$0xff] }
0x16fc   : > { %2816 = vadd.xlane.f32.xlu2 %v2815_v16 }
0x1757   : > { %v2799_v24 = vpop.xlane.xlu2 %2798 }
0x1758   : > { %v2821_v57 = vmul.f32 %v2799_v24, %v4582_v5 }
0x175a   : > { %v2829_v15 = vadd.f32 1e-05, %v2821_v57 }
0x175c   : > { %4141 = vrsqrt.f32 %v2829_v15  ;;  %vm2843_vm9 = vweird.f32 %v2829_v15 }
0x175f   : > { %v2805_v29 = vpop.xlane.xlu0 %2804  ;;  %v2772_v30 = vpop.xlane.xlu2 %2771 }
0x1760   : > { %v2823_v58 = vmul.f32 %v2805_v29, %v4582_v5  ;;  %v2780_v34 = vmul.f32 %v2772_v30, %v4582_v5 }
0x1762   : > { %v4142_v19 = vpop.eup %4141  ;;  %v2831_v40 = vadd.f32 1e-05, %v2823_v58  ;;  %v5251_v39 = vsub.f32 %v4986_v12, %v2780_v34 }
0x1763   : > { %v2838_v46 = vmul.f32 %v4142_v19, %v2829_v15  ;;  %vm2844_vm7 = vweird.f32 %v4142_v19 }
0x1764   : > { %4143 = vrsqrt.f32 %v2831_v40  ;;  %v2796_v22 = vmul.f32 %v5251_v39, %v5251_v39  ;;  %vm2845_vm10 = vmor %vm2843_vm9, %vm2844_vm7  ;;  %vm2863_vm11 = vweird.f32 %v2831_v40 }
0x1765   : > { %v2839_v4 = vmul.f32 %v4142_v19, %v2838_v46 }
0x1766   : > { %v2818_v43 = vsel %vm836_vm0, %v2796_v22, 0.0 }
0x1767   : > { %v2840_v51 = vmul.f32 0.5, %v2839_v4  ;;  %v2814_v48 = vpop.xlane.xlu0 %2813  ;;  %2819 = vadd.xlane.f32.xlu0 %v2818_v43  ;;  %v2811_v44 = vpop.xlane.xlu2 %2810 }
0x1768   : > { %v2826_v49 = vmul.f32 %v2814_v48, %v4582_v5  ;;  %v2825_v52 = vmul.f32 %v2811_v44, %v4582_v5 }
0x1769   : > { %v2841_v54 = vsub.f32 1.5, %v2840_v51 }
0x176a   : > { %v4144_v12 = vpop.eup %4143  ;;  %v2834_v27 = vadd.f32 1e-05, %v2826_v49  ;;  %v5258_v35 = vadd.f32 1e-05, %v2825_v52 }
0x176b   : > { %v2842_v56 = vmul.f32 %v4142_v19, %v2841_v54  ;;  %v2858_v45 = vmul.f32 %v4144_v12, %v2831_v40  ;;  %vm2864_vm1 = vweird.f32 %v4144_v12 }
0x176c   : > { %4145 = vrsqrt.f32 %v2834_v27  ;;  %vm2865_vm12 = vmor %vm2863_vm11, %vm2864_vm1  ;;  %vm2893_vm15 = vweird.f32 %v2834_v27  ;;  %vm2883_vm5 = vweird.f32 %v5258_v35 }
0x176d   : > { %v2846_v14 = vsel %vm2845_vm10, %v4142_v19, %v2842_v56  ;;  %v2859_v60 = vmul.f32 %v4144_v12, %v2858_v45  ;;  %4147 = vrsqrt.f32 %v5258_v35 }
0x176e   : > { %v2917_v61 = vmul.f32 %v2846_v14, %v5181_v47  ;;  %v4069_v47 = vld [vmem:[%s5479_s11 + $0x1] ss:$0 sm:$0xff]  ;;  %v4184_v14 = vld [vmem:[%s4497_s5 + $0x10] sm:$0xff] }
0x176f   : > { %v2860_v62 = vmul.f32 0.5, %v2859_v60  ;;  %v2817_v59 = vpop.xlane.xlu2 %2816 }
0x1770   : > { %v2926_v32 = vmul.f32 %v5105_v50, %v2917_v61  ;;  %v2827_v18 = vmul.f32 %v2817_v59, %v4582_v5  ;;  %v4185_v61 = vld [vmem:[%s4497_s5 + $0x18] sm:$0xff] }
0x1771   : > { %v2861_v0 = vsub.f32 1.5, %v2860_v62  ;;  %v2964_v62 = vadd.f32 %v4185_v61, %v5160_v38 }
0x1772   : > { %v4146_v23 = vpop.eup %4145  ;;  %v2935_v1 = vadd.f32 %v5108_v53, %v2926_v32  ;;  %v5265_v2 = vadd.f32 1e-05, %v2827_v18 }
0x1773   : > { %v4148_v7 = vpop.eup %4147  ;;  %v2862_v6 = vmul.f32 %v4144_v12, %v2861_v0  ;;  %v2888_v17 = vmul.f32 %v4146_v23, %v2834_v27  ;;  %vm2894_vm13 = vweird.f32 %v4146_v23 }
0x1774   : > { %v2943_v41 = vpack.c.bf16 %v2935_v1, %v2935_v1  ;;  %v2961_v16 = vadd.f32 %v4183_v42, %v2935_v1  ;;  %v2878_v8 = vmul.f32 %v4148_v7, %v5258_v35  ;;  %4149 = vrsqrt.f32 %v5265_v2  ;;  %vm2895_vm4 = vmor %vm2893_vm15, %vm2894_vm13 }
0x1775   : > { %v2866_v9 = vsel %vm2865_vm12, %v4144_v12, %v2862_v6  ;;  %v2889_v25 = vmul.f32 %v4146_v23, %v2888_v17  ;;  %vm2884_vm14 = vweird.f32 %v4148_v7  ;;  %vm2903_vm10 = vweird.f32 %v5265_v2 }
0x1776   : > { %3899 = vst.msk [vmem:[%s4852_s28 + $0x20] sm:$0xf] %vm1866_vm6, %v2943_v41  ;;  %v2919_v33 = vmul.f32 %v2866_v9, %v5190_v28  ;;  %v2879_v21 = vmul.f32 %v4148_v7, %v2878_v8  ;;  %v2665_v24 = vpop.f32.mrf.mxu2  ;;  %v3020_v55 = vpack.c.bf16 %v2962_v20, %v2961_v16  ;;  %v3095_v57 = vunpack.c.l.b16 %v2943_v41  ;;  %vm2885_vm7 = vmor %vm2883_vm5, %vm2884_vm14 }
0x1777   : > { %3423 = vst.msk [vmem:[%s5118_s4] sm:$0xf] %vm1866_vm6, %v2943_v41  ;;  %v2890_v26 = vmul.f32 0.5, %v2889_v25  ;;  %v2666_v15 = vadd.f32 %v4069_v47, %v2665_v24 }
0x1778   : > { %v2928_v29 = vmul.f32 %v5105_v50, %v2919_v33  ;;  %v2880_v30 = vmul.f32 0.5, %v2879_v21  ;;  %3932 = vmatmul.msk.bf16.vlgmr.msra.gmra.mxu1 %vm836_vm0, %v3020_v55  ;;  %v3103_v58 = vpack.c.b16 %v3096_v31, %v3095_v57 }
0x1779   : > { %v2891_v34 = vsub.f32 1.5, %v2890_v26  ;;  %v2669_v36 = vmax.f32 %v2666_v15, 0.0 }
0x177a   : > { %v2881_v19 = vsub.f32 1.5, %v2880_v30  ;;  %3944 = vmatmul.msk.bf16.vlgmr.msra.gmra.mxu2 %vm836_vm0, %v3103_v58  ;;  %v2937_v28 = vadd.f32 %v5108_v53, %v2928_v29  ;;  %v4150_v40 = vpop.eup %4149 }
0x177b   : > { %v2892_v46 = vmul.f32 %v4146_v23, %v2891_v34  ;;  %v2670_v22 = vpack.c.bf16 %v2669_v36, %v2669_v36  ;;  %v2898_v43 = vmul.f32 %v4150_v40, %v5265_v2  ;;  %vm2904_vm9 = vweird.f32 %v4150_v40  ;;  %v4188_v36 = vld [vmem:[%s4497_s5 + $0x30] sm:$0xff] }
0x177c   : > { %v2882_v4 = vmul.f32 %v4148_v7, %v2881_v19  ;;  %v2945_v51 = vpack.c.bf16 %v2937_v28, %v2937_v28  ;;  %v2963_v60 = vadd.f32 %v4184_v14, %v2937_v28  ;;  %vm2905_vm1 = vmor %vm2903_vm10, %vm2904_vm9  ;;  %v4189_v28 = vld [vmem:[%s4497_s5 + $0x38] sm:$0xff] }
0x177d   : > { %v2896_v48 = vsel %vm2895_vm4, %v4146_v23, %v2892_v46  ;;  %3898 = vmatmul.msk.bf16.vlgmr.msrb.gmra.mxu3 %vm1347_vm8, %v2670_v22  ;;  %v2899_v52 = vmul.f32 %v4150_v40, %v2898_v43 }
0x177e   : > { %v2922_v44 = vmul.f32 %v2896_v48, %v5198_v63  ;;  %v2886_v49 = vsel %vm2885_vm7, %v4148_v7, %v2882_v4  ;;  %v2667_v54 = vpop.f32.mrf.mxu2  ;;  %3901 = vst.msk [vmem:[%s4852_s28 + $0x28] sm:$0xf] %vm1866_vm6, %v2945_v51  ;;  %v3097_v32 = vunpack.c.l.b16 %v2945_v51  ;;  %v3021_v1 = vpack.c.bf16 %v2964_v62, %v2963_v60  ;;  %v4004_v60 = vld [vmem:[%s5483_s15 + $0x8] sm:$0xff] }
0x177f   : > { %v2921_v12 = vmul.f32 %v2886_v49, %v5209_v13  ;;  %3425 = vst.msk [vmem:[%s5118_s4 + $0x8] sm:$0xf] %vm1866_vm6, %v2945_v51  ;;  %v2900_v35 = vmul.f32 0.5, %v2899_v52  ;;  %v3098_v7 = vunpack.c.l.b16 %v5164_v37  ;;  %3012 = vmatpush.bf16.msra.mxu0 %v4004_v60 }
0x1780   : > { %v2931_v27 = vmul.f32 %v5105_v50, %v2922_v44 }
0x1781   : > { %v2930_v56 = vmul.f32 %v5105_v50, %v2921_v12  ;;  %v2901_v45 = vsub.f32 1.5, %v2900_v35  ;;  %v3104_v2 = vpack.c.b16 %v3098_v7, %v3097_v32 }
0x1782   : > { %v2940_v63 = vadd.f32 %v5108_v53, %v2931_v27 }
0x1783   : > { %v2939_v13 = vadd.f32 %v5108_v53, %v2930_v56  ;;  %v2902_v59 = vmul.f32 %v4150_v40, %v2901_v45 }
0x1784   : > { %v2948_v18 = vpack.c.bf16 %v2940_v63, %v2940_v63  ;;  %v2966_v20 = vadd.f32 %v4187_v10, %v2940_v63  ;;  %v4003_v63 = vld [vmem:[%s5483_s15] sm:$0xff] }
0x1785   : > { %v2947_v0 = vpack.c.bf16 %v2939_v13, %v2939_v13  ;;  %v2906_v23 = vsel %vm2905_vm1, %v4150_v40, %v2902_v59  ;;  %3013 = vmatpush.bf16.msra.mxu0 %v4003_v63 }
0x1786   : > { %3904 = vst.msk [vmem:[%s4852_s28 + $0x34] sm:$0xf] %vm1866_vm6, %v2948_v18  ;;  %v2923_v38 = vmul.f32 %v2906_v23, %v5218_v11  ;;  %v4186_v11 = vld [vmem:[%s4497_s5 + $0x20] sm:$0xff]  ;;  %v3100_v42 = vunpack.c.l.b16 %v2948_v18 }
0x1787   : > { %3903 = vst.msk [vmem:[%s4852_s28 + $0x30] sm:$0xf] %vm1866_vm6, %v2947_v0  ;;  %v2965_v47 = vadd.f32 %v4186_v11, %v2939_v13  ;;  %v3099_v41 = vunpack.c.l.b16 %v2947_v0 }
0x1788   : > { %3933 = vmatmul.msk.bf16.gmra.mxu1 %vm836_vm0, %v3021_v1  ;;  %3427 = vst.msk [vmem:[%s5118_s4 + $0x10] sm:$0xf] %vm1866_vm6, %v2947_v0  ;;  %v2932_v6 = vmul.f32 %v5105_v50, %v2923_v38 }
0x1789   : > { %3428 = vst.msk [vmem:[%s5118_s4 + $0x14] sm:$0xf] %vm1866_vm6, %v2948_v18  ;;  %v3022_v16 = vpack.c.bf16 %v2966_v20, %v2965_v47  ;;  %v3105_v8 = vpack.c.b16 %v3100_v42, %v3099_v41  ;;  %v4070_v18 = vld [vmem:[%s5549_s23 + $0x1] ss:$0 sm:$0xff]  ;;  %v4071_v47 = vld [vmem:[%s5549_s23 + $0x2] ss:$0 sm:$0xff] }
0x178a   : > { %3945 = vmatmul.msk.bf16.gmra.mxu2 %vm836_vm0, %v3104_v2  ;;  %v2941_v37 = vadd.f32 %v5108_v53, %v2932_v6 }
0x178c   : > { %v2949_v17 = vpack.c.bf16 %v2941_v37, %v2941_v37  ;;  %v2967_v19 = vadd.f32 %v4188_v36, %v2941_v37 }
0x178e   : > { %3905 = vst.msk [vmem:[%s4852_s28 + $0x38] sm:$0xf] %vm1866_vm6, %v2949_v17  ;;  %v3101_v22 = vunpack.c.l.b16 %v2949_v17 }
0x178f   : > { %3429 = vst.msk [vmem:[%s5118_s4 + $0x18] sm:$0xf] %vm1866_vm6, %v2949_v17 }
0x1798   : > { %3934 = vmatmul.msk.bf16.gmra.mxu1 %vm836_vm0, %v3022_v16 }
0x179a   : > { %3946 = vmatmul.msk.bf16.gmra.mxu2 %vm836_vm0, %v3105_v8 }
0x17da   : > { %v2820_v9 = vpop.xlane.xlu0 %2819 }
0x17db   : > { %v2828_v25 = vmul.f32 %v2820_v9, %v4582_v5 }
0x17dd   : > { %v2836_v31 = vadd.f32 1e-05, %v2828_v25 }
0x17df   : > { %4151 = vrsqrt.f32 %v2836_v31  ;;  %vm2913_vm12 = vweird.f32 %v2836_v31 }
0x17e5   : > { %v4152_v33 = vpop.eup %4151 }
0x17e6   : > { %v2908_v21 = vmul.f32 %v4152_v33, %v2836_v31  ;;  %vm2914_vm11 = vweird.f32 %v4152_v33 }
0x17e7   : > { %vm2915_vm13 = vmor %vm2913_vm12, %vm2914_vm11 }
0x17e8   : > { %v2909_v24 = vmul.f32 %v4152_v33, %v2908_v21 }
0x17ea   : > { %v2910_v55 = vmul.f32 0.5, %v2909_v24 }
0x17ec   : > { %v2911_v57 = vsub.f32 1.5, %v2910_v55 }
0x17ee   : > { %v2912_v26 = vmul.f32 %v4152_v33, %v2911_v57 }
0x17f0   : > { %v2916_v15 = vsel %vm2915_vm13, %v4152_v33, %v2912_v26 }
0x17f1   : > { %v2924_v29 = vmul.f32 %v2916_v15, %v5251_v39 }
0x17f3   : > { %v2933_v30 = vmul.f32 %v5105_v50, %v2924_v29  ;;  %v4072_v50 = vld [vmem:[%s5481_s13 + $0x1] ss:$0 sm:$0xff] }
0x17f5   : > { %v2942_v58 = vadd.f32 %v5108_v53, %v2933_v30  ;;  %v3058_v49 = vpop.f32.mrf.mxu1 }
0x17f6   : > { %v3059_v41 = vadd.f32 %v4070_v18, %v3058_v49 }
0x17f7   : > { %v2950_v34 = vpack.c.bf16 %v2942_v58, %v2942_v58  ;;  %v2968_v40 = vadd.f32 %v4189_v28, %v2942_v58 }
0x17f8   : > { %v3078_v24 = vpack.c.bf16 %v3059_v41, %v3059_v41 }
0x17f9   : > { %3906 = vst.msk [vmem:[%s4852_s28 + $0x3c] sm:$0xf] %vm1866_vm6, %v2950_v34  ;;  %v3023_v46 = vpack.c.bf16 %v2968_v40, %v2967_v19  ;;  %v3102_v4 = vunpack.c.l.b16 %v2950_v34 }
0x17fa   : > { %3430 = vst.msk [vmem:[%s5118_s4 + $0x1c] sm:$0xf] %vm1866_vm6, %v2950_v34 }
0x17fb   : > { %3935 = vmatmul.msk.bf16.gmra.mxu1 %vm836_vm0, %v3023_v46  ;;  %v3106_v43 = vpack.c.b16 %v3102_v4, %v3101_v22  ;;  %v3176_v22 = vunpack.c.l.b16 %v3078_v24 }
0x17fd   : > { %3947 = vmatmul.msk.bf16.gmra.mxu2 %vm836_vm0, %v3106_v43  ;;  %v5341_v52 = vpop.f32.mrf.mxu2  ;;  %v3060_v54 = vpop.f32.mrf.mxu1 }
0x17fe   : > { %v3061_v11 = vadd.f32 %v4070_v18, %v3060_v54 }
0x1800   : > { %v2718_v53 = vpop.f32.mrf.mxu3  ;;  %v3079_v25 = vpack.c.bf16 %v3061_v11, %v3061_v11 }
0x1801   : > { %v2719_v39 = vadd.f32 %v4072_v50, %v2718_v53 }
0x1802   : > { %v3177_v34 = vunpack.c.l.b16 %v3079_v25 }
0x1803   : > { %v2722_v51 = vadd.f32 %v2719_v39, %v5206_v3 }
0x1805   : > { %v2723_v48 = vsel %vm836_vm0, %v2722_v51, 0.0  ;;  %v5343_v12 = vpop.f32.mrf.mxu2  ;;  %v3063_v27 = vpop.f32.mrf.mxu1 }
0x1806   : > { %2724 = vadd.xlane.f32.xlu1 %v2723_v48  ;;  %v3064_v36 = vadd.f32 %v4070_v18, %v3063_v27  ;;  %v3184_v48 = vpack.c.b16 %v3177_v34, %v3176_v22 }
0x1808   : > { %v2720_v44 = vpop.f32.mrf.mxu3  ;;  %v3080_v49 = vpack.c.bf16 %v3064_v36, %v3064_v36 }
0x1809   : > { %v3143_v44 = vadd.f32 %v4071_v47, %v5343_v12 }
0x180a   : > { %v3178_v63 = vunpack.c.l.b16 %v3080_v49 }
0x180d   : > { %v3145_v35 = vpop.f32.mrf.mxu2  ;;  %v3065_v56 = vpop.f32.mrf.mxu1 }
0x180e   : > { %v3066_v55 = vadd.f32 %v4070_v18, %v3065_v56  ;;  %v3146_v43 = vadd.f32 %v4071_v47, %v3145_v35 }
0x1810   : > { %v3081_v4 = vpack.c.bf16 %v3066_v55, %v3066_v55  ;;  %v3162_v60 = vpack.c.bf16 %v3146_v43, %v3146_v43 }
0x1815   : > { %v3147_v45 = vpop.f32.mrf.mxu2  ;;  %v3068_v14 = vpop.f32.mrf.mxu1 }
0x1816   : > { %v3069_v10 = vadd.f32 %v4070_v18, %v3068_v14  ;;  %v3148_v28 = vadd.f32 %v4071_v47, %v3147_v45  ;;  %v3141_v14 = vadd.f32 %v4071_v47, %v5341_v52  ;;  %v3179_v45 = vunpack.c.l.b16 %v3081_v4 }
0x1818   : > { %v3082_v31 = vpack.c.bf16 %v3069_v10, %v3069_v10  ;;  %v3163_v54 = vpack.c.bf16 %v3148_v28, %v3148_v28 }
0x181a   : > { %v3180_v19 = vunpack.c.l.b16 %v3082_v31 }
0x181d   : > { %v3150_v3 = vpop.f32.mrf.mxu2  ;;  %v3070_v61 = vpop.f32.mrf.mxu1 }
0x181e   : > { %v3071_v6 = vadd.f32 %v4070_v18, %v3070_v61  ;;  %v3151_v57 = vadd.f32 %v4071_v47, %v3150_v3  ;;  %v3161_v61 = vpack.c.bf16 %v3143_v44, %v3143_v44 }
0x1820   : > { %v3083_v42 = vpack.c.bf16 %v3071_v6, %v3071_v6  ;;  %v3164_v53 = vpack.c.bf16 %v3151_v57, %v3151_v57  ;;  %v3237_v52 = vunpack.c.l.b16 %v3161_v61  ;;  %v2986_v61 = vld [vmem:[%s5550_s1] sm:$0xf] }
0x1822   : > { %v3181_v15 = vunpack.c.l.b16 %v3083_v42  ;;  %v3240_v3 = vunpack.c.l.b16 %v3164_v53  ;;  %v4190_v42 = vld [vmem:[%s5482_s14 + $0x8] sm:$0xff] }
0x1824   : > { %v5365_v50 = vpack.c.b16 %v3181_v15, %v3180_v19  ;;  %v4073_v15 = vld [vmem:[%s5549_s23] ss:$0 sm:$0xff] }
0x1825   : > { %v3152_v62 = vpop.f32.mrf.mxu2 }
0x1826   : > { %v3153_v33 = vadd.f32 %v4071_v47, %v3152_v62  ;;  %v3198_v35 = vsel %vm928_vm2, %v5365_v50, 0  ;;  %v3239_v62 = vunpack.c.l.b16 %v3163_v54 }
0x1828   : > { %v3165_v40 = vpack.c.bf16 %v3153_v33, %v3153_v33 }
0x182a   : > { %v3241_v56 = vunpack.c.l.b16 %v3165_v40 }
0x182c   : > { %v3246_v12 = vpack.c.b16 %v3241_v56, %v3240_v3 }
0x1878   : > { %v3073_v13 = vpop.f32.mrf.mxu1 }
0x1879   : > { %v2725_v59 = vpop.xlane.xlu1 %2724  ;;  %v3074_v23 = vadd.f32 %v4070_v18, %v3073_v13  ;;  %v3160_v13 = vpack.c.bf16 %v3141_v14, %v3141_v14 }
0x187a   : > { %v2726_v32 = vmul.f32 %v2725_v59, %v4582_v5  ;;  %v5372_v59 = vpack.c.b16 %v3179_v45, %v3178_v63 }
0x187b   : > { %v3084_v37 = vpack.c.bf16 %v3074_v23, %v3074_v23  ;;  %v3236_v23 = vunpack.c.l.b16 %v3160_v13 }
0x187c   : > { %v5355_v0 = vsub.f32 %v2722_v51, %v2726_v32  ;;  %v3238_v32 = vunpack.c.l.b16 %v3162_v60 }
0x187d   : > { %v3182_v16 = vunpack.c.l.b16 %v3084_v37 }
0x187e   : > { %v2728_v1 = vmul.f32 %v5355_v0, %v5355_v0 }
0x1880   : > { %v3075_v7 = vpop.f32.mrf.mxu1  ;;  %v3155_v38 = vpop.f32.mrf.mxu2  ;;  %v2729_v2 = vsel %vm836_vm0, %v2728_v1, 0.0  ;;  %v3195_v1 = vsel %vm928_vm2, %v5372_v59, 0 }
0x1881   : > { %v3076_v17 = vadd.f32 %v4070_v18, %v3075_v7  ;;  %2730 = vadd.xlane.f32.xlu1 %v2729_v2  ;;  %v3156_v9 = vadd.f32 %v4071_v47, %v3155_v38  ;;  %v3245_v18 = vpack.c.b16 %v3239_v62, %v3238_v32  ;;  %v3244_v7 = vpack.c.b16 %v3237_v52, %v3236_v23 }
0x1882   : > { %v3192_v38 = vsel %vm928_vm2, %v3184_v48, 0  ;;  %v3374_v62 = vsel %vm944_vm3, %v2986_v61, 0 }
0x1883   : > { %v3085_v20 = vpack.c.bf16 %v3076_v17, %v3076_v17  ;;  %v3166_v29 = vpack.c.bf16 %v3156_v9, %v3156_v9  ;;  %v2747_v9 = vperm.slane %v4190_v42, 6 }
0x1885   : > { %v3183_v8 = vunpack.c.l.b16 %v3085_v20  ;;  %v3242_v39 = vunpack.c.l.b16 %v3166_v29 }
0x1887   : > { %v3187_v21 = vpack.c.b16 %v3183_v8, %v3182_v16  ;;  %v2745_v16 = vperm.slane %v4190_v42, 2 }
0x1888   : > { %v3157_v26 = vpop.f32.mrf.mxu2 }
0x1889   : > { %v3158_v30 = vadd.f32 %v4071_v47, %v3157_v26  ;;  %3280 = vrot.lane.b32.xlu0 %v3187_v21, %s4258_s19  ;;  %v3201_v58 = vsel %vm928_vm2, %v3187_v21, 0  ;;  %v4191_v21 = vld [vmem:[%s4442_s0] sm:$0xff] }
0x188a   : > { %3207 = vmatpush.bf16.xpose.msra.mxu3 %v3201_v58 }
0x188b   : > { %v3167_v46 = vpack.c.bf16 %v3158_v30, %v3158_v30 }
0x188d   : > { %v3243_v51 = vunpack.c.l.b16 %v3167_v46 }
0x188f   : > { %v3247_v27 = vpack.c.b16 %v3243_v51, %v3242_v39 }
0x1891   : > { %3274 = vrot.lane.b32.xlu0 %v3184_v48, %s4258_s19  ;;  %3259 = vmatpush.bf16.msrb.mxu0 %v3247_v27 }
0x1892   : > { %3208 = vmatpush.bf16.xpose.msra.mxu3 %v3198_v35 }
0x1895   : > { %3260 = vmatpush.bf16.msrb.mxu0 %v3246_v12 }
0x1899   : > { %3261 = vmatpush.bf16.msrb.mxu0 %v3245_v18 }
0x189a   : > { %3209 = vmatpush.bf16.xpose.msra.mxu3 %v3195_v1 }
0x189d   : > { %3262 = vmatpush.bf16.msrb.mxu0 %v3244_v7 }
0x18a2   : > { %3210 = vmatpush.bf16.xpose.msra.mxu3 %v3192_v38 }
0x18f4   : > { %v2731_v2 = vpop.xlane.xlu1 %2730 }
0x18f5   : > { %v2732_v6 = vmul.f32 %v2731_v2, %v4582_v5 }
0x18f7   : > { %v2733_v37 = vadd.f32 1e-05, %v2732_v6 }
0x18f9   : > { %4153 = vrsqrt.f32 %v2733_v37  ;;  %vm2740_vm14 = vweird.f32 %v2733_v37 }
0x18fb   : > { %v3281_v55 = vpop.permute.xlu0 %3280 }
0x18fc   : > { %v3295_v26 = vsel %vm928_vm2, %v3281_v55, 0 }
0x18ff   : > { %v4154_v17 = vpop.eup %4153 }
0x1900   : > { %v2735_v11 = vmul.f32 %v4154_v17, %v2733_v37  ;;  %vm2741_vm6 = vweird.f32 %v4154_v17 }
0x1901   : > { %vm2742_vm15 = vmor %vm2740_vm14, %vm2741_vm6 }
0x1902   : > { %v2736_v47 = vmul.f32 %v4154_v17, %v2735_v11 }
0x1903   : > { %v3275_v19 = vpop.permute.xlu0 %3274 }
0x1904   : > { %v2737_v10 = vmul.f32 0.5, %v2736_v47  ;;  %v3286_v63 = vsel %vm928_vm2, %v3275_v19, 0 }
0x1906   : > { %v2738_v20 = vsub.f32 1.5, %v2737_v10 }
0x1908   : > { %v2739_v41 = vmul.f32 %v4154_v17, %v2738_v20  ;;  %v2987_v20 = vld [vmem:[%s5550_s1 + $0x4] sm:$0xf] }
0x190a   : > { %v2743_v8 = vsel %vm2742_vm15, %v4154_v17, %v2739_v41  ;;  %v3355_v41 = vsel %vm944_vm3, %v2987_v20, 0 }
0x190b   : > { %v2744_v25 = vmul.f32 %v2743_v8, %v5355_v0 }
0x190d   : > { %v2746_v31 = vmul.f32 %v2745_v16, %v2744_v25 }
0x190f   : > { %v5382_v33 = vadd.f32 %v2747_v9, %v2746_v31  ;;  %v4074_v9 = vld [vmem:[%s5551_s26] ss:$0 sm:$0xff] }
0x1911   : > { %v2960_v24 = vadd.f32 %v4191_v21, %v5382_v33 }
0x1913   : > { %v2989_v57 = vpack.c.bf16 %v2960_v24, %v2960_v24 }
0x1915   : > { %3923 = vmatmul.msk.bf16.vlgmr.msra.gmra.mxu0 %vm836_vm0, %v2989_v57 }
0x1916   : > { %3301 = vmatpush.bf16.xpose.msra.mxu0 %v3295_v26 }
0x1992   : > { %v3015_v29 = vpop.f32.mrf.mxu0 }
0x1993   : > { %v3016_v30 = vadd.f32 %v4073_v15, %v3015_v29 }
0x1995   : > { %v3019_v0 = vpack.c.bf16 %v3016_v30, %v3016_v30 }
0x1997   : > { %v3270_v58 = vunpack.c.l.b16 %v3019_v0  ;;  %3948 = vmatmul.msk.bf16.vlgmr.msra.gmra.mxu3 %vm928_vm2, %v3019_v0 }
0x1999   : > { %v3271_v34 = vpack.c.b16 %v3270_v58, %v3270_v58 }
0x199a   : > { %v3017_v36 = vpop.f32.mrf.mxu0 }
0x199b   : > { %3272 = vrot.lane.b32.xlu0 %v3271_v34, %s4258_s19 }
0x19a3   : > { %3328 = vrot.lane.b32.xlu0 %v3247_v27, %s4258_s19 }
0x19ab   : > { %3326 = vrot.lane.b32.xlu0 %v3246_v12, %s4258_s19 }
0x19b3   : > { %3324 = vrot.lane.b32.xlu0 %v3245_v18, %s4258_s19 }
0x19bb   : > { %3322 = vrot.lane.b32.xlu0 %v3244_v7, %s4258_s19 }
0x1a0d   : > { %v3273_v28 = vpop.permute.xlu0 %3272 }
0x1a15   : > { %v3329_v40 = vpop.permute.xlu0 %3328 }
0x1a16   : > { %3341 = vmatpush.bf16.msrb.mxu3 %v3329_v40 }
0x1a1a   : > { %v3212_v46 = vpop.f32.mrf.mxu3 }
0x1a1b   : > { %v3216_v22 = vsel %vm1347_vm8, %v3212_v46, -inf }
0x1a1c   : > { %3217 = vmax.xlane.f32.xlu2 %v3216_v22 }
0x1a1d   : > { %v3327_v4 = vpop.permute.xlu0 %3326 }
0x1a1e   : > { %3342 = vmatpush.bf16.msrb.mxu3 %v3327_v4  ;;  %v4075_v4 = vld [vmem:[%s5554_s20] ss:$0 sm:$0xff] }
0x1a22   : > { %v3214_v43 = vpop.f32.mrf.mxu3 }
0x1a25   : > { %v3325_v53 = vpop.permute.xlu0 %3324 }
0x1a26   : > { %3343 = vmatpush.bf16.msrb.mxu3 %v3325_v53  ;;  %v4076_v53 = vld [vmem:[%s5554_s20 + $0x1] ss:$0 sm:$0xff] }
0x1a2d   : > { %v3323_v39 = vpop.permute.xlu0 %3322 }
0x1a2e   : > { %3344 = vmatpush.bf16.msrb.mxu3 %v3323_v39 }
0x1a32   : > { %3364 = vmatpush.bf16.msra.mxu3 %v3355_v41 }
0x1a34   : > { %3278 = vrot.lane.b32.xlu2 %v5365_v50, %s4258_s19 }
0x1a8f   : > { %v3218_v51 = vpop.xlane.xlu2 %3217 }
0x1a90   : > { %v3219_v48 = vsub.f32 %v3212_v46, %v3218_v51 }
0x1a92   : > { %v3220_v44 = vmul.f32 1.442695, %v3219_v48 }
0x1a94   : > { %4155 = vpow2.f32 %v3220_v44 }
0x1a97   : > { %v3279_v49 = vpop.permute.xlu2 %3278 }
0x1a98   : > { %v3292_v54 = vsel %vm928_vm2, %v3279_v49, 0 }
0x1a99   : > { %3302 = vmatpush.bf16.xpose.msra.mxu0 %v3292_v54 }
0x1a9a   : > { %v4156_v56 = vpop.eup %4155 }
0x1a9b   : > { %v3222_v27 = vsel %vm1347_vm8, %v4156_v56, 0.0 }
0x1a9c   : > { %3223 = vadd.xlane.f32.xlu1 %v3222_v27 }
0x1ab5   : > { %3276 = vrot.lane.b32.xlu1 %v5372_v59, %s4258_s19  ;;  %s5555_s19 = sld [smem:[#allocation26_spill]] }
0x1abb   : > { %s3452_s5 = scalar_lea.hbm %s5555_s19, %s3955_s30  ;;  %s4212_s29 = scalar_lea.hbm %s5555_s19, 16 }
0x1abc   : > { %s3456_s1 = sshll.u32 %s3452_s5, 4  ;;  %s3457_s1 = int_to_ptr.hbm [resolvable:$true] %s3456_s1 }
0x1abd   : > { %s4206_s18 = sshra.s32 %s3457_s1, 4  ;;  %s4207_s18 = int_to_ptr.hbm [resolvable:$true] %s4206_s18 }
0x1abe   : > { %s4208_s30 = scalar_lea.hbm %s4207_s18, 8  ;;  %p4213_p0 = scmp.lt.s32.totalorder %s4207_s18, %s5555_s19 }
0x1abf   : > { %p4209_p11 = scmp.ne.s32.totalorder %s4207_s18, %s4208_s30  ;;  %p4214_p1 = scmp.lt.s32.totalorder %s4212_s29, %s4208_s30 }
0x1ac1   : > { %p4210_p12 = pnand %p4209_p11, %p4412_p5  ;;  %p4215_p2 = por %p4214_p1, %p4213_p0 }
0x1ac3   : > { %p4211_p13 = pneg %p4210_p12 }
0x1ac5   : > { %p4216_p3 = pnand %p4215_p2, %p4211_p13 }
0x1b0f   : > { %v3224_v14 = vpop.xlane.xlu1 %3223 }
0x1b10   : > { %4157 = vrcp.f32 %v3224_v14 }
0x1b16   : > { %v4158_v45 = vpop.eup %4157 }
0x1b17   : > { %v3226_v60 = vmul.f32 %v4158_v45, %v4156_v56 }
0x1b19   : > { %v3227_v50 = vpack.c.bf16 %v3226_v60, %v3226_v60 }
0x1b1b   : > { %3949 = vmatmul.msk.bf16.vlgmr.msrb.gmra.mxu0 %vm1347_vm8, %v3227_v50 }
0x1b27   : > { %v3277_v3 = vpop.permute.xlu1 %3276 }
0x1b28   : > { %v3289_v35 = vsel %vm928_vm2, %v3277_v3, 0 }
0x1b29   : > { %3303 = vmatpush.bf16.xpose.msra.mxu0 %v3289_v35 }
0x1b31   : > { %3304 = vmatpush.bf16.xpose.msra.mxu0 %v3286_v63 }
0x1b38   : > { %3950 = vmatmul.msk.bf16.vlgmr.msra.gmra.mxu0 %vm928_vm2, %v3273_v28 }
0x1b39   : > { %3383 = vmatpush.bf16.msrb.mxu0 %v3374_v62 }
0x1b98   : > { %v3264_v12 = vpop.f32.mrf.mxu0 }
0x1b99   : > { %v3268_v13 = vpack.c.bf16 %v3264_v12, %v3264_v12 }
0x1b9b   : > { %3953 = vmatmul.msk.bf16.vlgmr.msrb.gmra.mxu0 %vm928_vm2, %v3268_v13 }
0x1ba0   : > { %v3266_v59 = vpop.f32.mrf.mxu0 }
0x1bb5   : > { %v3306_v32 = vpop.f32.mrf.mxu0 }
0x1bb6   : > { %v3310_v52 = vsel %vm1347_vm8, %v3306_v32, -inf }
0x1bb7   : > { %3311 = vmax.xlane.f32.xlu2 %v3310_v52 }
0x1bbd   : > { %v3308_v18 = vpop.f32.mrf.mxu0 }
0x1c18   : > { %v3385_v23 = vpop.f32.mrf.mxu0 }
0x1c20   : > { %v3387_v1 = vpop.f32.mrf.mxu0 }
0x1c2a   : > { %v3312_v7 = vpop.xlane.xlu2 %3311 }
0x1c2b   : > { %v3313_v38 = vsub.f32 %v3306_v32, %v3312_v7 }
0x1c2d   : > { %v3314_v2 = vmul.f32 1.442695, %v3313_v38 }
0x1c2f   : > { %4159 = vpow2.f32 %v3314_v2 }
0x1c35   : > { %v4160_v6 = vpop.eup %4159 }
0x1c36   : > { %v3316_v37 = vsel %vm1347_vm8, %v4160_v6, 0.0 }
0x1c37   : > { %3317 = vadd.xlane.f32.xlu1 %v3316_v37 }
0x1caa   : > { %v3318_v17 = vpop.xlane.xlu1 %3317 }
0x1cab   : > { %4161 = vrcp.f32 %v3318_v17 }
0x1cb1   : > { %v4162_v11 = vpop.eup %4161 }
0x1cb2   : > { %v3320_v47 = vmul.f32 %v4162_v11, %v4160_v6 }
0x1cb4   : > { %v3321_v10 = vpack.c.bf16 %v3320_v47, %v3320_v47 }
0x1cb6   : > { %3951 = vmatmul.msk.bf16.vlgmr.msrb.gmra.mxu3 %vm1347_vm8, %v3321_v10 }
0x1d39   : > { %v3346_v42 = vpop.f32.mrf.mxu3 }
0x1d3a   : > { %v3350_v16 = vpack.c.bf16 %v3346_v42, %v3346_v42 }
0x1d3c   : > { %3952 = vmatmul.msk.bf16.vlgmr.msra.gmra.mxu3 %vm928_vm2, %v3350_v16 }
0x1d41   : > { %v3348_v8 = vpop.f32.mrf.mxu3 }
0x1dbf   : > { %v3366_v25 = vpop.f32.mrf.mxu3 }
0x1dc0   : > { %v3386_v31 = vadd.f32 %v3385_v23, %v3366_v25 }
0x1dc2   : > { %v3392_v21 = vadd.f32 %v4074_v9, %v3386_v31 }
0x1dc4   : > { %v3393_v24 = vadd.f32 %v3392_v21, %v5382_v33 }
0x1dc6   : > { %v3396_v55 = vsel %vm836_vm0, %v3393_v24, 0.0 }
0x1dc7   : > { %3397 = vadd.xlane.f32.xlu0 %v3396_v55  ;;  %v3368_v57 = vpop.f32.mrf.mxu3 }
0x1e3a   : > { %v3398_v26 = vpop.xlane.xlu0 %3397 }
0x1e3b   : > { %v3399_v15 = vmul.f32 %v3398_v26, %v4582_v5 }
0x1e3d   : > { %v3400_v29 = vsub.f32 %v3393_v24, %v3399_v15 }
0x1e3f   : > { %v3401_v30 = vmul.f32 %v3400_v29, %v3400_v29 }
0x1e41   : > { %v3402_v0 = vsel %vm836_vm0, %v3401_v30, 0.0 }
0x1e42   : > { %3403 = vadd.xlane.f32.xlu2 %v3402_v0 }
0x1eb5   : > { %v3404_v58 = vpop.xlane.xlu2 %3403 }
0x1eb6   : > { %v3405_v34 = vmul.f32 %v3404_v58, %v4582_v5 }
0x1eb8   : > { %v3406_v36 = vadd.f32 1e-05, %v3405_v34 }
0x1eba   : > { %4163 = vrsqrt.f32 %v3406_v36  ;;  %vm3413_vm3 = vweird.f32 %v3406_v36 }
0x1ec0   : > { %v4164_v33 = vpop.eup %4163 }
0x1ec1   : > { %v3408_v19 = vmul.f32 %v4164_v33, %v3406_v36  ;;  %vm3414_vm2 = vweird.f32 %v4164_v33 }
0x1ec2   : > { %vm3415_vm8 = vmor %vm3413_vm3, %vm3414_vm2 }
0x1ec3   : > { %v3409_v28 = vmul.f32 %v4164_v33, %v3408_v19 }
0x1ec5   : > { %v3410_v40 = vmul.f32 0.5, %v3409_v28 }
0x1ec7   : > { %v3411_v46 = vsub.f32 1.5, %v3410_v40 }
0x1ec9   : > { %v3412_v22 = vmul.f32 %v4164_v33, %v3411_v46 }
0x1ecb   : > { %v3416_v5 = vsel %vm3415_vm8, %v4164_v33, %v3412_v22 }
0x1ecc   : > { %v3417_v43 = vmul.f32 %v3416_v5, %v3400_v29 }
0x1ece   : > { %v3419_v39 = vmul.f32 %v4075_v4, %v3417_v43 }
0x1ed0   : > { %v3421_v51 = vadd.f32 %v4076_v53, %v3419_v39 }
0x1ed2   : > { %3422 = vst.msk [vmem:[%s720_s6] sm:$0xff] %vm836_vm0, %v3421_v51 }
0x1ed3   : > { %4219 = shalt.err (!%p4216_p3)
}
0x1ed4   : > { %4009 = dma.vmem_to_hbm [thread:$0]  (%p4412_p5), %s3455_s2, 128, %s3457_s1, %s3432_s16  }
0x1ed5 PF: > { %s5557_s3 = sld [smem:[#allocation8_spill]] }
0x1ed6   : > { %s5558_s26 = sld [smem:[#allocation5_spill]] }
0x1edb   : > { %p4015_p4 = scmp.ge.s32.totalorder %s5557_s3, 2 }
0x1edc   : > { %s3474_s7 = sand.u32 1, %s5558_s26  }
0x1edd   : > { %p4012_p7 = pnand %p4015_p4, %p4416_p6  ;;  %s3475_s0 = scalar_lea.sflag [#allocation3], %s3474_s7 }
0x1edf   : > { %p4013_p8 = pneg %p4012_p7 }
0x1ee1   : > { %4237 = dma.done.wait (%p4013_p8), %s3475_s0, 128  }
0x1ee2   : > { %4239 = vsyncadd (%p4013_p8), %s3475_s0, 4294967168  ;;  %s5560_s30 = sld [smem:[#allocation10_spill]] }
0x1ee3   : > { %s5561_s3 = sld [smem:[#allocation6_spill]] }
0x1ee4   : > { %s5562_s28 = sld [smem:[#allocation7_spill]] }
0x1ee5   : > { %s5563_s29 = sld [smem:[#allocation11_spill]] }
0x1ee8   : > { %p33_p9 = scmp.ge.s32.totalorder %s5560_s30, 4  }
0x1eea   :  { %35 = sbr.rel (!%p33_p9) target bundleno = 17 (0x11), region = 187 }
0x1eef   :  { %3497 = vsyncpa [#allocation3], 1 }
0x1ef0   :  { %3499 = vsyncpa [#allocation3 + $0x1], 1 }

// kernel: tpu_custom_call.1
= control target key start
LH: loop header
LB: loop body
LE: loop exit
PB: predicated region body
PF: predicated region fallthrough
CT: control target
= control target key end

     0   :  { %s5468_s0 = inlined_call_operand.vmem [shape: f32[2,8,32], index: 0, kind: input, shape index: {}]   ;;  %s5469_s1 = inlined_call_operand.vmem [shape: f32[2,64,32], index: 1, kind: input, shape index: {}]   ;;  %s5470_s2 = inlined_call_operand.vmem [shape: f32[2,64,32], index: 2, kind: input, shape index: {}]   ;;  %s5471_s3 = inlined_call_operand.vmem [shape: f32[2,64,32], index: 3, kind: input, shape index: {}]   ;;  %s5472_s4 = inlined_call_operand.vmem [shape: bf16[8,32,32], index: 4, kind: input, shape index: {}]   ;;  %s5473_s5 = inlined_call_operand.vmem [shape: f32[8,32], index: 5, kind: input, shape index: {}]   ;;  %s5474_s6 = inlined_call_operand.vmem [shape: bf16[6,32,16], index: 6, kind: input, shape index: {}]   ;;  %s5475_s7 = inlined_call_operand.vmem [shape: f32[6,16], index: 7, kind: input, shape index: {}]   ;;  %s5476_s8 = inlined_call_operand.vmem [shape: bf16[2,16,32], index: 8, kind: input, shape index: {}]   ;;  %s5477_s9 = inlined_call_operand.vmem [shape: f32[2,32], index: 9, kind: input, shape index: {}]   ;;  %s5478_s10 = inlined_call_operand.vmem [shape: bf16[2,32,64], index: 10, kind: input, shape index: {}]   ;;  %s5479_s11 = inlined_call_operand.vmem [shape: f32[2,64], index: 11, kind: input, shape index: {}]   ;;  %s5480_s12 = inlined_call_operand.vmem [shape: bf16[2,64,32], index: 12, kind: input, shape index: {}]   ;;  %s5481_s13 = inlined_call_operand.vmem [shape: f32[2,32], index: 13, kind: input, shape index: {}]   ;;  %s5482_s14 = inlined_call_operand.vmem [shape: f32[2,8,32], index: 14, kind: input, shape index: {}]   ;;  %s5483_s15 = inlined_call_operand.vmem [shape: bf16[3,32,16], index: 15, kind: input, shape index: {}]   ;;  %s5484_s16 = inlined_call_operand.vmem [shape: f32[3,16], index: 16, kind: input, shape index: {}]   ;;  %s5485_s17 = inlined_call_operand.vmem [shape: bf16[16,32], index: 17, kind: input, shape index: {}]   ;;  %s5486_s18 = inlined_call_operand.vmem [shape: f32[1,32], index: 18, kind: input, shape index: {}]   ;;  %s5487_s19 = inlined_call_operand.vmem [shape: f32[2,32], index: 19, kind: input, shape index: {}]   ;;  %s5488_s20 = inlined_call_operand.hbm [shape: f32[2,8,32], index: 20, kind: output, shape index: {0}]   ;;  %s5489_s21 = inlined_call_operand.vmem [shape: bf16[2,64,32], index: 21, kind: output, shape index: {1}]   ;;  %s5490_s22 = inlined_call_operand.vmem [shape: bf16[2,2,64,32], index: 22, kind: output, shape index: {2}]  }
   0x1   :  { %5511 = sst [smem:[#allocation14_spill]] %s5468_s0 }
   0x2   :  { %5512 = sst [smem:[#allocation15_spill]] %s5469_s1 }
   0x3   :  { %5513 = sst [smem:[#allocation16_spill]] %s5470_s2 }
   0x4   :  { %5514 = sst [smem:[#allocation17_spill]] %s5471_s3 }
   0x5   :  { %5515 = sst [smem:[#allocation18_spill]] %s5472_s4 }
   0x6   :  { %5516 = sst [smem:[#allocation19_spill]] %s5473_s5 }
   0x7   :  { %5517 = sst [smem:[#allocation20_spill]] %s5474_s6 }
   0x8   :  { %5518 = sst [smem:[#allocation21_spill]] %s5475_s7 }
   0x9   :  { %5519 = sst [smem:[#allocation22_spill]] %s5484_s16 }
   0xa   :  { %5520 = sst [smem:[#allocation23_spill]] %s5485_s17 }
   0xb   :  { %5521 = sst [smem:[#allocation24_spill]] %s5486_s18 }
   0xc   :  { %5522 = sst [smem:[#allocation25_spill]] %s5487_s19 }
   0xd   :  { %5523 = sst [smem:[#allocation26_spill]] %s5488_s20 }
   0xe   :  { %28 = vsyncpa [#allocation3], 0 }
   0xf   :  { %30 = vsyncpa [#allocation3 + $0x1], 0  ;;  %s4374_s3 = smov 0   ;;  %s4376_s28 = smov 0  }
  0x10   :  { %s4378_s29 = smov 0   ;;  %s4380_s30 = smov 0  }
  0x11 LB: > { %5524 = sst [smem:[#allocation5_spill]] %s4242_s3  ;;  %s4395_s4 = sadd.s32 4294967295, %s4254_s30   ;;  %s4254_s30 = sphi %s4380_s30, %s5560_s30   ;;  %s4250_s29 = sphi %s4378_s29, %s5563_s29   ;;  %s4246_s28 = sphi %s4376_s28, %s5562_s28   ;;  %s4242_s3 = sphi %s4374_s3, %s5561_s3  }
  0x12   : > { %5525 = sst [smem:[#allocation6_spill]] %s4246_s28  ;;  %s3608_s0 = sadd.s32 4294967294, %s4254_s30  }
  0x13   : > { %5526 = sst [smem:[#allocation7_spill]] %s4250_s29  ;;  %s4399_s23 = sadd.s32 1, %s4254_s30  }
  0x14   : > { %5527 = sst [smem:[#allocation8_spill]] %s4254_s30  ;;  %s483_s1 = sadd.s32 1, %s4250_s29 }
  0x15   : > { %5528 = sst [smem:[#allocation9_spill]] %s4395_s4  ;;  %s480_s5 = ssub.s32 %s4254_s30, %s4399_s23 }
  0x16   : > { %5529 = sst [smem:[#allocation10_spill]] %s4399_s23  ;;  %p493_p0 = scmp.ne.s32.totalorder %s4250_s29, %s4246_s28 }
  0x17   : > { %p481_p1 = scmp.eq.s32.totalorder %s480_s5, 0  ;;  %p494_p2 = scmp.eq.s32.totalorder %s4395_s4, 1 }
  0x18   : > { %p499_p3 = scmp.ne.s32.totalorder %s4246_s28, %s4242_s3  ;;  %p500_p4 = scmp.eq.s32.totalorder %s3608_s0, 1 }
  0x19   : > { %s4410_s24 = scalar_select %p481_p1, %s4250_s29, %s483_s1  }
  0x1a   : > { %p4412_p5 = por %p494_p2, %p493_p0  ;;  %p4416_p6 = por %p500_p4, %p499_p3 }
  0x1b   : > { %5530 = sst [smem:[#allocation11_spill]] %s4410_s24  ;;  %p3611_p7 = scmp.ge.s32.totalorder %s4254_s30, 1 }
  0x1c   : > { %s5531_s6 = scalar_select %p4412_p5, 1, 0 }
  0x1d   : > { %s5533_s25 = scalar_select %p4416_p6, 1, 0 }
  0x1e   : > { %5532 = sst [smem:[#allocation12_spill]] %s5531_s6  ;;  %p649_p8 = scmp.lt.s32.totalorder %s4254_s30, 3 }
  0x1f   : > { %5534 = sst [smem:[#allocation13_spill]] %s5533_s25 }
  0x20   : > { %p650_p9 = pnand %p3611_p7, %p649_p8 }
  0x21   : > { %s5535_s27 = sld [smem:[#allocation18_spill]] (!%p650_p9)  ;;  %p735_p10 = scmp.lt.s32.totalorder (!%p650_p9), %s4395_s4, 1 }
  0x22   : > { %653 = sbr.rel (%p650_p9) target bundleno = 7893 (0x1ed5), region = 100  ;;  %s5536_s30 = sld [smem:[#allocation14_spill]] (!%p650_p9) }
  0x23   : > { %s5537_s24 = sld [smem:[#allocation19_spill]] (!%p650_p9)  ;;  %s5500_s1 = smov (!%p650_p9), 112  }
  0x24   : > { %s5541_s3 = sld [smem:[#allocation20_spill]] (!%p650_p9)  ;;  %s4258_s19 = smov (!%p650_p9), 120  }
  0x25   : > { %s5543_s7 = sld [smem:[#allocation21_spill]] (!%p650_p9)  ;;  %s5544_s20 = smov (!%p650_p9), 112  }
  0x26   : > { %s5549_s23 = sld [smem:[#allocation22_spill]] (!%p650_p9) }
  0x27   : > { %v3964_v0 = vld [vmem:[%s5535_s27 + $0x8] sm:$0xff]  ;;  %v3966_v1 = vld [vmem:[%s5535_s27 + $0x18] sm:$0xff]  ;;  %v3963_v2 = vld [vmem:[%s5535_s27] sm:$0xff]  ;;  %s4436_s25 = scalar_select %p735_p10, %s4395_s4, 1  ;;  %vm836_vm0 = vcmask 261120   ;;  %vm908_vm1 = vcmask 130048  }
  0x28   : > { %846 = vmatpush.bf16.msra.mxu0 %v3964_v0  ;;  %873 = vmatpush.bf16.msra.mxu1 %v3966_v1  ;;  %v3965_v3 = vld [vmem:[%s5535_s27 + $0x10] sm:$0xff]  ;;  %v3968_v26 = vld [vmem:[%s5535_s27 + $0x28] sm:$0xff]  ;;  %v3967_v27 = vld [vmem:[%s5535_s27 + $0x20] sm:$0xff]  ;;  %vm928_vm2 = vcmask 64512   ;;  %vm944_vm3 = vcmask 1043456   ;;  %s5540_s4 = sld [smem:[#allocation15_spill]] }
  0x29   : > { %s3613_s26 = sshll.u32 %s4436_s25, 3  ;;  %v4051_v6 = vld [vmem:[%s5537_s24] ss:$0 sm:$0xff]  ;;  %v4052_v7 = vld [vmem:[%s5537_s24 + $0x1] ss:$0 sm:$0xff]  ;;  %900 = vmatpush.bf16.msra.mxu2 %v3968_v26  ;;  %v3970_v60 = vld [vmem:[%s5535_s27 + $0x38] sm:$0xff] }
  0x2a   : > { %s4442_s0 = scalar_lea.vmem %s5536_s30, %s3613_s26  ;;  %v4053_v32 = vld [vmem:[%s5537_s24 + $0x2] ss:$0 sm:$0xff]  ;;  %v3969_v61 = vld [vmem:[%s5535_s27 + $0x30] sm:$0xff]  ;;  %s4491_s29 = sshll.u32 %s4436_s25, 6  ;;  %vm1347_vm8 = vcmask 523264  }
  0x2b   : > { %v4445_v4 = vld [vmem:[%s4442_s0] sm:$0xff]  ;;  %s5538_s30 = sld [smem:[#allocation16_spill]]  ;;  %s5542_s17 = smov %s5541_s3 }
  0x2c   : > { %847 = vmatpush.bf16.msra.mxu0 %v3963_v2  ;;  %874 = vmatpush.bf16.msra.mxu1 %v3965_v3  ;;  %v822_v5 = vpack.c.bf16 %v4445_v4, %v4445_v4  ;;  %s3961_s16 = sshll.u32 %s4436_s25, 5  ;;  %s5551_s26 = sld [smem:[#allocation24_spill]] }
  0x2d   : > { %901 = vmatpush.bf16.msra.mxu2 %v3967_v27  ;;  %s5553_s2 = sld [smem:[#allocation9_spill]] }
  0x2e   : > { %s4509_s28 = scalar_lea.vmem %s5540_s4, %s4491_s29  ;;  %s5118_s4 = scalar_lea.vmem %s5489_s21, %s3961_s16 }
  0x2f   : > { %3644 = vmatmul.msk.bf16.vlgmr.msra.gmra.mxu0 %vm836_vm0, %v822_v5  ;;  %3653 = vmatmul.msk.bf16.vlgmr.msra.gmra.mxu1 %vm836_vm0, %v822_v5 }
  0x30   : > { %3662 = vmatmul.msk.bf16.vlgmr.msra.gmra.mxu2 %vm836_vm0, %v822_v5  ;;  %v3974_v5 = vld [vmem:[%s5541_s3 + $0x18] sm:$0xff] }
  0x31   : > { %s4497_s5 = scalar_lea.vmem %s5538_s30, %s4491_s29 }
  0x33   : > { %s3955_s30 = sshll.u32 %s5553_s2, 3 }
  0xac   : > { %v849_v8 = vpop.f32.mrf.mxu0  ;;  %v876_v9 = vpop.f32.mrf.mxu1 }
  0xad   : > { %v850_v10 = vadd.f32 %v4051_v6, %v849_v8  ;;  %v877_v11 = vadd.f32 %v4052_v7, %v876_v9  ;;  %v3973_v6 = vld [vmem:[%s5542_s17 + $0x10] sm:$0xff]  ;;  %v766_v7 = vld [vmem:[%s4497_s5] sm:$0xff] }
  0xaf   : > { %v880_v12 = vpack.c.bf16 %v877_v11, %v877_v11  ;;  %v853_v13 = vpack.c.bf16 %v850_v10, %v850_v10  ;;  %v767_v10 = vld [vmem:[%s4497_s5 + $0x8] sm:$0xff]  ;;  %v782_v11 = vld [vmem:[%s4509_s28] sm:$0xff] }
  0xb1   : > { %v913_v14 = vsel %vm908_vm1, %v880_v12, 0  ;;  %v968_v15 = vunpack.c.l.b16 %v880_v12  ;;  %v963_v19 = vunpack.c.l.b16 %v853_v13  ;;  %v783_v12 = vld [vmem:[%s4509_s28 + $0x8] sm:$0xff] }
  0xb2   : > { %922 = vmatpush.bf16.xpose.msra.mxu3 %v913_v14 }
  0xb3   : > { %v969_v16 = vpack.c.b16 %v968_v15, %v968_v15  ;;  %v964_v20 = vpack.c.b16 %v963_v19, %v963_v19  ;;  %v903_v33 = vpop.f32.mrf.mxu2 }
  0xb4   : > { %v851_v17 = vpop.f32.mrf.mxu0  ;;  %v878_v18 = vpop.f32.mrf.mxu1  ;;  %v904_v34 = vadd.f32 %v4053_v32, %v903_v33 }
  0xb5   : > { %970 = vrot.lane.b32.xlu0 %v969_v16, %s5500_s1 }
  0xb6   : > { %v907_v36 = vpack.c.bf16 %v904_v34, %v904_v34 }
  0xb8   : > { %v946_v38 = vsel %vm944_vm3, %v907_v36, 0  ;;  %v1004_v48 = vunpack.c.l.b16 %v907_v36 }
  0xb9   : > { %3663 = vmatmul.msk.bf16.vlgmr.msra.gmra.mxu3 %vm908_vm1, %v853_v13  ;;  %955 = vmatpush.bf16.msrb.mxu0 %v946_v38 }
  0xba   : > { %v1005_v49 = vpack.c.b16 %v1004_v48, %v1004_v48  ;;  %1044 = vmatpush.bf16.msrb.mxu3 %v3970_v60  ;;  %v772_v60 = vld [vmem:[%s4497_s5 + $0x30] sm:$0xff] }
  0xbb   : > { %v905_v40 = vpop.f32.mrf.mxu2 }
  0xbc   : > { %v787_v40 = vld [vmem:[%s4509_s28 + $0x28] sm:$0xff] }
  0xbd   : > { %965 = vrot.lane.b32.xlu0 %v964_v20, %s5500_s1  ;;  %1066 = vmatpush.bf16.msra.mxu0 %v3969_v61  ;;  %v784_v20 = vld [vmem:[%s4509_s28 + $0x10] sm:$0xff]  ;;  %v773_v61 = vld [vmem:[%s4497_s5 + $0x38] sm:$0xff] }
 0x127   : > { %v971_v21 = vpop.permute.xlu0 %970 }
 0x128   : > { %v976_v22 = vsel %vm908_vm1, %v971_v21, 0  ;;  %v785_v21 = vld [vmem:[%s4509_s28 + $0x18] sm:$0xff] }
 0x129   : > { %985 = vmatpush.bf16.xpose.msrb.mxu1 %v976_v22 }
 0x12f   : > { %v966_v23 = vpop.permute.xlu0 %965 }
 0x130   : > { %3665 = vmatmul.msk.bf16.vlgmr.msrb.gmra.mxu1 %vm908_vm1, %v966_v23 }
 0x13c   : > { %v924_v24 = vpop.f32.mrf.mxu3 }
 0x13d   : > { %v929_v31 = vsel %vm928_vm2, %v924_v24, -inf }
 0x144   : > { %v926_v25 = vpop.f32.mrf.mxu3 }
 0x145   : > { %v769_v25 = vld [vmem:[%s4497_s5 + $0x18] sm:$0xff] }
 0x1ad   : > { %v987_v28 = vpop.f32.mrf.mxu1 }
 0x1ae   : > { %v991_v29 = vsel %vm928_vm2, %v987_v28, -inf }
 0x1af   : > { %992 = vmax.xlane.f32.xlu1 %v991_v29 }
 0x1b5   : > { %v989_v30 = vpop.f32.mrf.mxu1 }
 0x1b6   : > { %v4054_v30 = vld [vmem:[%s5537_s24 + $0x3] ss:$0 sm:$0xff] }
 0x1b7   : > { %930 = vmax.xlane.f32.xlu1 %v929_v31 }
 0x222   : > { %v993_v35 = vpop.xlane.xlu1 %992 }
 0x223   : > { %v994_v37 = vsub.f32 %v987_v28, %v993_v35 }
 0x225   : > { %v995_v39 = vmul.f32 1.442695, %v994_v37 }
 0x227   : > { %4077 = vpow2.f32 %v995_v39  ;;  %v786_v39 = vld [vmem:[%s4509_s28 + $0x20] sm:$0xff] }
 0x22a   : > { %v931_v41 = vpop.xlane.xlu1 %930 }
 0x22b   : > { %v932_v42 = vsub.f32 %v924_v24, %v931_v41  ;;  %v768_v24 = vld [vmem:[%s4497_s5 + $0x10] sm:$0xff] }
 0x22d   : > { %v4078_v43 = vpop.eup %4077  ;;  %v933_v44 = vmul.f32 1.442695, %v932_v42  ;;  %v4257_v42 = vmov 32.0  }
 0x22e   : > { %v997_v45 = vsel %vm928_vm2, %v4078_v43, 0.0 }
 0x22f   : > { %4079 = vpow2.f32 %v933_v44  ;;  %998 = vadd.xlane.f32.xlu2 %v997_v45  ;;  %v771_v44 = vld [vmem:[%s4497_s5 + $0x28] sm:$0xff] }
 0x235   : > { %v4080_v46 = vpop.eup %4079 }
 0x236   : > { %v935_v47 = vsel %vm928_vm2, %v4080_v46, 0.0 }
 0x237   : > { %936 = vadd.xlane.f32.xlu0 %v935_v47 }
 0x247   : > { %1006 = vrot.lane.b32.xlu2 %v1005_v49, %s5500_s1  ;;  %s5539_s1 = sld [smem:[#allocation17_spill]]  ;;  %v3976_v49 = vld [vmem:[%s5542_s17 + $0x28] sm:$0xff] }
 0x248   : > { %1268 = vmatpush.bf16.msra.mxu3 %v3976_v49 }
 0x24d   : > { %s4503_s6 = scalar_lea.vmem %s5539_s1, %s4491_s29  ;;  %s5550_s1 = sld [smem:[#allocation23_spill]] }
 0x24e   : > { %v774_v8 = vld [vmem:[%s4503_s6] sm:$0xff]  ;;  %v775_v9 = vld [vmem:[%s4503_s6 + $0x8] sm:$0xff]  ;;  %v776_v18 = vld [vmem:[%s4503_s6 + $0x10] sm:$0xff] }
 0x24f   : > { %v4523_v13 = vadd.f32 %v782_v11, %v774_v8  ;;  %v4525_v14 = vadd.f32 %v783_v12, %v775_v9  ;;  %v777_v19 = vld [vmem:[%s4503_s6 + $0x18] sm:$0xff]  ;;  %v4534_v22 = vadd.f32 %v784_v20, %v776_v18  ;;  %v778_v37 = vld [vmem:[%s4503_s6 + $0x20] sm:$0xff]  ;;  %v779_v38 = vld [vmem:[%s4503_s6 + $0x28] sm:$0xff] }
 0x250   : > { %v4536_v23 = vadd.f32 %v785_v21, %v777_v19  ;;  %v4551_v41 = vadd.f32 %v786_v39, %v778_v37  ;;  %v4555_v45 = vadd.f32 %v787_v40, %v779_v38  ;;  %v3972_v20 = vld [vmem:[%s5542_s17 + $0x8] sm:$0xff]  ;;  %v3971_v21 = vld [vmem:[%s5542_s17] sm:$0xff] }
 0x251   : > { %v1108_v15 = vadd.f32 %v4523_v13, %v766_v7  ;;  %v1109_v16 = vadd.f32 %v4525_v14, %v767_v10  ;;  %v1110_v26 = vadd.f32 %v4534_v22, %v768_v24  ;;  %1159 = vmatpush.bf16.msra.mxu1 %v3972_v20 }
 0x252   : > { %v1111_v27 = vadd.f32 %v4536_v23, %v769_v25  ;;  %v1113_v47 = vadd.f32 %v4555_v45, %v771_v44  ;;  %v1235_v18 = vpack.c.bf16 %v4555_v45, %v4551_v41 }
 0x253   : > { %v1167_v17 = vpack.c.bf16 %v1109_v16, %v1108_v15  ;;  %v1234_v15 = vpack.c.bf16 %v4536_v23, %v4534_v22 }
 0x254   : > { %v1168_v29 = vpack.c.bf16 %v1111_v27, %v1110_v26 }
 0x255   : > { %1160 = vmatpush.bf16.msra.mxu1 %v3971_v21 }
 0x2a2   : > { %v999_v50 = vpop.xlane.xlu2 %998 }
 0x2a3   : > { %4081 = vrcp.f32 %v999_v50 }
 0x2a9   : > { %v4082_v51 = vpop.eup %4081 }
 0x2aa   : > { %v1001_v52 = vmul.f32 %v4082_v51, %v4078_v43  ;;  %v1007_v53 = vpop.permute.xlu2 %1006  ;;  %v937_v54 = vpop.xlane.xlu0 %936  ;;  %v770_v43 = vld [vmem:[%s4497_s5 + $0x20] sm:$0xff]  ;;  %v780_v51 = vld [vmem:[%s4503_s6 + $0x30] sm:$0xff] }
 0x2ab   : > { %4083 = vrcp.f32 %v937_v54  ;;  %v1012_v55 = vsel %vm944_vm3, %v1007_v53, 0  ;;  %v788_v53 = vld [vmem:[%s4509_s28 + $0x30] sm:$0xff]  ;;  %v789_v54 = vld [vmem:[%s4509_s28 + $0x38] sm:$0xff]  ;;  %s4852_s28 = scalar_lea.vmem %s5490_s22, %s4491_s29 }
 0x2ac   : > { %1021 = vmatpush.bf16.msrb.mxu2 %v1012_v55  ;;  %v1002_v56 = vpack.c.bf16 %v1001_v52, %v1001_v52  ;;  %4085 = vrcp.f32 %v4257_v42  ;;  %v781_v52 = vld [vmem:[%s4503_s6 + $0x38] sm:$0xff]  ;;  %v3975_v55 = vld [vmem:[%s5542_s17 + $0x20] sm:$0xff] }
 0x2ad   : > { %1269 = vmatpush.bf16.msra.mxu3 %v3975_v55 }
 0x2af   : > { %3666 = vmatmul.msk.bf16.vlgmr.msrb.gmra.mxu2 %vm928_vm2, %v1002_v56 }
 0x2b0   : > { %1202 = vmatpush.bf16.msra.mxu2 %v3974_v5 }
 0x2b1   : > { %v4084_v57 = vpop.eup %4083 }
 0x2b2   : > { %v939_v58 = vmul.f32 %v4084_v57, %v4080_v46  ;;  %v1112_v46 = vadd.f32 %v4551_v41, %v770_v43  ;;  %v4086_v50 = vpop.eup %4085  ;;  %v4570_v57 = vadd.f32 %v788_v53, %v780_v51  ;;  %v4612_v51 = vld [vmem:[%s5482_s14] sm:$0xff] }
 0x2b3   : > { %v1078_v56 = vmul.f32 32.0, %v4086_v50  ;;  %vm1082_vm4 = vweird.f32 %v4086_v50 }
 0x2b4   : > { %v940_v59 = vpack.c.bf16 %v939_v58, %v939_v58  ;;  %1203 = vmatpush.bf16.msra.mxu2 %v3973_v6  ;;  %v1169_v48 = vpack.c.bf16 %v1113_v47, %v1112_v46  ;;  %v4572_v58 = vadd.f32 %v789_v54, %v781_v52 }
 0x2b6   : > { %3664 = vmatmul.msk.bf16.vlgmr.msrb.gmra.mxu0 %vm928_vm2, %v940_v59  ;;  %v1233_v59 = vpack.c.bf16 %v4525_v14, %v4523_v13  ;;  %v1236_v25 = vpack.c.bf16 %v4572_v58, %v4570_v57 }
 0x2bf   : > { %3702 = vmatmul.msk.bf16.vlgmr.msra.gmra.mxu2 %vm836_vm0, %v1167_v17 }
 0x2cf   : > { %3703 = vmatmul.msk.bf16.gmra.mxu2 %vm836_vm0, %v1168_v29 }
 0x2df   : > { %3704 = vmatmul.msk.bf16.gmra.mxu2 %vm836_vm0, %v1169_v48 }
 0x332   : > { %v1023_v62 = vpop.f32.mrf.mxu2 }
 0x333   : > { %v1027_v63 = vpack.c.bf16 %v1023_v62, %v1023_v62  ;;  %v957_v0 = vpop.f32.mrf.mxu0  ;;  %v1079_v62 = vsub.f32 1.0, %v1078_v56 }
 0x334   : > { %v961_v1 = vpack.c.bf16 %v957_v0, %v957_v0  ;;  %v1115_v0 = vadd.f32 %v4572_v58, %v773_v61  ;;  %v1103_v61 = vperm.slane %v4612_v51, 0 }
 0x335   : > { %3671 = vmatmul.msk.bf16.vlgmr.msrb.gmra.mxu3 %vm908_vm1, %v1027_v63  ;;  %v1114_v63 = vadd.f32 %v4570_v57, %v772_v60 }
 0x336   : > { %3676 = vmatmul.msk.bf16.vlgmr.msra.gmra.mxu0 %vm908_vm1, %v961_v1  ;;  %v1080_v1 = vmul.f32 %v4086_v50, %v1079_v62 }
 0x33a   : > { %v1025_v2 = vpop.f32.mrf.mxu2 }
 0x33b   : > { %v959_v3 = vpop.f32.mrf.mxu0  ;;  %v1170_v2 = vpack.c.bf16 %v1115_v0, %v1114_v63 }
 0x33c   : > { %v1081_v3 = vadd.f32 %v4086_v50, %v1080_v1 }
 0x33d   : > { %3705 = vmatmul.msk.bf16.gmra.mxu2 %vm836_vm0, %v1170_v2  ;;  %v1105_v2 = vperm.slane %v4612_v51, 4 }
 0x33e   : > { %v4582_v5 = vsel %vm1082_vm4, %v4086_v50, %v1081_v3 }
 0x342   : > { %v1205_v11 = vpop.f32.mrf.mxu2 }
 0x345   : > { %3714 = vmatmul.msk.bf16.vlgmr.msra.gmra.mxu3 %vm836_vm0, %v1233_v59 }
 0x34a   : > { %v1207_v12 = vpop.f32.mrf.mxu2 }
 0x352   : > { %v1210_v16 = vpop.f32.mrf.mxu2 }
 0x355   : > { %3715 = vmatmul.msk.bf16.gmra.mxu3 %vm836_vm0, %v1234_v15 }
 0x35a   : > { %v1212_v17 = vpop.f32.mrf.mxu2 }
 0x362   : > { %v1215_v19 = vpop.f32.mrf.mxu2 }
 0x365   : > { %3716 = vmatmul.msk.bf16.gmra.mxu3 %vm836_vm0, %v1235_v18 }
 0x36a   : > { %v1217_v24 = vpop.f32.mrf.mxu2 }
 0x375   : > { %3717 = vmatmul.msk.bf16.gmra.mxu3 %vm836_vm0, %v1236_v25 }
 0x3b3   : > { %v1068_v28 = vpop.f32.mrf.mxu0 }
 0x3b8   : > { %v1046_v31 = vpop.f32.mrf.mxu3 }
 0x3b9   : > { %v1069_v32 = vadd.f32 %v1068_v28, %v1046_v31  ;;  %v4055_v28 = vld [vmem:[%s5543_s7 + $0x1] ss:$0 sm:$0xff] }
 0x3ba   : > { %v1211_v48 = vadd.f32 %v4055_v28, %v1210_v16  ;;  %v1213_v49 = vadd.f32 %v4055_v28, %v1212_v17  ;;  %v1206_v55 = vadd.f32 %v4055_v28, %v1205_v11  ;;  %v1208_v56 = vadd.f32 %v4055_v28, %v1207_v12 }
 0x3bb   : > { %v1070_v33 = vpop.f32.mrf.mxu0  ;;  %v1073_v34 = vadd.f32 %v4054_v30, %v1069_v32  ;;  %v1216_v32 = vadd.f32 %v4055_v28, %v1215_v19 }
 0x3bc   : > { %v1218_v33 = vadd.f32 %v4055_v28, %v1217_v24  ;;  %v1227_v63 = vpack.c.bf16 %v1211_v48, %v1211_v48  ;;  %v1228_v0 = vpack.c.bf16 %v1213_v49, %v1213_v49 }
 0x3bd   : > { %v1074_v35 = vsel %vm836_vm0, %v1073_v34, 0.0  ;;  %v1229_v39 = vpack.c.bf16 %v1216_v32, %v1216_v32 }
 0x3be   : > { %1075 = vadd.xlane.f32.xlu1 %v1074_v35  ;;  %v1230_v42 = vpack.c.bf16 %v1218_v33, %v1218_v33  ;;  %v1310_v11 = vunpack.c.l.b16 %v1228_v0 }
 0x3bf   : > { %v1311_v50 = vunpack.c.l.b16 %v1229_v39 }
 0x3c0   : > { %v1048_v36 = vpop.f32.mrf.mxu3  ;;  %v1220_v30 = vpop.f32.mrf.mxu2  ;;  %v1312_v53 = vunpack.c.l.b16 %v1230_v42 }
 0x3c1   : > { %v1221_v31 = vadd.f32 %v4055_v28, %v1220_v30 }
 0x3c2   : > { %v1317_v1 = vpack.c.b16 %v1312_v53, %v1311_v50 }
 0x3c4   : > { %v1329_v12 = vsel %vm928_vm2, %v1317_v1, 0 }
 0x3c8   : > { %v1222_v36 = vpop.f32.mrf.mxu2  ;;  %v1271_v25 = vpop.f32.mrf.mxu3 }
 0x3c9   : > { %v1223_v38 = vadd.f32 %v4055_v28, %v1222_v36 }
 0x3cb   : > { %v1232_v44 = vpack.c.bf16 %v1223_v38, %v1223_v38 }
 0x3cd   : > { %v1314_v47 = vunpack.c.l.b16 %v1232_v44 }
 0x431   : > { %v1076_v6 = vpop.xlane.xlu1 %1075 }
 0x432   : > { %v1084_v7 = vmul.f32 %v4582_v5, %v1076_v6  ;;  %v1225_v6 = vpack.c.bf16 %v1206_v55, %v1206_v55 }
 0x434   : > { %v4585_v8 = vsub.f32 %v1073_v34, %v1084_v7  ;;  %v1231_v34 = vpack.c.bf16 %v1221_v31, %v1221_v31  ;;  %v1226_v7 = vpack.c.bf16 %v1208_v56, %v1208_v56  ;;  %v1307_v16 = vunpack.c.l.b16 %v1225_v6  ;;  %v4056_v31 = vld [vmem:[%s5543_s7 + $0x2] ss:$0 sm:$0xff]  ;;  %v4057_v6 = vld [vmem:[%s5543_s7] ss:$0 sm:$0xff] }
 0x436   : > { %v1086_v9 = vmul.f32 %v4585_v8, %v4585_v8  ;;  %v1313_v43 = vunpack.c.l.b16 %v1231_v34  ;;  %v1308_v17 = vunpack.c.l.b16 %v1226_v7 }
 0x438   : > { %v1087_v10 = vsel %vm836_vm0, %v1086_v9, 0.0  ;;  %v1318_v54 = vpack.c.b16 %v1314_v47, %v1313_v43  ;;  %v1315_v20 = vpack.c.b16 %v1308_v17, %v1307_v16  ;;  %v1272_v47 = vadd.f32 %v4056_v31, %v1271_v25 }
 0x439   : > { %1088 = vadd.xlane.f32.xlu1 %v1087_v10  ;;  %v1309_v10 = vunpack.c.l.b16 %v1227_v63 }
 0x43a   : > { %v1332_v60 = vsel %vm928_vm2, %v1318_v54, 0  ;;  %1412 = vrot.lane.b32.xlu2 %v1318_v54, %s4258_s19  ;;  %v1323_v24 = vsel %vm928_vm2, %v1315_v20, 0  ;;  %v1291_v56 = vpack.c.bf16 %v1272_v47, %v1272_v47 }
 0x43b   : > { %1338 = vmatpush.bf16.xpose.msrb.mxu0 %v1332_v60  ;;  %v4625_v19 = vpack.c.b16 %v1310_v11, %v1309_v10 }
 0x43c   : > { %v1368_v63 = vunpack.c.l.b16 %v1291_v56 }
 0x43d   : > { %v1326_v21 = vsel %vm928_vm2, %v4625_v19, 0 }
 0x442   : > { %1410 = vrot.lane.b32.xlu2 %v1317_v1, %s4258_s19 }
 0x443   : > { %1339 = vmatpush.bf16.xpose.msrb.mxu0 %v1329_v12 }
 0x44a   : > { %1406 = vrot.lane.b32.xlu2 %v1315_v20, %s4258_s19 }
 0x44b   : > { %1340 = vmatpush.bf16.xpose.msrb.mxu0 %v1326_v21 }
 0x453   : > { %1341 = vmatpush.bf16.xpose.msrb.mxu0 %v1323_v24 }
 0x4ac   : > { %v1089_v26 = vpop.xlane.xlu1 %1088 }
 0x4ad   : > { %v1090_v27 = vmul.f32 %v1089_v26, %v4582_v5  ;;  %v1273_v26 = vpop.f32.mrf.mxu3 }
 0x4ae   : > { %v1274_v48 = vadd.f32 %v4056_v31, %v1273_v26 }
 0x4af   : > { %v1091_v29 = vadd.f32 1e-05, %v1090_v27 }
 0x4b1   : > { %4087 = vrsqrt.f32 %v1091_v29  ;;  %vm1098_vm6 = vweird.f32 %v1091_v29 }
 0x4b5   : > { %v1276_v27 = vpop.f32.mrf.mxu3 }
 0x4b7   : > { %v4088_v35 = vpop.eup %4087 }
 0x4b8   : > { %v1093_v37 = vmul.f32 %v4088_v35, %v1091_v29  ;;  %vm1099_vm5 = vweird.f32 %v4088_v35 }
 0x4b9   : > { %vm1100_vm7 = vmor %vm1098_vm6, %vm1099_vm5  ;;  %vm1866_vm6 = vcmask 257024  }
 0x4ba   : > { %v1094_v40 = vmul.f32 %v4088_v35, %v1093_v37  ;;  %v1277_v37 = vadd.f32 %v4056_v31, %v1276_v27 }
 0x4bc   : > { %v1095_v46 = vmul.f32 0.5, %v1094_v40  ;;  %v1293_v49 = vpack.c.bf16 %v1277_v37, %v1277_v37 }
 0x4bd   : > { %v1278_v28 = vpop.f32.mrf.mxu3 }
 0x4be   : > { %v1096_v52 = vsub.f32 1.5, %v1095_v46  ;;  %v1279_v39 = vadd.f32 %v4056_v31, %v1278_v28  ;;  %v1370_v60 = vunpack.c.l.b16 %v1293_v49 }
 0x4c0   : > { %v1097_v59 = vmul.f32 %v4088_v35, %v1096_v52  ;;  %v1294_v50 = vpack.c.bf16 %v1279_v39, %v1279_v39 }
 0x4c2   : > { %v1101_v62 = vsel %vm1100_vm7, %v4088_v35, %v1097_v59  ;;  %v1292_v59 = vpack.c.bf16 %v1274_v48, %v1274_v48 }
 0x4c3   : > { %v1102_v3 = vmul.f32 %v1101_v62, %v4585_v8 }
 0x4c4   : > { %v1369_v0 = vunpack.c.l.b16 %v1292_v59 }
 0x4c5   : > { %v1104_v9 = vmul.f32 %v1103_v61, %v1102_v3  ;;  %v1281_v29 = vpop.f32.mrf.mxu3  ;;  %v1371_v61 = vunpack.c.l.b16 %v1294_v50 }
 0x4c6   : > { %v1282_v34 = vadd.f32 %v4056_v31, %v1281_v29  ;;  %v4635_v3 = vpack.c.b16 %v1369_v0, %v1368_v63 }
 0x4c7   : > { %v4620_v15 = vadd.f32 %v1105_v2, %v1104_v9  ;;  %v1377_v1 = vpack.c.b16 %v1371_v61, %v1370_v60  ;;  %v1413_v2 = vpop.permute.xlu2 %1412 }
 0x4c8   : > { %v1295_v40 = vpack.c.bf16 %v1282_v34, %v1282_v34  ;;  %v1427_v7 = vsel %vm928_vm2, %v1413_v2, 0  ;;  %v1134_v2 = vld [vmem:[%s5476_s8 + $0x4] sm:$0xf] }
 0x4c9   : > { %v1107_v18 = vadd.f32 %v4620_v15, %v4445_v4 }
 0x4ca   : > { %v1372_v52 = vunpack.c.l.b16 %v1295_v40 }
 0x4cb   : > { %v1136_v8 = vpack.c.bf16 %v1107_v18, %v1107_v18 }
 0x4cd   : > { %3693 = vmatmul.msk.bf16.vlgmr.msra.gmra.mxu1 %vm836_vm0, %v1136_v8  ;;  %v1283_v30 = vpop.f32.mrf.mxu3 }
 0x4ce   : > { %v1284_v35 = vadd.f32 %v4056_v31, %v1283_v30 }
 0x4cf   : > { %v1411_v16 = vpop.permute.xlu2 %1410 }
 0x4d0   : > { %v1296_v42 = vpack.c.bf16 %v1284_v35, %v1284_v35  ;;  %v1424_v17 = vsel %vm928_vm2, %v1411_v16, 0 }
 0x4d2   : > { %v1373_v53 = vunpack.c.l.b16 %v1296_v42  ;;  %v1133_v42 = vld [vmem:[%s5476_s8] sm:$0xf] }
 0x4d4   : > { %v1378_v62 = vpack.c.b16 %v1373_v53, %v1372_v52 }
 0x4d5   : > { %v1286_v32 = vpop.f32.mrf.mxu3 }
 0x4d6   : > { %v1287_v33 = vadd.f32 %v4056_v31, %v1286_v32 }
 0x4d7   : > { %v1407_v30 = vpop.permute.xlu2 %1406 }
 0x4d8   : > { %v1297_v36 = vpack.c.bf16 %v1287_v33, %v1287_v33  ;;  %v1418_v40 = vsel %vm928_vm2, %v1407_v30, 0 }
 0x4da   : > { %v1374_v44 = vunpack.c.l.b16 %v1297_v36 }
 0x4dd   : > { %v1288_v38 = vpop.f32.mrf.mxu3 }
 0x4de   : > { %v1289_v43 = vadd.f32 %v4056_v31, %v1288_v38 }
 0x4e0   : > { %v1298_v46 = vpack.c.bf16 %v1289_v43, %v1289_v43  ;;  %v1506_v43 = vsel %vm944_vm3, %v1133_v42, 0  ;;  %v1548_v42 = vperm.slane %v4612_v51, 5 }
 0x4e2   : > { %v1375_v54 = vunpack.c.l.b16 %v1298_v46 }
 0x4e4   : > { %v1379_v55 = vpack.c.b16 %v1375_v54, %v1374_v44 }
 0x4e6   : > { %1391 = vmatpush.bf16.msrb.mxu1 %v1379_v55 }
 0x4ea   : > { %1392 = vmatpush.bf16.msrb.mxu1 %v1378_v62 }
 0x4ee   : > { %1393 = vmatpush.bf16.msrb.mxu1 %v1377_v1 }
 0x4f2   : > { %1394 = vmatpush.bf16.msrb.mxu1 %v4635_v3 }
 0x4f6   : > { %1433 = vmatpush.bf16.xpose.msra.mxu1 %v1427_v7 }
 0x4fe   : > { %1434 = vmatpush.bf16.xpose.msra.mxu1 %v1424_v17 }
 0x54a   : > { %v1162_v9 = vpop.f32.mrf.mxu1 }
 0x54b   : > { %v1163_v10 = vadd.f32 %v4057_v6, %v1162_v9  ;;  %v1487_v6 = vsel %vm944_vm3, %v1134_v2, 0 }
 0x54d   : > { %v1166_v11 = vpack.c.bf16 %v1163_v10, %v1163_v10  ;;  %v4058_v10 = vld [vmem:[%s5477_s9] ss:$0 sm:$0xff] }
 0x54f   : > { %v1402_v12 = vunpack.c.l.b16 %v1166_v11  ;;  %3718 = vmatmul.msk.bf16.vlgmr.msrb.gmra.mxu0 %vm928_vm2, %v1166_v11 }
 0x551   : > { %v1403_v18 = vpack.c.b16 %v1402_v12, %v1402_v12 }
 0x552   : > { %v1164_v8 = vpop.f32.mrf.mxu1 }
 0x553   : > { %1404 = vrot.lane.b32.xlu2 %v1403_v18, %s4258_s19 }
 0x55b   : > { %1460 = vrot.lane.b32.xlu2 %v1379_v55, %s4258_s19 }
 0x563   : > { %1458 = vrot.lane.b32.xlu2 %v1378_v62, %s4258_s19 }
 0x5ad   : > { %v1405_v32 = vpop.permute.xlu2 %1404 }
 0x5b5   : > { %v1461_v35 = vpop.permute.xlu2 %1460 }
 0x5b6   : > { %1473 = vmatpush.bf16.msra.mxu0 %v1461_v35 }
 0x5bd   : > { %v1459_v37 = vpop.permute.xlu2 %1458 }
 0x5be   : > { %1474 = vmatpush.bf16.msra.mxu0 %v1459_v37 }
 0x5cc   : > { %v1343_v20 = vpop.f32.mrf.mxu0 }
 0x5cd   : > { %v1348_v21 = vsel %vm1347_vm8, %v1343_v20, -inf }
 0x5ce   : > { %1349 = vmax.xlane.f32.xlu1 %v1348_v21 }
 0x5d4   : > { %v1345_v24 = vpop.f32.mrf.mxu0 }
 0x641   : > { %v1350_v25 = vpop.xlane.xlu1 %1349 }
 0x642   : > { %v1351_v26 = vsub.f32 %v1343_v20, %v1350_v25  ;;  %v3978_v20 = vld [vmem:[%s5478_s10 + $0x8] sm:$0xff] }
 0x643   : > { %1578 = vmatpush.bf16.msrb.mxu2 %v3978_v20 }
 0x644   : > { %v1352_v27 = vmul.f32 1.442695, %v1351_v26 }
 0x646   : > { %4089 = vpow2.f32 %v1352_v27 }
 0x64c   : > { %v4090_v28 = vpop.eup %4089 }
 0x64d   : > { %v1354_v29 = vsel %vm1347_vm8, %v4090_v28, 0.0 }
 0x64e   : > { %1355 = vadd.xlane.f32.xlu1 %v1354_v29 }
 0x667   : > { %1408 = vrot.lane.b32.xlu1 %v4625_v19, %s4258_s19 }
 0x66f   : > { %1456 = vrot.lane.b32.xlu1 %v1377_v1, %s4258_s19 }
 0x6c1   : > { %v1356_v31 = vpop.xlane.xlu1 %1355 }
 0x6c2   : > { %4091 = vrcp.f32 %v1356_v31  ;;  %v3981_v31 = vld [vmem:[%s5480_s12 + $0x10] sm:$0xff] }
 0x6c8   : > { %v4092_v33 = vpop.eup %4091 }
 0x6c9   : > { %v1358_v34 = vmul.f32 %v4092_v33, %v4090_v28  ;;  %v3982_v28 = vld [vmem:[%s5480_s12 + $0x18] sm:$0xff]  ;;  %v3980_v33 = vld [vmem:[%s5480_s12 + $0x8] sm:$0xff] }
 0x6ca   : > { %1628 = vmatpush.bf16.msrb.mxu3 %v3982_v28 }
 0x6cb   : > { %v1359_v36 = vpack.c.bf16 %v1358_v34, %v1358_v34 }
 0x6cd   : > { %3719 = vmatmul.msk.bf16.vlgmr.msrb.gmra.mxu1 %vm1347_vm8, %v1359_v36 }
 0x6ce   : > { %1629 = vmatpush.bf16.msrb.mxu3 %v3981_v31 }
 0x6d2   : > { %1630 = vmatpush.bf16.msrb.mxu3 %v3980_v33 }
 0x6d9   : > { %v1409_v38 = vpop.permute.xlu1 %1408 }
 0x6da   : > { %v1421_v39 = vsel %vm928_vm2, %v1409_v38, 0 }
 0x6db   : > { %1435 = vmatpush.bf16.xpose.msra.mxu1 %v1421_v39 }
 0x6e1   : > { %v1457_v19 = vpop.permute.xlu1 %1456 }
 0x6e2   : > { %1475 = vmatpush.bf16.msra.mxu0 %v1457_v19  ;;  %v1546_v19 = vperm.slane %v4612_v51, 1 }
 0x6e3   : > { %1436 = vmatpush.bf16.xpose.msra.mxu1 %v1418_v40 }
 0x6ea   : > { %3720 = vmatmul.msk.bf16.vlgmr.msra.gmra.mxu1 %vm928_vm2, %v1405_v32 }
 0x6eb   : > { %1515 = vmatpush.bf16.msrb.mxu1 %v1506_v43 }
 0x74a   : > { %v1396_v44 = vpop.f32.mrf.mxu1 }
 0x74b   : > { %v1400_v46 = vpack.c.bf16 %v1396_v44, %v1396_v44 }
 0x74d   : > { %3723 = vmatmul.msk.bf16.vlgmr.msrb.gmra.mxu1 %vm928_vm2, %v1400_v46 }
 0x752   : > { %v1398_v47 = vpop.f32.mrf.mxu1 }
 0x767   : > { %v1438_v48 = vpop.f32.mrf.mxu1 }
 0x768   : > { %v1442_v49 = vsel %vm1347_vm8, %v1438_v48, -inf }
 0x769   : > { %1443 = vmax.xlane.f32.xlu0 %v1442_v49  ;;  %v4059_v49 = vld [vmem:[%s5479_s11] ss:$0 sm:$0xff] }
 0x76f   : > { %v1440_v50 = vpop.f32.mrf.mxu1 }
 0x7ca   : > { %v1517_v52 = vpop.f32.mrf.mxu1 }
 0x7d2   : > { %v1519_v53 = vpop.f32.mrf.mxu1 }
 0x7dc   : > { %v1444_v54 = vpop.xlane.xlu0 %1443 }
 0x7dd   : > { %v1445_v55 = vsub.f32 %v1438_v48, %v1444_v54  ;;  %v3979_v48 = vld [vmem:[%s5480_s12] sm:$0xff] }
 0x7de   : > { %1631 = vmatpush.bf16.msrb.mxu3 %v3979_v48 }
 0x7df   : > { %v1446_v56 = vmul.f32 1.442695, %v1445_v55 }
 0x7e1   : > { %4093 = vpow2.f32 %v1446_v56  ;;  %v4060_v56 = vld [vmem:[%s5481_s13] ss:$0 sm:$0xff] }
 0x7e7   : > { %v4094_v59 = vpop.eup %4093 }
 0x7e8   : > { %v1448_v60 = vsel %vm1347_vm8, %v4094_v59, 0.0 }
 0x7e9   : > { %1449 = vadd.xlane.f32.xlu0 %v1448_v60 }
 0x7fd   : > { %1454 = vrot.lane.b32.xlu0 %v4635_v3, %s4258_s19 }
 0x85c   : > { %v1450_v61 = vpop.xlane.xlu0 %1449 }
 0x85d   : > { %4095 = vrcp.f32 %v1450_v61 }
 0x863   : > { %v4096_v62 = vpop.eup %4095 }
 0x864   : > { %v1452_v63 = vmul.f32 %v4096_v62, %v4094_v59 }
 0x866   : > { %v1453_v1 = vpack.c.bf16 %v1452_v63, %v1452_v63 }
 0x86f   : > { %v1455_v0 = vpop.permute.xlu0 %1454 }
 0x870   : > { %1476 = vmatpush.bf16.msra.mxu0 %v1455_v0 }
 0x873   : > { %3721 = vmatmul.msk.bf16.vlgmr.msra.gmra.mxu0 %vm1347_vm8, %v1453_v1 }
 0x874   : > { %1496 = vmatpush.bf16.msrb.mxu0 %v1487_v6 }
 0x8f0   : > { %v1478_v7 = vpop.f32.mrf.mxu0 }
 0x8f1   : > { %v1482_v9 = vpack.c.bf16 %v1478_v7, %v1478_v7 }
 0x8f3   : > { %3722 = vmatmul.msk.bf16.vlgmr.msrb.gmra.mxu0 %vm928_vm2, %v1482_v9  ;;  %v3988_v9 = vld [vmem:[%s5535_s27 + $0x68] sm:$0xff] }
 0x8f8   : > { %v1480_v3 = vpop.f32.mrf.mxu0 }
 0x8f9   : > { %v3984_v3 = vld [vmem:[%s5535_s27 + $0x48] sm:$0xff] }
 0x8fa   : > { %1933 = vmatpush.bf16.msra.mxu0 %v3984_v3 }
 0x970   : > { %v1498_v11 = vpop.f32.mrf.mxu0 }
 0x971   : > { %v1518_v12 = vadd.f32 %v1517_v52, %v1498_v11  ;;  %v3987_v11 = vld [vmem:[%s5535_s27 + $0x60] sm:$0xff] }
 0x973   : > { %v1522_v16 = vadd.f32 %v4058_v10, %v1518_v12  ;;  %v3986_v10 = vld [vmem:[%s5535_s27 + $0x58] sm:$0xff]  ;;  %v3983_v12 = vld [vmem:[%s5535_s27 + $0x40] sm:$0xff] }
 0x974   : > { %1960 = vmatpush.bf16.msra.mxu1 %v3986_v10  ;;  %1934 = vmatpush.bf16.msra.mxu0 %v3983_v12  ;;  %v1664_v10 = vsel %vm836_vm0, %v4523_v13, 0.0 }
 0x975   : > { %v1523_v17 = vadd.f32 %v1522_v16, %v4620_v15  ;;  %v3977_v15 = vld [vmem:[%s5478_s10] sm:$0xff]  ;;  %v3985_v16 = vld [vmem:[%s5535_s27 + $0x50] sm:$0xff] }
 0x976   : > { %1579 = vmatpush.bf16.msrb.mxu2 %v3977_v15  ;;  %v1660_v15 = vperm.slane %v4612_v51, 2 }
 0x977   : > { %v1524_v18 = vsel %vm836_vm0, %v1523_v17, 0.0 }
 0x978   : > { %v1500_v8 = vpop.f32.mrf.mxu0  ;;  %1525 = vadd.xlane.f32.xlu2 %v1524_v18  ;;  %1961 = vmatpush.bf16.msra.mxu1 %v3985_v16 }
 0x97a   : > { %1991 = vmatpush.bf16.msra.mxu2 %v3988_v9 }
 0x97e   : > { %1992 = vmatpush.bf16.msra.mxu2 %v3987_v11 }
 0x9eb   : > { %v1526_v21 = vpop.xlane.xlu2 %1525 }
 0x9ec   : > { %v1527_v24 = vmul.f32 %v1526_v21, %v4582_v5 }
 0x9ee   : > { %v1528_v25 = vsub.f32 %v1523_v17, %v1527_v24 }
 0x9f0   : > { %v1529_v26 = vmul.f32 %v1528_v25, %v1528_v25 }
 0x9f2   : > { %v1530_v27 = vsel %vm836_vm0, %v1529_v26, 0.0 }
 0x9f3   : > { %1531 = vadd.xlane.f32.xlu1 %v1530_v27 }
 0xa66   : > { %v1532_v29 = vpop.xlane.xlu1 %1531 }
 0xa67   : > { %v1533_v30 = vmul.f32 %v1532_v29, %v4582_v5  ;;  %v1662_v29 = vperm.slane %v4612_v51, 6 }
 0xa69   : > { %v1534_v32 = vadd.f32 1e-05, %v1533_v30 }
 0xa6b   : > { %4097 = vrsqrt.f32 %v1534_v32  ;;  %vm1541_vm10 = vweird.f32 %v1534_v32 }
 0xa71   : > { %v4098_v34 = vpop.eup %4097 }
 0xa72   : > { %v1536_v35 = vmul.f32 %v4098_v34, %v1534_v32  ;;  %vm1542_vm9 = vweird.f32 %v4098_v34 }
 0xa73   : > { %vm1543_vm11 = vmor %vm1541_vm10, %vm1542_vm9 }
 0xa74   : > { %v1537_v36 = vmul.f32 %v4098_v34, %v1536_v35 }
 0xa76   : > { %v1538_v37 = vmul.f32 0.5, %v1537_v36  ;;  %v4061_v36 = vld [vmem:[%s5537_s24 + $0x4] ss:$0 sm:$0xff] }
 0xa78   : > { %v1539_v38 = vsub.f32 1.5, %v1538_v37  ;;  %v4062_v37 = vld [vmem:[%s5537_s24 + $0x5] ss:$0 sm:$0xff] }
 0xa7a   : > { %v1540_v39 = vmul.f32 %v4098_v34, %v1539_v38 }
 0xa7c   : > { %v1544_v40 = vsel %vm1543_vm11, %v4098_v34, %v1540_v39 }
 0xa7d   : > { %v1545_v43 = vmul.f32 %v1544_v40, %v1528_v25 }
 0xa7f   : > { %v1547_v44 = vmul.f32 %v1546_v19, %v1545_v43 }
 0xa81   : > { %v1549_v46 = vadd.f32 %v1548_v42, %v1547_v44 }
 0xa83   : > { %v1550_v47 = vpack.c.bf16 %v1549_v46, %v1549_v46 }
 0xa85   : > { %3732 = vmatmul.msk.bf16.vlgmr.msrb.gmra.mxu2 %vm836_vm0, %v1550_v47 }
 0xb08   : > { %v1581_v50 = vpop.f32.mrf.mxu2 }
 0xb09   : > { %v1582_v52 = vadd.f32 %v4059_v49, %v1581_v50 }
 0xb0b   : > { %v1585_v53 = vmax.f32 %v1582_v52, 0.0 }
 0xb0d   : > { %v1586_v54 = vpack.c.bf16 %v1585_v53, %v1585_v53 }
 0xb0f   : > { %3749 = vmatmul.msk.bf16.vlgmr.msrb.gmra.mxu3 %vm1347_vm8, %v1586_v54 }
 0xb10   : > { %v1583_v55 = vpop.f32.mrf.mxu2 }
 0xb92   : > { %v1633_v59 = vpop.f32.mrf.mxu3 }
 0xb93   : > { %v1634_v60 = vadd.f32 %v4060_v56, %v1633_v59 }
 0xb95   : > { %v1637_v61 = vadd.f32 %v1634_v60, %v1549_v46 }
 0xb97   : > { %v1638_v62 = vsel %vm836_vm0, %v1637_v61, 0.0 }
 0xb98   : > { %1639 = vadd.xlane.f32.xlu0 %v1638_v62 }
 0xb9a   : > { %v1635_v63 = vpop.f32.mrf.mxu3 }
 0xc0b   : > { %v1640_v0 = vpop.xlane.xlu0 %1639 }
 0xc0c   : > { %v1641_v1 = vmul.f32 %v1640_v0, %v4582_v5 }
 0xc0e   : > { %v1642_v2 = vsub.f32 %v1637_v61, %v1641_v1 }
 0xc10   : > { %v1643_v6 = vmul.f32 %v1642_v2, %v1642_v2 }
 0xc12   : > { %v1644_v7 = vsel %vm836_vm0, %v1643_v6, 0.0 }
 0xc13   : > { %1645 = vadd.xlane.f32.xlu2 %v1644_v7 }
 0xc86   : > { %v1646_v17 = vpop.xlane.xlu2 %1645 }
 0xc87   : > { %v1647_v18 = vmul.f32 %v1646_v17, %v4582_v5 }
 0xc89   : > { %v1648_v8 = vadd.f32 1e-05, %v1647_v18 }
 0xc8b   : > { %4099 = vrsqrt.f32 %v1648_v8  ;;  %vm1655_vm13 = vweird.f32 %v1648_v8 }
 0xc91   : > { %v4100_v20 = vpop.eup %4099 }
 0xc92   : > { %v1650_v21 = vmul.f32 %v4100_v20, %v1648_v8  ;;  %vm1656_vm12 = vweird.f32 %v4100_v20 }
 0xc93   : > { %vm1657_vm14 = vmor %vm1655_vm13, %vm1656_vm12 }
 0xc94   : > { %v1651_v24 = vmul.f32 %v4100_v20, %v1650_v21 }
 0xc96   : > { %v1652_v25 = vmul.f32 0.5, %v1651_v24  ;;  %v1667_v24 = vsel %vm836_vm0, %v4525_v14, 0.0 }
 0xc98   : > { %v1653_v26 = vsub.f32 1.5, %v1652_v25 }
 0xc9a   : > { %v1654_v27 = vmul.f32 %v4100_v20, %v1653_v26 }
 0xc9c   : > { %v1658_v28 = vsel %vm1657_vm14, %v4100_v20, %v1654_v27  ;;  %v1673_v27 = vsel %vm836_vm0, %v4536_v23, 0.0 }
 0xc9d   : > { %v1659_v30 = vmul.f32 %v1658_v28, %v1642_v2  ;;  %v1670_v28 = vsel %vm836_vm0, %v4534_v22, 0.0 }
 0xc9f   : > { %v1661_v31 = vmul.f32 %v1660_v15, %v1659_v30  ;;  %v1679_v30 = vsel %vm836_vm0, %v4555_v45, 0.0 }
 0xca1   : > { %v4731_v32 = vadd.f32 %v1662_v29, %v1661_v31  ;;  %v1676_v31 = vsel %vm836_vm0, %v4551_v41, 0.0 }
 0xca3   : > { %v1968_v33 = vpack.c.bf16 %v4731_v32, %v4731_v32  ;;  %v1885_v34 = vadd.f32 %v4731_v32, %v4445_v4  ;;  %v4063_v4 = vld [vmem:[%s5537_s24 + $0x6] ss:$0 sm:$0xff] }
 0xca5   : > { %3793 = vmatmul.msk.bf16.vlgmr.msra.gmra.mxu2 %vm836_vm0, %v1968_v33  ;;  %v1910_v35 = vpack.c.bf16 %v1885_v34, %v1885_v34  ;;  %v1682_v33 = vsel %vm836_vm0, %v4570_v57, 0.0 }
 0xca7   : > { %3775 = vmatmul.msk.bf16.vlgmr.msra.gmra.mxu0 %vm836_vm0, %v1910_v35  ;;  %3784 = vmatmul.msk.bf16.vlgmr.msra.gmra.mxu1 %vm836_vm0, %v1910_v35 }
 0xd24   : > { %v1936_v38 = vpop.f32.mrf.mxu0  ;;  %v1963_v39 = vpop.f32.mrf.mxu1 }
 0xd25   : > { %v1937_v19 = vadd.f32 %v4061_v36, %v1936_v38  ;;  %v1964_v40 = vadd.f32 %v4062_v37, %v1963_v39  ;;  %v1685_v39 = vsel %vm836_vm0, %v4572_v58, 0.0 }
 0xd27   : > { %v1940_v42 = vpack.c.bf16 %v1937_v19, %v1937_v19  ;;  %v1967_v43 = vpack.c.bf16 %v1964_v40, %v1964_v40 }
 0xd28   : > { %v1994_v44 = vpop.f32.mrf.mxu2 }
 0xd29   : > { %v2051_v46 = vunpack.c.l.b16 %v1940_v42  ;;  %v2003_v47 = vsel %vm908_vm1, %v1967_v43, 0  ;;  %v2056_v48 = vunpack.c.l.b16 %v1967_v43  ;;  %v1995_v49 = vadd.f32 %v4063_v4, %v1994_v44 }
 0xd2a   : > { %2012 = vmatpush.bf16.xpose.msra.mxu3 %v2003_v47 }
 0xd2b   : > { %v2052_v50 = vpack.c.b16 %v2051_v46, %v2051_v46  ;;  %v2057_v52 = vpack.c.b16 %v2056_v48, %v2056_v48  ;;  %v1998_v53 = vpack.c.bf16 %v1995_v49, %v1995_v49 }
 0xd2c   : > { %v1938_v54 = vpop.f32.mrf.mxu0  ;;  %v1965_v55 = vpop.f32.mrf.mxu1 }
 0xd2d   : > { %v2034_v56 = vsel %vm944_vm3, %v1998_v53, 0  ;;  %2058 = vrot.lane.b32.xlu1 %v2057_v52, %s5544_s20  ;;  %2053 = vrot.lane.b32.xlu2 %v2052_v50, %s5544_s20  ;;  %v2092_v9 = vunpack.c.l.b16 %v1998_v53 }
 0xd2e   : > { %2043 = vmatpush.bf16.msrb.mxu0 %v2034_v56 }
 0xd2f   : > { %v2093_v3 = vpack.c.b16 %v2092_v9, %v2092_v9 }
 0xd30   : > { %v1996_v59 = vpop.f32.mrf.mxu2 }
 0xd31   : > { %3794 = vmatmul.msk.bf16.vlgmr.msra.gmra.mxu3 %vm908_vm1, %v1940_v42 }
 0xd87   : > { %v2054_v62 = vpop.permute.xlu2 %2053 }
 0xd9f   : > { %v2059_v60 = vpop.permute.xlu1 %2058 }
 0xda0   : > { %v2064_v61 = vsel %vm908_vm1, %v2059_v60, 0 }
 0xda1   : > { %2073 = vmatpush.bf16.xpose.msrb.mxu1 %v2064_v61 }
 0xda8   : > { %3796 = vmatmul.msk.bf16.vlgmr.msrb.gmra.mxu1 %vm908_vm1, %v2054_v62 }
 0xdb4   : > { %v2014_v63 = vpop.f32.mrf.mxu3 }
 0xdb5   : > { %v2018_v7 = vsel %vm928_vm2, %v2014_v63, -inf }
 0xdbc   : > { %v2016_v0 = vpop.f32.mrf.mxu3 }
 0xe25   : > { %v2075_v1 = vpop.f32.mrf.mxu1 }
 0xe26   : > { %v2079_v2 = vsel %vm928_vm2, %v2075_v1, -inf }
 0xe27   : > { %2080 = vmax.xlane.f32.xlu0 %v2079_v2 }
 0xe2d   : > { %v2077_v6 = vpop.f32.mrf.mxu1 }
 0xe2f   : > { %2019 = vmax.xlane.f32.xlu0 %v2018_v7 }
 0xe43   : > { %2094 = vrot.lane.b32.xlu0 %v2093_v3, %s5544_s20  ;;  %s5554_s20 = sld [smem:[#allocation25_spill]] }
 0xe6d   : > { %1665 = vadd.xlane.f32.xlu0 %v1664_v10 }
 0xe9a   : > { %v2081_v11 = vpop.xlane.xlu0 %2080 }
 0xe9b   : > { %v2082_v12 = vsub.f32 %v2075_v1, %v2081_v11 }
 0xe9d   : > { %v2083_v16 = vmul.f32 1.442695, %v2082_v12 }
 0xe9f   : > { %4101 = vpow2.f32 %v2083_v16 }
 0xea2   : > { %v2020_v17 = vpop.xlane.xlu0 %2019 }
 0xea3   : > { %v2021_v18 = vsub.f32 %v2014_v63, %v2020_v17 }
 0xea5   : > { %v4102_v8 = vpop.eup %4101  ;;  %v2022_v20 = vmul.f32 1.442695, %v2021_v18 }
 0xea6   : > { %v2085_v21 = vsel %vm928_vm2, %v4102_v8, 0.0 }
 0xea7   : > { %4103 = vpow2.f32 %v2022_v20  ;;  %2086 = vadd.xlane.f32.xlu1 %v2085_v21 }
 0xead   : > { %v4104_v25 = vpop.eup %4103 }
 0xeae   : > { %v2024_v26 = vsel %vm928_vm2, %v4104_v25, 0.0 }
 0xeaf   : > { %2025 = vadd.xlane.f32.xlu2 %v2024_v26  ;;  %1668 = vadd.xlane.f32.xlu1 %v1667_v24 }
 0xeb5   : > { %v2095_v15 = vpop.permute.xlu0 %2094 }
 0xeb6   : > { %v2100_v29 = vsel %vm944_vm3, %v2095_v15, 0 }
 0xeb7   : > { %2109 = vmatpush.bf16.msrb.mxu2 %v2100_v29  ;;  %1674 = vadd.xlane.f32.xlu1 %v1673_v27 }
 0xeb8   : > { %1671 = vadd.xlane.f32.xlu2 %v1670_v28 }
 0xebf   : > { %1680 = vadd.xlane.f32.xlu1 %v1679_v30 }
 0xec0   : > { %1677 = vadd.xlane.f32.xlu2 %v1676_v31  ;;  %v4838_v31 = vperm.slane %v4612_v51, 3 }
 0xec7   : > { %1683 = vadd.xlane.f32.xlu1 %v1682_v33  ;;  %v4841_v33 = vperm.slane %v4612_v51, 7  ;;  %v3990_v51 = vld [vmem:[%s5535_s27 + $0x78] sm:$0xff] }
 0xec8   : > { %2132 = vmatpush.bf16.msrb.mxu3 %v3990_v51 }
 0xee0   : > { %v1666_v34 = vpop.xlane.xlu0 %1665 }
 0xee1   : > { %v1688_v35 = vmul.f32 %v1666_v34, %v4582_v5 }
 0xee3   : > { %v4778_v36 = vsub.f32 %v4523_v13, %v1688_v35 }
 0xee5   : > { %v1704_v37 = vmul.f32 %v4778_v36, %v4778_v36 }
 0xee7   : > { %v1712_v38 = vsel %vm836_vm0, %v1704_v37, 0.0 }
 0xee8   : > { %1713 = vadd.xlane.f32.xlu2 %v1712_v38 }
 0xef0   : > { %1686 = vadd.xlane.f32.xlu2 %v1685_v39 }
 0xf1a   : > { %v2087_v19 = vpop.xlane.xlu1 %2086 }
 0xf1b   : > { %4105 = vrcp.f32 %v2087_v19 }
 0xf21   : > { %v4106_v40 = vpop.eup %4105 }
 0xf22   : > { %v2089_v4 = vmul.f32 %v4106_v40, %v4102_v8  ;;  %v2026_v42 = vpop.xlane.xlu2 %2025  ;;  %v1669_v43 = vpop.xlane.xlu1 %1668 }
 0xf23   : > { %4107 = vrcp.f32 %v2026_v42  ;;  %v1689_v13 = vmul.f32 %v1669_v43, %v4582_v5  ;;  %v3996_v42 = vld [vmem:[%s5542_s17 + $0x58] sm:$0xff]  ;;  %v3994_v43 = vld [vmem:[%s5542_s17 + $0x48] sm:$0xff] }
 0xf24   : > { %v2090_v44 = vpack.c.bf16 %v2089_v4, %v2089_v4  ;;  %2352 = vmatpush.bf16.msra.mxu3 %v3996_v42  ;;  %2286 = vmatpush.bf16.msra.mxu2 %v3994_v43  ;;  %v4167_v43 = vld [vmem:[%s4497_s5] sm:$0xff] }
 0xf25   : > { %v4787_v46 = vsub.f32 %v4525_v14, %v1689_v13 }
 0xf26   : > { %3797 = vmatmul.msk.bf16.vlgmr.msrb.gmra.mxu2 %vm928_vm2, %v2090_v44 }
 0xf27   : > { %v1705_v47 = vmul.f32 %v4787_v46, %v4787_v46 }
 0xf29   : > { %v4108_v48 = vpop.eup %4107  ;;  %v1715_v49 = vsel %vm836_vm0, %v1705_v47, 0.0 }
 0xf2a   : > { %v2028_v50 = vmul.f32 %v4108_v48, %v4104_v25  ;;  %1716 = vadd.xlane.f32.xlu0 %v1715_v49  ;;  %v1675_v52 = vpop.xlane.xlu1 %1674  ;;  %v3995_v48 = vld [vmem:[%s5542_s17 + $0x50] sm:$0xff]  ;;  %v3993_v49 = vld [vmem:[%s5542_s17 + $0x40] sm:$0xff] }
 0xf2b   : > { %v1691_v53 = vmul.f32 %v1675_v52, %v4582_v5  ;;  %v1672_v54 = vpop.xlane.xlu2 %1671  ;;  %2353 = vmatpush.bf16.msra.mxu3 %v3995_v48  ;;  %2287 = vmatpush.bf16.msra.mxu2 %v3993_v49 }
 0xf2c   : > { %v2029_v55 = vpack.c.bf16 %v2028_v50, %v2028_v50  ;;  %v1690_v56 = vmul.f32 %v1672_v54, %v4582_v5 }
 0xf2d   : > { %v4796_v14 = vsub.f32 %v4536_v23, %v1691_v53 }
 0xf2e   : > { %3795 = vmatmul.msk.bf16.vlgmr.msrb.gmra.mxu0 %vm928_vm2, %v2029_v55  ;;  %v4800_v59 = vsub.f32 %v4534_v22, %v1690_v56 }
 0xf2f   : > { %v1707_v60 = vmul.f32 %v4796_v14, %v4796_v14 }
 0xf30   : > { %v1706_v61 = vmul.f32 %v4800_v59, %v4800_v59 }
 0xf31   : > { %v1721_v62 = vsel %vm836_vm0, %v1707_v60, 0.0 }
 0xf32   : > { %1722 = vadd.xlane.f32.xlu1 %v1721_v62  ;;  %v1718_v63 = vsel %vm836_vm0, %v1706_v61, 0.0  ;;  %v1681_v0 = vpop.xlane.xlu1 %1680 }
 0xf33   : > { %1719 = vadd.xlane.f32.xlu0 %v1718_v63  ;;  %v1693_v23 = vmul.f32 %v1681_v0, %v4582_v5  ;;  %v1678_v1 = vpop.xlane.xlu2 %1677 }
 0xf34   : > { %v1692_v2 = vmul.f32 %v1678_v1, %v4582_v5 }
 0xf35   : > { %v4811_v22 = vsub.f32 %v4555_v45, %v1693_v23 }
 0xf36   : > { %v4814_v6 = vsub.f32 %v4551_v41, %v1692_v2 }
 0xf37   : > { %v1709_v7 = vmul.f32 %v4811_v22, %v4811_v22 }
 0xf38   : > { %v1708_v9 = vmul.f32 %v4814_v6, %v4814_v6 }
 0xf39   : > { %v1727_v3 = vsel %vm836_vm0, %v1709_v7, 0.0 }
 0xf3a   : > { %v1724_v10 = vsel %vm836_vm0, %v1708_v9, 0.0  ;;  %v1684_v11 = vpop.xlane.xlu1 %1683 }
 0xf3b   : > { %1728 = vadd.xlane.f32.xlu0 %v1727_v3  ;;  %1725 = vadd.xlane.f32.xlu2 %v1724_v10  ;;  %v1694_v12 = vmul.f32 %v1684_v11, %v4582_v5 }
 0xf3d   : > { %v4824_v45 = vsub.f32 %v4570_v57, %v1694_v12 }
 0xf3f   : > { %v1710_v41 = vmul.f32 %v4824_v45, %v4824_v45 }
 0xf41   : > { %v1730_v16 = vsel %vm836_vm0, %v1710_v41, 0.0 }
 0xf42   : > { %1731 = vadd.xlane.f32.xlu1 %v1730_v16 }
 0xf5b   : > { %v1714_v17 = vpop.xlane.xlu2 %1713 }
 0xf5c   : > { %v1736_v18 = vmul.f32 %v1714_v17, %v4582_v5 }
 0xf5e   : > { %v1744_v8 = vadd.f32 1e-05, %v1736_v18 }
 0xf60   : > { %4109 = vrsqrt.f32 %v1744_v8  ;;  %vm1758_vm15 = vweird.f32 %v1744_v8 }
 0xf63   : > { %v1687_v20 = vpop.xlane.xlu2 %1686 }
 0xf64   : > { %v1695_v21 = vmul.f32 %v1687_v20, %v4582_v5 }
 0xf66   : > { %v4110_v24 = vpop.eup %4109  ;;  %v4832_v25 = vsub.f32 %v4572_v58, %v1695_v21 }
 0xf67   : > { %v1753_v57 = vmul.f32 %v4110_v24, %v1744_v8  ;;  %vm1759_vm4 = vweird.f32 %v4110_v24 }
 0xf68   : > { %v1711_v26 = vmul.f32 %v4832_v25, %v4832_v25  ;;  %vm1760_vm5 = vmor %vm1758_vm15, %vm1759_vm4 }
 0xf69   : > { %v1754_v27 = vmul.f32 %v4110_v24, %v1753_v57 }
 0xf6a   : > { %v1733_v15 = vsel %vm836_vm0, %v1711_v26, 0.0 }
 0xf6b   : > { %v1755_v28 = vmul.f32 0.5, %v1754_v27  ;;  %1734 = vadd.xlane.f32.xlu2 %v1733_v15  ;;  %v4165_v15 = vld [vmem:[%s4503_s6] sm:$0xff] }
 0xf6d   : > { %v1756_v29 = vsub.f32 1.5, %v1755_v28 }
 0xf6f   : > { %v1757_v30 = vmul.f32 %v4110_v24, %v1756_v29 }
 0xf71   : > { %v1761_v58 = vsel %vm1760_vm5, %v4110_v24, %v1757_v30 }
 0xf72   : > { %v1832_v34 = vmul.f32 %v1761_v58, %v4778_v36  ;;  %v3989_v36 = vld [vmem:[%s5535_s27 + $0x70] sm:$0xff] }
 0xf73   : > { %2154 = vmatpush.bf16.msra.mxu0 %v3989_v36 }
 0xf74   : > { %v1841_v35 = vmul.f32 %v4838_v31, %v1832_v34 }
 0xf76   : > { %v4846_v37 = vadd.f32 %v4841_v33, %v1841_v35 }
 0xf78   : > { %v1858_v38 = vpack.c.bf16 %v4846_v37, %v4846_v37  ;;  %v4890_v28 = vadd.f32 %v4165_v15, %v4846_v37  ;;  %v4166_v37 = vld [vmem:[%s4503_s6 + $0x8] sm:$0xff]  ;;  %v4172_v15 = vld [vmem:[%s4497_s5 + $0x18] sm:$0xff] }
 0xf7a   : > { %1867 = vst.msk [vmem:[%s4852_s28] sm:$0xf] %vm1866_vm6, %v1858_v38 }
 0xf9d   : > { %v1717_v39 = vpop.xlane.xlu0 %1716 }
 0xf9e   : > { %v1737_v19 = vmul.f32 %v1717_v39, %v4582_v5 }
 0xfa0   : > { %v1745_v40 = vadd.f32 1e-05, %v1737_v19 }
 0xfa2   : > { %4111 = vrsqrt.f32 %v1745_v40  ;;  %vm1768_vm7 = vweird.f32 %v1745_v40 }
 0xfa5   : > { %v1723_v4 = vpop.xlane.xlu1 %1722 }
 0xfa6   : > { %v1739_v13 = vmul.f32 %v1723_v4, %v4582_v5  ;;  %v1720_v44 = vpop.xlane.xlu0 %1719 }
 0xfa7   : > { %v1738_v47 = vmul.f32 %v1720_v44, %v4582_v5 }
 0xfa8   : > { %v4112_v50 = vpop.eup %4111  ;;  %v1747_v52 = vadd.f32 1e-05, %v1739_v13  ;;  %v2190_v13 = vadd.f32 %v4167_v43, %v4890_v28  ;;  %v4174_v43 = vld [vmem:[%s4503_s6 + $0x28] sm:$0xff] }
 0xfa9   : > { %v2111_v53 = vpop.f32.mrf.mxu2  ;;  %v1763_v54 = vmul.f32 %v4112_v50, %v1745_v40  ;;  %v1746_v55 = vadd.f32 1e-05, %v1738_v47  ;;  %vm1769_vm9 = vweird.f32 %v4112_v50 }
 0xfaa   : > { %v2115_v56 = vpack.c.bf16 %v2111_v53, %v2111_v53  ;;  %4113 = vrsqrt.f32 %v1747_v52  ;;  %vm1770_vm10 = vmor %vm1768_vm7, %vm1769_vm9  ;;  %v4168_v53 = vld [vmem:[%s4497_s5 + $0x8] sm:$0xff] }
 0xfab   : > { %v2045_v60 = vpop.f32.mrf.mxu0  ;;  %v1764_v61 = vmul.f32 %v4112_v50, %v1763_v54  ;;  %4115 = vrsqrt.f32 %v1746_v55  ;;  %vm1778_vm12 = vweird.f32 %v1746_v55 }
 0xfac   : > { %v2049_v62 = vpack.c.bf16 %v2045_v60, %v2045_v60  ;;  %3802 = vmatmul.msk.bf16.vlgmr.msrb.gmra.mxu3 %vm908_vm1, %v2115_v56 }
 0xfad   : > { %v1765_v63 = vmul.f32 0.5, %v1764_v61 }
 0xfae   : > { %3807 = vmatmul.msk.bf16.vlgmr.msra.gmra.mxu0 %vm908_vm1, %v2049_v62  ;;  %v1726_v0 = vpop.xlane.xlu2 %1725  ;;  %v1729_v23 = vpop.xlane.xlu0 %1728  ;;  %vm1788_vm1 = vweird.f32 %v1747_v52 }
 0xfaf   : > { %v1766_v1 = vsub.f32 1.5, %v1765_v63  ;;  %v1740_v2 = vmul.f32 %v1726_v0, %v4582_v5  ;;  %v1741_v7 = vmul.f32 %v1729_v23, %v4582_v5 }
 0xfb0   : > { %v4114_v9 = vpop.eup %4113 }
 0xfb1   : > { %v4116_v3 = vpop.eup %4115  ;;  %v1767_v10 = vmul.f32 %v4112_v50, %v1766_v1  ;;  %v2113_v11 = vpop.f32.mrf.mxu2  ;;  %v1783_v12 = vmul.f32 %v4114_v9, %v1747_v52  ;;  %v1748_v41 = vadd.f32 1e-05, %v1740_v2  ;;  %v4883_v17 = vadd.f32 1e-05, %v1741_v7 }
 0xfb2   : > { %v1773_v16 = vmul.f32 %v4116_v3, %v1746_v55  ;;  %vm1789_vm11 = vweird.f32 %v4114_v9  ;;  %vm1779_vm13 = vweird.f32 %v4116_v3 }
 0xfb3   : > { %v1771_v18 = vsel %vm1770_vm10, %v4112_v50, %v1767_v10  ;;  %v2047_v8 = vpop.f32.mrf.mxu0  ;;  %v1784_v20 = vmul.f32 %v4114_v9, %v1783_v12  ;;  %4117 = vrsqrt.f32 %v1748_v41  ;;  %vm4893_vm14 = vmor %vm1788_vm1, %vm1789_vm11  ;;  %vm1798_vm4 = vweird.f32 %v1748_v41 }
 0xfb4   : > { %v1833_v21 = vmul.f32 %v1771_v18, %v4787_v46  ;;  %v1774_v24 = vmul.f32 %v4116_v3, %v1773_v16  ;;  %4119 = vrsqrt.f32 %v4883_v17  ;;  %vm4897_vm15 = vmor %vm1778_vm12, %vm1779_vm13  ;;  %vm1808_vm5 = vweird.f32 %v4883_v17  ;;  %v4169_v16 = vld [vmem:[%s4503_s6 + $0x10] sm:$0xff]  ;;  %v4170_v8 = vld [vmem:[%s4503_s6 + $0x18] sm:$0xff] }
 0xfb5   : > { %v1785_v57 = vmul.f32 0.5, %v1784_v20 }
 0xfb6   : > { %v1842_v26 = vmul.f32 %v4838_v31, %v1833_v21  ;;  %v1775_v27 = vmul.f32 0.5, %v1774_v24 }
 0xfb7   : > { %v1786_v29 = vsub.f32 1.5, %v1785_v57 }
 0xfb8   : > { %v1851_v46 = vadd.f32 %v4841_v33, %v1842_v26  ;;  %v1776_v58 = vsub.f32 1.5, %v1775_v27  ;;  %v4171_v27 = vld [vmem:[%s4497_s5 + $0x10] sm:$0xff] }
 0xfb9   : > { %v4118_v34 = vpop.eup %4117  ;;  %v1787_v35 = vmul.f32 %v4114_v9, %v1786_v29 }
 0xfba   : > { %v4120_v51 = vpop.eup %4119  ;;  %v1859_v36 = vpack.c.bf16 %v1851_v46, %v1851_v46  ;;  %v4902_v39 = vadd.f32 %v4166_v37, %v1851_v46  ;;  %v1777_v19 = vmul.f32 %v4116_v3, %v1776_v58  ;;  %v1793_v40 = vmul.f32 %v4118_v34, %v1748_v41 }
 0xfbb   : > { %v1791_v4 = vsel %vm4893_vm14, %v4114_v9, %v1787_v35  ;;  %v1803_v42 = vmul.f32 %v4120_v51, %v4883_v17  ;;  %vm1799_vm7 = vweird.f32 %v4118_v34  ;;  %vm1809_vm9 = vweird.f32 %v4120_v51 }
 0xfbc   : > { %1868 = vst.msk [vmem:[%s4852_s28 + $0x4] sm:$0xf] %vm1866_vm6, %v1859_v36  ;;  %v1835_v44 = vmul.f32 %v1791_v4, %v4796_v14  ;;  %v1781_v47 = vsel %vm4897_vm15, %v4116_v3, %v1777_v19  ;;  %v1794_v48 = vmul.f32 %v4118_v34, %v1793_v40  ;;  %v2317_v49 = vpack.c.bf16 %v4902_v39, %v4890_v28  ;;  %v1732_v14 = vpop.xlane.xlu1 %1731  ;;  %vm1800_vm10 = vmor %vm1798_vm4, %vm1799_vm7  ;;  %v4173_v4 = vld [vmem:[%s4503_s6 + $0x20] sm:$0xff] }
 0xfbd   : > { %v1834_v50 = vmul.f32 %v1781_v47, %v4800_v59  ;;  %v1804_v52 = vmul.f32 %v4120_v51, %v1803_v42  ;;  %v2191_v54 = vadd.f32 %v4168_v53, %v4902_v39  ;;  %v1742_v59 = vmul.f32 %v1732_v14, %v4582_v5  ;;  %vm1810_vm1 = vmor %vm1808_vm5, %vm1809_vm9 }
 0xfbe   : > { %v1844_v55 = vmul.f32 %v4838_v31, %v1835_v44  ;;  %v1795_v56 = vmul.f32 0.5, %v1794_v48  ;;  %3851 = vmatmul.msk.bf16.vlgmr.msra.gmra.mxu3 %vm836_vm0, %v2317_v49  ;;  %v4175_v48 = vld [vmem:[%s4497_s5 + $0x20] sm:$0xff] }
 0xfbf   : > { %v1843_v60 = vmul.f32 %v4838_v31, %v1834_v50  ;;  %v1805_v61 = vmul.f32 0.5, %v1804_v52  ;;  %v2251_v62 = vpack.c.bf16 %v2191_v54, %v2190_v13  ;;  %v1750_v2 = vadd.f32 1e-05, %v1742_v59  ;;  %v4176_v50 = vld [vmem:[%s4497_s5 + $0x28] sm:$0xff] }
 0xfc0   : > { %v1853_v63 = vadd.f32 %v4841_v33, %v1844_v55  ;;  %v1796_v0 = vsub.f32 1.5, %v1795_v56 }
 0xfc1   : > { %v1852_v23 = vadd.f32 %v4841_v33, %v1843_v60  ;;  %v1806_v1 = vsub.f32 1.5, %v1805_v61  ;;  %3839 = vmatmul.msk.bf16.vlgmr.msra.gmra.mxu2 %vm836_vm0, %v2251_v62  ;;  %4121 = vrsqrt.f32 %v1750_v2  ;;  %vm1818_vm11 = vweird.f32 %v1750_v2 }
 0xfc2   : > { %v1861_v7 = vpack.c.bf16 %v1853_v63, %v1853_v63  ;;  %v1797_v9 = vmul.f32 %v4118_v34, %v1796_v0  ;;  %v4940_v20 = vadd.f32 %v4170_v8, %v1853_v63 }
 0xfc3   : > { %v1860_v3 = vpack.c.bf16 %v1852_v23, %v1852_v23  ;;  %v1807_v10 = vmul.f32 %v4120_v51, %v1806_v1  ;;  %v4937_v18 = vadd.f32 %v4169_v16, %v1852_v23 }
 0xfc4   : > { %1870 = vst.msk [vmem:[%s4852_s28 + $0xc] sm:$0xf] %vm1866_vm6, %v1861_v7  ;;  %v1801_v11 = vsel %vm1800_vm10, %v4118_v34, %v1797_v9  ;;  %v2193_v29 = vadd.f32 %v4172_v15, %v4940_v20  ;;  %v4177_v7 = vld [vmem:[%s4503_s6 + $0x30] sm:$0xff] }
 0xfc5   : > { %1869 = vst.msk [vmem:[%s4852_s28 + $0x8] sm:$0xf] %vm1866_vm6, %v1860_v3  ;;  %v1836_v12 = vmul.f32 %v1801_v11, %v4814_v6  ;;  %v1811_v41 = vsel %vm1810_vm1, %v4120_v51, %v1807_v10  ;;  %v2192_v6 = vadd.f32 %v4171_v27, %v4937_v18  ;;  %v4178_v11 = vld [vmem:[%s4503_s6 + $0x38] sm:$0xff]  ;;  %s5552_s6 = sld [smem:[#allocation6_spill]] }
 0xfc6   : > { %v1837_v17 = vmul.f32 %v1811_v41, %v4811_v22  ;;  %v2318_v22 = vpack.c.bf16 %v4940_v20, %v4937_v18  ;;  %v4179_v41 = vld [vmem:[%s4497_s5 + $0x30] sm:$0xff] }
 0xfc7   : > { %v1845_v21 = vmul.f32 %v4838_v31, %v1836_v12  ;;  %v4122_v57 = vpop.eup %4121  ;;  %v2252_v38 = vpack.c.bf16 %v2193_v29, %v2192_v6 }
 0xfc8   : > { %v1846_v24 = vmul.f32 %v4838_v31, %v1837_v17  ;;  %v1813_v30 = vmul.f32 %v4122_v57, %v1750_v2  ;;  %vm1819_vm12 = vweird.f32 %v4122_v57 }
 0xfc9   : > { %v1854_v26 = vadd.f32 %v4841_v33, %v1845_v21  ;;  %vm1820_vm13 = vmor %vm1818_vm11, %vm1819_vm12  ;;  %v4064_v21 = vld [vmem:[%s5537_s24 + $0x7] ss:$0 sm:$0xff] }
 0xfca   : > { %v1855_v46 = vadd.f32 %v4841_v33, %v1846_v24  ;;  %v1814_v35 = vmul.f32 %v4122_v57, %v1813_v30 }
 0xfcb   : > { %v1862_v58 = vpack.c.bf16 %v1854_v26, %v1854_v26  ;;  %v4961_v42 = vadd.f32 %v4173_v4, %v1854_v26  ;;  %s718_s3 = sand.u32 1, %s5552_s6  }
 0xfcc   : > { %v1863_v34 = vpack.c.bf16 %v1855_v46, %v1855_v46  ;;  %v1815_v51 = vmul.f32 0.5, %v1814_v35  ;;  %v4964_v13 = vadd.f32 %v4174_v43, %v1855_v46  ;;  %s3612_s29 = sshll.u32 %s718_s3, 3  ;;  %s3432_s16 = scalar_lea.sflag [#allocation3], %s718_s3 }
 0xfcd   : > { %1871 = vst.msk [vmem:[%s4852_s28 + $0x10] sm:$0xf] %vm1866_vm6, %v1862_v58  ;;  %v2194_v49 = vadd.f32 %v4175_v48, %v4961_v42  ;;  %v4066_v48 = vld [vmem:[%s5543_s7 + $0x4] ss:$0 sm:$0xff]  ;;  %s720_s6 = scalar_lea.vmem [#allocation2], %s3612_s29 }
 0xfce   : > { %1872 = vst.msk [vmem:[%s4852_s28 + $0x14] sm:$0xf] %vm1866_vm6, %v1863_v34  ;;  %3852 = vmatmul.msk.bf16.gmra.mxu3 %vm836_vm0, %v2318_v22  ;;  %v1816_v36 = vsub.f32 1.5, %v1815_v51  ;;  %v2195_v52 = vadd.f32 %v4176_v50, %v4964_v13  ;;  %v2319_v53 = vpack.c.bf16 %v4964_v13, %v4961_v42  ;;  %s3454_s2 = sshll.u32 %s720_s6, 4  ;;  %s3455_s2 = int_to_ptr.vmem [resolvable:$true] %s3454_s2 }
 0xfd0   : > { %v1817_v37 = vmul.f32 %v4122_v57, %v1816_v36  ;;  %v2253_v54 = vpack.c.bf16 %v2195_v52, %v2194_v49  ;;  %v3992_v36 = vld [vmem:[%s5542_s17 + $0x38] sm:$0xff] }
 0xfd1   : > { %3840 = vmatmul.msk.bf16.gmra.mxu2 %vm836_vm0, %v2252_v38  ;;  %2243 = vmatpush.bf16.msra.mxu1 %v3992_v36 }
 0xfd2   : > { %v1821_v19 = vsel %vm1820_vm13, %v4122_v57, %v1817_v37 }
 0xfd3   : > { %v1838_v40 = vmul.f32 %v1821_v19, %v4824_v45  ;;  %v3991_v19 = vld [vmem:[%s5542_s17 + $0x30] sm:$0xff] }
 0xfd5   : > { %v1847_v44 = vmul.f32 %v4838_v31, %v1838_v40  ;;  %2244 = vmatpush.bf16.msra.mxu1 %v3991_v19 }
 0xfd7   : > { %v1856_v47 = vadd.f32 %v4841_v33, %v1847_v44  ;;  %v4065_v44 = vld [vmem:[%s5543_s7 + $0x5] ss:$0 sm:$0xff] }
 0xfd9   : > { %v1864_v45 = vpack.c.bf16 %v1856_v47, %v1856_v47  ;;  %v4982_v9 = vadd.f32 %v4177_v7, %v1856_v47 }
 0xfdb   : > { %1873 = vst.msk [vmem:[%s4852_s28 + $0x18] sm:$0xf] %vm1866_vm6, %v1864_v45  ;;  %v2196_v16 = vadd.f32 %v4179_v41, %v4982_v9 }
 0xfde   : > { %v1735_v55 = vpop.xlane.xlu2 %1734  ;;  %3853 = vmatmul.msk.bf16.gmra.mxu3 %vm836_vm0, %v2319_v53 }
 0xfdf   : > { %v1743_v56 = vmul.f32 %v1735_v55, %v4582_v5 }
 0xfe1   : > { %v1751_v14 = vadd.f32 1e-05, %v1743_v56  ;;  %3841 = vmatmul.msk.bf16.gmra.mxu2 %vm836_vm0, %v2253_v54 }
 0xfe3   : > { %4123 = vrsqrt.f32 %v1751_v14  ;;  %vm1828_vm14 = vweird.f32 %v1751_v14 }
 0xfe9   : > { %v4124_v60 = vpop.eup %4123 }
 0xfea   : > { %v1823_v61 = vmul.f32 %v4124_v60, %v1751_v14  ;;  %vm1829_vm15 = vweird.f32 %v4124_v60 }
 0xfeb   : > { %vm1830_vm4 = vmor %vm1828_vm14, %vm1829_vm15 }
 0xfec   : > { %v1824_v62 = vmul.f32 %v4124_v60, %v1823_v61 }
 0xfee   : > { %v1825_v59 = vmul.f32 0.5, %v1824_v62 }
 0xff0   : > { %v1826_v63 = vsub.f32 1.5, %v1825_v59 }
 0xff2   : > { %v1827_v0 = vmul.f32 %v4124_v60, %v1826_v63 }
 0xff4   : > { %v1831_v23 = vsel %vm1830_vm4, %v4124_v60, %v1827_v0 }
 0xff5   : > { %v1839_v1 = vmul.f32 %v1831_v23, %v4832_v25  ;;  %v4180_v25 = vld [vmem:[%s4497_s5 + $0x38] sm:$0xff] }
 0xff7   : > { %v1848_v2 = vmul.f32 %v4838_v31, %v1839_v1 }
 0xff9   : > { %v1857_v3 = vadd.f32 %v4841_v33, %v1848_v2 }
 0xffb   : > { %v1865_v10 = vpack.c.bf16 %v1857_v3, %v1857_v3  ;;  %v4986_v12 = vadd.f32 %v4178_v11, %v1857_v3 }
 0xffd   : > { %1874 = vst.msk [vmem:[%s4852_s28 + $0x1c] sm:$0xf] %vm1866_vm6, %v1865_v10  ;;  %v2320_v8 = vpack.c.bf16 %v4986_v12, %v4982_v9  ;;  %v2197_v31 = vadd.f32 %v4180_v25, %v4986_v12 }
 0xfff   : > { %3854 = vmatmul.msk.bf16.gmra.mxu3 %vm836_vm0, %v2320_v8  ;;  %v2254_v17 = vpack.c.bf16 %v2197_v31, %v2196_v16 }
0x1001   : > { %3842 = vmatmul.msk.bf16.gmra.mxu2 %vm836_vm0, %v2254_v17 }
0x102b   : > { %v2156_v33 = vpop.f32.mrf.mxu0 }
0x102f   : > { %v2134_v24 = vpop.f32.mrf.mxu3 }
0x1030   : > { %v2157_v57 = vadd.f32 %v2156_v33, %v2134_v24 }
0x1032   : > { %v2161_v26 = vadd.f32 %v4064_v21, %v2157_v57 }
0x1033   : > { %v2158_v27 = vpop.f32.mrf.mxu0 }
0x1034   : > { %v5002_v6 = vadd.f32 %v2161_v26, %v4731_v32 }
0x1036   : > { %v2163_v15 = vsel %vm836_vm0, %v5002_v6, 0.0 }
0x1037   : > { %2164 = vadd.xlane.f32.xlu0 %v2163_v15  ;;  %v2136_v29 = vpop.f32.mrf.mxu3 }
0x1041   : > { %v2355_v46 = vpop.f32.mrf.mxu3 }
0x1042   : > { %v2356_v21 = vadd.f32 %v4065_v44, %v2355_v46 }
0x1044   : > { %v2289_v30 = vpop.f32.mrf.mxu2  ;;  %v2375_v19 = vpack.c.bf16 %v2356_v21, %v2356_v21 }
0x1045   : > { %v2290_v0 = vadd.f32 %v4066_v48, %v2289_v30 }
0x1047   : > { %v2309_v24 = vpack.c.bf16 %v2290_v0, %v2290_v0 }
0x1049   : > { %v2357_v22 = vpop.f32.mrf.mxu3 }
0x104a   : > { %v2358_v57 = vadd.f32 %v4065_v44, %v2357_v22  ;;  %v2391_v22 = vunpack.c.l.b16 %v2309_v24 }
0x104c   : > { %v2291_v58 = vpop.f32.mrf.mxu2 }
0x104d   : > { %v2292_v23 = vadd.f32 %v4066_v48, %v2291_v58 }
0x104f   : > { %v2310_v26 = vpack.c.bf16 %v2292_v23, %v2292_v23 }
0x1051   : > { %v2360_v34 = vpop.f32.mrf.mxu3 }
0x1052   : > { %v2361_v45 = vadd.f32 %v4065_v44, %v2360_v34 }
0x1054   : > { %v2294_v35 = vpop.f32.mrf.mxu2  ;;  %v2377_v2 = vpack.c.bf16 %v2361_v45, %v2361_v45 }
0x1055   : > { %v2295_v30 = vadd.f32 %v4066_v48, %v2294_v35 }
0x1056   : > { %v2453_v29 = vunpack.c.l.b16 %v2377_v2 }
0x1059   : > { %v2362_v38 = vpop.f32.mrf.mxu3 }
0x105a   : > { %v2363_v55 = vadd.f32 %v4065_v44, %v2362_v38 }
0x105c   : > { %v2296_v51 = vpop.f32.mrf.mxu2  ;;  %v2378_v11 = vpack.c.bf16 %v2363_v55, %v2363_v55 }
0x105d   : > { %v2297_v34 = vadd.f32 %v4066_v48, %v2296_v51 }
0x105e   : > { %v2454_v58 = vunpack.c.l.b16 %v2378_v11 }
0x105f   : > { %v2312_v51 = vpack.c.bf16 %v2297_v34, %v2297_v34 }
0x1060   : > { %v5025_v35 = vpack.c.b16 %v2454_v58, %v2453_v29 }
0x1061   : > { %v2365_v37 = vpop.f32.mrf.mxu3 }
0x1062   : > { %v2366_v50 = vadd.f32 %v4065_v44, %v2365_v37 }
0x1064   : > { %v2299_v32 = vpop.f32.mrf.mxu2  ;;  %v2379_v56 = vpack.c.bf16 %v2366_v50, %v2366_v50 }
0x1065   : > { %v2300_v14 = vadd.f32 %v4066_v48, %v2299_v32 }
0x1066   : > { %v2455_v41 = vunpack.c.l.b16 %v2379_v56 }
0x1067   : > { %v2313_v16 = vpack.c.bf16 %v2300_v14, %v2300_v14 }
0x1069   : > { %v2367_v40 = vpop.f32.mrf.mxu3  ;;  %v2395_v38 = vunpack.c.l.b16 %v2313_v16 }
0x106a   : > { %v2368_v52 = vadd.f32 %v4065_v44, %v2367_v40  ;;  %v2376_v40 = vpack.c.bf16 %v2358_v57, %v2358_v57 }
0x106c   : > { %v2301_v4 = vpop.f32.mrf.mxu2  ;;  %v2380_v60 = vpack.c.bf16 %v2368_v52, %v2368_v52  ;;  %v2394_v52 = vunpack.c.l.b16 %v2312_v51 }
0x106d   : > { %v2302_v62 = vadd.f32 %v4066_v48, %v2301_v4  ;;  %v2392_v4 = vunpack.c.l.b16 %v2310_v26 }
0x106e   : > { %v2456_v8 = vunpack.c.l.b16 %v2380_v60 }
0x106f   : > { %v2314_v25 = vpack.c.bf16 %v2302_v62, %v2302_v62 }
0x1070   : > { %v5020_v36 = vpack.c.b16 %v2456_v8, %v2455_v41 }
0x1071   : > { %v2396_v37 = vunpack.c.l.b16 %v2314_v25 }
0x1082   : > { %v2370_v43 = vpop.f32.mrf.mxu3 }
0x1083   : > { %v2371_v49 = vadd.f32 %v4065_v44, %v2370_v43  ;;  %v2311_v43 = vpack.c.bf16 %v2295_v30, %v2295_v30 }
0x1084   : > { %v2304_v47 = vpop.f32.mrf.mxu2 }
0x1085   : > { %v2305_v53 = vadd.f32 %v4066_v48, %v2304_v47  ;;  %v2381_v54 = vpack.c.bf16 %v2371_v49, %v2371_v49  ;;  %v2451_v47 = vunpack.c.l.b16 %v2375_v19  ;;  %v2399_v49 = vpack.c.b16 %v2392_v4, %v2391_v22 }
0x1086   : > { %v2393_v50 = vunpack.c.l.b16 %v2311_v43 }
0x1087   : > { %v2315_v59 = vpack.c.bf16 %v2305_v53, %v2305_v53  ;;  %v2457_v7 = vunpack.c.l.b16 %v2381_v54 }
0x1088   : > { %v2400_v54 = vpack.c.b16 %v2394_v52, %v2393_v50 }
0x1089   : > { %v2397_v31 = vunpack.c.l.b16 %v2315_v59 }
0x108a   : > { %v2372_v61 = vpop.f32.mrf.mxu3  ;;  %v2410_v55 = vsel %vm928_vm2, %v2400_v54, 0 }
0x108b   : > { %v2373_v63 = vadd.f32 %v4065_v44, %v2372_v61  ;;  %v5027_v44 = vpack.c.b16 %v2396_v37, %v2395_v38  ;;  %v2407_v61 = vsel %vm928_vm2, %v2399_v49, 0 }
0x108c   : > { %v2306_v1 = vpop.f32.mrf.mxu2 }
0x108d   : > { %v2382_v3 = vpack.c.bf16 %v2373_v63, %v2373_v63  ;;  %v2307_v10 = vadd.f32 %v4066_v48, %v2306_v1  ;;  %v2452_v48 = vunpack.c.l.b16 %v2376_v40  ;;  %v2413_v53 = vsel %vm928_vm2, %v5027_v44, 0 }
0x108f   : > { %v2458_v17 = vunpack.c.l.b16 %v2382_v3  ;;  %v2316_v33 = vpack.c.bf16 %v2307_v10, %v2307_v10  ;;  %v5033_v45 = vpack.c.b16 %v2452_v48, %v2451_v47 }
0x1091   : > { %v5018_v27 = vpack.c.b16 %v2458_v17, %v2457_v7  ;;  %v2398_v15 = vunpack.c.l.b16 %v2316_v33  ;;  %v4181_v33 = vld [vmem:[%s4442_s0] sm:$0xff] }
0x1093   : > { %v2402_v32 = vpack.c.b16 %v2398_v15, %v2397_v31  ;;  %2474 = vmatpush.bf16.msrb.mxu1 %v5018_v27  ;;  %v4067_v15 = vld [vmem:[%s5543_s7 + $0x3] ss:$0 sm:$0xff] }
0x1095   : > { %2495 = vrot.lane.b32.xlu0 %v2402_v32, %s4258_s19  ;;  %v2416_v46 = vsel %vm928_vm2, %v2402_v32, 0 }
0x1096   : > { %2422 = vmatpush.bf16.xpose.msrb.mxu0 %v2416_v46 }
0x1097   : > { %2475 = vmatpush.bf16.msrb.mxu1 %v5020_v36 }
0x109b   : > { %2476 = vmatpush.bf16.msrb.mxu1 %v5025_v35 }
0x109d   : > { %2489 = vrot.lane.b32.xlu0 %v2399_v49, %s4258_s19 }
0x109e   : > { %2423 = vmatpush.bf16.xpose.msrb.mxu0 %v2413_v53 }
0x109f   : > { %2477 = vmatpush.bf16.msrb.mxu1 %v5033_v45 }
0x10a6   : > { %2424 = vmatpush.bf16.xpose.msrb.mxu0 %v2410_v55 }
0x10aa   : > { %v2165_v56 = vpop.xlane.xlu0 %2164 }
0x10ab   : > { %v2166_v14 = vmul.f32 %v2165_v56, %v4582_v5 }
0x10ad   : > { %v2167_v60 = vsub.f32 %v5002_v6, %v2166_v14  ;;  %v5046_v6 = vld [vmem:[%s5482_s14 + $0x8] sm:$0xff] }
0x10ae   : > { %2425 = vmatpush.bf16.xpose.msrb.mxu0 %v2407_v61  ;;  %v2185_v41 = vperm.slane %v5046_v6, 0  ;;  %v2187_v8 = vperm.slane %v5046_v6, 4 }
0x10af   : > { %v2168_v62 = vmul.f32 %v2167_v60, %v2167_v60 }
0x10b1   : > { %v2169_v59 = vsel %vm836_vm0, %v2168_v62, 0.0 }
0x10b2   : > { %2170 = vadd.xlane.f32.xlu1 %v2169_v59 }
0x1107   : > { %v2496_v24 = vpop.permute.xlu0 %2495 }
0x1108   : > { %v2510_v57 = vsel %vm928_vm2, %v2496_v24, 0 }
0x1125   : > { %v2171_v63 = vpop.xlane.xlu1 %2170 }
0x1126   : > { %v2172_v0 = vmul.f32 %v2171_v63, %v4582_v5 }
0x1128   : > { %v2173_v23 = vadd.f32 1e-05, %v2172_v0 }
0x112a   : > { %4125 = vrsqrt.f32 %v2173_v23  ;;  %vm2180_vm7 = vweird.f32 %v2173_v23 }
0x1130   : > { %v4126_v1 = vpop.eup %4125 }
0x1131   : > { %v2175_v2 = vmul.f32 %v4126_v1, %v2173_v23  ;;  %vm2181_vm5 = vweird.f32 %v4126_v1 }
0x1132   : > { %vm2182_vm9 = vmor %vm2180_vm7, %vm2181_vm5 }
0x1133   : > { %v2176_v7 = vmul.f32 %v4126_v1, %v2175_v2 }
0x1135   : > { %v2177_v3 = vmul.f32 0.5, %v2176_v7 }
0x1137   : > { %v2178_v10 = vsub.f32 1.5, %v2177_v3 }
0x1139   : > { %v2179_v11 = vmul.f32 %v4126_v1, %v2178_v10 }
0x113b   : > { %v2183_v16 = vsel %vm2182_vm9, %v4126_v1, %v2179_v11 }
0x113c   : > { %v2184_v25 = vmul.f32 %v2183_v16, %v2167_v60  ;;  %v3820_v60 = vld [vmem:[%s5476_s8 + $0x8] sm:$0xf] }
0x113d   : > { %v2589_v61 = vsel %vm944_vm3, %v3820_v60, 0 }
0x113e   : > { %v2186_v31 = vmul.f32 %v2185_v41, %v2184_v25  ;;  %v2758_v25 = vsel %vm836_vm0, %v4940_v20, 0.0 }
0x1140   : > { %v5050_v17 = vadd.f32 %v2187_v8, %v2186_v31  ;;  %v2752_v8 = vsel %vm836_vm0, %v4902_v39, 0.0  ;;  %v2764_v31 = vsel %vm836_vm0, %v4964_v13, 0.0 }
0x1142   : > { %v2189_v21 = vadd.f32 %v4181_v33, %v5050_v17 }
0x1144   : > { %v2220_v26 = vpack.c.bf16 %v2189_v21, %v2189_v21 }
0x1146   : > { %3830 = vmatmul.msk.bf16.vlgmr.msra.gmra.mxu1 %vm836_vm0, %v2220_v26 }
0x1147   : > { %2516 = vmatpush.bf16.xpose.msra.mxu1 %v2510_v57 }
0x11c3   : > { %v2246_v29 = vpop.f32.mrf.mxu1 }
0x11c4   : > { %v2247_v30 = vadd.f32 %v4067_v15, %v2246_v29 }
0x11c6   : > { %v2250_v58 = vpack.c.bf16 %v2247_v30, %v2247_v30 }
0x11c8   : > { %v2485_v34 = vunpack.c.l.b16 %v2250_v58  ;;  %3855 = vmatmul.msk.bf16.vlgmr.msrb.gmra.mxu0 %vm928_vm2, %v2250_v58 }
0x11ca   : > { %v2486_v38 = vpack.c.b16 %v2485_v34, %v2485_v34  ;;  %v3821_v34 = vld [vmem:[%s5476_s8 + $0xc] sm:$0xf] }
0x11cb   : > { %v2248_v37 = vpop.f32.mrf.mxu1 }
0x11cc   : > { %2487 = vrot.lane.b32.xlu0 %v2486_v38, %s4258_s19  ;;  %v2570_v38 = vsel %vm944_vm3, %v3821_v34, 0 }
0x1245   : > { %v2427_v32 = vpop.f32.mrf.mxu0 }
0x1246   : > { %v2431_v19 = vsel %vm1347_vm8, %v2427_v32, -inf }
0x1247   : > { %2432 = vmax.xlane.f32.xlu2 %v2431_v19 }
0x124d   : > { %v2429_v40 = vpop.f32.mrf.mxu0 }
0x125f   : > { %2493 = vrot.lane.b32.xlu2 %v5027_v44, %s4258_s19 }
0x12ba   : > { %v2433_v46 = vpop.xlane.xlu2 %2432 }
0x12bb   : > { %v2434_v22 = vsub.f32 %v2427_v32, %v2433_v46 }
0x12bd   : > { %v2435_v4 = vmul.f32 1.442695, %v2434_v22 }
0x12bf   : > { %4127 = vpow2.f32 %v2435_v4 }
0x12c2   : > { %v2494_v43 = vpop.permute.xlu2 %2493 }
0x12c3   : > { %v2507_v51 = vsel %vm928_vm2, %v2494_v43, 0 }
0x12c4   : > { %2517 = vmatpush.bf16.xpose.msra.mxu1 %v2507_v51 }
0x12c5   : > { %v4128_v47 = vpop.eup %4127 }
0x12c6   : > { %v2437_v48 = vsel %vm1347_vm8, %v4128_v47, 0.0 }
0x12c7   : > { %2438 = vadd.xlane.f32.xlu1 %v2437_v48 }
0x12e0   : > { %2491 = vrot.lane.b32.xlu1 %v2400_v54, %s4258_s19 }
0x12e8   : > { %2543 = vrot.lane.b32.xlu1 %v5018_v27, %s4258_s19  ;;  %v2490_v27 = vpop.permute.xlu0 %2489 }
0x12f0   : > { %2541 = vrot.lane.b32.xlu1 %v5020_v36, %s4258_s19  ;;  %v2501_v36 = vsel %vm928_vm2, %v2490_v27, 0 }
0x12f8   : > { %2539 = vrot.lane.b32.xlu1 %v5025_v35, %s4258_s19  ;;  %v2488_v35 = vpop.permute.xlu0 %2487 }
0x1300   : > { %2537 = vrot.lane.b32.xlu1 %v5033_v45, %s4258_s19 }
0x133a   : > { %v2439_v44 = vpop.xlane.xlu1 %2438 }
0x133b   : > { %4129 = vrcp.f32 %v2439_v44 }
0x1341   : > { %v4130_v49 = vpop.eup %4129 }
0x1342   : > { %v2441_v50 = vmul.f32 %v4130_v49, %v4128_v47 }
0x1344   : > { %v2442_v52 = vpack.c.bf16 %v2441_v50, %v2441_v50  ;;  %v5105_v50 = vperm.slane %v5046_v6, 3 }
0x1346   : > { %3856 = vmatmul.msk.bf16.vlgmr.msrb.gmra.mxu1 %vm1347_vm8, %v2442_v52 }
0x1352   : > { %v2492_v53 = vpop.permute.xlu1 %2491 }
0x1353   : > { %v2504_v54 = vsel %vm928_vm2, %v2492_v53, 0  ;;  %v5108_v53 = vperm.slane %v5046_v6, 7 }
0x1354   : > { %2518 = vmatpush.bf16.xpose.msra.mxu1 %v2504_v54 }
0x135a   : > { %v2544_v55 = vpop.permute.xlu1 %2543 }
0x135b   : > { %2556 = vmatpush.bf16.msra.mxu0 %v2544_v55 }
0x135c   : > { %2519 = vmatpush.bf16.xpose.msra.mxu1 %v2501_v36 }
0x1362   : > { %v2542_v56 = vpop.permute.xlu1 %2541 }
0x1363   : > { %3857 = vmatmul.msk.bf16.vlgmr.msra.gmra.mxu1 %vm928_vm2, %v2488_v35  ;;  %2557 = vmatpush.bf16.msra.mxu0 %v2542_v56  ;;  %v4068_v35 = vld [vmem:[%s5477_s9 + $0x1] ss:$0 sm:$0xff] }
0x1364   : > { %2598 = vmatpush.bf16.msrb.mxu1 %v2589_v61 }
0x136a   : > { %v2540_v45 = vpop.permute.xlu1 %2539 }
0x136b   : > { %2558 = vmatpush.bf16.msra.mxu0 %v2540_v45 }
0x1372   : > { %v2538_v14 = vpop.permute.xlu1 %2537 }
0x1373   : > { %2559 = vmatpush.bf16.msra.mxu0 %v2538_v14 }
0x1377   : > { %2579 = vmatpush.bf16.msrb.mxu0 %v2570_v38 }
0x13c3   : > { %v2479_v62 = vpop.f32.mrf.mxu1 }
0x13c4   : > { %v2483_v59 = vpack.c.bf16 %v2479_v62, %v2479_v62 }
0x13c6   : > { %3860 = vmatmul.msk.bf16.vlgmr.msrb.gmra.mxu1 %vm928_vm2, %v2483_v59 }
0x13cb   : > { %v2481_v63 = vpop.f32.mrf.mxu1 }
0x13e0   : > { %v2521_v0 = vpop.f32.mrf.mxu1 }
0x13e1   : > { %v2525_v23 = vsel %vm1347_vm8, %v2521_v0, -inf }
0x13e2   : > { %2526 = vmax.xlane.f32.xlu2 %v2525_v23 }
0x13e8   : > { %v2523_v1 = vpop.f32.mrf.mxu1 }
0x1443   : > { %v2600_v2 = vpop.f32.mrf.mxu1 }
0x144b   : > { %v2602_v7 = vpop.f32.mrf.mxu1 }
0x1455   : > { %v2527_v3 = vpop.xlane.xlu2 %2526 }
0x1456   : > { %v2528_v10 = vsub.f32 %v2521_v0, %v2527_v3  ;;  %v2767_v0 = vsel %vm836_vm0, %v4982_v9, 0.0 }
0x1458   : > { %v2529_v11 = vmul.f32 1.442695, %v2528_v10 }
0x145a   : > { %4131 = vpow2.f32 %v2529_v11  ;;  %v3998_v11 = vld [vmem:[%s5478_s10 + $0x18] sm:$0xff] }
0x145b   : > { %2662 = vmatpush.bf16.msrb.mxu2 %v3998_v11 }
0x1460   : > { %v4132_v41 = vpop.eup %4131 }
0x1461   : > { %v2531_v16 = vsel %vm1347_vm8, %v4132_v41, 0.0 }
0x1462   : > { %2532 = vadd.xlane.f32.xlu0 %v2531_v16 }
0x146a   : > { %2753 = vadd.xlane.f32.xlu0 %v2752_v8 }
0x1472   : > { %2759 = vadd.xlane.f32.xlu0 %v2758_v25 }
0x147a   : > { %2765 = vadd.xlane.f32.xlu0 %v2764_v31  ;;  %v2755_v31 = vsel %vm836_vm0, %v4937_v18, 0.0 }
0x14d5   : > { %v2533_v33 = vpop.xlane.xlu0 %2532 }
0x14d6   : > { %4133 = vrcp.f32 %v2533_v33 }
0x14dc   : > { %v4134_v21 = vpop.eup %4133 }
0x14dd   : > { %v2535_v24 = vmul.f32 %v4134_v21, %v4132_v41  ;;  %v2754_v57 = vpop.xlane.xlu0 %2753  ;;  %v2749_v41 = vsel %vm836_vm0, %v4890_v28, 0.0 }
0x14de   : > { %v2774_v26 = vmul.f32 %v2754_v57, %v4582_v5  ;;  %v2761_v57 = vsel %vm836_vm0, %v4961_v42, 0.0 }
0x14df   : > { %v2536_v15 = vpack.c.bf16 %v2535_v24, %v2535_v24 }
0x14e0   : > { %v2782_v29 = vsub.f32 %v4902_v39, %v2774_v26 }
0x14e1   : > { %3858 = vmatmul.msk.bf16.vlgmr.msra.gmra.mxu0 %vm1347_vm8, %v2536_v15 }
0x14e2   : > { %v2790_v30 = vmul.f32 %v2782_v29, %v2782_v29 }
0x14e4   : > { %v2800_v58 = vsel %vm836_vm0, %v2790_v30, 0.0 }
0x14e5   : > { %2801 = vadd.xlane.f32.xlu0 %v2800_v58  ;;  %v2760_v37 = vpop.xlane.xlu0 %2759 }
0x14e6   : > { %v2776_v59 = vmul.f32 %v2760_v37, %v4582_v5 }
0x14e8   : > { %v2784_v63 = vsub.f32 %v4940_v20, %v2776_v59  ;;  %v2770_v59 = vsel %vm836_vm0, %v4986_v12, 0.0 }
0x14ea   : > { %v2792_v23 = vmul.f32 %v2784_v63, %v2784_v63 }
0x14ec   : > { %v2806_v1 = vsel %vm836_vm0, %v2792_v23, 0.0 }
0x14ed   : > { %v5100_v32 = vpop.xlane.xlu0 %2765 }
0x1558   : > { %v2802_v19 = vpop.xlane.xlu0 %2801 }
0x1559   : > { %v2822_v40 = vmul.f32 %v2802_v19, %v4582_v5  ;;  %v3997_v19 = vld [vmem:[%s5478_s10 + $0x10] sm:$0xff] }
0x155a   : > { %2663 = vmatpush.bf16.msrb.mxu2 %v3997_v19 }
0x155b   : > { %v2830_v39 = vadd.f32 1e-05, %v2822_v40 }
0x155d   : > { %4135 = vrsqrt.f32 %v2830_v39  ;;  %vm2853_vm1 = vweird.f32 %v2830_v39 }
0x155e   : > { %v2561_v46 = vpop.f32.mrf.mxu0 }
0x155f   : > { %v2565_v22 = vpack.c.bf16 %v2561_v46, %v2561_v46 }
0x1561   : > { %3859 = vmatmul.msk.bf16.vlgmr.msrb.gmra.mxu0 %vm928_vm2, %v2565_v22 }
0x1563   : > { %v4136_v4 = vpop.eup %4135 }
0x1564   : > { %v2848_v43 = vmul.f32 %v4136_v4, %v2830_v39  ;;  %vm2854_vm10 = vweird.f32 %v4136_v4 }
0x1565   : > { %vm2855_vm11 = vmor %vm2853_vm1, %vm2854_vm10 }
0x1566   : > { %v2849_v51 = vmul.f32 %v4136_v4, %v2848_v43  ;;  %v2563_v47 = vpop.f32.mrf.mxu0 }
0x1568   : > { %v2850_v48 = vmul.f32 0.5, %v2849_v51 }
0x156a   : > { %v2851_v44 = vsub.f32 1.5, %v2850_v48 }
0x156c   : > { %v2852_v49 = vmul.f32 %v4136_v4, %v2851_v44 }
0x156e   : > { %v2856_v52 = vsel %vm2855_vm11, %v4136_v4, %v2852_v49  ;;  %v4002_v4 = vld [vmem:[%s5480_s12 + $0x38] sm:$0xff] }
0x156f   : > { %v2918_v54 = vmul.f32 %v2856_v52, %v2782_v29  ;;  %2713 = vmatpush.bf16.msrb.mxu3 %v4002_v4 }
0x1571   : > { %v2927_v27 = vmul.f32 %v5105_v50, %v2918_v54 }
0x1573   : > { %v5113_v55 = vadd.f32 %v5108_v53, %v2927_v27 }
0x1575   : > { %v5122_v36 = vpack.c.bf16 %v5113_v55, %v5113_v55 }
0x1577   : > { %3900 = vst.msk [vmem:[%s4852_s28 + $0x24] sm:$0xf] %vm1866_vm6, %v5122_v36 }
0x1578   : > { %3424 = vst.msk [vmem:[%s5118_s4 + $0x4] sm:$0xf] %vm1866_vm6, %v5122_v36 }
0x15de   : > { %v2581_v56 = vpop.f32.mrf.mxu0 }
0x15df   : > { %v2601_v45 = vadd.f32 %v2600_v2, %v2581_v56 }
0x15e1   : > { %v2605_v14 = vadd.f32 %v4068_v35, %v2601_v45  ;;  %v2778_v45 = vmul.f32 %v5100_v32, %v4582_v5  ;;  %v2631_v32 = vperm.slane %v5046_v6, 5 }
0x15e3   : > { %v2606_v60 = vadd.f32 %v2605_v14, %v5050_v17 }
0x15e5   : > { %v2607_v61 = vsel %vm836_vm0, %v2606_v60, 0.0 }
0x15e6   : > { %v2583_v62 = vpop.f32.mrf.mxu0  ;;  %2608 = vadd.xlane.f32.xlu1 %v2607_v61 }
0x15ee   : > { %2768 = vadd.xlane.f32.xlu1 %v2767_v0 }
0x15f6   : > { %2807 = vadd.xlane.f32.xlu1 %v2806_v1 }
0x1659   : > { %v2609_v2 = vpop.xlane.xlu1 %2608 }
0x165a   : > { %v2610_v7 = vmul.f32 %v2609_v2, %v4582_v5 }
0x165c   : > { %v5141_v17 = vsub.f32 %v2606_v60, %v2610_v7  ;;  %v2629_v60 = vperm.slane %v5046_v6, 1 }
0x165e   : > { %v2612_v3 = vmul.f32 %v5141_v17, %v5141_v17 }
0x1660   : > { %v2613_v10 = vsel %vm836_vm0, %v2612_v3, 0.0 }
0x1661   : > { %2614 = vadd.xlane.f32.xlu2 %v2613_v10  ;;  %v5146_v20 = vpop.xlane.xlu1 %2768 }
0x1662   : > { %v2779_v7 = vmul.f32 %v5146_v20, %v4582_v5 }
0x1664   : > { %v5218_v11 = vsub.f32 %v4982_v9, %v2779_v7  ;;  %v4001_v9 = vld [vmem:[%s5480_s12 + $0x30] sm:$0xff] }
0x1665   : > { %2714 = vmatpush.bf16.msrb.mxu3 %v4001_v9 }
0x1669   : > { %2750 = vadd.xlane.f32.xlu2 %v2749_v41  ;;  %v2808_v16 = vpop.xlane.xlu1 %2807 }
0x166a   : > { %v2824_v8 = vmul.f32 %v2808_v16, %v4582_v5 }
0x166c   : > { %v2832_v25 = vadd.f32 1e-05, %v2824_v8  ;;  %v4006_v8 = vld [vmem:[%s5483_s15 + $0x18] sm:$0xff] }
0x166d   : > { %3055 = vmatpush.bf16.msra.mxu1 %v4006_v8 }
0x166e   : > { %4137 = vrsqrt.f32 %v2832_v25  ;;  %vm2873_vm13 = vweird.f32 %v2832_v25 }
0x1671   : > { %2756 = vadd.xlane.f32.xlu2 %v2755_v31  ;;  %v4005_v31 = vld [vmem:[%s5483_s15 + $0x10] sm:$0xff] }
0x1672   : > { %3056 = vmatpush.bf16.msra.mxu1 %v4005_v31  ;;  %v3096_v31 = vunpack.c.l.b16 %v5122_v36 }
0x1674   : > { %v4138_v33 = vpop.eup %4137 }
0x1675   : > { %v2868_v21 = vmul.f32 %v4138_v33, %v2832_v25  ;;  %vm2874_vm12 = vweird.f32 %v4138_v33  ;;  %v4008_v25 = vld [vmem:[%s5483_s15 + $0x28] sm:$0xff] }
0x1676   : > { %vm2875_vm14 = vmor %vm2873_vm13, %vm2874_vm12  ;;  %3137 = vmatpush.bf16.msra.mxu2 %v4008_v25 }
0x1677   : > { %v2869_v24 = vmul.f32 %v4138_v33, %v2868_v21  ;;  %v4007_v21 = vld [vmem:[%s5483_s15 + $0x20] sm:$0xff] }
0x1679   : > { %v2870_v26 = vmul.f32 0.5, %v2869_v24  ;;  %2762 = vadd.xlane.f32.xlu2 %v2761_v57 }
0x167a   : > { %3138 = vmatpush.bf16.msra.mxu2 %v4007_v21 }
0x167b   : > { %v2871_v15 = vsub.f32 1.5, %v2870_v26  ;;  %v3999_v26 = vld [vmem:[%s5480_s12 + $0x20] sm:$0xff] }
0x167d   : > { %v2872_v29 = vmul.f32 %v4138_v33, %v2871_v15 }
0x167f   : > { %v2876_v30 = vsel %vm2875_vm14, %v4138_v33, %v2872_v29  ;;  %v4000_v33 = vld [vmem:[%s5480_s12 + $0x28] sm:$0xff] }
0x1680   : > { %v2920_v58 = vmul.f32 %v2876_v30, %v2784_v63  ;;  %v5198_v63 = vsub.f32 %v4964_v13, %v2778_v45  ;;  %2715 = vmatpush.bf16.msrb.mxu3 %v4000_v33 }
0x1682   : > { %v2929_v34 = vmul.f32 %v5105_v50, %v2920_v58  ;;  %v2794_v6 = vmul.f32 %v5198_v63, %v5198_v63 }
0x1684   : > { %v5160_v38 = vadd.f32 %v5108_v53, %v2929_v34  ;;  %v2812_v20 = vsel %vm836_vm0, %v2794_v6, 0.0  ;;  %2716 = vmatpush.bf16.msrb.mxu3 %v3999_v26 }
0x1686   : > { %v5164_v37 = vpack.c.bf16 %v5160_v38, %v5160_v38 }
0x1688   : > { %3902 = vst.msk [vmem:[%s4852_s28 + $0x2c] sm:$0xf] %vm1866_vm6, %v5164_v37 }
0x1689   : > { %3426 = vst.msk [vmem:[%s5118_s4 + $0xc] sm:$0xf] %vm1866_vm6, %v5164_v37 }
0x16d4   : > { %v2615_v40 = vpop.xlane.xlu2 %2614 }
0x16d5   : > { %v2616_v39 = vmul.f32 %v2615_v40, %v4582_v5 }
0x16d7   : > { %v2617_v46 = vadd.f32 1e-05, %v2616_v39 }
0x16d9   : > { %4139 = vrsqrt.f32 %v2617_v46  ;;  %vm2624_vm4 = vweird.f32 %v2617_v46 }
0x16dc   : > { %v2751_v22 = vpop.xlane.xlu2 %2750 }
0x16dd   : > { %v2773_v43 = vmul.f32 %v2751_v22, %v4582_v5 }
0x16df   : > { %v4140_v51 = vpop.eup %4139  ;;  %v5181_v47 = vsub.f32 %v4890_v28, %v2773_v43 }
0x16e0   : > { %v2619_v48 = vmul.f32 %v4140_v51, %v2617_v46  ;;  %vm2625_vm15 = vweird.f32 %v4140_v51 }
0x16e1   : > { %v2789_v44 = vmul.f32 %v5181_v47, %v5181_v47  ;;  %vm2626_vm5 = vmor %vm2624_vm4, %vm2625_vm15 }
0x16e2   : > { %v2620_v49 = vmul.f32 %v4140_v51, %v2619_v48 }
0x16e3   : > { %v2797_v52 = vsel %vm836_vm0, %v2789_v44, 0.0 }
0x16e4   : > { %v2621_v54 = vmul.f32 0.5, %v2620_v49  ;;  %2798 = vadd.xlane.f32.xlu2 %v2797_v52  ;;  %v2757_v27 = vpop.xlane.xlu2 %2756 }
0x16e5   : > { %v2775_v35 = vmul.f32 %v2757_v27, %v4582_v5 }
0x16e6   : > { %v2622_v56 = vsub.f32 1.5, %v2621_v54 }
0x16e7   : > { %v5190_v28 = vsub.f32 %v4937_v18, %v2775_v35 }
0x16e8   : > { %v2623_v14 = vmul.f32 %v4140_v51, %v2622_v56 }
0x16e9   : > { %v2791_v61 = vmul.f32 %v5190_v28, %v5190_v28 }
0x16ea   : > { %v2627_v62 = vsel %vm2626_vm5, %v4140_v51, %v2623_v14 }
0x16eb   : > { %v2628_v18 = vmul.f32 %v2627_v62, %v5141_v17  ;;  %v2803_v0 = vsel %vm836_vm0, %v2791_v61, 0.0 }
0x16ec   : > { %2771 = vadd.xlane.f32.xlu2 %v2770_v59  ;;  %2804 = vadd.xlane.f32.xlu0 %v2803_v0  ;;  %v2763_v23 = vpop.xlane.xlu2 %2762 }
0x16ed   : > { %v2630_v1 = vmul.f32 %v2629_v60, %v2628_v18  ;;  %v2777_v2 = vmul.f32 %v2763_v23, %v4582_v5 }
0x16ef   : > { %v5206_v3 = vadd.f32 %v2631_v32, %v2630_v1  ;;  %v5209_v13 = vsub.f32 %v4961_v42, %v2777_v2  ;;  %v2795_v42 = vmul.f32 %v5218_v11, %v5218_v11 }
0x16f1   : > { %v2633_v17 = vpack.c.bf16 %v5206_v3, %v5206_v3  ;;  %v2793_v10 = vmul.f32 %v5209_v13, %v5209_v13  ;;  %v2815_v16 = vsel %vm836_vm0, %v2795_v42, 0.0  ;;  %v4183_v42 = vld [vmem:[%s4497_s5] sm:$0xff] }
0x16f3   : > { %3873 = vmatmul.msk.bf16.vlgmr.msrb.gmra.mxu2 %vm836_vm0, %v2633_v17  ;;  %v2809_v41 = vsel %vm836_vm0, %v2793_v10, 0.0  ;;  %v4182_v10 = vld [vmem:[%s4497_s5 + $0x8] sm:$0xff] }
0x16f4   : > { %2813 = vadd.xlane.f32.xlu0 %v2812_v20  ;;  %2810 = vadd.xlane.f32.xlu2 %v2809_v41  ;;  %v2962_v20 = vadd.f32 %v4182_v10, %v5113_v55  ;;  %v4187_v10 = vld [vmem:[%s4497_s5 + $0x28] sm:$0xff] }
0x16fc   : > { %2816 = vadd.xlane.f32.xlu2 %v2815_v16 }
0x1757   : > { %v2799_v24 = vpop.xlane.xlu2 %2798 }
0x1758   : > { %v2821_v57 = vmul.f32 %v2799_v24, %v4582_v5 }
0x175a   : > { %v2829_v15 = vadd.f32 1e-05, %v2821_v57 }
0x175c   : > { %4141 = vrsqrt.f32 %v2829_v15  ;;  %vm2843_vm9 = vweird.f32 %v2829_v15 }
0x175f   : > { %v2805_v29 = vpop.xlane.xlu0 %2804  ;;  %v2772_v30 = vpop.xlane.xlu2 %2771 }
0x1760   : > { %v2823_v58 = vmul.f32 %v2805_v29, %v4582_v5  ;;  %v2780_v34 = vmul.f32 %v2772_v30, %v4582_v5 }
0x1762   : > { %v4142_v19 = vpop.eup %4141  ;;  %v2831_v40 = vadd.f32 1e-05, %v2823_v58  ;;  %v5251_v39 = vsub.f32 %v4986_v12, %v2780_v34 }
0x1763   : > { %v2838_v46 = vmul.f32 %v4142_v19, %v2829_v15  ;;  %vm2844_vm7 = vweird.f32 %v4142_v19 }
0x1764   : > { %4143 = vrsqrt.f32 %v2831_v40  ;;  %v2796_v22 = vmul.f32 %v5251_v39, %v5251_v39  ;;  %vm2845_vm10 = vmor %vm2843_vm9, %vm2844_vm7  ;;  %vm2863_vm11 = vweird.f32 %v2831_v40 }
0x1765   : > { %v2839_v4 = vmul.f32 %v4142_v19, %v2838_v46 }
0x1766   : > { %v2818_v43 = vsel %vm836_vm0, %v2796_v22, 0.0 }
0x1767   : > { %v2840_v51 = vmul.f32 0.5, %v2839_v4  ;;  %v2814_v48 = vpop.xlane.xlu0 %2813  ;;  %2819 = vadd.xlane.f32.xlu0 %v2818_v43  ;;  %v2811_v44 = vpop.xlane.xlu2 %2810 }
0x1768   : > { %v2826_v49 = vmul.f32 %v2814_v48, %v4582_v5  ;;  %v2825_v52 = vmul.f32 %v2811_v44, %v4582_v5 }
0x1769   : > { %v2841_v54 = vsub.f32 1.5, %v2840_v51 }
0x176a   : > { %v4144_v12 = vpop.eup %4143  ;;  %v2834_v27 = vadd.f32 1e-05, %v2826_v49  ;;  %v5258_v35 = vadd.f32 1e-05, %v2825_v52 }
0x176b   : > { %v2842_v56 = vmul.f32 %v4142_v19, %v2841_v54  ;;  %v2858_v45 = vmul.f32 %v4144_v12, %v2831_v40  ;;  %vm2864_vm1 = vweird.f32 %v4144_v12 }
0x176c   : > { %4145 = vrsqrt.f32 %v2834_v27  ;;  %vm2865_vm12 = vmor %vm2863_vm11, %vm2864_vm1  ;;  %vm2893_vm15 = vweird.f32 %v2834_v27  ;;  %vm2883_vm5 = vweird.f32 %v5258_v35 }
0x176d   : > { %v2846_v14 = vsel %vm2845_vm10, %v4142_v19, %v2842_v56  ;;  %v2859_v60 = vmul.f32 %v4144_v12, %v2858_v45  ;;  %4147 = vrsqrt.f32 %v5258_v35 }
0x176e   : > { %v2917_v61 = vmul.f32 %v2846_v14, %v5181_v47  ;;  %v4069_v47 = vld [vmem:[%s5479_s11 + $0x1] ss:$0 sm:$0xff]  ;;  %v4184_v14 = vld [vmem:[%s4497_s5 + $0x10] sm:$0xff] }
0x176f   : > { %v2860_v62 = vmul.f32 0.5, %v2859_v60  ;;  %v2817_v59 = vpop.xlane.xlu2 %2816 }
0x1770   : > { %v2926_v32 = vmul.f32 %v5105_v50, %v2917_v61  ;;  %v2827_v18 = vmul.f32 %v2817_v59, %v4582_v5  ;;  %v4185_v61 = vld [vmem:[%s4497_s5 + $0x18] sm:$0xff] }
0x1771   : > { %v2861_v0 = vsub.f32 1.5, %v2860_v62  ;;  %v2964_v62 = vadd.f32 %v4185_v61, %v5160_v38 }
0x1772   : > { %v4146_v23 = vpop.eup %4145  ;;  %v2935_v1 = vadd.f32 %v5108_v53, %v2926_v32  ;;  %v5265_v2 = vadd.f32 1e-05, %v2827_v18 }
0x1773   : > { %v4148_v7 = vpop.eup %4147  ;;  %v2862_v6 = vmul.f32 %v4144_v12, %v2861_v0  ;;  %v2888_v17 = vmul.f32 %v4146_v23, %v2834_v27  ;;  %vm2894_vm13 = vweird.f32 %v4146_v23 }
0x1774   : > { %v2943_v41 = vpack.c.bf16 %v2935_v1, %v2935_v1  ;;  %v2961_v16 = vadd.f32 %v4183_v42, %v2935_v1  ;;  %v2878_v8 = vmul.f32 %v4148_v7, %v5258_v35  ;;  %4149 = vrsqrt.f32 %v5265_v2  ;;  %vm2895_vm4 = vmor %vm2893_vm15, %vm2894_vm13 }
0x1775   : > { %v2866_v9 = vsel %vm2865_vm12, %v4144_v12, %v2862_v6  ;;  %v2889_v25 = vmul.f32 %v4146_v23, %v2888_v17  ;;  %vm2884_vm14 = vweird.f32 %v4148_v7  ;;  %vm2903_vm10 = vweird.f32 %v5265_v2 }
0x1776   : > { %3899 = vst.msk [vmem:[%s4852_s28 + $0x20] sm:$0xf] %vm1866_vm6, %v2943_v41  ;;  %v2919_v33 = vmul.f32 %v2866_v9, %v5190_v28  ;;  %v2879_v21 = vmul.f32 %v4148_v7, %v2878_v8  ;;  %v2665_v24 = vpop.f32.mrf.mxu2  ;;  %v3020_v55 = vpack.c.bf16 %v2962_v20, %v2961_v16  ;;  %v3095_v57 = vunpack.c.l.b16 %v2943_v41  ;;  %vm2885_vm7 = vmor %vm2883_vm5, %vm2884_vm14 }
0x1777   : > { %3423 = vst.msk [vmem:[%s5118_s4] sm:$0xf] %vm1866_vm6, %v2943_v41  ;;  %v2890_v26 = vmul.f32 0.5, %v2889_v25  ;;  %v2666_v15 = vadd.f32 %v4069_v47, %v2665_v24 }
0x1778   : > { %v2928_v29 = vmul.f32 %v5105_v50, %v2919_v33  ;;  %v2880_v30 = vmul.f32 0.5, %v2879_v21  ;;  %3932 = vmatmul.msk.bf16.vlgmr.msra.gmra.mxu1 %vm836_vm0, %v3020_v55  ;;  %v3103_v58 = vpack.c.b16 %v3096_v31, %v3095_v57 }
0x1779   : > { %v2891_v34 = vsub.f32 1.5, %v2890_v26  ;;  %v2669_v36 = vmax.f32 %v2666_v15, 0.0 }
0x177a   : > { %v2881_v19 = vsub.f32 1.5, %v2880_v30  ;;  %3944 = vmatmul.msk.bf16.vlgmr.msra.gmra.mxu2 %vm836_vm0, %v3103_v58  ;;  %v2937_v28 = vadd.f32 %v5108_v53, %v2928_v29  ;;  %v4150_v40 = vpop.eup %4149 }
0x177b   : > { %v2892_v46 = vmul.f32 %v4146_v23, %v2891_v34  ;;  %v2670_v22 = vpack.c.bf16 %v2669_v36, %v2669_v36  ;;  %v2898_v43 = vmul.f32 %v4150_v40, %v5265_v2  ;;  %vm2904_vm9 = vweird.f32 %v4150_v40  ;;  %v4188_v36 = vld [vmem:[%s4497_s5 + $0x30] sm:$0xff] }
0x177c   : > { %v2882_v4 = vmul.f32 %v4148_v7, %v2881_v19  ;;  %v2945_v51 = vpack.c.bf16 %v2937_v28, %v2937_v28  ;;  %v2963_v60 = vadd.f32 %v4184_v14, %v2937_v28  ;;  %vm2905_vm1 = vmor %vm2903_vm10, %vm2904_vm9  ;;  %v4189_v28 = vld [vmem:[%s4497_s5 + $0x38] sm:$0xff] }
0x177d   : > { %v2896_v48 = vsel %vm2895_vm4, %v4146_v23, %v2892_v46  ;;  %3898 = vmatmul.msk.bf16.vlgmr.msrb.gmra.mxu3 %vm1347_vm8, %v2670_v22  ;;  %v2899_v52 = vmul.f32 %v4150_v40, %v2898_v43 }
0x177e   : > { %v2922_v44 = vmul.f32 %v2896_v48, %v5198_v63  ;;  %v2886_v49 = vsel %vm2885_vm7, %v4148_v7, %v2882_v4  ;;  %v2667_v54 = vpop.f32.mrf.mxu2  ;;  %3901 = vst.msk [vmem:[%s4852_s28 + $0x28] sm:$0xf] %vm1866_vm6, %v2945_v51  ;;  %v3097_v32 = vunpack.c.l.b16 %v2945_v51  ;;  %v3021_v1 = vpack.c.bf16 %v2964_v62, %v2963_v60  ;;  %v4004_v60 = vld [vmem:[%s5483_s15 + $0x8] sm:$0xff] }
0x177f   : > { %v2921_v12 = vmul.f32 %v2886_v49, %v5209_v13  ;;  %3425 = vst.msk [vmem:[%s5118_s4 + $0x8] sm:$0xf] %vm1866_vm6, %v2945_v51  ;;  %v2900_v35 = vmul.f32 0.5, %v2899_v52  ;;  %v3098_v7 = vunpack.c.l.b16 %v5164_v37  ;;  %3012 = vmatpush.bf16.msra.mxu0 %v4004_v60 }
0x1780   : > { %v2931_v27 = vmul.f32 %v5105_v50, %v2922_v44 }
0x1781   : > { %v2930_v56 = vmul.f32 %v5105_v50, %v2921_v12  ;;  %v2901_v45 = vsub.f32 1.5, %v2900_v35  ;;  %v3104_v2 = vpack.c.b16 %v3098_v7, %v3097_v32 }
0x1782   : > { %v2940_v63 = vadd.f32 %v5108_v53, %v2931_v27 }
0x1783   : > { %v2939_v13 = vadd.f32 %v5108_v53, %v2930_v56  ;;  %v2902_v59 = vmul.f32 %v4150_v40, %v2901_v45 }
0x1784   : > { %v2948_v18 = vpack.c.bf16 %v2940_v63, %v2940_v63  ;;  %v2966_v20 = vadd.f32 %v4187_v10, %v2940_v63  ;;  %v4003_v63 = vld [vmem:[%s5483_s15] sm:$0xff] }
0x1785   : > { %v2947_v0 = vpack.c.bf16 %v2939_v13, %v2939_v13  ;;  %v2906_v23 = vsel %vm2905_vm1, %v4150_v40, %v2902_v59  ;;  %3013 = vmatpush.bf16.msra.mxu0 %v4003_v63 }
0x1786   : > { %3904 = vst.msk [vmem:[%s4852_s28 + $0x34] sm:$0xf] %vm1866_vm6, %v2948_v18  ;;  %v2923_v38 = vmul.f32 %v2906_v23, %v5218_v11  ;;  %v4186_v11 = vld [vmem:[%s4497_s5 + $0x20] sm:$0xff]  ;;  %v3100_v42 = vunpack.c.l.b16 %v2948_v18 }
0x1787   : > { %3903 = vst.msk [vmem:[%s4852_s28 + $0x30] sm:$0xf] %vm1866_vm6, %v2947_v0  ;;  %v2965_v47 = vadd.f32 %v4186_v11, %v2939_v13  ;;  %v3099_v41 = vunpack.c.l.b16 %v2947_v0 }
0x1788   : > { %3933 = vmatmul.msk.bf16.gmra.mxu1 %vm836_vm0, %v3021_v1  ;;  %3427 = vst.msk [vmem:[%s5118_s4 + $0x10] sm:$0xf] %vm1866_vm6, %v2947_v0  ;;  %v2932_v6 = vmul.f32 %v5105_v50, %v2923_v38 }
0x1789   : > { %3428 = vst.msk [vmem:[%s5118_s4 + $0x14] sm:$0xf] %vm1866_vm6, %v2948_v18  ;;  %v3022_v16 = vpack.c.bf16 %v2966_v20, %v2965_v47  ;;  %v3105_v8 = vpack.c.b16 %v3100_v42, %v3099_v41  ;;  %v4070_v18 = vld [vmem:[%s5549_s23 + $0x1] ss:$0 sm:$0xff]  ;;  %v4071_v47 = vld [vmem:[%s5549_s23 + $0x2] ss:$0 sm:$0xff] }
0x178a   : > { %3945 = vmatmul.msk.bf16.gmra.mxu2 %vm836_vm0, %v3104_v2  ;;  %v2941_v37 = vadd.f32 %v5108_v53, %v2932_v6 }
0x178c   : > { %v2949_v17 = vpack.c.bf16 %v2941_v37, %v2941_v37  ;;  %v2967_v19 = vadd.f32 %v4188_v36, %v2941_v37 }
0x178e   : > { %3905 = vst.msk [vmem:[%s4852_s28 + $0x38] sm:$0xf] %vm1866_vm6, %v2949_v17  ;;  %v3101_v22 = vunpack.c.l.b16 %v2949_v17 }
0x178f   : > { %3429 = vst.msk [vmem:[%s5118_s4 + $0x18] sm:$0xf] %vm1866_vm6, %v2949_v17 }
0x1798   : > { %3934 = vmatmul.msk.bf16.gmra.mxu1 %vm836_vm0, %v3022_v16 }
0x179a   : > { %3946 = vmatmul.msk.bf16.gmra.mxu2 %vm836_vm0, %v3105_v8 }
0x17da   : > { %v2820_v9 = vpop.xlane.xlu0 %2819 }
0x17db   : > { %v2828_v25 = vmul.f32 %v2820_v9, %v4582_v5 }
0x17dd   : > { %v2836_v31 = vadd.f32 1e-05, %v2828_v25 }
0x17df   : > { %4151 = vrsqrt.f32 %v2836_v31  ;;  %vm2913_vm12 = vweird.f32 %v2836_v31 }
0x17e5   : > { %v4152_v33 = vpop.eup %4151 }
0x17e6   : > { %v2908_v21 = vmul.f32 %v4152_v33, %v2836_v31  ;;  %vm2914_vm11 = vweird.f32 %v4152_v33 }
0x17e7   : > { %vm2915_vm13 = vmor %vm2913_vm12, %vm2914_vm11 }
0x17e8   : > { %v2909_v24 = vmul.f32 %v4152_v33, %v2908_v21 }
0x17ea   : > { %v2910_v55 = vmul.f32 0.5, %v2909_v24 }
0x17ec   : > { %v2911_v57 = vsub.f32 1.5, %v2910_v55 }
0x17ee   : > { %v2912_v26 = vmul.f32 %v4152_v33, %v2911_v57 }
0x17f0   : > { %v2916_v15 = vsel %vm2915_vm13, %v4152_v33, %v2912_v26 }
0x17f1   : > { %v2924_v29 = vmul.f32 %v2916_v15, %v5251_v39 }
0x17f3   : > { %v2933_v30 = vmul.f32 %v5105_v50, %v2924_v29  ;;  %v4072_v50 = vld [vmem:[%s5481_s13 + $0x1] ss:$0 sm:$0xff] }
0x17f5   : > { %v2942_v58 = vadd.f32 %v5108_v53, %v2933_v30  ;;  %v3058_v49 = vpop.f32.mrf.mxu1 }
0x17f6   : > { %v3059_v41 = vadd.f32 %v4070_v18, %v3058_v49 }
0x17f7   : > { %v2950_v34 = vpack.c.bf16 %v2942_v58, %v2942_v58  ;;  %v2968_v40 = vadd.f32 %v4189_v28, %v2942_v58 }
0x17f8   : > { %v3078_v24 = vpack.c.bf16 %v3059_v41, %v3059_v41 }
0x17f9   : > { %3906 = vst.msk [vmem:[%s4852_s28 + $0x3c] sm:$0xf] %vm1866_vm6, %v2950_v34  ;;  %v3023_v46 = vpack.c.bf16 %v2968_v40, %v2967_v19  ;;  %v3102_v4 = vunpack.c.l.b16 %v2950_v34 }
0x17fa   : > { %3430 = vst.msk [vmem:[%s5118_s4 + $0x1c] sm:$0xf] %vm1866_vm6, %v2950_v34 }
0x17fb   : > { %3935 = vmatmul.msk.bf16.gmra.mxu1 %vm836_vm0, %v3023_v46  ;;  %v3106_v43 = vpack.c.b16 %v3102_v4, %v3101_v22  ;;  %v3176_v22 = vunpack.c.l.b16 %v3078_v24 }
0x17fd   : > { %3947 = vmatmul.msk.bf16.gmra.mxu2 %vm836_vm0, %v3106_v43  ;;  %v5341_v52 = vpop.f32.mrf.mxu2  ;;  %v3060_v54 = vpop.f32.mrf.mxu1 }
0x17fe   : > { %v3061_v11 = vadd.f32 %v4070_v18, %v3060_v54 }
0x1800   : > { %v2718_v53 = vpop.f32.mrf.mxu3  ;;  %v3079_v25 = vpack.c.bf16 %v3061_v11, %v3061_v11 }
0x1801   : > { %v2719_v39 = vadd.f32 %v4072_v50, %v2718_v53 }
0x1802   : > { %v3177_v34 = vunpack.c.l.b16 %v3079_v25 }
0x1803   : > { %v2722_v51 = vadd.f32 %v2719_v39, %v5206_v3 }
0x1805   : > { %v2723_v48 = vsel %vm836_vm0, %v2722_v51, 0.0  ;;  %v5343_v12 = vpop.f32.mrf.mxu2  ;;  %v3063_v27 = vpop.f32.mrf.mxu1 }
0x1806   : > { %2724 = vadd.xlane.f32.xlu1 %v2723_v48  ;;  %v3064_v36 = vadd.f32 %v4070_v18, %v3063_v27  ;;  %v3184_v48 = vpack.c.b16 %v3177_v34, %v3176_v22 }
0x1808   : > { %v2720_v44 = vpop.f32.mrf.mxu3  ;;  %v3080_v49 = vpack.c.bf16 %v3064_v36, %v3064_v36 }
0x1809   : > { %v3143_v44 = vadd.f32 %v4071_v47, %v5343_v12 }
0x180a   : > { %v3178_v63 = vunpack.c.l.b16 %v3080_v49 }
0x180d   : > { %v3145_v35 = vpop.f32.mrf.mxu2  ;;  %v3065_v56 = vpop.f32.mrf.mxu1 }
0x180e   : > { %v3066_v55 = vadd.f32 %v4070_v18, %v3065_v56  ;;  %v3146_v43 = vadd.f32 %v4071_v47, %v3145_v35 }
0x1810   : > { %v3081_v4 = vpack.c.bf16 %v3066_v55, %v3066_v55  ;;  %v3162_v60 = vpack.c.bf16 %v3146_v43, %v3146_v43 }
0x1815   : > { %v3147_v45 = vpop.f32.mrf.mxu2  ;;  %v3068_v14 = vpop.f32.mrf.mxu1 }
0x1816   : > { %v3069_v10 = vadd.f32 %v4070_v18, %v3068_v14  ;;  %v3148_v28 = vadd.f32 %v4071_v47, %v3147_v45  ;;  %v3141_v14 = vadd.f32 %v4071_v47, %v5341_v52  ;;  %v3179_v45 = vunpack.c.l.b16 %v3081_v4 }
0x1818   : > { %v3082_v31 = vpack.c.bf16 %v3069_v10, %v3069_v10  ;;  %v3163_v54 = vpack.c.bf16 %v3148_v28, %v3148_v28 }
0x181a   : > { %v3180_v19 = vunpack.c.l.b16 %v3082_v31 }
0x181d   : > { %v3150_v3 = vpop.f32.mrf.mxu2  ;;  %v3070_v61 = vpop.f32.mrf.mxu1 }
0x181e   : > { %v3071_v6 = vadd.f32 %v4070_v18, %v3070_v61  ;;  %v3151_v57 = vadd.f32 %v4071_v47, %v3150_v3  ;;  %v3161_v61 = vpack.c.bf16 %v3143_v44, %v3143_v44 }
0x1820   : > { %v3083_v42 = vpack.c.bf16 %v3071_v6, %v3071_v6  ;;  %v3164_v53 = vpack.c.bf16 %v3151_v57, %v3151_v57  ;;  %v3237_v52 = vunpack.c.l.b16 %v3161_v61  ;;  %v2986_v61 = vld [vmem:[%s5550_s1] sm:$0xf] }
0x1822   : > { %v3181_v15 = vunpack.c.l.b16 %v3083_v42  ;;  %v3240_v3 = vunpack.c.l.b16 %v3164_v53  ;;  %v4190_v42 = vld [vmem:[%s5482_s14 + $0x8] sm:$0xff] }
0x1824   : > { %v5365_v50 = vpack.c.b16 %v3181_v15, %v3180_v19  ;;  %v4073_v15 = vld [vmem:[%s5549_s23] ss:$0 sm:$0xff] }
0x1825   : > { %v3152_v62 = vpop.f32.mrf.mxu2 }
0x1826   : > { %v3153_v33 = vadd.f32 %v4071_v47, %v3152_v62  ;;  %v3198_v35 = vsel %vm928_vm2, %v5365_v50, 0  ;;  %v3239_v62 = vunpack.c.l.b16 %v3163_v54 }
0x1828   : > { %v3165_v40 = vpack.c.bf16 %v3153_v33, %v3153_v33 }
0x182a   : > { %v3241_v56 = vunpack.c.l.b16 %v3165_v40 }
0x182c   : > { %v3246_v12 = vpack.c.b16 %v3241_v56, %v3240_v3 }
0x1878   : > { %v3073_v13 = vpop.f32.mrf.mxu1 }
0x1879   : > { %v2725_v59 = vpop.xlane.xlu1 %2724  ;;  %v3074_v23 = vadd.f32 %v4070_v18, %v3073_v13  ;;  %v3160_v13 = vpack.c.bf16 %v3141_v14, %v3141_v14 }
0x187a   : > { %v2726_v32 = vmul.f32 %v2725_v59, %v4582_v5  ;;  %v5372_v59 = vpack.c.b16 %v3179_v45, %v3178_v63 }
0x187b   : > { %v3084_v37 = vpack.c.bf16 %v3074_v23, %v3074_v23  ;;  %v3236_v23 = vunpack.c.l.b16 %v3160_v13 }
0x187c   : > { %v5355_v0 = vsub.f32 %v2722_v51, %v2726_v32  ;;  %v3238_v32 = vunpack.c.l.b16 %v3162_v60 }
0x187d   : > { %v3182_v16 = vunpack.c.l.b16 %v3084_v37 }
0x187e   : > { %v2728_v1 = vmul.f32 %v5355_v0, %v5355_v0 }
0x1880   : > { %v3075_v7 = vpop.f32.mrf.mxu1  ;;  %v3155_v38 = vpop.f32.mrf.mxu2  ;;  %v2729_v2 = vsel %vm836_vm0, %v2728_v1, 0.0  ;;  %v3195_v1 = vsel %vm928_vm2, %v5372_v59, 0 }
0x1881   : > { %v3076_v17 = vadd.f32 %v4070_v18, %v3075_v7  ;;  %2730 = vadd.xlane.f32.xlu1 %v2729_v2  ;;  %v3156_v9 = vadd.f32 %v4071_v47, %v3155_v38  ;;  %v3245_v18 = vpack.c.b16 %v3239_v62, %v3238_v32  ;;  %v3244_v7 = vpack.c.b16 %v3237_v52, %v3236_v23 }
0x1882   : > { %v3192_v38 = vsel %vm928_vm2, %v3184_v48, 0  ;;  %v3374_v62 = vsel %vm944_vm3, %v2986_v61, 0 }
0x1883   : > { %v3085_v20 = vpack.c.bf16 %v3076_v17, %v3076_v17  ;;  %v3166_v29 = vpack.c.bf16 %v3156_v9, %v3156_v9  ;;  %v2747_v9 = vperm.slane %v4190_v42, 6 }
0x1885   : > { %v3183_v8 = vunpack.c.l.b16 %v3085_v20  ;;  %v3242_v39 = vunpack.c.l.b16 %v3166_v29 }
0x1887   : > { %v3187_v21 = vpack.c.b16 %v3183_v8, %v3182_v16  ;;  %v2745_v16 = vperm.slane %v4190_v42, 2 }
0x1888   : > { %v3157_v26 = vpop.f32.mrf.mxu2 }
0x1889   : > { %v3158_v30 = vadd.f32 %v4071_v47, %v3157_v26  ;;  %3280 = vrot.lane.b32.xlu0 %v3187_v21, %s4258_s19  ;;  %v3201_v58 = vsel %vm928_vm2, %v3187_v21, 0  ;;  %v4191_v21 = vld [vmem:[%s4442_s0] sm:$0xff] }
0x188a   : > { %3207 = vmatpush.bf16.xpose.msra.mxu3 %v3201_v58 }
0x188b   : > { %v3167_v46 = vpack.c.bf16 %v3158_v30, %v3158_v30 }
0x188d   : > { %v3243_v51 = vunpack.c.l.b16 %v3167_v46 }
0x188f   : > { %v3247_v27 = vpack.c.b16 %v3243_v51, %v3242_v39 }
0x1891   : > { %3274 = vrot.lane.b32.xlu0 %v3184_v48, %s4258_s19  ;;  %3259 = vmatpush.bf16.msrb.mxu0 %v3247_v27 }
0x1892   : > { %3208 = vmatpush.bf16.xpose.msra.mxu3 %v3198_v35 }
0x1895   : > { %3260 = vmatpush.bf16.msrb.mxu0 %v3246_v12 }
0x1899   : > { %3261 = vmatpush.bf16.msrb.mxu0 %v3245_v18 }
0x189a   : > { %3209 = vmatpush.bf16.xpose.msra.mxu3 %v3195_v1 }
0x189d   : > { %3262 = vmatpush.bf16.msrb.mxu0 %v3244_v7 }
0x18a2   : > { %3210 = vmatpush.bf16.xpose.msra.mxu3 %v3192_v38 }
0x18f4   : > { %v2731_v2 = vpop.xlane.xlu1 %2730 }
0x18f5   : > { %v2732_v6 = vmul.f32 %v2731_v2, %v4582_v5 }
0x18f7   : > { %v2733_v37 = vadd.f32 1e-05, %v2732_v6 }
0x18f9   : > { %4153 = vrsqrt.f32 %v2733_v37  ;;  %vm2740_vm14 = vweird.f32 %v2733_v37 }
0x18fb   : > { %v3281_v55 = vpop.permute.xlu0 %3280 }
0x18fc   : > { %v3295_v26 = vsel %vm928_vm2, %v3281_v55, 0 }
0x18ff   : > { %v4154_v17 = vpop.eup %4153 }
0x1900   : > { %v2735_v11 = vmul.f32 %v4154_v17, %v2733_v37  ;;  %vm2741_vm6 = vweird.f32 %v4154_v17 }
0x1901   : > { %vm2742_vm15 = vmor %vm2740_vm14, %vm2741_vm6 }
0x1902   : > { %v2736_v47 = vmul.f32 %v4154_v17, %v2735_v11 }
0x1903   : > { %v3275_v19 = vpop.permute.xlu0 %3274 }
0x1904   : > { %v2737_v10 = vmul.f32 0.5, %v2736_v47  ;;  %v3286_v63 = vsel %vm928_vm2, %v3275_v19, 0 }
0x1906   : > { %v2738_v20 = vsub.f32 1.5, %v2737_v10 }
0x1908   : > { %v2739_v41 = vmul.f32 %v4154_v17, %v2738_v20  ;;  %v2987_v20 = vld [vmem:[%s5550_s1 + $0x4] sm:$0xf] }
0x190a   : > { %v2743_v8 = vsel %vm2742_vm15, %v4154_v17, %v2739_v41  ;;  %v3355_v41 = vsel %vm944_vm3, %v2987_v20, 0 }
0x190b   : > { %v2744_v25 = vmul.f32 %v2743_v8, %v5355_v0 }
0x190d   : > { %v2746_v31 = vmul.f32 %v2745_v16, %v2744_v25 }
0x190f   : > { %v5382_v33 = vadd.f32 %v2747_v9, %v2746_v31  ;;  %v4074_v9 = vld [vmem:[%s5551_s26] ss:$0 sm:$0xff] }
0x1911   : > { %v2960_v24 = vadd.f32 %v4191_v21, %v5382_v33 }
0x1913   : > { %v2989_v57 = vpack.c.bf16 %v2960_v24, %v2960_v24 }
0x1915   : > { %3923 = vmatmul.msk.bf16.vlgmr.msra.gmra.mxu0 %vm836_vm0, %v2989_v57 }
0x1916   : > { %3301 = vmatpush.bf16.xpose.msra.mxu0 %v3295_v26 }
0x1992   : > { %v3015_v29 = vpop.f32.mrf.mxu0 }
0x1993   : > { %v3016_v30 = vadd.f32 %v4073_v15, %v3015_v29 }
0x1995   : > { %v3019_v0 = vpack.c.bf16 %v3016_v30, %v3016_v30 }
0x1997   : > { %v3270_v58 = vunpack.c.l.b16 %v3019_v0  ;;  %3948 = vmatmul.msk.bf16.vlgmr.msra.gmra.mxu3 %vm928_vm2, %v3019_v0 }
0x1999   : > { %v3271_v34 = vpack.c.b16 %v3270_v58, %v3270_v58 }
0x199a   : > { %v3017_v36 = vpop.f32.mrf.mxu0 }
0x199b   : > { %3272 = vrot.lane.b32.xlu0 %v3271_v34, %s4258_s19 }
0x19a3   : > { %3328 = vrot.lane.b32.xlu0 %v3247_v27, %s4258_s19 }
0x19ab   : > { %3326 = vrot.lane.b32.xlu0 %v3246_v12, %s4258_s19 }
0x19b3   : > { %3324 = vrot.lane.b32.xlu0 %v3245_v18, %s4258_s19 }
0x19bb   : > { %3322 = vrot.lane.b32.xlu0 %v3244_v7, %s4258_s19 }
0x1a0d   : > { %v3273_v28 = vpop.permute.xlu0 %3272 }
0x1a15   : > { %v3329_v40 = vpop.permute.xlu0 %3328 }
0x1a16   : > { %3341 = vmatpush.bf16.msrb.mxu3 %v3329_v40 }
0x1a1a   : > { %v3212_v46 = vpop.f32.mrf.mxu3 }
0x1a1b   : > { %v3216_v22 = vsel %vm1347_vm8, %v3212_v46, -inf }
0x1a1c   : > { %3217 = vmax.xlane.f32.xlu2 %v3216_v22 }
0x1a1d   : > { %v3327_v4 = vpop.permute.xlu0 %3326 }
0x1a1e   : > { %3342 = vmatpush.bf16.msrb.mxu3 %v3327_v4  ;;  %v4075_v4 = vld [vmem:[%s5554_s20] ss:$0 sm:$0xff] }
0x1a22   : > { %v3214_v43 = vpop.f32.mrf.mxu3 }
0x1a25   : > { %v3325_v53 = vpop.permute.xlu0 %3324 }
0x1a26   : > { %3343 = vmatpush.bf16.msrb.mxu3 %v3325_v53  ;;  %v4076_v53 = vld [vmem:[%s5554_s20 + $0x1] ss:$0 sm:$0xff] }
0x1a2d   : > { %v3323_v39 = vpop.permute.xlu0 %3322 }
0x1a2e   : > { %3344 = vmatpush.bf16.msrb.mxu3 %v3323_v39 }
0x1a32   : > { %3364 = vmatpush.bf16.msra.mxu3 %v3355_v41 }
0x1a34   : > { %3278 = vrot.lane.b32.xlu2 %v5365_v50, %s4258_s19 }
0x1a8f   : > { %v3218_v51 = vpop.xlane.xlu2 %3217 }
0x1a90   : > { %v3219_v48 = vsub.f32 %v3212_v46, %v3218_v51 }
0x1a92   : > { %v3220_v44 = vmul.f32 1.442695, %v3219_v48 }
0x1a94   : > { %4155 = vpow2.f32 %v3220_v44 }
0x1a97   : > { %v3279_v49 = vpop.permute.xlu2 %3278 }
0x1a98   : > { %v3292_v54 = vsel %vm928_vm2, %v3279_v49, 0 }
0x1a99   : > { %3302 = vmatpush.bf16.xpose.msra.mxu0 %v3292_v54 }
0x1a9a   : > { %v4156_v56 = vpop.eup %4155 }
0x1a9b   : > { %v3222_v27 = vsel %vm1347_vm8, %v4156_v56, 0.0 }
0x1a9c   : > { %3223 = vadd.xlane.f32.xlu1 %v3222_v27 }
0x1ab5   : > { %3276 = vrot.lane.b32.xlu1 %v5372_v59, %s4258_s19  ;;  %s5555_s19 = sld [smem:[#allocation26_spill]] }
0x1abb   : > { %s3452_s5 = scalar_lea.hbm %s5555_s19, %s3955_s30  ;;  %s4212_s29 = scalar_lea.hbm %s5555_s19, 16 }
0x1abc   : > { %s3456_s1 = sshll.u32 %s3452_s5, 4  ;;  %s3457_s1 = int_to_ptr.hbm [resolvable:$true] %s3456_s1 }
0x1abd   : > { %s4206_s18 = sshra.s32 %s3457_s1, 4  ;;  %s4207_s18 = int_to_ptr.hbm [resolvable:$true] %s4206_s18 }
0x1abe   : > { %s4208_s30 = scalar_lea.hbm %s4207_s18, 8  ;;  %p4213_p0 = scmp.lt.s32.totalorder %s4207_s18, %s5555_s19 }
0x1abf   : > { %p4209_p11 = scmp.ne.s32.totalorder %s4207_s18, %s4208_s30  ;;  %p4214_p1 = scmp.lt.s32.totalorder %s4212_s29, %s4208_s30 }
0x1ac1   : > { %p4210_p12 = pnand %p4209_p11, %p4412_p5  ;;  %p4215_p2 = por %p4214_p1, %p4213_p0 }
0x1ac3   : > { %p4211_p13 = pneg %p4210_p12 }
0x1ac5   : > { %p4216_p3 = pnand %p4215_p2, %p4211_p13 }
0x1b0f   : > { %v3224_v14 = vpop.xlane.xlu1 %3223 }
0x1b10   : > { %4157 = vrcp.f32 %v3224_v14 }
0x1b16   : > { %v4158_v45 = vpop.eup %4157 }
0x1b17   : > { %v3226_v60 = vmul.f32 %v4158_v45, %v4156_v56 }
0x1b19   : > { %v3227_v50 = vpack.c.bf16 %v3226_v60, %v3226_v60 }
0x1b1b   : > { %3949 = vmatmul.msk.bf16.vlgmr.msrb.gmra.mxu0 %vm1347_vm8, %v3227_v50 }
0x1b27   : > { %v3277_v3 = vpop.permute.xlu1 %3276 }
0x1b28   : > { %v3289_v35 = vsel %vm928_vm2, %v3277_v3, 0 }
0x1b29   : > { %3303 = vmatpush.bf16.xpose.msra.mxu0 %v3289_v35 }
0x1b31   : > { %3304 = vmatpush.bf16.xpose.msra.mxu0 %v3286_v63 }
0x1b38   : > { %3950 = vmatmul.msk.bf16.vlgmr.msra.gmra.mxu0 %vm928_vm2, %v3273_v28 }
0x1b39   : > { %3383 = vmatpush.bf16.msrb.mxu0 %v3374_v62 }
0x1b98   : > { %v3264_v12 = vpop.f32.mrf.mxu0 }
0x1b99   : > { %v3268_v13 = vpack.c.bf16 %v3264_v12, %v3264_v12 }
0x1b9b   : > { %3953 = vmatmul.msk.bf16.vlgmr.msrb.gmra.mxu0 %vm928_vm2, %v3268_v13 }
0x1ba0   : > { %v3266_v59 = vpop.f32.mrf.mxu0 }
0x1bb5   : > { %v3306_v32 = vpop.f32.mrf.mxu0 }
0x1bb6   : > { %v3310_v52 = vsel %vm1347_vm8, %v3306_v32, -inf }
0x1bb7   : > { %3311 = vmax.xlane.f32.xlu2 %v3310_v52 }
0x1bbd   : > { %v3308_v18 = vpop.f32.mrf.mxu0 }
0x1c18   : > { %v3385_v23 = vpop.f32.mrf.mxu0 }
0x1c20   : > { %v3387_v1 = vpop.f32.mrf.mxu0 }
0x1c2a   : > { %v3312_v7 = vpop.xlane.xlu2 %3311 }
0x1c2b   : > { %v3313_v38 = vsub.f32 %v3306_v32, %v3312_v7 }
0x1c2d   : > { %v3314_v2 = vmul.f32 1.442695, %v3313_v38 }
0x1c2f   : > { %4159 = vpow2.f32 %v3314_v2 }
0x1c35   : > { %v4160_v6 = vpop.eup %4159 }
0x1c36   : > { %v3316_v37 = vsel %vm1347_vm8, %v4160_v6, 0.0 }
0x1c37   : > { %3317 = vadd.xlane.f32.xlu1 %v3316_v37 }
0x1caa   : > { %v3318_v17 = vpop.xlane.xlu1 %3317 }
0x1cab   : > { %4161 = vrcp.f32 %v3318_v17 }
0x1cb1   : > { %v4162_v11 = vpop.eup %4161 }
0x1cb2   : > { %v3320_v47 = vmul.f32 %v4162_v11, %v4160_v6 }
0x1cb4   : > { %v3321_v10 = vpack.c.bf16 %v3320_v47, %v3320_v47 }
0x1cb6   : > { %3951 = vmatmul.msk.bf16.vlgmr.msrb.gmra.mxu3 %vm1347_vm8, %v3321_v10 }
0x1d39   : > { %v3346_v42 = vpop.f32.mrf.mxu3 }
0x1d3a   : > { %v3350_v16 = vpack.c.bf16 %v3346_v42, %v3346_v42 }
0x1d3c   : > { %3952 = vmatmul.msk.bf16.vlgmr.msra.gmra.mxu3 %vm928_vm2, %v3350_v16 }
0x1d41   : > { %v3348_v8 = vpop.f32.mrf.mxu3 }
0x1dbf   : > { %v3366_v25 = vpop.f32.mrf.mxu3 }
0x1dc0   : > { %v3386_v31 = vadd.f32 %v3385_v23, %v3366_v25 }
0x1dc2   : > { %v3392_v21 = vadd.f32 %v4074_v9, %v3386_v31 }
0x1dc4   : > { %v3393_v24 = vadd.f32 %v3392_v21, %v5382_v33 }
0x1dc6   : > { %v3396_v55 = vsel %vm836_vm0, %v3393_v24, 0.0 }
0x1dc7   : > { %3397 = vadd.xlane.f32.xlu0 %v3396_v55  ;;  %v3368_v57 = vpop.f32.mrf.mxu3 }
0x1e3a   : > { %v3398_v26 = vpop.xlane.xlu0 %3397 }
0x1e3b   : > { %v3399_v15 = vmul.f32 %v3398_v26, %v4582_v5 }
0x1e3d   : > { %v3400_v29 = vsub.f32 %v3393_v24, %v3399_v15 }
0x1e3f   : > { %v3401_v30 = vmul.f32 %v3400_v29, %v3400_v29 }
0x1e41   : > { %v3402_v0 = vsel %vm836_vm0, %v3401_v30, 0.0 }
0x1e42   : > { %3403 = vadd.xlane.f32.xlu2 %v3402_v0 }
0x1eb5   : > { %v3404_v58 = vpop.xlane.xlu2 %3403 }
0x1eb6   : > { %v3405_v34 = vmul.f32 %v3404_v58, %v4582_v5 }
0x1eb8   : > { %v3406_v36 = vadd.f32 1e-05, %v3405_v34 }
0x1eba   : > { %4163 = vrsqrt.f32 %v3406_v36  ;;  %vm3413_vm3 = vweird.f32 %v3406_v36 }
0x1ec0   : > { %v4164_v33 = vpop.eup %4163 }
0x1ec1   : > { %v3408_v19 = vmul.f32 %v4164_v33, %v3406_v36  ;;  %vm3414_vm2 = vweird.f32 %v4164_v33 }
0x1ec2   : > { %vm3415_vm8 = vmor %vm3413_vm3, %vm3414_vm2 }
0x1ec3   : > { %v3409_v28 = vmul.f32 %v4164_v33, %v3408_v19 }
0x1ec5   : > { %v3410_v40 = vmul.f32 0.5, %v3409_v28 }
0x1ec7   : > { %v3411_v46 = vsub.f32 1.5, %v3410_v40 }
0x1ec9   : > { %v3412_v22 = vmul.f32 %v4164_v33, %v3411_v46 }
0x1ecb   : > { %v3416_v5 = vsel %vm3415_vm8, %v4164_v33, %v3412_v22 }
0x1ecc   : > { %v3417_v43 = vmul.f32 %v3416_v5, %v3400_v29 }
0x1ece   : > { %v3419_v39 = vmul.f32 %v4075_v4, %v3417_v43 }
0x1ed0   : > { %v3421_v51 = vadd.f32 %v4076_v53, %v3419_v39 }
0x1ed2   : > { %3422 = vst.msk [vmem:[%s720_s6] sm:$0xff] %vm836_vm0, %v3421_v51 }
0x1ed3   : > { %4219 = shalt.err (!%p4216_p3)
}
0x1ed4   : > { %4009 = dma.vmem_to_hbm [thread:$0]  (%p4412_p5), %s3455_s2, 128, %s3457_s1, %s3432_s16  }
0x1ed5 PF: > { %s5557_s3 = sld [smem:[#allocation8_spill]] }
0x1ed6   : > { %s5558_s26 = sld [smem:[#allocation5_spill]] }
0x1edb   : > { %p4015_p4 = scmp.ge.s32.totalorder %s5557_s3, 2 }
0x1edc   : > { %s3474_s7 = sand.u32 1, %s5558_s26  }
0x1edd   : > { %p4012_p7 = pnand %p4015_p4, %p4416_p6  ;;  %s3475_s0 = scalar_lea.sflag [#allocation3], %s3474_s7 }
0x1edf   : > { %p4013_p8 = pneg %p4012_p7 }
0x1ee1   : > { %4237 = dma.done.wait (%p4013_p8), %s3475_s0, 128  }
0x1ee2   : > { %4239 = vsyncadd (%p4013_p8), %s3475_s0, 4294967168  ;;  %s5560_s30 = sld [smem:[#allocation10_spill]] }
0x1ee3   : > { %s5561_s3 = sld [smem:[#allocation6_spill]] }
0x1ee4   : > { %s5562_s28 = sld [smem:[#allocation7_spill]] }
0x1ee5   : > { %s5563_s29 = sld [smem:[#allocation11_spill]] }
0x1ee8   : > { %p33_p9 = scmp.ge.s32.totalorder %s5560_s30, 4  }
0x1eea   :  { %35 = sbr.rel (!%p33_p9) target bundleno = 17 (0x11), region = 187 }
0x1eef   :  { %3497 = vsyncpa [#allocation3], 1 }
0x1ef0   :  { %3499 = vsyncpa [#allocation3 + $0x1], 1 }

</bundles_post_ra>
